<compile_context>
chip_gen: v5e
topology: v5e:2x2
jax: 0.10.0
libtpu: 0.0.40
codegen_flags: <defaults>
</compile_context>

<pallas_src>
import functools
from math import pi as PI

import jax
import jax.numpy as jnp
import numpy as np
from jax.experimental import pallas as pl
from jax.experimental.pallas import tpu as pltpu

F32 = jnp.float32
ACT_DTYPE = jnp.bfloat16      # streamed inter-kernel activations
EPS = 1e-6                    # VNLeakyReLU epsilon
VN_NEG_SLOPE = 0.2            # VNLeakyReLU negative slope
SCA_NEG_SLOPE = 0.01          # nn.LeakyReLU default negative slope
LN_EPS = 1e-5                 # nn.LayerNorm default eps

MAX_ROW_TILE = 1024           # node / edge row tile upper bound (lane axis)
SCATTER_TILE_E = 256          # edge tile inside the scatter (keeps one-hot small)
SCATTER_MAX_TILE_N = 1024     # node tile inside the scatter (cuts msg re-reads)

_PAR1 = pltpu.CompilerParams(dimension_semantics=("parallel",))


# ---------------------------------------------------------------------------
# small helpers
# ---------------------------------------------------------------------------
def _dot(a, b):
    # DEFAULT matmul precision (single-pass MXU); the block tolerance is ~5e-2.
    return jnp.dot(a, b, preferred_element_type=jnp.float32)


def _round_up(x, m):
    return (x + m - 1) // m * m


def _choose_tile(n_rows, max_tile=MAX_ROW_TILE):
    """Pad rows to a multiple of 256 and pick a lane tile (multiple of 128).
    Prefers >= 2 grid steps so dual-TC chips (v7x) get work on the parallel axis."""
    n_pad = _round_up(max(n_rows, 1), 256)
    for t in (max_tile, 768, 512, 256):
        if t < n_pad and n_pad % t == 0:
            return t, n_pad
    return n_pad, n_pad


def _scatter_n_tile(n_pad, max_tile=SCATTER_MAX_TILE_N):
    """Largest node tile (multiple of 128) dividing n_pad, capped at n_pad/2 when possible."""
    cap = n_pad // 2 if n_pad >= 512 else n_pad
    cap = min(max_tile, max(cap, 128))
    t = cap - (cap % 128) if (cap % 128) else cap
    while n_pad % t != 0:
        t -= 128
    return t


def _const1(shape):
    """Full-array block, constant index map (weights stay VMEM-resident), 1-D grid."""
    n = len(shape)
    return pl.BlockSpec(tuple(shape), lambda i, _n=n: (0,) * _n)


def _lane1(lead, tile):
    """Block (lead..., tile) over array (lead..., M_pad), tiled along the last (lane) dim."""
    n = len(lead)
    return pl.BlockSpec(tuple(lead) + (tile,), lambda i, _n=n: (0,) * _n + (i,))


# ---------------------------------------------------------------------------
# in-kernel building blocks (CT layout: (channels, rows), vectors as 3-lists)
# ---------------------------------------------------------------------------
def _dot3(wt, x3):
    """Apply one weight to all 3 vector components with a single wide MXU pass."""
    t = x3[0].shape[-1]
    xw = jnp.concatenate(x3, axis=-1)          # (in, 3T), lane concat (aligned to 128)
    yw = _dot(wt, xw)                          # (out, 3T)
    return [yw[:, k * t:(k + 1) * t] for k in range(3)]


def _gvlinear_ct(sca, vec3, w):
    """GVLinear: VNLinear -> norm -> Linear([vnorm; sca]) -> VNLinear2 -> sigmoid gate."""
    wv1t, wv2t, wst, wgt, bg = w
    v = _dot3(wv1t, vec3)                                         # (H, T) x3
    vnorm = jnp.sqrt(v[0] * v[0] + v[1] * v[1] + v[2] * v[2])     # (H, T)
    out_s = _dot(wst, jnp.concatenate([vnorm, sca], axis=0))      # (out_s, T)
    gate = jax.nn.sigmoid(_dot(wgt, out_s) + bg)                  # (out_v, T)
    ov = _dot3(wv2t, v)
    out_v = [gate * ok for ok in ov]                              # (out_v, T) x3
    return out_s, out_v


def _vnleaky_ct(x3, wdirt):
    """VNLeakyReLU on a vector channel given map_to_dir weight (out, in)."""
    d = _dot3(wdirt, x3)
    dotp = x3[0] * d[0] + x3[1] * d[1] + x3[2] * d[2]
    dns = d[0] * d[0] + d[1] * d[1] + d[2] * d[2]
    mask = (dotp >= 0).astype(F32)
    coef = dotp * pl.reciprocal(dns + EPS, approx=True)           # EUP slot
    a = VN_NEG_SLOPE
    return [a * xk + (1 - a) * (mask * xk + (1 - mask) * (xk - coef * dk))
            for xk, dk in zip(x3, d)]


def _leaky_sca(x):
    return jnp.where(x >= 0, x, SCA_NEG_SLOPE * x)


# ---------------------------------------------------------------------------
# Pallas kernels
# ---------------------------------------------------------------------------
def node_gvl_kernel(sca_ref, vec_ref, wv1t_ref, wv2t_ref, wst_ref, wgt_ref, bg_ref,
                    osca_ref, ovec_ref):
    """MessageModule node-branch GVLinear over a node tile."""
    vec3 = [vec_ref[k] for k in range(3)]
    o_s, o_v = _gvlinear_ct(
        sca_ref[...], vec3,
        (wv1t_ref[...], wv2t_ref[...], wst_ref[...], wgt_ref[...], bg_ref[...]))
    osca_ref[...] = o_s.astype(osca_ref.dtype)
    for k in range(3):
        ovec_ref[k] = o_v[k].astype(ovec_ref.dtype)


def edge_message_kernel(evt_ref, eft_ref, nsca_ref, nvec_ref, valid_ref,
                        off_ref, wexp_ref,
                        egv1t_ref, egv2t_ref, egst_ref, eggt_ref, egbg_ref,
                        ewdirt_ref,
                        wset_ref, bset_ref, wn2et_ref, bn2e_ref, wevnt_ref,
                        mv1t_ref, mv2t_ref, mst_ref, mgt_ref, mbg_ref,
                        msg_ref, *, coeff, cutoff, hs, hv):
    """Fused: distance / Gaussian smearing / EdgeExpansion + edge GVPerceptronVN +
    message combine + out GVLinear + cosine-cutoff annealing (+ padding mask)."""
    # ---- edge featurization ----
    ev = [evt_ref[k] for k in range(3)]                              # (1, T)
    dist = jnp.sqrt(ev[0] * ev[0] + ev[1] * ev[1] + ev[2] * ev[2])   # (1, T)
    diff = dist - off_ref[...]                                       # (G_pad, T)
    gau = jnp.exp(coeff * diff * diff)                               # (G_pad, T)
    inv_d = pl.reciprocal(dist + 1e-7, approx=True)
    nrm = [e * inv_d for e in ev]                                    # (1, T)
    wexp = wexp_ref[...]                                             # (ec, 1)
    evf = [wexp * n for n in nrm]                                    # (ec, T)  EdgeExpansion
    # ---- edge GVLinear (scalar input [vnorm ; gau ; edge_feature], one merged weight) ----
    v = _dot3(egv1t_ref[...], evf)                                   # (ec, T) x3
    vnorm = jnp.sqrt(v[0] * v[0] + v[1] * v[1] + v[2] * v[2])
    s_in = jnp.concatenate([vnorm, gau, eft_ref[...]], axis=0)       # (ec+G_pad+net, T)
    e_sca = _dot(egst_ref[...], s_in)                                # (ec, T)
    gate = jax.nn.sigmoid(_dot(eggt_ref[...], e_sca) + egbg_ref[...])
    ev2 = _dot3(egv2t_ref[...], v)
    e_vec = [gate * vk for vk in ev2]
    # ---- GVPerceptronVN activations ----
    e_vec = _vnleaky_ct(e_vec, ewdirt_ref[...])
    e_sca = _leaky_sca(e_sca)
    # ---- message combine (sca_linear and e2n_linear stacked into one dot) ----
    nsca = nsca_ref[...].astype(F32)
    nvec = [nvec_ref[k].astype(F32) for k in range(3)]
    se = _dot(wset_ref[...], e_sca) + bset_ref[...]                  # (hs+hv, T)
    y_sca = nsca * se[0:hs, :]
    g_e2n = se[hs:hs + hv, :]
    g_n2e = _dot(wn2et_ref[...], nsca) + bn2e_ref[...]
    evn = _dot3(wevnt_ref[...], e_vec)
    y_vec = [g_e2n * nvec[k] + g_n2e * evn[k] for k in range(3)]
    # ---- out GVLinear ----
    m_sca, m_vec = _gvlinear_ct(
        y_sca, y_vec,
        (mv1t_ref[...], mv2t_ref[...], mst_ref[...], mgt_ref[...], mbg_ref[...]))
    # ---- annealing + padded-edge mask (padded edges contribute exactly zero) ----
    c = 0.5 * (jnp.cos(dist * (PI / cutoff)) + 1.0)
    c = c * (dist <= cutoff).astype(F32) * valid_ref[...]
    msg = jnp.concatenate([m_sca * c] + [mv * c for mv in m_vec], axis=0)
    msg_ref[...] = msg.astype(msg_ref.dtype)


def scatter_kernel(row_ref, msg_ref, aggr_ref, *, tn):
    """scatter_sum over destination nodes. One-hot selection built in-kernel from
    int32 row indices; E axis is the last ('arbitrary') reduction grid axis."""
    e = pl.program_id(1)

    @pl.when(e == 0)
    def _():
        aggr_ref[...] = jnp.zeros_like(aggr_ref)

    te = row_ref.shape[0]
    n_base = pl.program_id(0) * tn
    lane_ids = jax.lax.broadcasted_iota(jnp.int32, (te, tn), 1) + n_base
    sel = (row_ref[...] == lane_ids).astype(msg_ref.dtype)           # (te, tn)
    aggr_ref[...] += _dot(msg_ref[...], sel)                         # (C_all, tn) f32


def node_out_kernel(sca_ref, vec_ref, aggr_ref,
                    cv1t_ref, cv2t_ref, cst_ref, cgt_ref, cbg_ref,
                    wls_ref, bls_ref, wlv_ref, blv_ref,
                    awdirt_ref,
                    ov1t_ref, ov2t_ref, ost_ref, ogt_ref, obg_ref,
                    fsca_ref, fvec_ref, *, hs, hv):
    """Fused: centroid GVLinear + residual + LayerNorms + activations + out_transform."""
    vec3 = [vec_ref[k] for k in range(3)]
    c_sca, c_vec = _gvlinear_ct(
        sca_ref[...], vec3,
        (cv1t_ref[...], cv2t_ref[...], cst_ref[...], cgt_ref[...], cbg_ref[...]))
    aggr = aggr_ref[...]
    s = c_sca + aggr[0:hs, :]
    v = [c_vec[k] + aggr[hs + k * hv: hs + (k + 1) * hv, :] for k in range(3)]
    # LayerNorm over scalar channels (sublane axis)
    mu = jnp.sum(s, axis=0, keepdims=True) * (1.0 / hs)
    var = jnp.sum((s - mu) ** 2, axis=0, keepdims=True) * (1.0 / hs)
    s = (s - mu) * jax.lax.rsqrt(var + LN_EPS) * wls_ref[...] + bls_ref[...]
    # LayerNorm over (hv, 3)
    inv3 = 1.0 / (3.0 * hv)
    muv = jnp.sum(v[0] + v[1] + v[2], axis=0, keepdims=True) * inv3
    varv = jnp.sum((v[0] - muv) ** 2 + (v[1] - muv) ** 2 + (v[2] - muv) ** 2,
                   axis=0, keepdims=True) * inv3
    rinv = jax.lax.rsqrt(varv + LN_EPS)
    wlv = wlv_ref[...]
    blv = blv_ref[...]
    v = [(v[k] - muv) * rinv * wlv[k * hv:(k + 1) * hv, :] + blv[k * hv:(k + 1) * hv, :]
         for k in range(3)]
    # activations + output transform
    a_sca = _leaky_sca(s)
    a_vec = _vnleaky_ct(v, awdirt_ref[...])
    f_sca, f_vec = _gvlinear_ct(
        a_sca, a_vec,
        (ov1t_ref[...], ov2t_ref[...], ost_ref[...], ogt_ref[...], obg_ref[...]))
    fsca_ref[...] = f_sca
    for k in range(3):
        fvec_ref[k] = f_vec[k]


# ---------------------------------------------------------------------------
# pallas_call wrappers
# ---------------------------------------------------------------------------
def node_gvl(wct, sca_t, vec_t, tile):
    hs_in, N_pad = sca_t.shape
    hv_in = vec_t.shape[1]
    out_s = wct['wst'].shape[0]
    out_v = wct['wv2t'].shape[0]
    consts = [wct['wv1t'], wct['wv2t'], wct['wst'], wct['wgt'], wct['bg']]
    return pl.pallas_call(
        node_gvl_kernel,
        grid=(N_pad // tile,),
        in_specs=[_lane1((hs_in,), tile), _lane1((3, hv_in), tile)]
                 + [_const1(a.shape) for a in consts],
        out_specs=(_lane1((out_s,), tile), _lane1((3, out_v), tile)),
        out_shape=(jax.ShapeDtypeStruct((out_s, N_pad), ACT_DTYPE),
                   jax.ShapeDtypeStruct((3, out_v, N_pad), ACT_DTYPE)),
        compiler_params=_PAR1,
    )(sca_t, vec_t, *consts)


def edge_message(ct, evt, eft, nsca_e, nvec_e, valid, tile, *, hs, hv, coeff, cutoff):
    E_pad = evt.shape[2]
    net = eft.shape[0]
    eg = ct['edge_gvl']
    mo = ct['msg_out_gvl']
    consts = [ct['offsets_pad'], ct['wexp'],
              eg['wv1t'], eg['wv2t'], eg['wst_pad'], eg['wgt'], eg['bg'],
              ct['edge_wdirt'],
              ct['wset'], ct['bset'], ct['wn2et'], ct['bn2e'], ct['wevnt'],
              mo['wv1t'], mo['wv2t'], mo['wst'], mo['wgt'], mo['bg']]
    data = [evt, eft, nsca_e, nvec_e, valid]
    data_specs = [_lane1((3, 1), tile), _lane1((net,), tile),
                  _lane1((hs,), tile), _lane1((3, hv), tile), _lane1((1,), tile)]
    c_all = hs + 3 * hv
    kern = functools.partial(edge_message_kernel, coeff=coeff, cutoff=cutoff, hs=hs, hv=hv)
    return pl.pallas_call(
        kern,
        grid=(E_pad // tile,),
        in_specs=data_specs + [_const1(a.shape) for a in consts],
        out_specs=_lane1((c_all,), tile),
        out_shape=jax.ShapeDtypeStruct((c_all, E_pad), ACT_DTYPE),
        compiler_params=_PAR1,
    )(*data, *consts)


def scatter_messages(row_col, msg_all, N_pad, tn, te):
    c_all, E_pad = msg_all.shape
    kern = functools.partial(scatter_kernel, tn=tn)
    return pl.pallas_call(
        kern,
        grid=(N_pad // tn, E_pad // te),
        in_specs=[pl.BlockSpec((te, 1), lambda n, e: (e, 0)),
                  pl.BlockSpec((c_all, te), lambda n, e: (0, e))],
        out_specs=pl.BlockSpec((c_all, tn), lambda n, e: (0, n)),
        out_shape=jax.ShapeDtypeStruct((c_all, N_pad), F32),
        compiler_params=pltpu.CompilerParams(
            dimension_semantics=("parallel", "arbitrary")),
    )(row_col, msg_all)


def node_out(ct, sca_t, vec_t, aggr_all, tile, *, hs, hv):
    N_pad = sca_t.shape[1]
    cg = ct['centroid_gvl']
    og = ct['out_gvl']
    consts = [cg['wv1t'], cg['wv2t'], cg['wst'], cg['wgt'], cg['bg'],
              ct['ln_sca_w'], ct['ln_sca_b'], ct['ln_vec_w'], ct['ln_vec_b'],
              ct['act_wdirt'],
              og['wv1t'], og['wv2t'], og['wst'], og['wgt'], og['bg']]
    c_all = hs + 3 * hv
    kern = functools.partial(node_out_kernel, hs=hs, hv=hv)
    return pl.pallas_call(
        kern,
        grid=(N_pad // tile,),
        in_specs=[_lane1((hs,), tile), _lane1((3, hv), tile), _lane1((c_all,), tile)]
                 + [_const1(a.shape) for a in consts],
        out_specs=(_lane1((hs,), tile), _lane1((3, hv), tile)),
        out_shape=(jax.ShapeDtypeStruct((hs, N_pad), F32),
                   jax.ShapeDtypeStruct((3, hv, N_pad), F32)),
        compiler_params=_PAR1,
    )(sca_t, vec_t, aggr_all, *consts)


# ---------------------------------------------------------------------------
# parameters
# ---------------------------------------------------------------------------
def _linear_w(key, fin, fout):
    return (jax.random.normal(key, (fin, fout), F32) / np.sqrt(fin)).astype(F32)


def _linear_b(key, fout):
    return (0.1 * jax.random.normal(key, (fout,), F32)).astype(F32)


def init_gvlinear_params(key, in_s, in_v, out_s, out_v):
    H = max(in_v, out_v)
    k = jax.random.split(key, 5)
    return dict(
        wv1=_linear_w(k[0], in_v, H),          # VNLinear(in_v -> H), no bias
        wv2=_linear_w(k[1], H, out_v),         # VNLinear(H -> out_v), no bias
        ws=_linear_w(k[2], H + in_s, out_s),   # Linear(H+in_s -> out_s), no bias
        wg=_linear_w(k[3], out_s, out_v),      # scalar_to_vector_gates
        bg=_linear_b(k[4], out_v),
    )


def init_params(key, hidden_channels, edge_channels, num_edge_types, cutoff):
    hs, hv = hidden_channels
    ec = edge_channels
    G = ec - num_edge_types
    keys = jax.random.split(key, 16)
    offsets_np = np.linspace(0.0, cutoff, G).astype(np.float32)
    coeff = float(-0.5 / float(offsets_np[1] - offsets_np[0]) ** 2)   # Python float (static)
    kl = jax.random.split(keys[15], 4)
    return dict(
        offsets=jnp.asarray(offsets_np),
        coeff=coeff,
        wexp=_linear_w(keys[0], 1, ec).reshape(ec),                   # EdgeExpansion Linear(1, ec)
        msg_node_gvl=init_gvlinear_params(keys[1], hs, hv, hs, hv),
        msg_edge_gvl=init_gvlinear_params(keys[2], ec, ec, ec, ec),
        msg_edge_act_wdir=_linear_w(keys[3], ec, ec),                 # VNLeakyReLU map_to_dir
        msg_sca=dict(wsca=_linear_w(keys[4], ec, hs), bsca=_linear_b(keys[5], hs),
                     we2n=_linear_w(keys[6], ec, hv), be2n=_linear_b(keys[7], hv),
                     wn2e=_linear_w(keys[8], hs, hv), bn2e=_linear_b(keys[9], hv),
                     wevn=_linear_w(keys[10], ec, hv)),
        msg_out_gvl=init_gvlinear_params(keys[11], hs, hv, hs, hv),
        centroid=init_gvlinear_params(keys[12], hs, hv, hs, hv),
        act_vec_wdir=_linear_w(keys[13], hv, hv),
        out_transform=init_gvlinear_params(keys[14], hs, hv, hs, hv),
        ln_sca_w=1.0 + 0.1 * jax.random.normal(kl[0], (hs,), F32),
        ln_sca_b=0.1 * jax.random.normal(kl[1], (hs,), F32),
        ln_vec_w=1.0 + 0.1 * jax.random.normal(kl[2], (hv, 3), F32),
        ln_vec_b=0.1 * jax.random.normal(kl[3], (hv, 3), F32),
    )


def _gvl_ct(p):
    """GVLinear params in the (out, in) orientation used in-kernel (scalar weight kept merged)."""
    return dict(wv1t=p['wv1'].T, wv2t=p['wv2'].T, wst=p['ws'].T,
                wgt=p['wg'].T, bg=p['bg'].reshape(-1, 1))


def prepare_ct_params(params):
    """One-time (init-time) weight transposition / merging for the kernels."""
    eg = params['msg_edge_gvl']
    ec = eg['wv1'].shape[0]
    H_e = eg['wv1'].shape[1]
    G = params['offsets'].shape[0]
    net = eg['ws'].shape[0] - H_e - G
    G_pad = _round_up(G, 8)                      # align the sublane concat [vnorm; gau; eft]
    wsT = eg['ws'].T                             # (ec, H_e + G + net), rows [vnorm; gau; eft]
    wst_pad = jnp.concatenate(
        [wsT[:, :H_e + G], jnp.zeros((wsT.shape[0], G_pad - G), F32), wsT[:, H_e + G:]],
        axis=1)
    offsets_pad = jnp.concatenate(
        [params['offsets'],
         jnp.full((G_pad - G,), params['offsets'][-1], F32)]).reshape(-1, 1)
    pm = params['msg_sca']
    return dict(
        offsets_pad=offsets_pad,
        wexp=params['wexp'].reshape(-1, 1),
        node_gvl=_gvl_ct(params['msg_node_gvl']),
        edge_gvl=dict(wv1t=eg['wv1'].T, wv2t=eg['wv2'].T, wst_pad=wst_pad,
                      wgt=eg['wg'].T, bg=eg['bg'].reshape(-1, 1)),
        edge_wdirt=params['msg_edge_act_wdir'].T,
        wset=jnp.concatenate([pm['wsca'].T, pm['we2n'].T], axis=0),      # (hs+hv, ec)
        bset=jnp.concatenate([pm['bsca'], pm['be2n']], axis=0).reshape(-1, 1),
        wn2et=pm['wn2e'].T, bn2e=pm['bn2e'].reshape(-1, 1),
        wevnt=pm['wevn'].T,
        msg_out_gvl=_gvl_ct(params['msg_out_gvl']),
        centroid_gvl=_gvl_ct(params['centroid']),
        ln_sca_w=params['ln_sca_w'].reshape(-1, 1),
        ln_sca_b=params['ln_sca_b'].reshape(-1, 1),
        ln_vec_w=params['ln_vec_w'].T.reshape(-1, 1),   # row k*hv + c  <-  w[c, k]
        ln_vec_b=params['ln_vec_b'].T.reshape(-1, 1),
        act_wdirt=params['act_vec_wdir'].T,
        out_gvl=_gvl_ct(params['out_transform']),
    )


# ---------------------------------------------------------------------------
# full forward pass (Pallas kernels + plain-JAX layout/gather glue)
# ---------------------------------------------------------------------------
def attention_interaction_block_vn(ct, x, edge_index, edge_feature, edge_vector,
                                   *, coeff, cutoff):
    scalar, vector_pt = x                        # (N, hs), (N, hv, 3) PyTorch layout
    N, hs = scalar.shape
    hv = vector_pt.shape[1]
    E = edge_vector.shape[0]
    net = edge_feature.shape[1]

    tile_n, N_pad = _choose_tile(N)
    tile_e, E_pad = _choose_tile(E)
    tn_sc = _scatter_n_tile(N_pad)

    # ---- CT layout + row padding (layout plumbing stays in XLA; for stacked blocks keep
    #      activations in CT layout between layers to avoid this round trip) ----
    sca_t = jnp.zeros((hs, N_pad), F32).at[:, :N].set(scalar.T)
    vec_t = jnp.zeros((3, hv, N_pad), F32).at[:, :, :N].set(
        jnp.transpose(vector_pt, (2, 1, 0)))
    evt = jnp.zeros((3, 1, E_pad), F32).at[:, 0, :E].set(edge_vector.T)
    eft = jnp.zeros((net, E_pad), F32).at[:, :E].set(edge_feature.T)
    row = edge_index[0].astype(jnp.int32)
    col = edge_index[1].astype(jnp.int32)
    row_col = jnp.full((E_pad, 1), -1, jnp.int32).at[:E, 0].set(row)   # -1: never scattered
    col_pad = jnp.zeros((E_pad,), jnp.int32).at[:E].set(col)
    valid = (jnp.arange(E_pad) < E).astype(F32).reshape(1, E_pad)

    # 1) MessageModule node-branch GVLinear (per node tile), bf16 streamed outputs
    nsca_all, nvec_all = node_gvl(ct['node_gvl'], sca_t, vec_t, tile_n)
    # per-edge gather of source-node features (data-dependent index -> XLA glue, bf16)
    nsca_e = nsca_all[:, col_pad]
    nvec_e = nvec_all[:, :, col_pad]

    # 2) fused edge featurization + edge GVP + message combine + out GVL + annealing
    msg_all = edge_message(ct, evt, eft, nsca_e, nvec_e, valid, tile_e,
                           hs=hs, hv=hv, coeff=coeff, cutoff=cutoff)

    # 3) scatter-sum to destination nodes (one-hot built in-kernel, E axis reduced)
    aggr_all = scatter_messages(row_col, msg_all, N_pad, tn_sc, SCATTER_TILE_E)

    # 4) fused centroid + residual + LayerNorms + activations + out_transform
    f_sca_t, f_vec_t = node_out(ct, sca_t, vec_t, aggr_all, tile_n, hs=hs, hv=hv)

    f_sca = f_sca_t[:, :N].T                               # (N, hs)
    f_vec = jnp.transpose(f_vec_t[:, :, :N], (2, 1, 0))    # (N, hv, 3)
    return f_sca, f_vec


# ---------------------------------------------------------------------------
# pure-JAX reference (PyTorch layout) for correctness check
# ---------------------------------------------------------------------------
def _leaky(x, slope):
    return jnp.where(x >= 0, x, slope * x)


def ref_gvlinear(p, sca, vec):                 # vec: (M, Cin, 3)
    vinter = jnp.einsum('mck,ch->mhk', vec, p['wv1'])
    vnorm = jnp.sqrt(jnp.sum(vinter ** 2, axis=-1))
    out_sca = jnp.concatenate([vnorm, sca], axis=-1) @ p['ws']
    out_vec = jnp.einsum('mhk,ho->mok', vinter, p['wv2'])
    gate = jax.nn.sigmoid(out_sca @ p['wg'] + p['bg'])
    return out_sca, gate[:, :, None] * out_vec


def ref_vnleaky(wdir, vec):                    # vec: (M, C, 3)
    d = jnp.einsum('mck,cd->mdk', vec, wdir)
    dot = jnp.sum(vec * d, axis=-1, keepdims=True)
    mask = (dot >= 0).astype(F32)
    dns = jnp.sum(d * d, axis=-1, keepdims=True)
    a = VN_NEG_SLOPE
    return a * vec + (1 - a) * (mask * vec + (1 - mask) * (vec - (dot / (dns + EPS)) * d))


def ref_forward(params, x, edge_index, edge_feature, edge_vector, cutoff=10.0):
    scalar, vector = x
    N = scalar.shape[0]
    row, col = edge_index[0], edge_index[1]
    dist = jnp.linalg.norm(edge_vector, axis=-1)
    gau = jnp.exp(params['coeff'] * (dist[:, None] - params['offsets'][None, :]) ** 2)
    edge_sca_feat = jnp.concatenate([gau, edge_feature], axis=-1)
    nrm = edge_vector / (dist[:, None] + 1e-7)
    edge_vec_feat = nrm[:, None, :] * params['wexp'][None, :, None]    # (E, ec, 3)

    n_sca, n_vec = ref_gvlinear(params['msg_node_gvl'], scalar, vector)
    n_sca, n_vec = n_sca[col], n_vec[col]
    e_sca, e_vec = ref_gvlinear(params['msg_edge_gvl'], edge_sca_feat, edge_vec_feat)
    e_vec = ref_vnleaky(params['msg_edge_act_wdir'], e_vec)
    e_sca = _leaky(e_sca, SCA_NEG_SLOPE)
    pm = params['msg_sca']
    y_sca = n_sca * (e_sca @ pm['wsca'] + pm['bsca'])
    y_vec = ((e_sca @ pm['we2n'] + pm['be2n'])[:, :, None] * n_vec
             + (n_sca @ pm['wn2e'] + pm['bn2e'])[:, :, None]
             * jnp.einsum('mck,co->mok', e_vec, pm['wevn']))
    m_sca, m_vec = ref_gvlinear(params['msg_out_gvl'], y_sca, y_vec)
    C = 0.5 * (jnp.cos(dist * PI / cutoff) + 1.0)
    C = C * (dist <= cutoff).astype(F32) * (dist >= 0.0).astype(F32)
    m_sca = m_sca * C[:, None]
    m_vec = m_vec * C[:, None, None]
    aggr_sca = jax.ops.segment_sum(m_sca, row, num_segments=N)
    aggr_vec = jax.ops.segment_sum(m_vec, row, num_segments=N)

    c_sca, c_vec = ref_gvlinear(params['centroid'], scalar, vector)
    out_sca = c_sca + aggr_sca
    out_vec = c_vec + aggr_vec
    mu = jnp.mean(out_sca, axis=-1, keepdims=True)
    var = jnp.mean((out_sca - mu) ** 2, axis=-1, keepdims=True)
    out_sca = (out_sca - mu) / jnp.sqrt(var + LN_EPS) * params['ln_sca_w'] + params['ln_sca_b']
    muv = jnp.mean(out_vec, axis=(1, 2), keepdims=True)
    varv = jnp.mean((out_vec - muv) ** 2, axis=(1, 2), keepdims=True)
    out_vec = ((out_vec - muv) / jnp.sqrt(varv + LN_EPS)
               * params['ln_vec_w'][None] + params['ln_vec_b'][None])

    a_sca = _leaky(out_sca, SCA_NEG_SLOPE)
    a_vec = ref_vnleaky(params['act_vec_wdir'], out_vec)
    return ref_gvlinear(params['out_transform'], a_sca, a_vec)


# ---------------------------------------------------------------------------
if __name__ == "__main__":
    hidden_channels = (32, 16)     # (scalar feat, vector feat)
    edge_channels = 16
    num_edge_types = 4
    key_channels = 32              # unused in forward (as in the PyTorch module)
    num_heads = 2                  # unused in forward
    cutoff = 10.0
    N, E = 16, 32

    key = jax.random.PRNGKey(0)
    kp, kx, kv, ke, kef, kev = jax.random.split(key, 6)
    params = init_params(kp, hidden_channels, edge_channels, num_edge_types, cutoff)
    ct = prepare_ct_params(params)          # one-time weight transposition / merging

    x_sca = jax.random.normal(kx, (N, hidden_channels[0]), F32)
    x_vec = jax.random.normal(kv, (N, hidden_channels[1], 3), F32)
    edge_index = jax.random.randint(ke, (2, E), 0, N, dtype=jnp.int32)
    edge_feature = jax.random.normal(kef, (E, num_edge_types), F32)
    edge_vector = 3.0 * jax.random.normal(kev, (E, 3), F32)

    forward = jax.jit(functools.partial(
        attention_interaction_block_vn, coeff=params['coeff'], cutoff=cutoff))

    out_sca, out_vec = forward(ct, (x_sca, x_vec), edge_index, edge_feature, edge_vector)
    out_sca, out_vec = jax.block_until_ready((out_sca, out_vec))

    ref_sca, ref_vec = ref_forward(
        params, (x_sca, x_vec), edge_index, edge_feature, edge_vector, cutoff)
    ref_sca, ref_vec = jax.block_until_ready((ref_sca, ref_vec))

    def _mixed_err(a, b):
        return float(jnp.max(jnp.abs(a - b) / (1.0 + jnp.abs(b))))

    err_s = _mixed_err(out_sca, ref_sca)
    err_v = _mixed_err(out_vec, ref_vec)
    assert err_s < 5e-2 and err_v < 5e-2, (err_s, err_v)
    print("KERNEL_OK")
</pallas_src>

<mosaic_0001>
module attributes {stable_mosaic.version = 11 : i64} {
  func.func @node_gvl_kernel(%arg0: i32, %arg1: memref<32x256xf32, #tpu.memory_space<vmem>>, %arg2: memref<3x16x256xf32, #tpu.memory_space<vmem>>, %arg3: memref<16x16xf32, #tpu.memory_space<vmem>>, %arg4: memref<16x16xf32, #tpu.memory_space<vmem>>, %arg5: memref<32x48xf32, #tpu.memory_space<vmem>>, %arg6: memref<16x32xf32, #tpu.memory_space<vmem>>, %arg7: memref<16x1xf32, #tpu.memory_space<vmem>>, %arg8: memref<32x256xbf16, #tpu.memory_space<vmem>>, %arg9: memref<3x16x256xbf16, #tpu.memory_space<vmem>>) attributes {dimension_semantics = [#tpu.dimension_semantics<parallel>], iteration_bounds = array<i64: 1>, scalar_prefetch = 0 : i64, scratch_operands = 0 : i64, tpu.core_type = #tpu.core_type<tc>, window_params = [{transform_indices = @transform_0, window_bounds = array<i64: 32, 256>}, {transform_indices = @transform_1, window_bounds = array<i64: 3, 16, 256>}, {pipeline_mode = #tpu.pipeline_mode<synchronous>, transform_indices = @transform_2, window_bounds = array<i64: 16, 16>}, {pipeline_mode = #tpu.pipeline_mode<synchronous>, transform_indices = @transform_3, window_bounds = array<i64: 16, 16>}, {pipeline_mode = #tpu.pipeline_mode<synchronous>, transform_indices = @transform_4, window_bounds = array<i64: 32, 48>}, {pipeline_mode = #tpu.pipeline_mode<synchronous>, transform_indices = @transform_5, window_bounds = array<i64: 16, 32>}, {pipeline_mode = #tpu.pipeline_mode<synchronous>, transform_indices = @transform_6, window_bounds = array<i64: 16, 1>}, {transform_indices = @transform_7, window_bounds = array<i64: 32, 256>}, {transform_indices = @transform_8, window_bounds = array<i64: 3, 16, 256>}]} {
    %c0 = arith.constant 0 : index
    %c0_0 = arith.constant 0 : index
    %c0_1 = arith.constant 0 : index
    %0 = vector.load %arg2[%c0, %c0_0, %c0_1] : memref<3x16x256xf32, #tpu.memory_space<vmem>>, vector<1x16x256xf32>
    %1 = vector.shape_cast %0 : vector<1x16x256xf32> to vector<16x256xf32>
    %c1 = arith.constant 1 : index
    %c0_2 = arith.constant 0 : index
    %c0_3 = arith.constant 0 : index
    %2 = vector.load %arg2[%c1, %c0_2, %c0_3] : memref<3x16x256xf32, #tpu.memory_space<vmem>>, vector<1x16x256xf32>
    %3 = vector.shape_cast %2 : vector<1x16x256xf32> to vector<16x256xf32>
    %c2 = arith.constant 2 : index
    %c0_4 = arith.constant 0 : index
    %c0_5 = arith.constant 0 : index
    %4 = vector.load %arg2[%c2, %c0_4, %c0_5] : memref<3x16x256xf32, #tpu.memory_space<vmem>>, vector<1x16x256xf32>
    %5 = vector.shape_cast %4 : vector<1x16x256xf32> to vector<16x256xf32>
    %c0_6 = arith.constant 0 : index
    %c0_7 = arith.constant 0 : index
    %6 = vector.load %arg1[%c0_6, %c0_7] : memref<32x256xf32, #tpu.memory_space<vmem>>, vector<32x256xf32>
    %c0_8 = arith.constant 0 : index
    %c0_9 = arith.constant 0 : index
    %7 = vector.load %arg3[%c0_8, %c0_9] : memref<16x16xf32, #tpu.memory_space<vmem>>, vector<16x16xf32>
    %c0_10 = arith.constant 0 : index
    %c0_11 = arith.constant 0 : index
    %8 = vector.load %arg4[%c0_10, %c0_11] : memref<16x16xf32, #tpu.memory_space<vmem>>, vector<16x16xf32>
    %c0_12 = arith.constant 0 : index
    %c0_13 = arith.constant 0 : index
    %9 = vector.load %arg5[%c0_12, %c0_13] : memref<32x48xf32, #tpu.memory_space<vmem>>, vector<32x48xf32>
    %c0_14 = arith.constant 0 : index
    %c0_15 = arith.constant 0 : index
    %10 = vector.load %arg6[%c0_14, %c0_15] : memref<16x32xf32, #tpu.memory_space<vmem>>, vector<16x32xf32>
    %c0_16 = arith.constant 0 : index
    %c0_17 = arith.constant 0 : index
    %11 = vector.load %arg7[%c0_16, %c0_17] : memref<16x1xf32, #tpu.memory_space<vmem>>, vector<16x1xf32>
    %12 = tpu.concatenate %1, %3, %5 in 1 : vector<16x256xf32>, vector<16x256xf32>, vector<16x256xf32> -> vector<16x768xf32>
    %cst = arith.constant dense<0.000000e+00> : vector<16x768xf32>
    %13 = tpu.matmul %7, %12, %cst {dimension_numbers = #tpu.dot_dimension_numbers<[1], [0], [0], [1], [0, 0, 1, 1], [], []>} : vector<16x16xf32>, vector<16x768xf32>, vector<16x768xf32> -> vector<16x768xf32>
    %14 = vector.extract_strided_slice %13 {offsets = [0, 0], sizes = [16, 256], strides = [1, 1]} : vector<16x768xf32> to vector<16x256xf32>
    %15 = vector.extract_strided_slice %13 {offsets = [0, 256], sizes = [16, 256], strides = [1, 1]} : vector<16x768xf32> to vector<16x256xf32>
    %16 = vector.extract_strided_slice %13 {offsets = [0, 512], sizes = [16, 256], strides = [1, 1]} : vector<16x768xf32> to vector<16x256xf32>
    %17 = arith.mulf %14, %14 : vector<16x256xf32>
    %18 = arith.mulf %15, %15 : vector<16x256xf32>
    %19 = arith.addf %17, %18 : vector<16x256xf32>
    %20 = arith.mulf %16, %16 : vector<16x256xf32>
    %21 = arith.addf %19, %20 : vector<16x256xf32>
    %22 = math.sqrt %21 : vector<16x256xf32>
    %23 = tpu.concatenate %22, %6 in 0 : vector<16x256xf32>, vector<32x256xf32> -> vector<48x256xf32>
    %cst_18 = arith.constant dense<0.000000e+00> : vector<32x256xf32>
    %24 = tpu.matmul %9, %23, %cst_18 {dimension_numbers = #tpu.dot_dimension_numbers<[1], [0], [0], [1], [0, 0, 1, 1], [], []>} : vector<32x48xf32>, vector<48x256xf32>, vector<32x256xf32> -> vector<32x256xf32>
    %cst_19 = arith.constant dense<0.000000e+00> : vector<16x256xf32>
    %25 = tpu.matmul %10, %24, %cst_19 {dimension_numbers = #tpu.dot_dimension_numbers<[1], [0], [0], [1], [0, 0, 1, 1], [], []>} : vector<16x32xf32>, vector<32x256xf32>, vector<16x256xf32> -> vector<16x256xf32>
    %26 = vector.broadcast %11 : vector<16x1xf32> to vector<16x256xf32>
    %27 = arith.addf %25, %26 : vector<16x256xf32>
    %28 = arith.negf %27 : vector<16x256xf32>
    %29 = math.exp %28 : vector<16x256xf32>
    %cst_20 = arith.constant 1.000000e+00 : f32
    %30 = vector.broadcast %cst_20 : f32 to vector<16x256xf32>
    %31 = arith.addf %30, %29 : vector<16x256xf32>
    %32 = arith.divf %30, %31 : vector<16x256xf32>
    %33 = tpu.concatenate %14, %15, %16 in 1 : vector<16x256xf32>, vector<16x256xf32>, vector<16x256xf32> -> vector<16x768xf32>
    %cst_21 = arith.constant dense<0.000000e+00> : vector<16x768xf32>
    %34 = tpu.matmul %8, %33, %cst_21 {dimension_numbers = #tpu.dot_dimension_numbers<[1], [0], [0], [1], [0, 0, 1, 1], [], []>} : vector<16x16xf32>, vector<16x768xf32>, vector<16x768xf32> -> vector<16x768xf32>
    %35 = vector.extract_strided_slice %34 {offsets = [0, 0], sizes = [16, 256], strides = [1, 1]} : vector<16x768xf32> to vector<16x256xf32>
    %36 = vector.extract_strided_slice %34 {offsets = [0, 256], sizes = [16, 256], strides = [1, 1]} : vector<16x768xf32> to vector<16x256xf32>
    %37 = vector.extract_strided_slice %34 {offsets = [0, 512], sizes = [16, 256], strides = [1, 1]} : vector<16x768xf32> to vector<16x256xf32>
    %38 = arith.mulf %32, %35 : vector<16x256xf32>
    %39 = arith.mulf %32, %36 : vector<16x256xf32>
    %40 = arith.mulf %32, %37 : vector<16x256xf32>
    %41 = arith.truncf %24 : vector<32x256xf32> to vector<32x256xbf16>
    %c0_22 = arith.constant 0 : index
    %c0_23 = arith.constant 0 : index
    %42 = vector.load %arg8[%c0_22, %c0_23] : memref<32x256xbf16, #tpu.memory_space<vmem>>, vector<32x256xbf16>
    tpu.vector_store %arg8[%c0_22, %c0_23], %41 {strides = array<i32>} : memref<32x256xbf16, #tpu.memory_space<vmem>>, vector<32x256xbf16>,
    %43 = arith.truncf %38 : vector<16x256xf32> to vector<16x256xbf16>
    %c0_24 = arith.constant 0 : index
    %c0_25 = arith.constant 0 : index
    %c0_26 = arith.constant 0 : index
    %44 = vector.load %arg9[%c0_24, %c0_25, %c0_26] : memref<3x16x256xbf16, #tpu.memory_space<vmem>>, vector<1x16x256xbf16>
    %45 = vector.shape_cast %44 : vector<1x16x256xbf16> to vector<16x256xbf16>
    %46 = vector.shape_cast %43 : vector<16x256xbf16> to vector<1x16x256xbf16>
    tpu.vector_store %arg9[%c0_24, %c0_25, %c0_26], %46 {strides = array<i32>} : memref<3x16x256xbf16, #tpu.memory_space<vmem>>, vector<1x16x256xbf16>,
    %47 = arith.truncf %39 : vector<16x256xf32> to vector<16x256xbf16>
    %c1_27 = arith.constant 1 : index
    %c0_28 = arith.constant 0 : index
    %c0_29 = arith.constant 0 : index
    %48 = vector.load %arg9[%c1_27, %c0_28, %c0_29] : memref<3x16x256xbf16, #tpu.memory_space<vmem>>, vector<1x16x256xbf16>
    %49 = vector.shape_cast %48 : vector<1x16x256xbf16> to vector<16x256xbf16>
    %50 = vector.shape_cast %47 : vector<16x256xbf16> to vector<1x16x256xbf16>
    tpu.vector_store %arg9[%c1_27, %c0_28, %c0_29], %50 {strides = array<i32>} : memref<3x16x256xbf16, #tpu.memory_space<vmem>>, vector<1x16x256xbf16>,
    %51 = arith.truncf %40 : vector<16x256xf32> to vector<16x256xbf16>
    %c2_30 = arith.constant 2 : index
    %c0_31 = arith.constant 0 : index
    %c0_32 = arith.constant 0 : index
    %52 = vector.load %arg9[%c2_30, %c0_31, %c0_32] : memref<3x16x256xbf16, #tpu.memory_space<vmem>>, vector<1x16x256xbf16>
    %53 = vector.shape_cast %52 : vector<1x16x256xbf16> to vector<16x256xbf16>
    %54 = vector.shape_cast %51 : vector<16x256xbf16> to vector<1x16x256xbf16>
    tpu.vector_store %arg9[%c2_30, %c0_31, %c0_32], %54 {strides = array<i32>} : memref<3x16x256xbf16, #tpu.memory_space<vmem>>, vector<1x16x256xbf16>,
    return
  }
  func.func @transform_0(%arg0: i32) -> (i32, i32) {
    %c0_i32 = arith.constant 0 : i32
    %c0_i32_0 = arith.constant 0 : i32
    return %c0_i32, %arg0 : i32, i32
  }
  func.func @transform_1(%arg0: i32) -> (i32, i32, i32) {
    %c0_i32 = arith.constant 0 : i32
    %c0_i32_0 = arith.constant 0 : i32
    %c0_i32_1 = arith.constant 0 : i32
    return %c0_i32, %c0_i32_0, %arg0 : i32, i32, i32
  }
  func.func @transform_2(%arg0: i32) -> (i32, i32) {
    %c0_i32 = arith.constant 0 : i32
    %c0_i32_0 = arith.constant 0 : i32
    %c0_i32_1 = arith.constant 0 : i32
    return %c0_i32, %c0_i32_0 : i32, i32
  }
  func.func @transform_3(%arg0: i32) -> (i32, i32) {
    %c0_i32 = arith.constant 0 : i32
    %c0_i32_0 = arith.constant 0 : i32
    %c0_i32_1 = arith.constant 0 : i32
    return %c0_i32, %c0_i32_0 : i32, i32
  }
  func.func @transform_4(%arg0: i32) -> (i32, i32) {
    %c0_i32 = arith.constant 0 : i32
    %c0_i32_0 = arith.constant 0 : i32
    %c0_i32_1 = arith.constant 0 : i32
    return %c0_i32, %c0_i32_0 : i32, i32
  }
  func.func @transform_5(%arg0: i32) -> (i32, i32) {
    %c0_i32 = arith.constant 0 : i32
    %c0_i32_0 = arith.constant 0 : i32
    %c0_i32_1 = arith.constant 0 : i32
    return %c0_i32, %c0_i32_0 : i32, i32
  }
  func.func @transform_6(%arg0: i32) -> (i32, i32) {
    %c0_i32 = arith.constant 0 : i32
    %c0_i32_0 = arith.constant 0 : i32
    %c0_i32_1 = arith.constant 0 : i32
    return %c0_i32, %c0_i32_0 : i32, i32
  }
  func.func @transform_7(%arg0: i32) -> (i32, i32) {
    %c0_i32 = arith.constant 0 : i32
    %c0_i32_0 = arith.constant 0 : i32
    return %c0_i32, %arg0 : i32, i32
  }
  func.func @transform_8(%arg0: i32) -> (i32, i32, i32) {
    %c0_i32 = arith.constant 0 : i32
    %c0_i32_0 = arith.constant 0 : i32
    %c0_i32_1 = arith.constant 0 : i32
    return %c0_i32, %c0_i32_0, %arg0 : i32, i32, i32
  }
}

module attributes {stable_mosaic.version = 11 : i64} {
  func.func @scatter_kernel(%arg0: i32, %arg1: i32, %arg2: memref<256x1xi32, #tpu.memory_space<vmem>>, %arg3: memref<80x256xbf16, #tpu.memory_space<vmem>>, %arg4: memref<80x256xf32, #tpu.memory_space<vmem>>) attributes {dimension_semantics = [#tpu.dimension_semantics<parallel>, #tpu.dimension_semantics<arbitrary>], iteration_bounds = array<i64: 1, 1>, scalar_prefetch = 0 : i64, scratch_operands = 0 : i64, tpu.core_type = #tpu.core_type<tc>, window_params = [{transform_indices = @transform_0, window_bounds = array<i64: 256, 1>}, {transform_indices = @transform_1, window_bounds = array<i64: 80, 256>}, {transform_indices = @transform_2, window_bounds = array<i64: 80, 256>}]} {
    %c0_i32 = arith.constant 0 : i32
    %0 = arith.cmpi eq, %arg1, %c0_i32 : i32
    %1 = arith.extui %0 : i1 to i32
    %c0_i32_0 = arith.constant 0 : i32
    %2 = arith.cmpi ne, %1, %c0_i32_0 : i32
    scf.if %2 {
      %cst_8 = arith.constant 0.000000e+00 : f32
      %18 = vector.broadcast %cst_8 : f32 to vector<80x256xf32>
      %c0_9 = arith.constant 0 : index
      %c0_10 = arith.constant 0 : index
      %19 = vector.load %arg4[%c0_9, %c0_10] : memref<80x256xf32, #tpu.memory_space<vmem>>, vector<80x256xf32>
      tpu.vector_store %arg4[%c0_9, %c0_10], %18 {strides = array<i32>} : memref<80x256xf32, #tpu.memory_space<vmem>>, vector<80x256xf32>,
    } else {
    }
    %c256_i32 = arith.constant 256 : i32
    %3 = arith.muli %arg0, %c256_i32 : i32
    %4 = tpu.iota {dimensions = array<i32: 1>} : vector<256x256xi32>
    %5 = vector.broadcast %3 : i32 to vector<256x256xi32>
    %6 = arith.addi %4, %5 : vector<256x256xi32>
    %c0 = arith.constant 0 : index
    %c0_1 = arith.constant 0 : index
    %7 = vector.load %arg2[%c0, %c0_1] : memref<256x1xi32, #tpu.memory_space<vmem>>, vector<256x1xi32>
    %8 = vector.broadcast %7 : vector<256x1xi32> to vector<256x256xi32>
    %9 = arith.cmpi eq, %8, %6 : vector<256x256xi32>
    %10 = arith.extui %9 : vector<256x256xi1> to vector<256x256xi32>
    %11 = arith.sitofp %10 : vector<256x256xi32> to vector<256x256xf32>
    %12 = arith.truncf %11 : vector<256x256xf32> to vector<256x256xbf16>
    %c0_2 = arith.constant 0 : index
    %c0_3 = arith.constant 0 : index
    %13 = vector.load %arg4[%c0_2, %c0_3] : memref<80x256xf32, #tpu.memory_space<vmem>>, vector<80x256xf32>
    %c0_4 = arith.constant 0 : index
    %c0_5 = arith.constant 0 : index
    %14 = vector.load %arg3[%c0_4, %c0_5] : memref<80x256xbf16, #tpu.memory_space<vmem>>, vector<80x256xbf16>
    %cst = arith.constant dense<0.000000e+00> : vector<80x256xf32>
    %15 = tpu.matmul %14, %12, %cst {dimension_numbers = #tpu.dot_dimension_numbers<[1], [0], [0], [1], [0, 0, 1, 1], [], []>} : vector<80x256xbf16>, vector<256x256xbf16>, vector<80x256xf32> -> vector<80x256xf32>
    %16 = arith.addf %13, %15 : vector<80x256xf32>
    %c0_6 = arith.constant 0 : index
    %c0_7 = arith.constant 0 : index
    %17 = vector.load %arg4[%c0_6, %c0_7] : memref<80x256xf32, #tpu.memory_space<vmem>>, vector<80x256xf32>
    tpu.vector_store %arg4[%c0_6, %c0_7], %16 {strides = array<i32>} : memref<80x256xf32, #tpu.memory_space<vmem>>, vector<80x256xf32>,
    return
  }
  func.func @transform_0(%arg0: i32, %arg1: i32) -> (i32, i32) {
    %c0_i32 = arith.constant 0 : i32
    %c0_i32_0 = arith.constant 0 : i32
    return %arg1, %c0_i32 : i32, i32
  }
  func.func @transform_1(%arg0: i32, %arg1: i32) -> (i32, i32) {
    %c0_i32 = arith.constant 0 : i32
    %c0_i32_0 = arith.constant 0 : i32
    return %c0_i32, %arg1 : i32, i32
  }
  func.func @transform_2(%arg0: i32, %arg1: i32) -> (i32, i32) {
    %c0_i32 = arith.constant 0 : i32
    %c0_i32_0 = arith.constant 0 : i32
    return %c0_i32, %arg0 : i32, i32
  }
}

module attributes {stable_mosaic.version = 11 : i64} {
  func.func @edge_message_kernel(%arg0: i32, %arg1: memref<3x1x256xf32, #tpu.memory_space<vmem>>, %arg2: memref<4x256xf32, #tpu.memory_space<vmem>>, %arg3: memref<32x256xbf16, #tpu.memory_space<vmem>>, %arg4: memref<3x16x256xbf16, #tpu.memory_space<vmem>>, %arg5: memref<1x256xf32, #tpu.memory_space<vmem>>, %arg6: memref<16x1xf32, #tpu.memory_space<vmem>>, %arg7: memref<16x1xf32, #tpu.memory_space<vmem>>, %arg8: memref<16x16xf32, #tpu.memory_space<vmem>>, %arg9: memref<16x16xf32, #tpu.memory_space<vmem>>, %arg10: memref<16x36xf32, #tpu.memory_space<vmem>>, %arg11: memref<16x16xf32, #tpu.memory_space<vmem>>, %arg12: memref<16x1xf32, #tpu.memory_space<vmem>>, %arg13: memref<16x16xf32, #tpu.memory_space<vmem>>, %arg14: memref<48x16xf32, #tpu.memory_space<vmem>>, %arg15: memref<48x1xf32, #tpu.memory_space<vmem>>, %arg16: memref<16x32xf32, #tpu.memory_space<vmem>>, %arg17: memref<16x1xf32, #tpu.memory_space<vmem>>, %arg18: memref<16x16xf32, #tpu.memory_space<vmem>>, %arg19: memref<16x16xf32, #tpu.memory_space<vmem>>, %arg20: memref<16x16xf32, #tpu.memory_space<vmem>>, %arg21: memref<32x48xf32, #tpu.memory_space<vmem>>, %arg22: memref<16x32xf32, #tpu.memory_space<vmem>>, %arg23: memref<16x1xf32, #tpu.memory_space<vmem>>, %arg24: memref<80x256xbf16, #tpu.memory_space<vmem>>) attributes {dimension_semantics = [#tpu.dimension_semantics<parallel>], iteration_bounds = array<i64: 1>, scalar_prefetch = 0 : i64, scratch_operands = 0 : i64, tpu.core_type = #tpu.core_type<tc>, window_params = [{transform_indices = @transform_0, window_bounds = array<i64: 3, 1, 256>}, {transform_indices = @transform_1, window_bounds = array<i64: 4, 256>}, {transform_indices = @transform_2, window_bounds = array<i64: 32, 256>}, {transform_indices = @transform_3, window_bounds = array<i64: 3, 16, 256>}, {transform_indices = @transform_4, window_bounds = array<i64: 1, 256>}, {pipeline_mode = #tpu.pipeline_mode<synchronous>, transform_indices = @transform_5, window_bounds = array<i64: 16, 1>}, {pipeline_mode = #tpu.pipeline_mode<synchronous>, transform_indices = @transform_6, window_bounds = array<i64: 16, 1>}, {pipeline_mode = #tpu.pipeline_mode<synchronous>, transform_indices = @transform_7, window_bounds = array<i64: 16, 16>}, {pipeline_mode = #tpu.pipeline_mode<synchronous>, transform_indices = @transform_8, window_bounds = array<i64: 16, 16>}, {pipeline_mode = #tpu.pipeline_mode<synchronous>, transform_indices = @transform_9, window_bounds = array<i64: 16, 36>}, {pipeline_mode = #tpu.pipeline_mode<synchronous>, transform_indices = @transform_10, window_bounds = array<i64: 16, 16>}, {pipeline_mode = #tpu.pipeline_mode<synchronous>, transform_indices = @transform_11, window_bounds = array<i64: 16, 1>}, {pipeline_mode = #tpu.pipeline_mode<synchronous>, transform_indices = @transform_12, window_bounds = array<i64: 16, 16>}, {pipeline_mode = #tpu.pipeline_mode<synchronous>, transform_indices = @transform_13, window_bounds = array<i64: 48, 16>}, {pipeline_mode = #tpu.pipeline_mode<synchronous>, transform_indices = @transform_14, window_bounds = array<i64: 48, 1>}, {pipeline_mode = #tpu.pipeline_mode<synchronous>, transform_indices = @transform_15, window_bounds = array<i64: 16, 32>}, {pipeline_mode = #tpu.pipeline_mode<synchronous>, transform_indices = @transform_16, window_bounds = array<i64: 16, 1>}, {pipeline_mode = #tpu.pipeline_mode<synchronous>, transform_indices = @transform_17, window_bounds = array<i64: 16, 16>}, {pipeline_mode = #tpu.pipeline_mode<synchronous>, transform_indices = @transform_18, window_bounds = array<i64: 16, 16>}, {pipeline_mode = #tpu.pipeline_mode<synchronous>, transform_indices = @transform_19, window_bounds = array<i64: 16, 16>}, {pipeline_mode = #tpu.pipeline_mode<synchronous>, transform_indices = @transform_20, window_bounds = array<i64: 32, 48>}, {pipeline_mode = #tpu.pipeline_mode<synchronous>, transform_indices = @transform_21, window_bounds = array<i64: 16, 32>}, {pipeline_mode = #tpu.pipeline_mode<synchronous>, transform_indices = @transform_22, window_bounds = array<i64: 16, 1>}, {transform_indices = @transform_23, window_bounds = array<i64: 80, 256>}]} {
    %c0 = arith.constant 0 : index
    %c0_0 = arith.constant 0 : index
    %c0_1 = arith.constant 0 : index
    %0 = vector.load %arg1[%c0, %c0_0, %c0_1] : memref<3x1x256xf32, #tpu.memory_space<vmem>>, vector<1x1x256xf32>
    %1 = vector.shape_cast %0 : vector<1x1x256xf32> to vector<1x256xf32>
    %c1 = arith.constant 1 : index
    %c0_2 = arith.constant 0 : index
    %c0_3 = arith.constant 0 : index
    %2 = vector.load %arg1[%c1, %c0_2, %c0_3] : memref<3x1x256xf32, #tpu.memory_space<vmem>>, vector<1x1x256xf32>
    %3 = vector.shape_cast %2 : vector<1x1x256xf32> to vector<1x256xf32>
    %c2 = arith.constant 2 : index
    %c0_4 = arith.constant 0 : index
    %c0_5 = arith.constant 0 : index
    %4 = vector.load %arg1[%c2, %c0_4, %c0_5] : memref<3x1x256xf32, #tpu.memory_space<vmem>>, vector<1x1x256xf32>
    %5 = vector.shape_cast %4 : vector<1x1x256xf32> to vector<1x256xf32>
    %6 = arith.mulf %1, %1 : vector<1x256xf32>
    %7 = arith.mulf %3, %3 : vector<1x256xf32>
    %8 = arith.addf %6, %7 : vector<1x256xf32>
    %9 = arith.mulf %5, %5 : vector<1x256xf32>
    %10 = arith.addf %8, %9 : vector<1x256xf32>
    %11 = math.sqrt %10 : vector<1x256xf32>
    %c0_6 = arith.constant 0 : index
    %c0_7 = arith.constant 0 : index
    %12 = vector.load %arg6[%c0_6, %c0_7] : memref<16x1xf32, #tpu.memory_space<vmem>>, vector<16x1xf32>
    %13 = vector.broadcast %11 : vector<1x256xf32> to vector<16x256xf32>
    %14 = vector.broadcast %12 : vector<16x1xf32> to vector<16x256xf32>
    %15 = arith.subf %13, %14 : vector<16x256xf32>
    %cst = arith.constant -0.604999959 : f32
    %16 = vector.broadcast %cst : f32 to vector<16x256xf32>
    %17 = arith.mulf %16, %15 : vector<16x256xf32>
    %18 = arith.mulf %17, %15 : vector<16x256xf32>
    %19 = math.exp %18 : vector<16x256xf32>
    %cst_8 = arith.constant 1.000000e-07 : f32
    %20 = vector.broadcast %cst_8 : f32 to vector<1x256xf32>
    %21 = arith.addf %11, %20 : vector<1x256xf32>
    %22 = tpu.reciprocal %21 {approx = true} : vector<1x256xf32> -> vector<1x256xf32>
    %23 = arith.mulf %1, %22 : vector<1x256xf32>
    %24 = arith.mulf %3, %22 : vector<1x256xf32>
    %25 = arith.mulf %5, %22 : vector<1x256xf32>
    %c0_9 = arith.constant 0 : index
    %c0_10 = arith.constant 0 : index
    %26 = vector.load %arg7[%c0_9, %c0_10] : memref<16x1xf32, #tpu.memory_space<vmem>>, vector<16x1xf32>
    %27 = vector.broadcast %26 : vector<16x1xf32> to vector<16x256xf32>
    %28 = vector.broadcast %23 : vector<1x256xf32> to vector<16x256xf32>
    %29 = arith.mulf %27, %28 : vector<16x256xf32>
    %30 = vector.broadcast %26 : vector<16x1xf32> to vector<16x256xf32>
    %31 = vector.broadcast %24 : vector<1x256xf32> to vector<16x256xf32>
    %32 = arith.mulf %30, %31 : vector<16x256xf32>
    %33 = vector.broadcast %26 : vector<16x1xf32> to vector<16x256xf32>
    %34 = vector.broadcast %25 : vector<1x256xf32> to vector<16x256xf32>
    %35 = arith.mulf %33, %34 : vector<16x256xf32>
    %c0_11 = arith.constant 0 : index
    %c0_12 = arith.constant 0 : index
    %36 = vector.load %arg8[%c0_11, %c0_12] : memref<16x16xf32, #tpu.memory_space<vmem>>, vector<16x16xf32>
    %37 = tpu.concatenate %29, %32, %35 in 1 : vector<16x256xf32>, vector<16x256xf32>, vector<16x256xf32> -> vector<16x768xf32>
    %cst_13 = arith.constant dense<0.000000e+00> : vector<16x768xf32>
    %38 = tpu.matmul %36, %37, %cst_13 {dimension_numbers = #tpu.dot_dimension_numbers<[1], [0], [0], [1], [0, 0, 1, 1], [], []>} : vector<16x16xf32>, vector<16x768xf32>, vector<16x768xf32> -> vector<16x768xf32>
    %39 = vector.extract_strided_slice %38 {offsets = [0, 0], sizes = [16, 256], strides = [1, 1]} : vector<16x768xf32> to vector<16x256xf32>
    %40 = vector.extract_strided_slice %38 {offsets = [0, 256], sizes = [16, 256], strides = [1, 1]} : vector<16x768xf32> to vector<16x256xf32>
    %41 = vector.extract_strided_slice %38 {offsets = [0, 512], sizes = [16, 256], strides = [1, 1]} : vector<16x768xf32> to vector<16x256xf32>
    %42 = arith.mulf %39, %39 : vector<16x256xf32>
    %43 = arith.mulf %40, %40 : vector<16x256xf32>
    %44 = arith.addf %42, %43 : vector<16x256xf32>
    %45 = arith.mulf %41, %41 : vector<16x256xf32>
    %46 = arith.addf %44, %45 : vector<16x256xf32>
    %47 = math.sqrt %46 : vector<16x256xf32>
    %c0_14 = arith.constant 0 : index
    %c0_15 = arith.constant 0 : index
    %48 = vector.load %arg2[%c0_14, %c0_15] : memref<4x256xf32, #tpu.memory_space<vmem>>, vector<4x256xf32>
    %49 = tpu.concatenate %47, %19, %48 in 0 : vector<16x256xf32>, vector<16x256xf32>, vector<4x256xf32> -> vector<36x256xf32>
    %c0_16 = arith.constant 0 : index
    %c0_17 = arith.constant 0 : index
    %50 = vector.load %arg10[%c0_16, %c0_17] : memref<16x36xf32, #tpu.memory_space<vmem>>, vector<16x36xf32>
    %cst_18 = arith.constant dense<0.000000e+00> : vector<16x256xf32>
    %51 = tpu.matmul %50, %49, %cst_18 {dimension_numbers = #tpu.dot_dimension_numbers<[1], [0], [0], [1], [0, 0, 1, 1], [], []>} : vector<16x36xf32>, vector<36x256xf32>, vector<16x256xf32> -> vector<16x256xf32>
    %c0_19 = arith.constant 0 : index
    %c0_20 = arith.constant 0 : index
    %52 = vector.load %arg11[%c0_19, %c0_20] : memref<16x16xf32, #tpu.memory_space<vmem>>, vector<16x16xf32>
    %cst_21 = arith.constant dense<0.000000e+00> : vector<16x256xf32>
    %53 = tpu.matmul %52, %51, %cst_21 {dimension_numbers = #tpu.dot_dimension_numbers<[1], [0], [0], [1], [0, 0, 1, 1], [], []>} : vector<16x16xf32>, vector<16x256xf32>, vector<16x256xf32> -> vector<16x256xf32>
    %c0_22 = arith.constant 0 : index
    %c0_23 = arith.constant 0 : index
    %54 = vector.load %arg12[%c0_22, %c0_23] : memref<16x1xf32, #tpu.memory_space<vmem>>, vector<16x1xf32>
    %55 = vector.broadcast %54 : vector<16x1xf32> to vector<16x256xf32>
    %56 = arith.addf %53, %55 : vector<16x256xf32>
    %57 = arith.negf %56 : vector<16x256xf32>
    %58 = math.exp %57 : vector<16x256xf32>
    %cst_24 = arith.constant 1.000000e+00 : f32
    %59 = vector.broadcast %cst_24 : f32 to vector<16x256xf32>
    %60 = arith.addf %59, %58 : vector<16x256xf32>
    %61 = arith.divf %59, %60 : vector<16x256xf32>
    %c0_25 = arith.constant 0 : index
    %c0_26 = arith.constant 0 : index
    %62 = vector.load %arg9[%c0_25, %c0_26] : memref<16x16xf32, #tpu.memory_space<vmem>>, vector<16x16xf32>
    %63 = tpu.concatenate %39, %40, %41 in 1 : vector<16x256xf32>, vector<16x256xf32>, vector<16x256xf32> -> vector<16x768xf32>
    %cst_27 = arith.constant dense<0.000000e+00> : vector<16x768xf32>
    %64 = tpu.matmul %62, %63, %cst_27 {dimension_numbers = #tpu.dot_dimension_numbers<[1], [0], [0], [1], [0, 0, 1, 1], [], []>} : vector<16x16xf32>, vector<16x768xf32>, vector<16x768xf32> -> vector<16x768xf32>
    %65 = vector.extract_strided_slice %64 {offsets = [0, 0], sizes = [16, 256], strides = [1, 1]} : vector<16x768xf32> to vector<16x256xf32>
    %66 = vector.extract_strided_slice %64 {offsets = [0, 256], sizes = [16, 256], strides = [1, 1]} : vector<16x768xf32> to vector<16x256xf32>
    %67 = vector.extract_strided_slice %64 {offsets = [0, 512], sizes = [16, 256], strides = [1, 1]} : vector<16x768xf32> to vector<16x256xf32>
    %68 = arith.mulf %61, %65 : vector<16x256xf32>
    %69 = arith.mulf %61, %66 : vector<16x256xf32>
    %70 = arith.mulf %61, %67 : vector<16x256xf32>
    %c0_28 = arith.constant 0 : index
    %c0_29 = arith.constant 0 : index
    %71 = vector.load %arg13[%c0_28, %c0_29] : memref<16x16xf32, #tpu.memory_space<vmem>>, vector<16x16xf32>
    %72 = tpu.concatenate %68, %69, %70 in 1 : vector<16x256xf32>, vector<16x256xf32>, vector<16x256xf32> -> vector<16x768xf32>
    %cst_30 = arith.constant dense<0.000000e+00> : vector<16x768xf32>
    %73 = tpu.matmul %71, %72, %cst_30 {dimension_numbers = #tpu.dot_dimension_numbers<[1], [0], [0], [1], [0, 0, 1, 1], [], []>} : vector<16x16xf32>, vector<16x768xf32>, vector<16x768xf32> -> vector<16x768xf32>
    %74 = vector.extract_strided_slice %73 {offsets = [0, 0], sizes = [16, 256], strides = [1, 1]} : vector<16x768xf32> to vector<16x256xf32>
    %75 = vector.extract_strided_slice %73 {offsets = [0, 256], sizes = [16, 256], strides = [1, 1]} : vector<16x768xf32> to vector<16x256xf32>
    %76 = vector.extract_strided_slice %73 {offsets = [0, 512], sizes = [16, 256], strides = [1, 1]} : vector<16x768xf32> to vector<16x256xf32>
    %77 = arith.mulf %68, %74 : vector<16x256xf32>
    %78 = arith.mulf %69, %75 : vector<16x256xf32>
    %79 = arith.addf %77, %78 : vector<16x256xf32>
    %80 = arith.mulf %70, %76 : vector<16x256xf32>
    %81 = arith.addf %79, %80 : vector<16x256xf32>
    %82 = arith.mulf %74, %74 : vector<16x256xf32>
    %83 = arith.mulf %75, %75 : vector<16x256xf32>
    %84 = arith.addf %82, %83 : vector<16x256xf32>
    %85 = arith.mulf %76, %76 : vector<16x256xf32>
    %86 = arith.addf %84, %85 : vector<16x256xf32>
    %cst_31 = arith.constant 0.000000e+00 : f32
    %87 = vector.broadcast %cst_31 : f32 to vector<16x256xf32>
    %88 = arith.cmpf oge, %81, %87 : vector<16x256xf32>
    %89 = arith.extui %88 : vector<16x256xi1> to vector<16x256xi32>
    %90 = arith.sitofp %89 : vector<16x256xi32> to vector<16x256xf32>
    %cst_32 = arith.constant 9.99999997E-7 : f32
    %91 = vector.broadcast %cst_32 : f32 to vector<16x256xf32>
    %92 = arith.addf %86, %91 : vector<16x256xf32>
    %93 = tpu.reciprocal %92 {approx = true} : vector<16x256xf32> -> vector<16x256xf32>
    %94 = arith.mulf %81, %93 : vector<16x256xf32>
    %cst_33 = arith.constant 2.000000e-01 : f32
    %95 = vector.broadcast %cst_33 : f32 to vector<16x256xf32>
    %96 = arith.mulf %95, %68 : vector<16x256xf32>
    %97 = arith.mulf %90, %68 : vector<16x256xf32>
    %cst_34 = arith.constant 1.000000e+00 : f32
    %98 = vector.broadcast %cst_34 : f32 to vector<16x256xf32>
    %99 = arith.subf %98, %90 : vector<16x256xf32>
    %100 = arith.mulf %94, %74 : vector<16x256xf32>
    %101 = arith.subf %68, %100 : vector<16x256xf32>
    %102 = arith.mulf %99, %101 : vector<16x256xf32>
    %103 = arith.addf %97, %102 : vector<16x256xf32>
    %cst_35 = arith.constant 8.000000e-01 : f32
    %104 = vector.broadcast %cst_35 : f32 to vector<16x256xf32>
    %105 = arith.mulf %104, %103 : vector<16x256xf32>
    %106 = arith.addf %96, %105 : vector<16x256xf32>
    %cst_36 = arith.constant 2.000000e-01 : f32
    %107 = vector.broadcast %cst_36 : f32 to vector<16x256xf32>
    %108 = arith.mulf %107, %69 : vector<16x256xf32>
    %109 = arith.mulf %90, %69 : vector<16x256xf32>
    %cst_37 = arith.constant 1.000000e+00 : f32
    %110 = vector.broadcast %cst_37 : f32 to vector<16x256xf32>
    %111 = arith.subf %110, %90 : vector<16x256xf32>
    %112 = arith.mulf %94, %75 : vector<16x256xf32>
    %113 = arith.subf %69, %112 : vector<16x256xf32>
    %114 = arith.mulf %111, %113 : vector<16x256xf32>
    %115 = arith.addf %109, %114 : vector<16x256xf32>
    %cst_38 = arith.constant 8.000000e-01 : f32
    %116 = vector.broadcast %cst_38 : f32 to vector<16x256xf32>
    %117 = arith.mulf %116, %115 : vector<16x256xf32>
    %118 = arith.addf %108, %117 : vector<16x256xf32>
    %cst_39 = arith.constant 2.000000e-01 : f32
    %119 = vector.broadcast %cst_39 : f32 to vector<16x256xf32>
    %120 = arith.mulf %119, %70 : vector<16x256xf32>
    %121 = arith.mulf %90, %70 : vector<16x256xf32>
    %cst_40 = arith.constant 1.000000e+00 : f32
    %122 = vector.broadcast %cst_40 : f32 to vector<16x256xf32>
    %123 = arith.subf %122, %90 : vector<16x256xf32>
    %124 = arith.mulf %94, %76 : vector<16x256xf32>
    %125 = arith.subf %70, %124 : vector<16x256xf32>
    %126 = arith.mulf %123, %125 : vector<16x256xf32>
    %127 = arith.addf %121, %126 : vector<16x256xf32>
    %cst_41 = arith.constant 8.000000e-01 : f32
    %128 = vector.broadcast %cst_41 : f32 to vector<16x256xf32>
    %129 = arith.mulf %128, %127 : vector<16x256xf32>
    %130 = arith.addf %120, %129 : vector<16x256xf32>
    %cst_42 = arith.constant 0.000000e+00 : f32
    %131 = vector.broadcast %cst_42 : f32 to vector<16x256xf32>
    %132 = arith.cmpf oge, %51, %131 : vector<16x256xf32>
    %cst_43 = arith.constant 0.00999999977 : f32
    %133 = vector.broadcast %cst_43 : f32 to vector<16x256xf32>
    %134 = arith.mulf %133, %51 : vector<16x256xf32>
    %135 = arith.select %132, %51, %134 : vector<16x256xi1>, vector<16x256xf32>
    %c0_44 = arith.constant 0 : index
    %c0_45 = arith.constant 0 : index
    %136 = vector.load %arg3[%c0_44, %c0_45] : memref<32x256xbf16, #tpu.memory_space<vmem>>, vector<32x256xbf16>
    %137 = arith.extf %136 : vector<32x256xbf16> to vector<32x256xf32>
    %c0_46 = arith.constant 0 : index
    %c0_47 = arith.constant 0 : index
    %c0_48 = arith.constant 0 : index
    %138 = vector.load %arg4[%c0_46, %c0_47, %c0_48] : memref<3x16x256xbf16, #tpu.memory_space<vmem>>, vector<1x16x256xbf16>
    %139 = vector.shape_cast %138 : vector<1x16x256xbf16> to vector<16x256xbf16>
    %140 = arith.extf %139 : vector<16x256xbf16> to vector<16x256xf32>
    %c1_49 = arith.constant 1 : index
    %c0_50 = arith.constant 0 : index
    %c0_51 = arith.constant 0 : index
    %141 = vector.load %arg4[%c1_49, %c0_50, %c0_51] : memref<3x16x256xbf16, #tpu.memory_space<vmem>>, vector<1x16x256xbf16>
    %142 = vector.shape_cast %141 : vector<1x16x256xbf16> to vector<16x256xbf16>
    %143 = arith.extf %142 : vector<16x256xbf16> to vector<16x256xf32>
    %c2_52 = arith.constant 2 : index
    %c0_53 = arith.constant 0 : index
    %c0_54 = arith.constant 0 : index
    %144 = vector.load %arg4[%c2_52, %c0_53, %c0_54] : memref<3x16x256xbf16, #tpu.memory_space<vmem>>, vector<1x16x256xbf16>
    %145 = vector.shape_cast %144 : vector<1x16x256xbf16> to vector<16x256xbf16>
    %146 = arith.extf %145 : vector<16x256xbf16> to vector<16x256xf32>
    %c0_55 = arith.constant 0 : index
    %c0_56 = arith.constant 0 : index
    %147 = vector.load %arg14[%c0_55, %c0_56] : memref<48x16xf32, #tpu.memory_space<vmem>>, vector<48x16xf32>
    %cst_57 = arith.constant dense<0.000000e+00> : vector<48x256xf32>
    %148 = tpu.matmul %147, %135, %cst_57 {dimension_numbers = #tpu.dot_dimension_numbers<[1], [0], [0], [1], [0, 0, 1, 1], [], []>} : vector<48x16xf32>, vector<16x256xf32>, vector<48x256xf32> -> vector<48x256xf32>
    %c0_58 = arith.constant 0 : index
    %c0_59 = arith.constant 0 : index
    %149 = vector.load %arg15[%c0_58, %c0_59] : memref<48x1xf32, #tpu.memory_space<vmem>>, vector<48x1xf32>
    %150 = vector.broadcast %149 : vector<48x1xf32> to vector<48x256xf32>
    %151 = arith.addf %148, %150 : vector<48x256xf32>
    %152 = vector.extract_strided_slice %151 {offsets = [0, 0], sizes = [32, 256], strides = [1, 1]} : vector<48x256xf32> to vector<32x256xf32>
    %153 = arith.mulf %137, %152 : vector<32x256xf32>
    %154 = vector.extract_strided_slice %151 {offsets = [32, 0], sizes = [16, 256], strides = [1, 1]} : vector<48x256xf32> to vector<16x256xf32>
    %c0_60 = arith.constant 0 : index
    %c0_61 = arith.constant 0 : index
    %155 = vector.load %arg16[%c0_60, %c0_61] : memref<16x32xf32, #tpu.memory_space<vmem>>, vector<16x32xf32>
    %cst_62 = arith.constant dense<0.000000e+00> : vector<16x256xf32>
    %156 = tpu.matmul %155, %137, %cst_62 {dimension_numbers = #tpu.dot_dimension_numbers<[1], [0], [0], [1], [0, 0, 1, 1], [], []>} : vector<16x32xf32>, vector<32x256xf32>, vector<16x256xf32> -> vector<16x256xf32>
    %c0_63 = arith.constant 0 : index
    %c0_64 = arith.constant 0 : index
    %157 = vector.load %arg17[%c0_63, %c0_64] : memref<16x1xf32, #tpu.memory_space<vmem>>, vector<16x1xf32>
    %158 = vector.broadcast %157 : vector<16x1xf32> to vector<16x256xf32>
    %159 = arith.addf %156, %158 : vector<16x256xf32>
    %c0_65 = arith.constant 0 : index
    %c0_66 = arith.constant 0 : index
    %160 = vector.load %arg18[%c0_65, %c0_66] : memref<16x16xf32, #tpu.memory_space<vmem>>, vector<16x16xf32>
    %161 = tpu.concatenate %106, %118, %130 in 1 : vector<16x256xf32>, vector<16x256xf32>, vector<16x256xf32> -> vector<16x768xf32>
    %cst_67 = arith.constant dense<0.000000e+00> : vector<16x768xf32>
    %162 = tpu.matmul %160, %161, %cst_67 {dimension_numbers = #tpu.dot_dimension_numbers<[1], [0], [0], [1], [0, 0, 1, 1], [], []>} : vector<16x16xf32>, vector<16x768xf32>, vector<16x768xf32> -> vector<16x768xf32>
    %163 = vector.extract_strided_slice %162 {offsets = [0, 0], sizes = [16, 256], strides = [1, 1]} : vector<16x768xf32> to vector<16x256xf32>
    %164 = vector.extract_strided_slice %162 {offsets = [0, 256], sizes = [16, 256], strides = [1, 1]} : vector<16x768xf32> to vector<16x256xf32>
    %165 = vector.extract_strided_slice %162 {offsets = [0, 512], sizes = [16, 256], strides = [1, 1]} : vector<16x768xf32> to vector<16x256xf32>
    %166 = arith.mulf %154, %140 : vector<16x256xf32>
    %167 = arith.mulf %159, %163 : vector<16x256xf32>
    %168 = arith.addf %166, %167 : vector<16x256xf32>
    %169 = arith.mulf %154, %143 : vector<16x256xf32>
    %170 = arith.mulf %159, %164 : vector<16x256xf32>
    %171 = arith.addf %169, %170 : vector<16x256xf32>
    %172 = arith.mulf %154, %146 : vector<16x256xf32>
    %173 = arith.mulf %159, %165 : vector<16x256xf32>
    %174 = arith.addf %172, %173 : vector<16x256xf32>
    %c0_68 = arith.constant 0 : index
    %c0_69 = arith.constant 0 : index
    %175 = vector.load %arg19[%c0_68, %c0_69] : memref<16x16xf32, #tpu.memory_space<vmem>>, vector<16x16xf32>
    %c0_70 = arith.constant 0 : index
    %c0_71 = arith.constant 0 : index
    %176 = vector.load %arg20[%c0_70, %c0_71] : memref<16x16xf32, #tpu.memory_space<vmem>>, vector<16x16xf32>
    %c0_72 = arith.constant 0 : index
    %c0_73 = arith.constant 0 : index
    %177 = vector.load %arg21[%c0_72, %c0_73] : memref<32x48xf32, #tpu.memory_space<vmem>>, vector<32x48xf32>
    %c0_74 = arith.constant 0 : index
    %c0_75 = arith.constant 0 : index
    %178 = vector.load %arg22[%c0_74, %c0_75] : memref<16x32xf32, #tpu.memory_space<vmem>>, vector<16x32xf32>
    %c0_76 = arith.constant 0 : index
    %c0_77 = arith.constant 0 : index
    %179 = vector.load %arg23[%c0_76, %c0_77] : memref<16x1xf32, #tpu.memory_space<vmem>>, vector<16x1xf32>
    %180 = tpu.concatenate %168, %171, %174 in 1 : vector<16x256xf32>, vector<16x256xf32>, vector<16x256xf32> -> vector<16x768xf32>
    %cst_78 = arith.constant dense<0.000000e+00> : vector<16x768xf32>
    %181 = tpu.matmul %175, %180, %cst_78 {dimension_numbers = #tpu.dot_dimension_numbers<[1], [0], [0], [1], [0, 0, 1, 1], [], []>} : vector<16x16xf32>, vector<16x768xf32>, vector<16x768xf32> -> vector<16x768xf32>
    %182 = vector.extract_strided_slice %181 {offsets = [0, 0], sizes = [16, 256], strides = [1, 1]} : vector<16x768xf32> to vector<16x256xf32>
    %183 = vector.extract_strided_slice %181 {offsets = [0, 256], sizes = [16, 256], strides = [1, 1]} : vector<16x768xf32> to vector<16x256xf32>
    %184 = vector.extract_strided_slice %181 {offsets = [0, 512], sizes = [16, 256], strides = [1, 1]} : vector<16x768xf32> to vector<16x256xf32>
    %185 = arith.mulf %182, %182 : vector<16x256xf32>
    %186 = arith.mulf %183, %183 : vector<16x256xf32>
    %187 = arith.addf %185, %186 : vector<16x256xf32>
    %188 = arith.mulf %184, %184 : vector<16x256xf32>
    %189 = arith.addf %187, %188 : vector<16x256xf32>
    %190 = math.sqrt %189 : vector<16x256xf32>
    %191 = tpu.concatenate %190, %153 in 0 : vector<16x256xf32>, vector<32x256xf32> -> vector<48x256xf32>
    %cst_79 = arith.constant dense<0.000000e+00> : vector<32x256xf32>
    %192 = tpu.matmul %177, %191, %cst_79 {dimension_numbers = #tpu.dot_dimension_numbers<[1], [0], [0], [1], [0, 0, 1, 1], [], []>} : vector<32x48xf32>, vector<48x256xf32>, vector<32x256xf32> -> vector<32x256xf32>
    %cst_80 = arith.constant dense<0.000000e+00> : vector<16x256xf32>
    %193 = tpu.matmul %178, %192, %cst_80 {dimension_numbers = #tpu.dot_dimension_numbers<[1], [0], [0], [1], [0, 0, 1, 1], [], []>} : vector<16x32xf32>, vector<32x256xf32>, vector<16x256xf32> -> vector<16x256xf32>
    %194 = vector.broadcast %179 : vector<16x1xf32> to vector<16x256xf32>
    %195 = arith.addf %193, %194 : vector<16x256xf32>
    %196 = arith.negf %195 : vector<16x256xf32>
    %197 = math.exp %196 : vector<16x256xf32>
    %cst_81 = arith.constant 1.000000e+00 : f32
    %198 = vector.broadcast %cst_81 : f32 to vector<16x256xf32>
    %199 = arith.addf %198, %197 : vector<16x256xf32>
    %200 = arith.divf %198, %199 : vector<16x256xf32>
    %201 = tpu.concatenate %182, %183, %184 in 1 : vector<16x256xf32>, vector<16x256xf32>, vector<16x256xf32> -> vector<16x768xf32>
    %cst_82 = arith.constant dense<0.000000e+00> : vector<16x768xf32>
    %202 = tpu.matmul %176, %201, %cst_82 {dimension_numbers = #tpu.dot_dimension_numbers<[1], [0], [0], [1], [0, 0, 1, 1], [], []>} : vector<16x16xf32>, vector<16x768xf32>, vector<16x768xf32> -> vector<16x768xf32>
    %203 = vector.extract_strided_slice %202 {offsets = [0, 0], sizes = [16, 256], strides = [1, 1]} : vector<16x768xf32> to vector<16x256xf32>
    %204 = vector.extract_strided_slice %202 {offsets = [0, 256], sizes = [16, 256], strides = [1, 1]} : vector<16x768xf32> to vector<16x256xf32>
    %205 = vector.extract_strided_slice %202 {offsets = [0, 512], sizes = [16, 256], strides = [1, 1]} : vector<16x768xf32> to vector<16x256xf32>
    %206 = arith.mulf %200, %203 : vector<16x256xf32>
    %207 = arith.mulf %200, %204 : vector<16x256xf32>
    %208 = arith.mulf %200, %205 : vector<16x256xf32>
    %cst_83 = arith.constant 0.314159274 : f32
    %209 = vector.broadcast %cst_83 : f32 to vector<1x256xf32>
    %210 = arith.mulf %11, %209 : vector<1x256xf32>
    %211 = math.cos %210 : vector<1x256xf32>
    %cst_84 = arith.constant 1.000000e+00 : f32
    %212 = vector.broadcast %cst_84 : f32 to vector<1x256xf32>
    %213 = arith.addf %211, %212 : vector<1x256xf32>
    %cst_85 = arith.constant 5.000000e-01 : f32
    %214 = vector.broadcast %cst_85 : f32 to vector<1x256xf32>
    %215 = arith.mulf %214, %213 : vector<1x256xf32>
    %cst_86 = arith.constant 1.000000e+01 : f32
    %216 = vector.broadcast %cst_86 : f32 to vector<1x256xf32>
    %217 = arith.cmpf ole, %11, %216 : vector<1x256xf32>
    %218 = arith.extui %217 : vector<1x256xi1> to vector<1x256xi32>
    %219 = arith.sitofp %218 : vector<1x256xi32> to vector<1x256xf32>
    %220 = arith.mulf %215, %219 : vector<1x256xf32>
    %c0_87 = arith.constant 0 : index
    %c0_88 = arith.constant 0 : index
    %221 = vector.load %arg5[%c0_87, %c0_88] : memref<1x256xf32, #tpu.memory_space<vmem>>, vector<1x256xf32>
    %222 = arith.mulf %220, %221 : vector<1x256xf32>
    %223 = vector.broadcast %222 : vector<1x256xf32> to vector<32x256xf32>
    %224 = arith.mulf %192, %223 : vector<32x256xf32>
    %225 = vector.broadcast %222 : vector<1x256xf32> to vector<16x256xf32>
    %226 = arith.mulf %206, %225 : vector<16x256xf32>
    %227 = vector.broadcast %222 : vector<1x256xf32> to vector<16x256xf32>
    %228 = arith.mulf %207, %227 : vector<16x256xf32>
    %229 = vector.broadcast %222 : vector<1x256xf32> to vector<16x256xf32>
    %230 = arith.mulf %208, %229 : vector<16x256xf32>
    %231 = tpu.concatenate %224, %226, %228, %230 in 0 : vector<32x256xf32>, vector<16x256xf32>, vector<16x256xf32>, vector<16x256xf32> -> vector<80x256xf32>
    %232 = arith.truncf %231 : vector<80x256xf32> to vector<80x256xbf16>
    %c0_89 = arith.constant 0 : index
    %c0_90 = arith.constant 0 : index
    %233 = vector.load %arg24[%c0_89, %c0_90] : memref<80x256xbf16, #tpu.memory_space<vmem>>, vector<80x256xbf16>
    tpu.vector_store %arg24[%c0_89, %c0_90], %232 {strides = array<i32>} : memref<80x256xbf16, #tpu.memory_space<vmem>>, vector<80x256xbf16>,
    return
  }
  func.func @transform_0(%arg0: i32) -> (i32, i32, i32) {
    %c0_i32 = arith.constant 0 : i32
    %c0_i32_0 = arith.constant 0 : i32
    %c0_i32_1 = arith.constant 0 : i32
    return %c0_i32, %c0_i32_0, %arg0 : i32, i32, i32
  }
  func.func @transform_1(%arg0: i32) -> (i32, i32) {
    %c0_i32 = arith.constant 0 : i32
    %c0_i32_0 = arith.constant 0 : i32
    return %c0_i32, %arg0 : i32, i32
  }
  func.func @transform_2(%arg0: i32) -> (i32, i32) {
    %c0_i32 = arith.constant 0 : i32
    %c0_i32_0 = arith.constant 0 : i32
    return %c0_i32, %arg0 : i32, i32
  }
  func.func @transform_3(%arg0: i32) -> (i32, i32, i32) {
    %c0_i32 = arith.constant 0 : i32
    %c0_i32_0 = arith.constant 0 : i32
    %c0_i32_1 = arith.constant 0 : i32
    return %c0_i32, %c0_i32_0, %arg0 : i32, i32, i32
  }
  func.func @transform_4(%arg0: i32) -> (i32, i32) {
    %c0_i32 = arith.constant 0 : i32
    %c0_i32_0 = arith.constant 0 : i32
    return %c0_i32, %arg0 : i32, i32
  }
  func.func @transform_5(%arg0: i32) -> (i32, i32) {
    %c0_i32 = arith.constant 0 : i32
    %c0_i32_0 = arith.constant 0 : i32
    %c0_i32_1 = arith.constant 0 : i32
    return %c0_i32, %c0_i32_0 : i32, i32
  }
  func.func @transform_6(%arg0: i32) -> (i32, i32) {
    %c0_i32 = arith.constant 0 : i32
    %c0_i32_0 = arith.constant 0 : i32
    %c0_i32_1 = arith.constant 0 : i32
    return %c0_i32, %c0_i32_0 : i32, i32
  }
  func.func @transform_7(%arg0: i32) -> (i32, i32) {
    %c0_i32 = arith.constant 0 : i32
    %c0_i32_0 = arith.constant 0 : i32
    %c0_i32_1 = arith.constant 0 : i32
    return %c0_i32, %c0_i32_0 : i32, i32
  }
  func.func @transform_8(%arg0: i32) -> (i32, i32) {
    %c0_i32 = arith.constant 0 : i32
    %c0_i32_0 = arith.constant 0 : i32
    %c0_i32_1 = arith.constant 0 : i32
    return %c0_i32, %c0_i32_0 : i32, i32
  }
  func.func @transform_9(%arg0: i32) -> (i32, i32) {
    %c0_i32 = arith.constant 0 : i32
    %c0_i32_0 = arith.constant 0 : i32
    %c0_i32_1 = arith.constant 0 : i32
    return %c0_i32, %c0_i32_0 : i32, i32
  }
  func.func @transform_10(%arg0: i32) -> (i32, i32) {
    %c0_i32 = arith.constant 0 : i32
    %c0_i32_0 = arith.constant 0 : i32
    %c0_i32_1 = arith.constant 0 : i32
    return %c0_i32, %c0_i32_0 : i32, i32
  }
  func.func @transform_11(%arg0: i32) -> (i32, i32) {
    %c0_i32 = arith.constant 0 : i32
    %c0_i32_0 = arith.constant 0 : i32
    %c0_i32_1 = arith.constant 0 : i32
    return %c0_i32, %c0_i32_0 : i32, i32
  }
  func.func @transform_12(%arg0: i32) -> (i32, i32) {
    %c0_i32 = arith.constant 0 : i32
    %c0_i32_0 = arith.constant 0 : i32
    %c0_i32_1 = arith.constant 0 : i32
    return %c0_i32, %c0_i32_0 : i32, i32
  }
  func.func @transform_13(%arg0: i32) -> (i32, i32) {
    %c0_i32 = arith.constant 0 : i32
    %c0_i32_0 = arith.constant 0 : i32
    %c0_i32_1 = arith.constant 0 : i32
    return %c0_i32, %c0_i32_0 : i32, i32
  }
  func.func @transform_14(%arg0: i32) -> (i32, i32) {
    %c0_i32 = arith.constant 0 : i32
    %c0_i32_0 = arith.constant 0 : i32
    %c0_i32_1 = arith.constant 0 : i32
    return %c0_i32, %c0_i32_0 : i32, i32
  }
  func.func @transform_15(%arg0: i32) -> (i32, i32) {
    %c0_i32 = arith.constant 0 : i32
    %c0_i32_0 = arith.constant 0 : i32
    %c0_i32_1 = arith.constant 0 : i32
    return %c0_i32, %c0_i32_0 : i32, i32
  }
  func.func @transform_16(%arg0: i32) -> (i32, i32) {
    %c0_i32 = arith.constant 0 : i32
    %c0_i32_0 = arith.constant 0 : i32
    %c0_i32_1 = arith.constant 0 : i32
    return %c0_i32, %c0_i32_0 : i32, i32
  }
  func.func @transform_17(%arg0: i32) -> (i32, i32) {
    %c0_i32 = arith.constant 0 : i32
    %c0_i32_0 = arith.constant 0 : i32
    %c0_i32_1 = arith.constant 0 : i32
    return %c0_i32, %c0_i32_0 : i32, i32
  }
  func.func @transform_18(%arg0: i32) -> (i32, i32) {
    %c0_i32 = arith.constant 0 : i32
    %c0_i32_0 = arith.constant 0 : i32
    %c0_i32_1 = arith.constant 0 : i32
    return %c0_i32, %c0_i32_0 : i32, i32
  }
  func.func @transform_19(%arg0: i32) -> (i32, i32) {
    %c0_i32 = arith.constant 0 : i32
    %c0_i32_0 = arith.constant 0 : i32
    %c0_i32_1 = arith.constant 0 : i32
    return %c0_i32, %c0_i32_0 : i32, i32
  }
  func.func @transform_20(%arg0: i32) -> (i32, i32) {
    %c0_i32 = arith.constant 0 : i32
    %c0_i32_0 = arith.constant 0 : i32
    %c0_i32_1 = arith.constant 0 : i32
    return %c0_i32, %c0_i32_0 : i32, i32
  }
  func.func @transform_21(%arg0: i32) -> (i32, i32) {
    %c0_i32 = arith.constant 0 : i32
    %c0_i32_0 = arith.constant 0 : i32
    %c0_i32_1 = arith.constant 0 : i32
    return %c0_i32, %c0_i32_0 : i32, i32
  }
  func.func @transform_22(%arg0: i32) -> (i32, i32) {
    %c0_i32 = arith.constant 0 : i32
    %c0_i32_0 = arith.constant 0 : i32
    %c0_i32_1 = arith.constant 0 : i32
    return %c0_i32, %c0_i32_0 : i32, i32
  }
  func.func @transform_23(%arg0: i32) -> (i32, i32) {
    %c0_i32 = arith.constant 0 : i32
    %c0_i32_0 = arith.constant 0 : i32
    return %c0_i32, %arg0 : i32, i32
  }
}

module attributes {stable_mosaic.version = 11 : i64} {
  func.func @node_out_kernel(%arg0: i32, %arg1: memref<32x256xf32, #tpu.memory_space<vmem>>, %arg2: memref<3x16x256xf32, #tpu.memory_space<vmem>>, %arg3: memref<80x256xf32, #tpu.memory_space<vmem>>, %arg4: memref<16x16xf32, #tpu.memory_space<vmem>>, %arg5: memref<16x16xf32, #tpu.memory_space<vmem>>, %arg6: memref<32x48xf32, #tpu.memory_space<vmem>>, %arg7: memref<16x32xf32, #tpu.memory_space<vmem>>, %arg8: memref<16x1xf32, #tpu.memory_space<vmem>>, %arg9: memref<32x1xf32, #tpu.memory_space<vmem>>, %arg10: memref<32x1xf32, #tpu.memory_space<vmem>>, %arg11: memref<48x1xf32, #tpu.memory_space<vmem>>, %arg12: memref<48x1xf32, #tpu.memory_space<vmem>>, %arg13: memref<16x16xf32, #tpu.memory_space<vmem>>, %arg14: memref<16x16xf32, #tpu.memory_space<vmem>>, %arg15: memref<16x16xf32, #tpu.memory_space<vmem>>, %arg16: memref<32x48xf32, #tpu.memory_space<vmem>>, %arg17: memref<16x32xf32, #tpu.memory_space<vmem>>, %arg18: memref<16x1xf32, #tpu.memory_space<vmem>>, %arg19: memref<32x256xf32, #tpu.memory_space<vmem>>, %arg20: memref<3x16x256xf32, #tpu.memory_space<vmem>>) attributes {dimension_semantics = [#tpu.dimension_semantics<parallel>], iteration_bounds = array<i64: 1>, scalar_prefetch = 0 : i64, scratch_operands = 0 : i64, tpu.core_type = #tpu.core_type<tc>, window_params = [{transform_indices = @transform_0, window_bounds = array<i64: 32, 256>}, {transform_indices = @transform_1, window_bounds = array<i64: 3, 16, 256>}, {transform_indices = @transform_2, window_bounds = array<i64: 80, 256>}, {pipeline_mode = #tpu.pipeline_mode<synchronous>, transform_indices = @transform_3, window_bounds = array<i64: 16, 16>}, {pipeline_mode = #tpu.pipeline_mode<synchronous>, transform_indices = @transform_4, window_bounds = array<i64: 16, 16>}, {pipeline_mode = #tpu.pipeline_mode<synchronous>, transform_indices = @transform_5, window_bounds = array<i64: 32, 48>}, {pipeline_mode = #tpu.pipeline_mode<synchronous>, transform_indices = @transform_6, window_bounds = array<i64: 16, 32>}, {pipeline_mode = #tpu.pipeline_mode<synchronous>, transform_indices = @transform_7, window_bounds = array<i64: 16, 1>}, {pipeline_mode = #tpu.pipeline_mode<synchronous>, transform_indices = @transform_8, window_bounds = array<i64: 32, 1>}, {pipeline_mode = #tpu.pipeline_mode<synchronous>, transform_indices = @transform_9, window_bounds = array<i64: 32, 1>}, {pipeline_mode = #tpu.pipeline_mode<synchronous>, transform_indices = @transform_10, window_bounds = array<i64: 48, 1>}, {pipeline_mode = #tpu.pipeline_mode<synchronous>, transform_indices = @transform_11, window_bounds = array<i64: 48, 1>}, {pipeline_mode = #tpu.pipeline_mode<synchronous>, transform_indices = @transform_12, window_bounds = array<i64: 16, 16>}, {pipeline_mode = #tpu.pipeline_mode<synchronous>, transform_indices = @transform_13, window_bounds = array<i64: 16, 16>}, {pipeline_mode = #tpu.pipeline_mode<synchronous>, transform_indices = @transform_14, window_bounds = array<i64: 16, 16>}, {pipeline_mode = #tpu.pipeline_mode<synchronous>, transform_indices = @transform_15, window_bounds = array<i64: 32, 48>}, {pipeline_mode = #tpu.pipeline_mode<synchronous>, transform_indices = @transform_16, window_bounds = array<i64: 16, 32>}, {pipeline_mode = #tpu.pipeline_mode<synchronous>, transform_indices = @transform_17, window_bounds = array<i64: 16, 1>}, {transform_indices = @transform_18, window_bounds = array<i64: 32, 256>}, {transform_indices = @transform_19, window_bounds = array<i64: 3, 16, 256>}]} {
    %c0 = arith.constant 0 : index
    %c0_0 = arith.constant 0 : index
    %c0_1 = arith.constant 0 : index
    %0 = vector.load %arg2[%c0, %c0_0, %c0_1] : memref<3x16x256xf32, #tpu.memory_space<vmem>>, vector<1x16x256xf32>
    %1 = vector.shape_cast %0 : vector<1x16x256xf32> to vector<16x256xf32>
    %c1 = arith.constant 1 : index
    %c0_2 = arith.constant 0 : index
    %c0_3 = arith.constant 0 : index
    %2 = vector.load %arg2[%c1, %c0_2, %c0_3] : memref<3x16x256xf32, #tpu.memory_space<vmem>>, vector<1x16x256xf32>
    %3 = vector.shape_cast %2 : vector<1x16x256xf32> to vector<16x256xf32>
    %c2 = arith.constant 2 : index
    %c0_4 = arith.constant 0 : index
    %c0_5 = arith.constant 0 : index
    %4 = vector.load %arg2[%c2, %c0_4, %c0_5] : memref<3x16x256xf32, #tpu.memory_space<vmem>>, vector<1x16x256xf32>
    %5 = vector.shape_cast %4 : vector<1x16x256xf32> to vector<16x256xf32>
    %c0_6 = arith.constant 0 : index
    %c0_7 = arith.constant 0 : index
    %6 = vector.load %arg1[%c0_6, %c0_7] : memref<32x256xf32, #tpu.memory_space<vmem>>, vector<32x256xf32>
    %c0_8 = arith.constant 0 : index
    %c0_9 = arith.constant 0 : index
    %7 = vector.load %arg4[%c0_8, %c0_9] : memref<16x16xf32, #tpu.memory_space<vmem>>, vector<16x16xf32>
    %c0_10 = arith.constant 0 : index
    %c0_11 = arith.constant 0 : index
    %8 = vector.load %arg5[%c0_10, %c0_11] : memref<16x16xf32, #tpu.memory_space<vmem>>, vector<16x16xf32>
    %c0_12 = arith.constant 0 : index
    %c0_13 = arith.constant 0 : index
    %9 = vector.load %arg6[%c0_12, %c0_13] : memref<32x48xf32, #tpu.memory_space<vmem>>, vector<32x48xf32>
    %c0_14 = arith.constant 0 : index
    %c0_15 = arith.constant 0 : index
    %10 = vector.load %arg7[%c0_14, %c0_15] : memref<16x32xf32, #tpu.memory_space<vmem>>, vector<16x32xf32>
    %c0_16 = arith.constant 0 : index
    %c0_17 = arith.constant 0 : index
    %11 = vector.load %arg8[%c0_16, %c0_17] : memref<16x1xf32, #tpu.memory_space<vmem>>, vector<16x1xf32>
    %12 = tpu.concatenate %1, %3, %5 in 1 : vector<16x256xf32>, vector<16x256xf32>, vector<16x256xf32> -> vector<16x768xf32>
    %cst = arith.constant dense<0.000000e+00> : vector<16x768xf32>
    %13 = tpu.matmul %7, %12, %cst {dimension_numbers = #tpu.dot_dimension_numbers<[1], [0], [0], [1], [0, 0, 1, 1], [], []>} : vector<16x16xf32>, vector<16x768xf32>, vector<16x768xf32> -> vector<16x768xf32>
    %14 = vector.extract_strided_slice %13 {offsets = [0, 0], sizes = [16, 256], strides = [1, 1]} : vector<16x768xf32> to vector<16x256xf32>
    %15 = vector.extract_strided_slice %13 {offsets = [0, 256], sizes = [16, 256], strides = [1, 1]} : vector<16x768xf32> to vector<16x256xf32>
    %16 = vector.extract_strided_slice %13 {offsets = [0, 512], sizes = [16, 256], strides = [1, 1]} : vector<16x768xf32> to vector<16x256xf32>
    %17 = arith.mulf %14, %14 : vector<16x256xf32>
    %18 = arith.mulf %15, %15 : vector<16x256xf32>
    %19 = arith.addf %17, %18 : vector<16x256xf32>
    %20 = arith.mulf %16, %16 : vector<16x256xf32>
    %21 = arith.addf %19, %20 : vector<16x256xf32>
    %22 = math.sqrt %21 : vector<16x256xf32>
    %23 = tpu.concatenate %22, %6 in 0 : vector<16x256xf32>, vector<32x256xf32> -> vector<48x256xf32>
    %cst_18 = arith.constant dense<0.000000e+00> : vector<32x256xf32>
    %24 = tpu.matmul %9, %23, %cst_18 {dimension_numbers = #tpu.dot_dimension_numbers<[1], [0], [0], [1], [0, 0, 1, 1], [], []>} : vector<32x48xf32>, vector<48x256xf32>, vector<32x256xf32> -> vector<32x256xf32>
    %cst_19 = arith.constant dense<0.000000e+00> : vector<16x256xf32>
    %25 = tpu.matmul %10, %24, %cst_19 {dimension_numbers = #tpu.dot_dimension_numbers<[1], [0], [0], [1], [0, 0, 1, 1], [], []>} : vector<16x32xf32>, vector<32x256xf32>, vector<16x256xf32> -> vector<16x256xf32>
    %26 = vector.broadcast %11 : vector<16x1xf32> to vector<16x256xf32>
    %27 = arith.addf %25, %26 : vector<16x256xf32>
    %28 = arith.negf %27 : vector<16x256xf32>
    %29 = math.exp %28 : vector<16x256xf32>
    %cst_20 = arith.constant 1.000000e+00 : f32
    %30 = vector.broadcast %cst_20 : f32 to vector<16x256xf32>
    %31 = arith.addf %30, %29 : vector<16x256xf32>
    %32 = arith.divf %30, %31 : vector<16x256xf32>
    %33 = tpu.concatenate %14, %15, %16 in 1 : vector<16x256xf32>, vector<16x256xf32>, vector<16x256xf32> -> vector<16x768xf32>
    %cst_21 = arith.constant dense<0.000000e+00> : vector<16x768xf32>
    %34 = tpu.matmul %8, %33, %cst_21 {dimension_numbers = #tpu.dot_dimension_numbers<[1], [0], [0], [1], [0, 0, 1, 1], [], []>} : vector<16x16xf32>, vector<16x768xf32>, vector<16x768xf32> -> vector<16x768xf32>
    %35 = vector.extract_strided_slice %34 {offsets = [0, 0], sizes = [16, 256], strides = [1, 1]} : vector<16x768xf32> to vector<16x256xf32>
    %36 = vector.extract_strided_slice %34 {offsets = [0, 256], sizes = [16, 256], strides = [1, 1]} : vector<16x768xf32> to vector<16x256xf32>
    %37 = vector.extract_strided_slice %34 {offsets = [0, 512], sizes = [16, 256], strides = [1, 1]} : vector<16x768xf32> to vector<16x256xf32>
    %38 = arith.mulf %32, %35 : vector<16x256xf32>
    %39 = arith.mulf %32, %36 : vector<16x256xf32>
    %40 = arith.mulf %32, %37 : vector<16x256xf32>
    %c0_22 = arith.constant 0 : index
    %c0_23 = arith.constant 0 : index
    %41 = vector.load %arg3[%c0_22, %c0_23] : memref<80x256xf32, #tpu.memory_space<vmem>>, vector<80x256xf32>
    %42 = vector.extract_strided_slice %41 {offsets = [0, 0], sizes = [32, 256], strides = [1, 1]} : vector<80x256xf32> to vector<32x256xf32>
    %43 = arith.addf %24, %42 : vector<32x256xf32>
    %44 = vector.extract_strided_slice %41 {offsets = [32, 0], sizes = [16, 256], strides = [1, 1]} : vector<80x256xf32> to vector<16x256xf32>
    %45 = arith.addf %38, %44 : vector<16x256xf32>
    %46 = vector.extract_strided_slice %41 {offsets = [48, 0], sizes = [16, 256], strides = [1, 1]} : vector<80x256xf32> to vector<16x256xf32>
    %47 = arith.addf %39, %46 : vector<16x256xf32>
    %48 = vector.extract_strided_slice %41 {offsets = [64, 0], sizes = [16, 256], strides = [1, 1]} : vector<80x256xf32> to vector<16x256xf32>
    %49 = arith.addf %40, %48 : vector<16x256xf32>
    %cst_24 = arith.constant dense<0.000000e+00> : vector<256xf32>
    %50 = vector.multi_reduction <add>, %43, %cst_24 [0] : vector<32x256xf32> to vector<256xf32>
    %51 = vector.shape_cast %50 : vector<256xf32> to vector<1x256xf32>
    %cst_25 = arith.constant 3.125000e-02 : f32
    %52 = vector.broadcast %cst_25 : f32 to vector<1x256xf32>
    %53 = arith.mulf %51, %52 : vector<1x256xf32>
    %54 = vector.broadcast %53 : vector<1x256xf32> to vector<32x256xf32>
    %55 = arith.subf %43, %54 : vector<32x256xf32>
    %56 = arith.mulf %55, %55 : vector<32x256xf32>
    %cst_26 = arith.constant dense<0.000000e+00> : vector<256xf32>
    %57 = vector.multi_reduction <add>, %56, %cst_26 [0] : vector<32x256xf32> to vector<256xf32>
    %58 = vector.shape_cast %57 : vector<256xf32> to vector<1x256xf32>
    %cst_27 = arith.constant 3.125000e-02 : f32
    %59 = vector.broadcast %cst_27 : f32 to vector<1x256xf32>
    %60 = arith.mulf %58, %59 : vector<1x256xf32>
    %61 = vector.broadcast %53 : vector<1x256xf32> to vector<32x256xf32>
    %62 = arith.subf %43, %61 : vector<32x256xf32>
    %cst_28 = arith.constant 9.99999974E-6 : f32
    %63 = vector.broadcast %cst_28 : f32 to vector<1x256xf32>
    %64 = arith.addf %60, %63 : vector<1x256xf32>
    %65 = math.rsqrt %64 : vector<1x256xf32>
    %66 = vector.broadcast %65 : vector<1x256xf32> to vector<32x256xf32>
    %67 = arith.mulf %62, %66 : vector<32x256xf32>
    %c0_29 = arith.constant 0 : index
    %c0_30 = arith.constant 0 : index
    %68 = vector.load %arg9[%c0_29, %c0_30] : memref<32x1xf32, #tpu.memory_space<vmem>>, vector<32x1xf32>
    %69 = vector.broadcast %68 : vector<32x1xf32> to vector<32x256xf32>
    %70 = arith.mulf %67, %69 : vector<32x256xf32>
    %c0_31 = arith.constant 0 : index
    %c0_32 = arith.constant 0 : index
    %71 = vector.load %arg10[%c0_31, %c0_32] : memref<32x1xf32, #tpu.memory_space<vmem>>, vector<32x1xf32>
    %72 = vector.broadcast %71 : vector<32x1xf32> to vector<32x256xf32>
    %73 = arith.addf %70, %72 : vector<32x256xf32>
    %74 = arith.addf %45, %47 : vector<16x256xf32>
    %75 = arith.addf %74, %49 : vector<16x256xf32>
    %cst_33 = arith.constant dense<0.000000e+00> : vector<256xf32>
    %76 = vector.multi_reduction <add>, %75, %cst_33 [0] : vector<16x256xf32> to vector<256xf32>
    %77 = vector.shape_cast %76 : vector<256xf32> to vector<1x256xf32>
    %cst_34 = arith.constant 0.020833334 : f32
    %78 = vector.broadcast %cst_34 : f32 to vector<1x256xf32>
    %79 = arith.mulf %77, %78 : vector<1x256xf32>
    %80 = vector.broadcast %79 : vector<1x256xf32> to vector<16x256xf32>
    %81 = arith.subf %45, %80 : vector<16x256xf32>
    %82 = arith.mulf %81, %81 : vector<16x256xf32>
    %83 = vector.broadcast %79 : vector<1x256xf32> to vector<16x256xf32>
    %84 = arith.subf %47, %83 : vector<16x256xf32>
    %85 = arith.mulf %84, %84 : vector<16x256xf32>
    %86 = arith.addf %82, %85 : vector<16x256xf32>
    %87 = vector.broadcast %79 : vector<1x256xf32> to vector<16x256xf32>
    %88 = arith.subf %49, %87 : vector<16x256xf32>
    %89 = arith.mulf %88, %88 : vector<16x256xf32>
    %90 = arith.addf %86, %89 : vector<16x256xf32>
    %cst_35 = arith.constant dense<0.000000e+00> : vector<256xf32>
    %91 = vector.multi_reduction <add>, %90, %cst_35 [0] : vector<16x256xf32> to vector<256xf32>
    %92 = vector.shape_cast %91 : vector<256xf32> to vector<1x256xf32>
    %cst_36 = arith.constant 0.020833334 : f32
    %93 = vector.broadcast %cst_36 : f32 to vector<1x256xf32>
    %94 = arith.mulf %92, %93 : vector<1x256xf32>
    %cst_37 = arith.constant 9.99999974E-6 : f32
    %95 = vector.broadcast %cst_37 : f32 to vector<1x256xf32>
    %96 = arith.addf %94, %95 : vector<1x256xf32>
    %97 = math.rsqrt %96 : vector<1x256xf32>
    %c0_38 = arith.constant 0 : index
    %c0_39 = arith.constant 0 : index
    %98 = vector.load %arg11[%c0_38, %c0_39] : memref<48x1xf32, #tpu.memory_space<vmem>>, vector<48x1xf32>
    %c0_40 = arith.constant 0 : index
    %c0_41 = arith.constant 0 : index
    %99 = vector.load %arg12[%c0_40, %c0_41] : memref<48x1xf32, #tpu.memory_space<vmem>>, vector<48x1xf32>
    %100 = vector.broadcast %79 : vector<1x256xf32> to vector<16x256xf32>
    %101 = arith.subf %45, %100 : vector<16x256xf32>
    %102 = vector.broadcast %97 : vector<1x256xf32> to vector<16x256xf32>
    %103 = arith.mulf %101, %102 : vector<16x256xf32>
    %104 = vector.extract_strided_slice %98 {offsets = [0, 0], sizes = [16, 1], strides = [1, 1]} : vector<48x1xf32> to vector<16x1xf32>
    %105 = vector.broadcast %104 : vector<16x1xf32> to vector<16x256xf32>
    %106 = arith.mulf %103, %105 : vector<16x256xf32>
    %107 = vector.extract_strided_slice %99 {offsets = [0, 0], sizes = [16, 1], strides = [1, 1]} : vector<48x1xf32> to vector<16x1xf32>
    %108 = vector.broadcast %107 : vector<16x1xf32> to vector<16x256xf32>
    %109 = arith.addf %106, %108 : vector<16x256xf32>
    %110 = vector.broadcast %79 : vector<1x256xf32> to vector<16x256xf32>
    %111 = arith.subf %47, %110 : vector<16x256xf32>
    %112 = vector.broadcast %97 : vector<1x256xf32> to vector<16x256xf32>
    %113 = arith.mulf %111, %112 : vector<16x256xf32>
    %114 = vector.extract_strided_slice %98 {offsets = [16, 0], sizes = [16, 1], strides = [1, 1]} : vector<48x1xf32> to vector<16x1xf32>
    %115 = vector.broadcast %114 : vector<16x1xf32> to vector<16x256xf32>
    %116 = arith.mulf %113, %115 : vector<16x256xf32>
    %117 = vector.extract_strided_slice %99 {offsets = [16, 0], sizes = [16, 1], strides = [1, 1]} : vector<48x1xf32> to vector<16x1xf32>
    %118 = vector.broadcast %117 : vector<16x1xf32> to vector<16x256xf32>
    %119 = arith.addf %116, %118 : vector<16x256xf32>
    %120 = vector.broadcast %79 : vector<1x256xf32> to vector<16x256xf32>
    %121 = arith.subf %49, %120 : vector<16x256xf32>
    %122 = vector.broadcast %97 : vector<1x256xf32> to vector<16x256xf32>
    %123 = arith.mulf %121, %122 : vector<16x256xf32>
    %124 = vector.extract_strided_slice %98 {offsets = [32, 0], sizes = [16, 1], strides = [1, 1]} : vector<48x1xf32> to vector<16x1xf32>
    %125 = vector.broadcast %124 : vector<16x1xf32> to vector<16x256xf32>
    %126 = arith.mulf %123, %125 : vector<16x256xf32>
    %127 = vector.extract_strided_slice %99 {offsets = [32, 0], sizes = [16, 1], strides = [1, 1]} : vector<48x1xf32> to vector<16x1xf32>
    %128 = vector.broadcast %127 : vector<16x1xf32> to vector<16x256xf32>
    %129 = arith.addf %126, %128 : vector<16x256xf32>
    %cst_42 = arith.constant 0.000000e+00 : f32
    %130 = vector.broadcast %cst_42 : f32 to vector<32x256xf32>
    %131 = arith.cmpf oge, %73, %130 : vector<32x256xf32>
    %cst_43 = arith.constant 0.00999999977 : f32
    %132 = vector.broadcast %cst_43 : f32 to vector<32x256xf32>
    %133 = arith.mulf %132, %73 : vector<32x256xf32>
    %134 = arith.select %131, %73, %133 : vector<32x256xi1>, vector<32x256xf32>
    %c0_44 = arith.constant 0 : index
    %c0_45 = arith.constant 0 : index
    %135 = vector.load %arg13[%c0_44, %c0_45] : memref<16x16xf32, #tpu.memory_space<vmem>>, vector<16x16xf32>
    %136 = tpu.concatenate %109, %119, %129 in 1 : vector<16x256xf32>, vector<16x256xf32>, vector<16x256xf32> -> vector<16x768xf32>
    %cst_46 = arith.constant dense<0.000000e+00> : vector<16x768xf32>
    %137 = tpu.matmul %135, %136, %cst_46 {dimension_numbers = #tpu.dot_dimension_numbers<[1], [0], [0], [1], [0, 0, 1, 1], [], []>} : vector<16x16xf32>, vector<16x768xf32>, vector<16x768xf32> -> vector<16x768xf32>
    %138 = vector.extract_strided_slice %137 {offsets = [0, 0], sizes = [16, 256], strides = [1, 1]} : vector<16x768xf32> to vector<16x256xf32>
    %139 = vector.extract_strided_slice %137 {offsets = [0, 256], sizes = [16, 256], strides = [1, 1]} : vector<16x768xf32> to vector<16x256xf32>
    %140 = vector.extract_strided_slice %137 {offsets = [0, 512], sizes = [16, 256], strides = [1, 1]} : vector<16x768xf32> to vector<16x256xf32>
    %141 = arith.mulf %109, %138 : vector<16x256xf32>
    %142 = arith.mulf %119, %139 : vector<16x256xf32>
    %143 = arith.addf %141, %142 : vector<16x256xf32>
    %144 = arith.mulf %129, %140 : vector<16x256xf32>
    %145 = arith.addf %143, %144 : vector<16x256xf32>
    %146 = arith.mulf %138, %138 : vector<16x256xf32>
    %147 = arith.mulf %139, %139 : vector<16x256xf32>
    %148 = arith.addf %146, %147 : vector<16x256xf32>
    %149 = arith.mulf %140, %140 : vector<16x256xf32>
    %150 = arith.addf %148, %149 : vector<16x256xf32>
    %cst_47 = arith.constant 0.000000e+00 : f32
    %151 = vector.broadcast %cst_47 : f32 to vector<16x256xf32>
    %152 = arith.cmpf oge, %145, %151 : vector<16x256xf32>
    %153 = arith.extui %152 : vector<16x256xi1> to vector<16x256xi32>
    %154 = arith.sitofp %153 : vector<16x256xi32> to vector<16x256xf32>
    %cst_48 = arith.constant 9.99999997E-7 : f32
    %155 = vector.broadcast %cst_48 : f32 to vector<16x256xf32>
    %156 = arith.addf %150, %155 : vector<16x256xf32>
    %157 = tpu.reciprocal %156 {approx = true} : vector<16x256xf32> -> vector<16x256xf32>
    %158 = arith.mulf %145, %157 : vector<16x256xf32>
    %cst_49 = arith.constant 2.000000e-01 : f32
    %159 = vector.broadcast %cst_49 : f32 to vector<16x256xf32>
    %160 = arith.mulf %159, %109 : vector<16x256xf32>
    %161 = arith.mulf %154, %109 : vector<16x256xf32>
    %cst_50 = arith.constant 1.000000e+00 : f32
    %162 = vector.broadcast %cst_50 : f32 to vector<16x256xf32>
    %163 = arith.subf %162, %154 : vector<16x256xf32>
    %164 = arith.mulf %158, %138 : vector<16x256xf32>
    %165 = arith.subf %109, %164 : vector<16x256xf32>
    %166 = arith.mulf %163, %165 : vector<16x256xf32>
    %167 = arith.addf %161, %166 : vector<16x256xf32>
    %cst_51 = arith.constant 8.000000e-01 : f32
    %168 = vector.broadcast %cst_51 : f32 to vector<16x256xf32>
    %169 = arith.mulf %168, %167 : vector<16x256xf32>
    %170 = arith.addf %160, %169 : vector<16x256xf32>
    %cst_52 = arith.constant 2.000000e-01 : f32
    %171 = vector.broadcast %cst_52 : f32 to vector<16x256xf32>
    %172 = arith.mulf %171, %119 : vector<16x256xf32>
    %173 = arith.mulf %154, %119 : vector<16x256xf32>
    %cst_53 = arith.constant 1.000000e+00 : f32
    %174 = vector.broadcast %cst_53 : f32 to vector<16x256xf32>
    %175 = arith.subf %174, %154 : vector<16x256xf32>
    %176 = arith.mulf %158, %139 : vector<16x256xf32>
    %177 = arith.subf %119, %176 : vector<16x256xf32>
    %178 = arith.mulf %175, %177 : vector<16x256xf32>
    %179 = arith.addf %173, %178 : vector<16x256xf32>
    %cst_54 = arith.constant 8.000000e-01 : f32
    %180 = vector.broadcast %cst_54 : f32 to vector<16x256xf32>
    %181 = arith.mulf %180, %179 : vector<16x256xf32>
    %182 = arith.addf %172, %181 : vector<16x256xf32>
    %cst_55 = arith.constant 2.000000e-01 : f32
    %183 = vector.broadcast %cst_55 : f32 to vector<16x256xf32>
    %184 = arith.mulf %183, %129 : vector<16x256xf32>
    %185 = arith.mulf %154, %129 : vector<16x256xf32>
    %cst_56 = arith.constant 1.000000e+00 : f32
    %186 = vector.broadcast %cst_56 : f32 to vector<16x256xf32>
    %187 = arith.subf %186, %154 : vector<16x256xf32>
    %188 = arith.mulf %158, %140 : vector<16x256xf32>
    %189 = arith.subf %129, %188 : vector<16x256xf32>
    %190 = arith.mulf %187, %189 : vector<16x256xf32>
    %191 = arith.addf %185, %190 : vector<16x256xf32>
    %cst_57 = arith.constant 8.000000e-01 : f32
    %192 = vector.broadcast %cst_57 : f32 to vector<16x256xf32>
    %193 = arith.mulf %192, %191 : vector<16x256xf32>
    %194 = arith.addf %184, %193 : vector<16x256xf32>
    %c0_58 = arith.constant 0 : index
    %c0_59 = arith.constant 0 : index
    %195 = vector.load %arg14[%c0_58, %c0_59] : memref<16x16xf32, #tpu.memory_space<vmem>>, vector<16x16xf32>
    %c0_60 = arith.constant 0 : index
    %c0_61 = arith.constant 0 : index
    %196 = vector.load %arg15[%c0_60, %c0_61] : memref<16x16xf32, #tpu.memory_space<vmem>>, vector<16x16xf32>
    %c0_62 = arith.constant 0 : index
    %c0_63 = arith.constant 0 : index
    %197 = vector.load %arg16[%c0_62, %c0_63] : memref<32x48xf32, #tpu.memory_space<vmem>>, vector<32x48xf32>
    %c0_64 = arith.constant 0 : index
    %c0_65 = arith.constant 0 : index
    %198 = vector.load %arg17[%c0_64, %c0_65] : memref<16x32xf32, #tpu.memory_space<vmem>>, vector<16x32xf32>
    %c0_66 = arith.constant 0 : index
    %c0_67 = arith.constant 0 : index
    %199 = vector.load %arg18[%c0_66, %c0_67] : memref<16x1xf32, #tpu.memory_space<vmem>>, vector<16x1xf32>
    %200 = tpu.concatenate %170, %182, %194 in 1 : vector<16x256xf32>, vector<16x256xf32>, vector<16x256xf32> -> vector<16x768xf32>
    %cst_68 = arith.constant dense<0.000000e+00> : vector<16x768xf32>
    %201 = tpu.matmul %195, %200, %cst_68 {dimension_numbers = #tpu.dot_dimension_numbers<[1], [0], [0], [1], [0, 0, 1, 1], [], []>} : vector<16x16xf32>, vector<16x768xf32>, vector<16x768xf32> -> vector<16x768xf32>
    %202 = vector.extract_strided_slice %201 {offsets = [0, 0], sizes = [16, 256], strides = [1, 1]} : vector<16x768xf32> to vector<16x256xf32>
    %203 = vector.extract_strided_slice %201 {offsets = [0, 256], sizes = [16, 256], strides = [1, 1]} : vector<16x768xf32> to vector<16x256xf32>
    %204 = vector.extract_strided_slice %201 {offsets = [0, 512], sizes = [16, 256], strides = [1, 1]} : vector<16x768xf32> to vector<16x256xf32>
    %205 = arith.mulf %202, %202 : vector<16x256xf32>
    %206 = arith.mulf %203, %203 : vector<16x256xf32>
    %207 = arith.addf %205, %206 : vector<16x256xf32>
    %208 = arith.mulf %204, %204 : vector<16x256xf32>
    %209 = arith.addf %207, %208 : vector<16x256xf32>
    %210 = math.sqrt %209 : vector<16x256xf32>
    %211 = tpu.concatenate %210, %134 in 0 : vector<16x256xf32>, vector<32x256xf32> -> vector<48x256xf32>
    %cst_69 = arith.constant dense<0.000000e+00> : vector<32x256xf32>
    %212 = tpu.matmul %197, %211, %cst_69 {dimension_numbers = #tpu.dot_dimension_numbers<[1], [0], [0], [1], [0, 0, 1, 1], [], []>} : vector<32x48xf32>, vector<48x256xf32>, vector<32x256xf32> -> vector<32x256xf32>
    %cst_70 = arith.constant dense<0.000000e+00> : vector<16x256xf32>
    %213 = tpu.matmul %198, %212, %cst_70 {dimension_numbers = #tpu.dot_dimension_numbers<[1], [0], [0], [1], [0, 0, 1, 1], [], []>} : vector<16x32xf32>, vector<32x256xf32>, vector<16x256xf32> -> vector<16x256xf32>
    %214 = vector.broadcast %199 : vector<16x1xf32> to vector<16x256xf32>
    %215 = arith.addf %213, %214 : vector<16x256xf32>
    %216 = arith.negf %215 : vector<16x256xf32>
    %217 = math.exp %216 : vector<16x256xf32>
    %cst_71 = arith.constant 1.000000e+00 : f32
    %218 = vector.broadcast %cst_71 : f32 to vector<16x256xf32>
    %219 = arith.addf %218, %217 : vector<16x256xf32>
    %220 = arith.divf %218, %219 : vector<16x256xf32>
    %221 = tpu.concatenate %202, %203, %204 in 1 : vector<16x256xf32>, vector<16x256xf32>, vector<16x256xf32> -> vector<16x768xf32>
    %cst_72 = arith.constant dense<0.000000e+00> : vector<16x768xf32>
    %222 = tpu.matmul %196, %221, %cst_72 {dimension_numbers = #tpu.dot_dimension_numbers<[1], [0], [0], [1], [0, 0, 1, 1], [], []>} : vector<16x16xf32>, vector<16x768xf32>, vector<16x768xf32> -> vector<16x768xf32>
    %223 = vector.extract_strided_slice %222 {offsets = [0, 0], sizes = [16, 256], strides = [1, 1]} : vector<16x768xf32> to vector<16x256xf32>
    %224 = vector.extract_strided_slice %222 {offsets = [0, 256], sizes = [16, 256], strides = [1, 1]} : vector<16x768xf32> to vector<16x256xf32>
    %225 = vector.extract_strided_slice %222 {offsets = [0, 512], sizes = [16, 256], strides = [1, 1]} : vector<16x768xf32> to vector<16x256xf32>
    %226 = arith.mulf %220, %223 : vector<16x256xf32>
    %227 = arith.mulf %220, %224 : vector<16x256xf32>
    %228 = arith.mulf %220, %225 : vector<16x256xf32>
    %c0_73 = arith.constant 0 : index
    %c0_74 = arith.constant 0 : index
    %229 = vector.load %arg19[%c0_73, %c0_74] : memref<32x256xf32, #tpu.memory_space<vmem>>, vector<32x256xf32>
    tpu.vector_store %arg19[%c0_73, %c0_74], %212 {strides = array<i32>} : memref<32x256xf32, #tpu.memory_space<vmem>>, vector<32x256xf32>,
    %c0_75 = arith.constant 0 : index
    %c0_76 = arith.constant 0 : index
    %c0_77 = arith.constant 0 : index
    %230 = vector.load %arg20[%c0_75, %c0_76, %c0_77] : memref<3x16x256xf32, #tpu.memory_space<vmem>>, vector<1x16x256xf32>
    %231 = vector.shape_cast %230 : vector<1x16x256xf32> to vector<16x256xf32>
    %232 = vector.shape_cast %226 : vector<16x256xf32> to vector<1x16x256xf32>
    tpu.vector_store %arg20[%c0_75, %c0_76, %c0_77], %232 {strides = array<i32>} : memref<3x16x256xf32, #tpu.memory_space<vmem>>, vector<1x16x256xf32>,
    %c1_78 = arith.constant 1 : index
    %c0_79 = arith.constant 0 : index
    %c0_80 = arith.constant 0 : index
    %233 = vector.load %arg20[%c1_78, %c0_79, %c0_80] : memref<3x16x256xf32, #tpu.memory_space<vmem>>, vector<1x16x256xf32>
    %234 = vector.shape_cast %233 : vector<1x16x256xf32> to vector<16x256xf32>
    %235 = vector.shape_cast %227 : vector<16x256xf32> to vector<1x16x256xf32>
    tpu.vector_store %arg20[%c1_78, %c0_79, %c0_80], %235 {strides = array<i32>} : memref<3x16x256xf32, #tpu.memory_space<vmem>>, vector<1x16x256xf32>,
    %c2_81 = arith.constant 2 : index
    %c0_82 = arith.constant 0 : index
    %c0_83 = arith.constant 0 : index
    %236 = vector.load %arg20[%c2_81, %c0_82, %c0_83] : memref<3x16x256xf32, #tpu.memory_space<vmem>>, vector<1x16x256xf32>
    %237 = vector.shape_cast %236 : vector<1x16x256xf32> to vector<16x256xf32>
    %238 = vector.shape_cast %228 : vector<16x256xf32> to vector<1x16x256xf32>
    tpu.vector_store %arg20[%c2_81, %c0_82, %c0_83], %238 {strides = array<i32>} : memref<3x16x256xf32, #tpu.memory_space<vmem>>, vector<1x16x256xf32>,
    return
  }
  func.func @transform_0(%arg0: i32) -> (i32, i32) {
    %c0_i32 = arith.constant 0 : i32
    %c0_i32_0 = arith.constant 0 : i32
    return %c0_i32, %arg0 : i32, i32
  }
  func.func @transform_1(%arg0: i32) -> (i32, i32, i32) {
    %c0_i32 = arith.constant 0 : i32
    %c0_i32_0 = arith.constant 0 : i32
    %c0_i32_1 = arith.constant 0 : i32
    return %c0_i32, %c0_i32_0, %arg0 : i32, i32, i32
  }
  func.func @transform_2(%arg0: i32) -> (i32, i32) {
    %c0_i32 = arith.constant 0 : i32
    %c0_i32_0 = arith.constant 0 : i32
    return %c0_i32, %arg0 : i32, i32
  }
  func.func @transform_3(%arg0: i32) -> (i32, i32) {
    %c0_i32 = arith.constant 0 : i32
    %c0_i32_0 = arith.constant 0 : i32
    %c0_i32_1 = arith.constant 0 : i32
    return %c0_i32, %c0_i32_0 : i32, i32
  }
  func.func @transform_4(%arg0: i32) -> (i32, i32) {
    %c0_i32 = arith.constant 0 : i32
    %c0_i32_0 = arith.constant 0 : i32
    %c0_i32_1 = arith.constant 0 : i32
    return %c0_i32, %c0_i32_0 : i32, i32
  }
  func.func @transform_5(%arg0: i32) -> (i32, i32) {
    %c0_i32 = arith.constant 0 : i32
    %c0_i32_0 = arith.constant 0 : i32
    %c0_i32_1 = arith.constant 0 : i32
    return %c0_i32, %c0_i32_0 : i32, i32
  }
  func.func @transform_6(%arg0: i32) -> (i32, i32) {
    %c0_i32 = arith.constant 0 : i32
    %c0_i32_0 = arith.constant 0 : i32
    %c0_i32_1 = arith.constant 0 : i32
    return %c0_i32, %c0_i32_0 : i32, i32
  }
  func.func @transform_7(%arg0: i32) -> (i32, i32) {
    %c0_i32 = arith.constant 0 : i32
    %c0_i32_0 = arith.constant 0 : i32
    %c0_i32_1 = arith.constant 0 : i32
    return %c0_i32, %c0_i32_0 : i32, i32
  }
  func.func @transform_8(%arg0: i32) -> (i32, i32) {
    %c0_i32 = arith.constant 0 : i32
    %c0_i32_0 = arith.constant 0 : i32
    %c0_i32_1 = arith.constant 0 : i32
    return %c0_i32, %c0_i32_0 : i32, i32
  }
  func.func @transform_9(%arg0: i32) -> (i32, i32) {
    %c0_i32 = arith.constant 0 : i32
    %c0_i32_0 = arith.constant 0 : i32
    %c0_i32_1 = arith.constant 0 : i32
    return %c0_i32, %c0_i32_0 : i32, i32
  }
  func.func @transform_10(%arg0: i32) -> (i32, i32) {
    %c0_i32 = arith.constant 0 : i32
    %c0_i32_0 = arith.constant 0 : i32
    %c0_i32_1 = arith.constant 0 : i32
    return %c0_i32, %c0_i32_0 : i32, i32
  }
  func.func @transform_11(%arg0: i32) -> (i32, i32) {
    %c0_i32 = arith.constant 0 : i32
    %c0_i32_0 = arith.constant 0 : i32
    %c0_i32_1 = arith.constant 0 : i32
    return %c0_i32, %c0_i32_0 : i32, i32
  }
  func.func @transform_12(%arg0: i32) -> (i32, i32) {
    %c0_i32 = arith.constant 0 : i32
    %c0_i32_0 = arith.constant 0 : i32
    %c0_i32_1 = arith.constant 0 : i32
    return %c0_i32, %c0_i32_0 : i32, i32
  }
  func.func @transform_13(%arg0: i32) -> (i32, i32) {
    %c0_i32 = arith.constant 0 : i32
    %c0_i32_0 = arith.constant 0 : i32
    %c0_i32_1 = arith.constant 0 : i32
    return %c0_i32, %c0_i32_0 : i32, i32
  }
  func.func @transform_14(%arg0: i32) -> (i32, i32) {
    %c0_i32 = arith.constant 0 : i32
    %c0_i32_0 = arith.constant 0 : i32
    %c0_i32_1 = arith.constant 0 : i32
    return %c0_i32, %c0_i32_0 : i32, i32
  }
  func.func @transform_15(%arg0: i32) -> (i32, i32) {
    %c0_i32 = arith.constant 0 : i32
    %c0_i32_0 = arith.constant 0 : i32
    %c0_i32_1 = arith.constant 0 : i32
    return %c0_i32, %c0_i32_0 : i32, i32
  }
  func.func @transform_16(%arg0: i32) -> (i32, i32) {
    %c0_i32 = arith.constant 0 : i32
    %c0_i32_0 = arith.constant 0 : i32
    %c0_i32_1 = arith.constant 0 : i32
    return %c0_i32, %c0_i32_0 : i32, i32
  }
  func.func @transform_17(%arg0: i32) -> (i32, i32) {
    %c0_i32 = arith.constant 0 : i32
    %c0_i32_0 = arith.constant 0 : i32
    %c0_i32_1 = arith.constant 0 : i32
    return %c0_i32, %c0_i32_0 : i32, i32
  }
  func.func @transform_18(%arg0: i32) -> (i32, i32) {
    %c0_i32 = arith.constant 0 : i32
    %c0_i32_0 = arith.constant 0 : i32
    return %c0_i32, %arg0 : i32, i32
  }
  func.func @transform_19(%arg0: i32) -> (i32, i32, i32) {
    %c0_i32 = arith.constant 0 : i32
    %c0_i32_0 = arith.constant 0 : i32
    %c0_i32_1 = arith.constant 0 : i32
    return %c0_i32, %c0_i32_0, %arg0 : i32, i32, i32
  }
}

</mosaic_0001>

<bundles_post_ra>
// kernel: attention_interaction_block_vn.4
= control target key start
LH: loop header
LB: loop body
LE: loop exit
PB: predicated region body
PF: predicated region fallthrough
CT: control target
= control target key end

     0   :  { %vm62_vm0 = vcmask 130048   ;;  %vm275_vm8 = vcmask 392192   ;;  %vm356_vm10 = vcmask 261120   ;;  %s1059_s1 = inlined_call_operand.vmem [shape: f32[3,16,256], index: 1, kind: input, shape index: {}]   ;;  %s1060_s2 = inlined_call_operand.vmem [shape: f32[16,16], index: 2, kind: input, shape index: {}]   ;;  %s1061_s0 = inlined_call_operand.vmem [shape: f32[32,256], index: 0, kind: input, shape index: {}]   ;;  %s1062_s4 = inlined_call_operand.vmem [shape: f32[32,48], index: 4, kind: input, shape index: {}]   ;;  %s1063_s7 = inlined_call_operand.vmem [shape: bf16[32,256], index: 7, kind: output, shape index: {0}]   ;;  %s1064_s6 = inlined_call_operand.vmem [shape: f32[16,1], index: 6, kind: input, shape index: {}]   ;;  %s1065_s3 = inlined_call_operand.vmem [shape: f32[16,16], index: 3, kind: input, shape index: {}]   ;;  %s1066_s5 = inlined_call_operand.vmem [shape: f32[16,32], index: 5, kind: input, shape index: {}]   ;;  %s1067_s8 = inlined_call_operand.vmem [shape: bf16[3,16,256], index: 8, kind: output, shape index: {1}]  }
   0x1   :  { %v30_v0 = vld [vmem:[%s1059_s1 + $0x10] sm:$0xff]  ;;  %v31_v1 = vld [vmem:[%s1059_s1 + $0x18] sm:$0xff]  ;;  %v28_v2 = vld [vmem:[%s1059_s1] sm:$0xff] }
   0x2   :  { %723 = vmatpush.msra.mxu2 %v30_v0  ;;  %725 = vmatpush.msra.mxu3 %v31_v1  ;;  %v29_v3 = vld [vmem:[%s1059_s1 + $0x8] sm:$0xff]  ;;  %v673_v5 = vld [vmem:[%s1059_s1 + $0x30] sm:$0xff]  ;;  %v674_v6 = vld [vmem:[%s1059_s1 + $0x38] sm:$0xff] }
   0x3   :  { %v51_v4 = vld [vmem:[%s1060_s2 + $0x8] sm:$0xff]  ;;  %83 = vmatpush.msra.mxu0 %v30_v0  ;;  %106 = vmatpush.msra.mxu1 %v31_v1  ;;  %v671_v7 = vld [vmem:[%s1059_s1 + $0x20] sm:$0xff]  ;;  %v677_v10 = vld [vmem:[%s1059_s1 + $0x50] sm:$0xff] }
   0x4   :  { %724 = vmatpush.msra.mxu2 %v28_v2  ;;  %726 = vmatpush.msra.mxu3 %v29_v3  ;;  %v672_v8 = vld [vmem:[%s1059_s1 + $0x28] sm:$0xff]  ;;  %v50_v9 = vld [vmem:[%s1060_s2] sm:$0xff]  ;;  %v678_v11 = vld [vmem:[%s1059_s1 + $0x58] sm:$0xff] }
   0x5   :  { %680 = vmatmul.msk.f32.vlgmr.msra.gmra.mxu2 %vm62_vm0, %v51_v4  ;;  %682 = vmatmul.msk.f32.vlgmr.msra.gmra.mxu3 %vm62_vm0, %v51_v4  ;;  %v675_v12 = vld [vmem:[%s1059_s1 + $0x40] sm:$0xff]  ;;  %v676_v13 = vld [vmem:[%s1059_s1 + $0x48] sm:$0xff]  ;;  %v48_v14 = vld [vmem:[%s1061_s0 + $0x30] sm:$0xff] }
   0x6   :  { %129 = vmatpush.msrb.mxu2 %v673_v5  ;;  %152 = vmatpush.msrb.mxu3 %v674_v6  ;;  %v49_v15 = vld [vmem:[%s1061_s0 + $0x38] sm:$0xff]  ;;  %v46_v16 = vld [vmem:[%s1061_s0 + $0x20] sm:$0xff]  ;;  %v47_v17 = vld [vmem:[%s1061_s0 + $0x28] sm:$0xff] }
   0x7   :  { %84 = vmatpush.msra.mxu0 %v28_v2  ;;  %107 = vmatpush.msra.mxu1 %v29_v3  ;;  %v44_v18 = vld [vmem:[%s1061_s0 + $0x10] sm:$0xff]  ;;  %v45_v19 = vld [vmem:[%s1061_s0 + $0x18] sm:$0xff]  ;;  %v42_v20 = vld [vmem:[%s1061_s0] sm:$0xff] }
   0x8   :  { %130 = vmatpush.msrb.mxu2 %v671_v7  ;;  %153 = vmatpush.msrb.mxu3 %v672_v8  ;;  %v43_v21 = vld [vmem:[%s1061_s0 + $0x8] sm:$0xff] }
   0x9   :  { %679 = vmatmul.msk.f32.vlgmr.msra.gmra.mxu0 %vm62_vm0, %v50_v9  ;;  %681 = vmatmul.msk.f32.vlgmr.msra.gmra.mxu1 %vm62_vm0, %v50_v9 }
   0xa   :  { %175 = vmatpush.msrb.mxu0 %v677_v10  ;;  %198 = vmatpush.msrb.mxu1 %v678_v11 }
   0xb   :  { %298 = vmatpush.msra.mxu2 %v48_v14  ;;  %327 = vmatpush.msra.mxu3 %v49_v15 }
   0xc   :  { %176 = vmatpush.msrb.mxu0 %v675_v12  ;;  %199 = vmatpush.msrb.mxu1 %v676_v13 }
   0xd   :  { %683 = vmatmul.msk.f32.vlgmr.msrb.gmra.mxu2 %vm62_vm0, %v50_v9  ;;  %685 = vmatmul.msk.f32.vlgmr.msrb.gmra.mxu3 %vm62_vm0, %v50_v9 }
   0xe   :  { %299 = vmatpush.msra.mxu2 %v46_v16  ;;  %328 = vmatpush.msra.mxu3 %v47_v17 }
  0x10   :  { %300 = vmatpush.msra.mxu2 %v44_v18  ;;  %329 = vmatpush.msra.mxu3 %v45_v19 }
  0x11   :  { %687 = vmatmul.msk.f32.vlgmr.msrb.gmra.mxu0 %vm62_vm0, %v50_v9  ;;  %689 = vmatmul.msk.f32.vlgmr.msrb.gmra.mxu1 %vm62_vm0, %v50_v9 }
  0x12   :  { %301 = vmatpush.msra.mxu2 %v42_v20  ;;  %330 = vmatpush.msra.mxu3 %v43_v21 }
  0x15   :  { %684 = vmatmul.msk.f32.gmra.mxu2 %vm62_vm0, %v51_v4  ;;  %686 = vmatmul.msk.f32.gmra.mxu3 %vm62_vm0, %v51_v4 }
  0x19   :  { %688 = vmatmul.msk.f32.gmra.mxu0 %vm62_vm0, %v51_v4  ;;  %690 = vmatmul.msk.f32.gmra.mxu1 %vm62_vm0, %v51_v4 }
  0x86   :  { %v877_v22 = vpop.f32.mrf.mxu0  ;;  %v879_v23 = vpop.f32.mrf.mxu1 }
  0x87   :  { %v207_v28 = vmul.f32 %v877_v22, %v877_v22  ;;  %v208_v29 = vmul.f32 %v879_v23, %v879_v23 }
  0x88   :  { %v881_v24 = vpop.f32.mrf.mxu2  ;;  %v883_v25 = vpop.f32.mrf.mxu3 }
  0x89   :  { %v209_v42 = vmul.f32 %v881_v24, %v881_v24  ;;  %v210_v43 = vmul.f32 %v883_v25, %v883_v25 }
  0x8e   :  { %v885_v26 = vpop.f32.mrf.mxu0  ;;  %v887_v27 = vpop.f32.mrf.mxu1 }
  0x8f   :  { %v219_v34 = vmul.f32 %v885_v26, %v885_v26  ;;  %v220_v35 = vmul.f32 %v887_v27, %v887_v27 }
  0x90   :  { %v893_v30 = vpop.f32.mrf.mxu2  ;;  %v895_v31 = vpop.f32.mrf.mxu3 }
  0x91   :  { %v211_v32 = vmul.f32 %v893_v30, %v893_v30  ;;  %v212_v33 = vmul.f32 %v895_v31, %v895_v31 }
  0x93   :  { %v215_v36 = vadd.f32 %v211_v32, %v207_v28  ;;  %v216_v37 = vadd.f32 %v212_v33, %v208_v29 }
  0x95   :  { %v905_v38 = vadd.f32 %v219_v34, %v215_v36  ;;  %v907_v39 = vadd.f32 %v220_v35, %v216_v37  ;;  %v54_v36 = vld [vmem:[%s1062_s4] sm:$0xff] }
  0x96   :  { %v909_v40 = vpop.f32.mrf.mxu0  ;;  %v911_v41 = vpop.f32.mrf.mxu1 }
  0x97   :  { %729 = vrsqrt.f32 %v905_v38  ;;  %v221_v48 = vmul.f32 %v909_v40, %v909_v40  ;;  %v222_v49 = vmul.f32 %v911_v41, %v911_v41  ;;  %vm234_vm1 = vcmp.eq.f32.partialorder %v905_v38, inf }
  0x98   :  { %v918_v44 = vpop.f32.mrf.mxu2  ;;  %v920_v45 = vpop.f32.mrf.mxu3  ;;  %731 = vrsqrt.f32 %v907_v39  ;;  %v237_v17 = vand.u32 2147483648, %v905_v38  ;;  %vm246_vm2 = vcmp.eq.f32.partialorder %v907_v39, inf  ;;  %vm236_vm7 = vcmp.eq.f32.partialorder %v905_v38, 0.0 }
  0x99   :  { %v213_v46 = vmul.f32 %v918_v44, %v918_v44  ;;  %v214_v47 = vmul.f32 %v920_v45, %v920_v45  ;;  %v249_v35 = vand.u32 2147483648, %v907_v39  ;;  %vm248_vm9 = vcmp.eq.f32.partialorder %v907_v39, 0.0 }
  0x9b   :  { %v217_v50 = vadd.f32 %v213_v46, %v209_v42  ;;  %v218_v51 = vadd.f32 %v214_v47, %v210_v43  ;;  %v60_v46 = vld [vmem:[%s1064_s6] sm:$0xff] }
  0x9d   :  { %v730_v52 = vpop.eup %729  ;;  %v225_v53 = vadd.f32 %v221_v48, %v217_v50  ;;  %v226_v54 = vadd.f32 %v222_v49, %v218_v51  ;;  %v52_v49 = vld [vmem:[%s1065_s3] sm:$0xff]  ;;  %v61_v51 = vld [vmem:[%s1064_s6 + $0x8] sm:$0xff] }
  0x9e   :  { %v732_v55 = vpop.eup %731  ;;  %v228_v56 = vmul.f32 %v730_v52, %v905_v38 }
  0x9f   :  { %733 = vrsqrt.f32 %v225_v53  ;;  %v240_v58 = vmul.f32 %v732_v55, %v907_v39  ;;  %vm258_vm3 = vcmp.eq.f32.partialorder %v225_v53, inf  ;;  %vm260_vm4 = vcmp.eq.f32.partialorder %v225_v53, 0.0 }
  0xa0   :  { %735 = vrsqrt.f32 %v226_v54  ;;  %v229_v57 = vmul.f32 %v730_v52, %v228_v56  ;;  %v261_v18 = vand.u32 2147483648, %v225_v53  ;;  %vm270_vm5 = vcmp.eq.f32.partialorder %v226_v54, inf }
  0xa1   :  { %v241_v60 = vmul.f32 %v732_v55, %v240_v58  ;;  %v273_v21 = vand.u32 2147483648, %v226_v54  ;;  %vm272_vm6 = vcmp.eq.f32.partialorder %v226_v54, 0.0 }
  0xa2   :  { %v230_v59 = vmul.f32 0.5, %v229_v57 }
  0xa3   :  { %v242_v62 = vmul.f32 0.5, %v241_v60  ;;  %v59_v60 = vld [vmem:[%s1066_s5 + $0x8] sm:$0xff] }
  0xa4   :  { %v231_v1 = vsub.f32 1.5, %v230_v59  ;;  %v58_v59 = vld [vmem:[%s1066_s5] sm:$0xff] }
  0xa5   :  { %v734_v61 = vpop.eup %733  ;;  %v243_v3 = vsub.f32 1.5, %v242_v62 }
  0xa6   :  { %v736_v63 = vpop.eup %735  ;;  %v252_v0 = vmul.f32 %v734_v61, %v225_v53  ;;  %v232_v7 = vmul.f32 %v730_v52, %v231_v1 }
  0xa7   :  { %v264_v2 = vmul.f32 %v736_v63, %v226_v54  ;;  %v244_v9 = vmul.f32 %v732_v55, %v243_v3 }
  0xa8   :  { %v253_v4 = vmul.f32 %v734_v61, %v252_v0  ;;  %v233_v13 = vmul.f32 %v232_v7, %v905_v38 }
  0xa9   :  { %v265_v5 = vmul.f32 %v736_v63, %v264_v2  ;;  %v245_v15 = vmul.f32 %v244_v9, %v907_v39 }
  0xaa   :  { %v254_v6 = vmul.f32 0.5, %v253_v4  ;;  %v235_v28 = vsel %vm234_vm1, %v905_v38, %v233_v13  ;;  %v55_v38 = vld [vmem:[%s1062_s4 + $0x8] sm:$0xff] }
  0xab   :  { %v266_v8 = vmul.f32 0.5, %v265_v5  ;;  %v247_v33 = vsel %vm246_vm2, %v907_v39, %v245_v15  ;;  %v238_v37 = vsel %vm236_vm7, %v237_v17, %v235_v28  ;;  %v56_v39 = vld [vmem:[%s1062_s4 + $0x10] sm:$0xff] }
  0xac   :  { %v255_v10 = vsub.f32 1.5, %v254_v6  ;;  %v250_v42 = vsel %vm248_vm9, %v249_v35, %v247_v33 }
  0xad   :  { %v267_v11 = vsub.f32 1.5, %v266_v8 }
  0xae   :  { %v256_v12 = vmul.f32 %v734_v61, %v255_v10 }
  0xaf   :  { %v268_v14 = vmul.f32 %v736_v63, %v267_v11 }
  0xb0   :  { %v257_v16 = vmul.f32 %v256_v12, %v225_v53 }
  0xb1   :  { %v269_v19 = vmul.f32 %v268_v14, %v226_v54 }
  0xb2   :  { %v259_v20 = vsel %vm258_vm3, %v225_v53, %v257_v16 }
  0xb3   :  { %v262_v29 = vsel %vm260_vm4, %v261_v18, %v259_v20  ;;  %v271_v32 = vsel %vm270_vm5, %v226_v54, %v269_v19  ;;  %v53_v54 = vld [vmem:[%s1065_s3 + $0x8] sm:$0xff] }
  0xb4   :  { %302 = vmatpush.msra.mxu2 %v262_v29  ;;  %v274_v34 = vsel %vm272_vm6, %v273_v21, %v271_v32 }
  0xb5   :  { %331 = vmatpush.msra.mxu3 %v274_v34 }
  0xb6   :  { %303 = vmatpush.msra.mxu2 %v238_v37 }
  0xb7   :  { %332 = vmatpush.msra.mxu3 %v250_v42  ;;  %691 = vmatmul.msk.f32.vlgmr.msra.gmra.mxu2 %vm275_vm8, %v54_v36 }
  0xb8   :  { %695 = vmatmul.msk.f32.vlgmr.msra.gmra.mxu3 %vm275_vm8, %v54_v36  ;;  %551 = vmatpush.msrb.mxu2 %v918_v44 }
  0xb9   :  { %574 = vmatpush.msrb.mxu3 %v920_v45  ;;  %v753_v45 = vmov 0  }
  0xba   :  { %552 = vmatpush.msrb.mxu2 %v893_v30  ;;  %v57_v30 = vld [vmem:[%s1062_s4 + $0x18] sm:$0xff]  ;;  %728 = vset.pattern.permute.xlu0 %v753_v45 }
  0xbb   :  { %575 = vmatpush.msrb.mxu3 %v895_v31  ;;  %348 = vperm.xlu0 %728, %v60_v46  }
  0xbf   :  { %692 = vmatmul.msk.f32.gmra.mxu2 %vm275_vm8, %v55_v38 }
  0xc0   :  { %696 = vmatmul.msk.f32.gmra.mxu3 %vm275_vm8, %v55_v38 }
  0xc3   :  { %353 = vperm.xlu0 %728, %v61_v51  }
  0xc7   :  { %693 = vmatmul.msk.f32.gmra.mxu2 %vm275_vm8, %v56_v39 }
  0xc8   :  { %697 = vmatmul.msk.f32.gmra.mxu3 %vm275_vm8, %v56_v39 }
  0xcf   :  { %694 = vmatmul.msk.f32.gmra.mxu2 %vm275_vm8, %v57_v30 }
  0xd0   :  { %698 = vmatmul.msk.f32.gmra.mxu3 %vm275_vm8, %v57_v30 }
  0xd7   :  { %711 = vmatmul.msk.f32.vlgmr.msrb.gmra.mxu2 %vm62_vm0, %v52_v49 }
  0xd8   :  { %713 = vmatmul.msk.f32.vlgmr.msrb.gmra.mxu3 %vm62_vm0, %v52_v49 }
  0xdf   :  { %712 = vmatmul.msk.f32.gmra.mxu2 %vm62_vm0, %v53_v54 }
  0xe0   :  { %714 = vmatmul.msk.f32.gmra.mxu3 %vm62_vm0, %v53_v54 }
 0x13a   :  { %v305_v31 = vpop.f32.mrf.mxu2 }
 0x13b   :  { %v334_v43 = vpop.f32.mrf.mxu3 }
 0x13c   :  { %v641_v44 = vpack.c.bf16 %v334_v43, %v305_v31 }
 0x13e   :  { %645 = vst [vmem:[%s1063_s7] sm:$0xff] %v641_v44 }
 0x142   :  { %v308_v47 = vpop.f32.mrf.mxu2 }
 0x143   :  { %v337_v48 = vpop.f32.mrf.mxu3 }
 0x144   :  { %v642_v50 = vpack.c.bf16 %v337_v48, %v308_v47 }
 0x146   :  { %646 = vst [vmem:[%s1063_s7 + $0x8] sm:$0xff] %v642_v50 }
 0x14a   :  { %v311_v52 = vpop.f32.mrf.mxu2 }
 0x14b   :  { %v340_v53 = vpop.f32.mrf.mxu3 }
 0x14c   :  { %v643_v55 = vpack.c.bf16 %v340_v53, %v311_v52 }
 0x14e   :  { %647 = vst [vmem:[%s1063_s7 + $0x10] sm:$0xff] %v643_v55 }
 0x152   :  { %v314_v56 = vpop.f32.mrf.mxu2 }
 0x153   :  { %v343_v57 = vpop.f32.mrf.mxu3  ;;  %375 = vmatpush.msra.mxu0 %v314_v56 }
 0x154   :  { %v644_v58 = vpack.c.bf16 %v343_v57, %v314_v56  ;;  %398 = vmatpush.msra.mxu1 %v343_v57 }
 0x155   :  { %376 = vmatpush.msra.mxu0 %v311_v52 }
 0x156   :  { %648 = vst [vmem:[%s1063_s7 + $0x18] sm:$0xff] %v644_v58  ;;  %399 = vmatpush.msra.mxu1 %v340_v53 }
 0x157   :  { %377 = vmatpush.msra.mxu0 %v308_v47 }
 0x158   :  { %400 = vmatpush.msra.mxu1 %v337_v48 }
 0x159   :  { %378 = vmatpush.msra.mxu0 %v305_v31 }
 0x15a   :  { %401 = vmatpush.msra.mxu1 %v334_v43  ;;  %699 = vmatmul.msk.f32.vlgmr.msra.gmra.mxu0 %vm356_vm10, %v58_v59  ;;  %v554_v36 = vpop.f32.mrf.mxu2 }
 0x15b   :  { %701 = vmatmul.msk.f32.vlgmr.msra.gmra.mxu1 %vm356_vm10, %v58_v59  ;;  %505 = vmatpush.msrb.mxu0 %v881_v24  ;;  %v577_v43 = vpop.f32.mrf.mxu3 }
 0x15c   :  { %528 = vmatpush.msrb.mxu1 %v883_v25 }
 0x15d   :  { %506 = vmatpush.msrb.mxu0 %v877_v22  ;;  %v349_v22 = vpop.permute.xlu0 %348 }
 0x15e   :  { %529 = vmatpush.msrb.mxu1 %v879_v23 }
 0x15f   :  { %597 = vmatpush.msra.mxu0 %v909_v40 }
 0x160   :  { %620 = vmatpush.msra.mxu1 %v911_v41 }
 0x161   :  { %598 = vmatpush.msra.mxu0 %v885_v26 }
 0x162   :  { %621 = vmatpush.msra.mxu1 %v887_v27  ;;  %700 = vmatmul.msk.f32.gmra.mxu0 %vm356_vm10, %v59_v60 }
 0x163   :  { %702 = vmatmul.msk.f32.gmra.mxu1 %vm356_vm10, %v59_v60 }
 0x165   :  { %v354_v41 = vpop.permute.xlu0 %353 }
 0x16a   :  { %707 = vmatmul.msk.f32.vlgmr.msrb.gmra.mxu0 %vm62_vm0, %v52_v49 }
 0x16b   :  { %709 = vmatmul.msk.f32.vlgmr.msrb.gmra.mxu1 %vm62_vm0, %v52_v49 }
 0x172   :  { %708 = vmatmul.msk.f32.gmra.mxu0 %vm62_vm0, %v53_v54 }
 0x173   :  { %710 = vmatmul.msk.f32.gmra.mxu1 %vm62_vm0, %v53_v54 }
 0x17a   :  { %715 = vmatmul.msk.f32.vlgmr.msra.gmra.mxu0 %vm62_vm0, %v52_v49 }
 0x17b   :  { %717 = vmatmul.msk.f32.vlgmr.msra.gmra.mxu1 %vm62_vm0, %v52_v49 }
 0x182   :  { %716 = vmatmul.msk.f32.gmra.mxu0 %vm62_vm0, %v53_v54 }
 0x183   :  { %718 = vmatmul.msk.f32.gmra.mxu1 %vm62_vm0, %v53_v54 }
 0x1d7   :  { %v380_v23 = vpop.f32.mrf.mxu0 }
 0x1d8   :  { %v381_v24 = vadd.f32 %v380_v23, %v349_v22  ;;  %v403_v25 = vpop.f32.mrf.mxu1 }
 0x1d9   :  { %v404_v26 = vadd.f32 %v403_v25, %v349_v22 }
 0x1da   :  { %v703_v27 = vmul.f32 -1.442695, %v381_v24 }
 0x1db   :  { %v704_v40 = vmul.f32 -1.442695, %v404_v26 }
 0x1dc   :  { %737 = vpow2.f32 %v703_v27 }
 0x1dd   :  { %739 = vpow2.f32 %v704_v40 }
 0x1df   :  { %v383_v61 = vpop.f32.mrf.mxu0 }
 0x1e0   :  { %v384_v62 = vadd.f32 %v383_v61, %v354_v41  ;;  %v406_v63 = vpop.f32.mrf.mxu1 }
 0x1e1   :  { %v407_v0 = vadd.f32 %v406_v63, %v354_v41  ;;  %v557_v63 = vpop.f32.mrf.mxu2 }
 0x1e2   :  { %v738_v1 = vpop.eup %737  ;;  %v705_v2 = vmul.f32 -1.442695, %v384_v62 }
 0x1e3   :  { %v740_v3 = vpop.eup %739  ;;  %v421_v4 = vadd.f32 1.0, %v738_v1  ;;  %v706_v5 = vmul.f32 -1.442695, %v407_v0 }
 0x1e4   :  { %v422_v6 = vadd.f32 1.0, %v740_v3  ;;  %741 = vpow2.f32 %v705_v2  ;;  %v580_v3 = vpop.f32.mrf.mxu3 }
 0x1e5   :  { %743 = vrcp.f32 %v421_v4  ;;  %v434_v18 = vand.u32 2147483647, %v421_v4  ;;  %v436_v19 = vand.u32 2147483648, %v421_v4  ;;  %vm430_vm13 = vweird.f32 %v421_v4 }
 0x1e6   :  { %745 = vrcp.f32 %v422_v6  ;;  %v451_v29 = vand.u32 2147483648, %v422_v6  ;;  %v449_v34 = vand.u32 2147483647, %v422_v6  ;;  %vm445_vm15 = vweird.f32 %v422_v6 }
 0x1e7   :  { %747 = vpow2.f32 %v706_v5  ;;  %v508_v7 = vpop.f32.mrf.mxu0  ;;  %v437_v42 = vor.u32 1.1754944e-38, %v436_v19  ;;  %vm435_vm0 = vcmp.eq.f32.partialorder %v434_v18, 8.507059e+37 }
 0x1e8   :  { %v531_v8 = vpop.f32.mrf.mxu1  ;;  %v452_v30 = vor.u32 1.1754944e-38, %v451_v29  ;;  %vm450_vm2 = vcmp.eq.f32.partialorder %v449_v34, 8.507059e+37 }
 0x1ea   :  { %v742_v9 = vpop.eup %741 }
 0x1eb   :  { %v744_v10 = vpop.eup %743  ;;  %v1021_v11 = vadd.f32 1.0, %v742_v9 }
 0x1ec   :  { %v746_v12 = vpop.eup %745  ;;  %v426_v13 = vmul.f32 %v744_v10, %v421_v4  ;;  %vm431_vm11 = vweird.f32 %v744_v10 }
 0x1ed   :  { %v748_v14 = vpop.eup %747  ;;  %749 = vrcp.f32 %v1021_v11  ;;  %v441_v15 = vmul.f32 %v746_v12, %v422_v6  ;;  %vm446_vm12 = vweird.f32 %v746_v12  ;;  %vm432_vm14 = vmor %vm430_vm13, %vm431_vm11  ;;  %v466_v46 = vand.u32 2147483648, %v1021_v11 }
 0x1ee   :  { %v1024_v16 = vadd.f32 1.0, %v748_v14  ;;  %v427_v17 = vsub.f32 1.0, %v426_v13  ;;  %vm447_vm1 = vmor %vm445_vm15, %vm446_vm12  ;;  %v464_v57 = vand.u32 2147483647, %v1021_v11  ;;  %vm460_vm4 = vweird.f32 %v1021_v11 }
 0x1ef   :  { %v442_v20 = vsub.f32 1.0, %v441_v15  ;;  %v1026_v21 = vpop.f32.mrf.mxu0  ;;  %v467_v26 = vor.u32 1.1754944e-38, %v466_v46 }
 0x1f0   :  { %751 = vrcp.f32 %v1024_v16  ;;  %v428_v28 = vmul.f32 %v744_v10, %v427_v17  ;;  %v1029_v32 = vpop.f32.mrf.mxu1  ;;  %v481_v27 = vand.u32 2147483648, %v1024_v16  ;;  %v479_v41 = vand.u32 2147483647, %v1024_v16 }
 0x1f1   :  { %v443_v33 = vmul.f32 %v746_v12, %v442_v20  ;;  %vm465_vm7 = vcmp.eq.f32.partialorder %v464_v57, 8.507059e+37  ;;  %vm475_vm8 = vweird.f32 %v1024_v16 }
 0x1f2   :  { %v429_v35 = vadd.f32 %v744_v10, %v428_v28  ;;  %v482_v2 = vor.u32 1.1754944e-38, %v481_v27  ;;  %vm480_vm10 = vcmp.eq.f32.partialorder %v479_v41, 8.507059e+37 }
 0x1f3   :  { %v750_v37 = vpop.eup %749  ;;  %v444_v38 = vadd.f32 %v746_v12, %v443_v33 }
 0x1f4   :  { %v433_v39 = vsel %vm432_vm14, %v744_v10, %v429_v35  ;;  %v456_v31 = vmul.f32 %v750_v37, %v1021_v11  ;;  %vm461_vm3 = vweird.f32 %v750_v37 }
 0x1f5   :  { %v438_v44 = vsel %vm435_vm0, %v437_v42, %v433_v39  ;;  %v448_v45 = vsel %vm447_vm1, %v746_v12, %v444_v38  ;;  %vm462_vm5 = vmor %vm460_vm4, %vm461_vm3 }
 0x1f6   :  { %v752_v47 = vpop.eup %751  ;;  %v629_v48 = vmul.f32 %v508_v7, %v438_v44  ;;  %v453_v49 = vsel %vm450_vm2, %v452_v30, %v448_v45  ;;  %v457_v50 = vsub.f32 1.0, %v456_v31  ;;  %v633_v51 = vmul.f32 %v554_v36, %v438_v44 }
 0x1f7   :  { %v630_v52 = vmul.f32 %v531_v8, %v453_v49  ;;  %v471_v53 = vmul.f32 %v752_v47, %v1024_v16  ;;  %v634_v54 = vmul.f32 %v577_v43, %v453_v49  ;;  %v600_v55 = vpop.f32.mrf.mxu0  ;;  %vm476_vm6 = vweird.f32 %v752_v47 }
 0x1f8   :  { %v458_v56 = vmul.f32 %v750_v37, %v457_v50  ;;  %v637_v58 = vmul.f32 %v600_v55, %v438_v44  ;;  %v623_v59 = vpop.f32.mrf.mxu1  ;;  %vm477_vm9 = vmor %vm475_vm8, %vm476_vm6 }
 0x1f9   :  { %v649_v60 = vpack.c.bf16 %v630_v52, %v629_v48  ;;  %v472_v22 = vsub.f32 1.0, %v471_v53  ;;  %v653_v23 = vpack.c.bf16 %v634_v54, %v633_v51  ;;  %v638_v24 = vmul.f32 %v623_v59, %v453_v49 }
 0x1fa   :  { %v459_v25 = vadd.f32 %v750_v37, %v458_v56 }
 0x1fb   :  { %651 = vst [vmem:[%s1067_s8] sm:$0xff] %v649_v60  ;;  %v473_v40 = vmul.f32 %v752_v47, %v472_v22  ;;  %v658_v61 = vpack.c.bf16 %v638_v24, %v637_v58 }
 0x1fc   :  { %v463_v62 = vsel %vm462_vm5, %v750_v37, %v459_v25  ;;  %719 = vst [vmem:[%s1067_s8 + $0x10] sm:$0xff] %v653_v23 }
 0x1fd   :  { %v468_v0 = vsel %vm465_vm7, %v467_v26, %v463_v62  ;;  %v474_v1 = vadd.f32 %v752_v47, %v473_v40  ;;  %721 = vst [vmem:[%s1067_s8 + $0x20] sm:$0xff] %v658_v61 }
 0x1fe   :  { %v631_v4 = vmul.f32 %v1026_v21, %v468_v0  ;;  %v635_v6 = vmul.f32 %v557_v63, %v468_v0 }
 0x1ff   :  { %v478_v5 = vsel %vm477_vm9, %v752_v47, %v474_v1  ;;  %v603_v7 = vpop.f32.mrf.mxu0 }
 0x200   :  { %v483_v8 = vsel %vm480_vm10, %v482_v2, %v478_v5  ;;  %v639_v9 = vmul.f32 %v603_v7, %v468_v0  ;;  %v626_v10 = vpop.f32.mrf.mxu1 }
 0x201   :  { %v632_v11 = vmul.f32 %v1029_v32, %v483_v8  ;;  %v636_v12 = vmul.f32 %v580_v3, %v483_v8  ;;  %v640_v13 = vmul.f32 %v626_v10, %v483_v8 }
 0x203   :  { %v650_v14 = vpack.c.bf16 %v632_v11, %v631_v4  ;;  %v654_v15 = vpack.c.bf16 %v636_v12, %v635_v6  ;;  %v659_v16 = vpack.c.bf16 %v640_v13, %v639_v9 }
 0x205   :  { %652 = vst [vmem:[%s1067_s8 + $0x8] sm:$0xff] %v650_v14 }
 0x206   :  { %720 = vst [vmem:[%s1067_s8 + $0x18] sm:$0xff] %v654_v15 }
 0x207   :  { %722 = vst [vmem:[%s1067_s8 + $0x28] sm:$0xff] %v659_v16 }

// kernel: attention_interaction_block_vn.6
= control target key start
LH: loop header
LB: loop body
LE: loop exit
PB: predicated region body
PF: predicated region fallthrough
CT: control target
= control target key end

     0   :  { %v838_v0 = vmov 0   ;;  %v36_v35 = vlaneseq  ;;  %v839_v44 = vmov 1.0|1.0   ;;  %s1172_s0 = inlined_call_operand.vmem [shape: s32[256,1], index: 0, kind: input, shape index: {}]   ;;  %s1173_s1 = inlined_call_operand.vmem [shape: bf16[80,256], index: 1, kind: input, shape index: {}]   ;;  %s1174_s2 = inlined_call_operand.vmem [shape: f32[80,256], index: 2, kind: output, shape index: {}]  }
   0x1   :  { %837 = vset.pattern.permute.xlu2 %v838_v0  ;;  %836 = vset.pattern.permute.xlu1 %v838_v0  ;;  %v72_v1 = vld [vmem:[%s1172_s0 + $0xf0] sm:$0xff]  ;;  %v54_v3 = vld [vmem:[%s1172_s0 + $0x60] sm:$0xff]  ;;  %v73_v4 = vld [vmem:[%s1172_s0 + $0xf8] sm:$0xff] }
   0x2   :  { %v56_v2 = vld [vmem:[%s1172_s0 + $0x70] sm:$0xff]  ;;  %835 = vset.pattern.permute.xlu0 %v838_v0  ;;  %165 = vperm.xlu1 %836, %v72_v1   ;;  %v57_v5 = vld [vmem:[%s1172_s0 + $0x78] sm:$0xff]  ;;  %v55_v6 = vld [vmem:[%s1172_s0 + $0x68] sm:$0xff]  ;;  %v951_v39 = vand.u32 127, %v36_v35 }
   0x3   :  { %117 = vperm.xlu0 %835, %v56_v2   ;;  %111 = vperm.xlu2 %837, %v54_v3   ;;  %v71_v7 = vld [vmem:[%s1172_s0 + $0xe8] sm:$0xff]  ;;  %v70_v8 = vld [vmem:[%s1172_s0 + $0xe0] sm:$0xff]  ;;  %v52_v9 = vld [vmem:[%s1172_s0 + $0x50] sm:$0xff] }
   0x4   :  { %v68_v10 = vld [vmem:[%s1172_s0 + $0xd0] sm:$0xff]  ;;  %v53_v11 = vld [vmem:[%s1172_s0 + $0x58] sm:$0xff]  ;;  %v51_v13 = vld [vmem:[%s1172_s0 + $0x48] sm:$0xff]  ;;  %v954_v40 = vadd.s32 128, %v951_v39 }
   0x5   :  { %v69_v12 = vld [vmem:[%s1172_s0 + $0xd8] sm:$0xff]  ;;  %v66_v14 = vld [vmem:[%s1172_s0 + $0xc0] sm:$0xff]  ;;  %v48_v16 = vld [vmem:[%s1172_s0 + $0x30] sm:$0xff] }
   0x6   :  { %v50_v15 = vld [vmem:[%s1172_s0 + $0x40] sm:$0xff]  ;;  %v67_v17 = vld [vmem:[%s1172_s0 + $0xc8] sm:$0xff]  ;;  %v49_v18 = vld [vmem:[%s1172_s0 + $0x38] sm:$0xff] }
   0x7   :  { %v65_v19 = vld [vmem:[%s1172_s0 + $0xb8] sm:$0xff]  ;;  %v64_v20 = vld [vmem:[%s1172_s0 + $0xb0] sm:$0xff]  ;;  %v46_v21 = vld [vmem:[%s1172_s0 + $0x20] sm:$0xff] }
   0x8   :  { %v62_v22 = vld [vmem:[%s1172_s0 + $0xa0] sm:$0xff]  ;;  %v47_v23 = vld [vmem:[%s1172_s0 + $0x28] sm:$0xff]  ;;  %v45_v25 = vld [vmem:[%s1172_s0 + $0x18] sm:$0xff] }
   0x9   :  { %v63_v24 = vld [vmem:[%s1172_s0 + $0xa8] sm:$0xff]  ;;  %v60_v26 = vld [vmem:[%s1172_s0 + $0x90] sm:$0xff]  ;;  %v42_v28 = vld [vmem:[%s1172_s0] sm:$0xff] }
   0xa   :  { %168 = vperm.xlu1 %836, %v73_v4   ;;  %v44_v27 = vld [vmem:[%s1172_s0 + $0x10] sm:$0xff]  ;;  %v61_v29 = vld [vmem:[%s1172_s0 + $0x98] sm:$0xff]  ;;  %v43_v30 = vld [vmem:[%s1172_s0 + $0x8] sm:$0xff] }
   0xb   :  { %120 = vperm.xlu0 %835, %v57_v5   ;;  %114 = vperm.xlu2 %837, %v55_v6   ;;  %v59_v31 = vld [vmem:[%s1172_s0 + $0x88] sm:$0xff]  ;;  %v58_v32 = vld [vmem:[%s1172_s0 + $0x80] sm:$0xff] }
   0xc   :  { %v720_v3 = vld [vmem:[%s1173_s1] sm:$0xf]  ;;  %v823_v4 = vld [vmem:[%s1173_s1 + $0x4] sm:$0xf0] }
   0xd   :  { %v721_v5 = vor.u32 %v823_v4, %v720_v3 }
  0x12   :  { %162 = vperm.xlu1 %836, %v71_v7   ;;  %v822_v7 = vld [vmem:[%s1173_s1 + $0x4] sm:$0xf] }
  0x13   :  { %159 = vperm.xlu0 %835, %v70_v8   ;;  %105 = vperm.xlu2 %837, %v52_v9   ;;  %v722_v8 = vld [vmem:[%s1173_s1 + $0x8] sm:$0xf0] }
  0x1a   :  { %153 = vperm.xlu1 %836, %v68_v10   ;;  %v725_v10 = vor.u32 %v822_v7, %v722_v8 }
  0x1b   :  { %108 = vperm.xlu0 %835, %v53_v11   ;;  %156 = vperm.xlu2 %837, %v69_v12   ;;  %v728_v11 = vld [vmem:[%s1173_s1 + $0x10] sm:$0xf]  ;;  %v825_v12 = vld [vmem:[%s1173_s1 + $0x14] sm:$0xf0] }
  0x22   :  { %102 = vperm.xlu1 %836, %v51_v13   ;;  %v729_v13 = vor.u32 %v825_v12, %v728_v11 }
  0x23   :  { %147 = vperm.xlu2 %837, %v66_v14   ;;  %99 = vperm.xlu0 %835, %v50_v15   ;;  %v824_v14 = vld [vmem:[%s1173_s1 + $0x14] sm:$0xf]  ;;  %v730_v15 = vld [vmem:[%s1173_s1 + $0x18] sm:$0xf0] }
  0x2a   :  { %93 = vperm.xlu1 %836, %v48_v16   ;;  %v733_v16 = vor.u32 %v824_v14, %v730_v15 }
  0x2b   :  { %150 = vperm.xlu0 %835, %v67_v17   ;;  %96 = vperm.xlu2 %837, %v49_v18   ;;  %v736_v17 = vld [vmem:[%s1173_s1 + $0x20] sm:$0xf]  ;;  %v827_v18 = vld [vmem:[%s1173_s1 + $0x24] sm:$0xf0] }
  0x32   :  { %144 = vperm.xlu1 %836, %v65_v19   ;;  %v737_v19 = vor.u32 %v827_v18, %v736_v17 }
  0x33   :  { %141 = vperm.xlu0 %835, %v64_v20   ;;  %87 = vperm.xlu2 %837, %v46_v21   ;;  %v826_v20 = vld [vmem:[%s1173_s1 + $0x24] sm:$0xf]  ;;  %v738_v21 = vld [vmem:[%s1173_s1 + $0x28] sm:$0xf0] }
  0x3a   :  { %135 = vperm.xlu1 %836, %v62_v22   ;;  %v741_v22 = vor.u32 %v826_v20, %v738_v21 }
  0x3b   :  { %90 = vperm.xlu0 %835, %v47_v23   ;;  %138 = vperm.xlu2 %837, %v63_v24   ;;  %v744_v23 = vld [vmem:[%s1173_s1 + $0x30] sm:$0xf]  ;;  %v829_v24 = vld [vmem:[%s1173_s1 + $0x34] sm:$0xf0] }
  0x42   :  { %84 = vperm.xlu1 %836, %v45_v25   ;;  %v745_v25 = vor.u32 %v829_v24, %v744_v23 }
  0x43   :  { %129 = vperm.xlu2 %837, %v60_v26   ;;  %81 = vperm.xlu0 %835, %v44_v27   ;;  %v828_v26 = vld [vmem:[%s1173_s1 + $0x34] sm:$0xf]  ;;  %v746_v27 = vld [vmem:[%s1173_s1 + $0x38] sm:$0xf0] }
  0x4a   :  { %75 = vperm.xlu1 %836, %v42_v28   ;;  %v749_v28 = vor.u32 %v828_v26, %v746_v27 }
  0x4b   :  { %132 = vperm.xlu0 %835, %v61_v29   ;;  %78 = vperm.xlu2 %837, %v43_v30   ;;  %v752_v29 = vld [vmem:[%s1173_s1 + $0x40] sm:$0xf]  ;;  %v831_v30 = vld [vmem:[%s1173_s1 + $0x44] sm:$0xf0] }
  0x52   :  { %126 = vperm.xlu1 %836, %v59_v31   ;;  %v753_v31 = vor.u32 %v831_v30, %v752_v29 }
  0x53   :  { %123 = vperm.xlu0 %835, %v58_v32   ;;  %v830_v32 = vld [vmem:[%s1173_s1 + $0x44] sm:$0xf] }
  0x5d   :  { %v112_v33 = vpop.permute.xlu2 %111 }
  0x5e   :  { %vm194_vm9 = vcmp.eq.s32.totalorder %v112_v33, %v951_v39  ;;  %vm195_vm13 = vcmp.eq.s32.totalorder %v112_v33, %v954_v40  ;;  %v754_v33 = vld [vmem:[%s1173_s1 + $0x48] sm:$0xf0] }
  0x65   :  { %v115_v34 = vpop.permute.xlu2 %114 }
  0x66   :  { %vm196_vm10 = vcmp.eq.s32.totalorder %v115_v34, %v951_v39  ;;  %vm197_vm14 = vcmp.eq.s32.totalorder %v115_v34, %v954_v40  ;;  %v757_v34 = vor.u32 %v830_v32, %v754_v33 }
  0x6d   :  { %v106_v36 = vpop.permute.xlu2 %105 }
  0x74   :  { %v166_v37 = vpop.permute.xlu1 %165 }
  0x75   :  { %v118_v38 = vpop.permute.xlu0 %117  ;;  %vm230_vm0 = vcmp.eq.s32.totalorder %v166_v37, %v951_v39  ;;  %v157_v43 = vpop.permute.xlu2 %156  ;;  %vm231_vm12 = vcmp.eq.s32.totalorder %v166_v37, %v954_v40 }
  0x76   :  { %vm198_vm2 = vcmp.eq.s32.totalorder %v118_v38, %v951_v39  ;;  %vm199_vm8 = vcmp.eq.s32.totalorder %v118_v38, %v954_v40 }
  0x7c   :  { %v169_v41 = vpop.permute.xlu1 %168 }
  0x7d   :  { %v121_v42 = vpop.permute.xlu0 %120  ;;  %vm232_vm1 = vcmp.eq.s32.totalorder %v169_v41, %v951_v39  ;;  %vm233_vm6 = vcmp.eq.s32.totalorder %v169_v41, %v954_v40  ;;  %v148_v47 = vpop.permute.xlu2 %147 }
  0x7e   :  { %vm200_vm3 = vcmp.eq.s32.totalorder %v121_v42, %v951_v39  ;;  %vm774_vm4 = vmpackc.low %vm232_vm1, %vm230_vm0  ;;  %vm201_vm5 = vcmp.eq.s32.totalorder %v121_v42, %v954_v40 }
  0x7f   :  { %vm758_vm7 = vmpackc.low %vm200_vm3, %vm198_vm2  ;;  %775 = vmatpush.bf16.msk.msra.mxu1 %vm774_vm4, %v839_v44 }
  0x80   :  { %759 = vmatpush.bf16.msk.msra.mxu0 %vm758_vm7, %v839_v44  ;;  %vm790_vm11 = vmpackc.low %vm201_vm5, %vm199_vm8  ;;  %vm224_vm8 = vcmp.eq.s32.totalorder %v157_v43, %v951_v39 }
  0x81   :  { %791 = vmatpush.bf16.msk.msra.mxu2 %vm790_vm11, %v839_v44  ;;  %vm806_vm15 = vmpackc.low %vm233_vm6, %vm231_vm12 }
  0x82   :  { %807 = vmatpush.bf16.msk.msra.mxu3 %vm806_vm15, %v839_v44  ;;  %vm760_vm0 = vmpackc.low %vm196_vm10, %vm194_vm9  ;;  %vm190_vm10 = vcmp.eq.s32.totalorder %v106_v36, %v951_v39  ;;  %vm191_vm15 = vcmp.eq.s32.totalorder %v106_v36, %v954_v40 }
  0x83   :  { %vm792_vm1 = vmpackc.low %vm197_vm14, %vm195_vm13 }
  0x84   :  { %761 = vmatpush.bf16.msk.msra.mxu0 %vm760_vm0, %v839_v44  ;;  %v163_v45 = vpop.permute.xlu1 %162 }
  0x85   :  { %793 = vmatpush.bf16.msk.msra.mxu2 %vm792_vm1, %v839_v44  ;;  %vm228_vm2 = vcmp.eq.s32.totalorder %v163_v45, %v951_v39  ;;  %vm229_vm3 = vcmp.eq.s32.totalorder %v163_v45, %v954_v40  ;;  %v160_v46 = vpop.permute.xlu0 %159  ;;  %vm225_vm1 = vcmp.eq.s32.totalorder %v157_v43, %v954_v40  ;;  %v97_v50 = vpop.permute.xlu2 %96 }
  0x86   :  { %vm226_vm4 = vcmp.eq.s32.totalorder %v160_v46, %v951_v39  ;;  %vm227_vm5 = vcmp.eq.s32.totalorder %v160_v46, %v954_v40 }
  0x87   :  { %vm776_vm7 = vmpackc.low %vm228_vm2, %vm226_vm4 }
  0x88   :  { %777 = vmatpush.bf16.msk.msra.mxu1 %vm776_vm7, %v839_v44  ;;  %vm808_vm6 = vmpackc.low %vm229_vm3, %vm227_vm5 }
  0x89   :  { %809 = vmatpush.bf16.msk.msra.mxu3 %vm808_vm6, %v839_v44 }
  0x8c   :  { %v154_v48 = vpop.permute.xlu1 %153 }
  0x8d   :  { %vm222_vm9 = vcmp.eq.s32.totalorder %v154_v48, %v951_v39  ;;  %v109_v49 = vpop.permute.xlu0 %108  ;;  %vm223_vm11 = vcmp.eq.s32.totalorder %v154_v48, %v954_v40  ;;  %v88_v53 = vpop.permute.xlu2 %87 }
  0x8e   :  { %vm192_vm12 = vcmp.eq.s32.totalorder %v109_v49, %v951_v39  ;;  %vm193_vm13 = vcmp.eq.s32.totalorder %v109_v49, %v954_v40  ;;  %vm778_vm14 = vmpackc.low %vm224_vm8, %vm222_vm9 }
  0x8f   :  { %vm762_vm0 = vmpackc.low %vm192_vm12, %vm190_vm10  ;;  %779 = vmatpush.bf16.msk.msra.mxu1 %vm778_vm14, %v839_v44  ;;  %vm184_vm10 = vcmp.eq.s32.totalorder %v97_v50, %v951_v39 }
  0x90   :  { %763 = vmatpush.bf16.msk.msra.mxu0 %vm762_vm0, %v839_v44  ;;  %vm794_vm2 = vmpackc.low %vm193_vm13, %vm191_vm15  ;;  %vm218_vm13 = vcmp.eq.s32.totalorder %v148_v47, %v951_v39 }
  0x91   :  { %795 = vmatpush.bf16.msk.msra.mxu2 %vm794_vm2, %v839_v44  ;;  %vm810_vm3 = vmpackc.low %vm225_vm1, %vm223_vm11  ;;  %vm185_vm1 = vcmp.eq.s32.totalorder %v97_v50, %v954_v40 }
  0x92   :  { %811 = vmatpush.bf16.msk.msra.mxu3 %vm810_vm3, %v839_v44  ;;  %vm219_vm3 = vcmp.eq.s32.totalorder %v148_v47, %v954_v40 }
  0x94   :  { %v103_v51 = vpop.permute.xlu1 %102 }
  0x95   :  { %vm188_vm4 = vcmp.eq.s32.totalorder %v103_v51, %v951_v39  ;;  %vm189_vm5 = vcmp.eq.s32.totalorder %v103_v51, %v954_v40  ;;  %v100_v52 = vpop.permute.xlu0 %99  ;;  %v139_v58 = vpop.permute.xlu2 %138 }
  0x96   :  { %vm186_vm7 = vcmp.eq.s32.totalorder %v100_v52, %v951_v39  ;;  %vm187_vm6 = vcmp.eq.s32.totalorder %v100_v52, %v954_v40 }
  0x97   :  { %vm764_vm8 = vmpackc.low %vm188_vm4, %vm186_vm7 }
  0x98   :  { %765 = vmatpush.bf16.msk.msra.mxu0 %vm764_vm8, %v839_v44  ;;  %vm796_vm9 = vmpackc.low %vm189_vm5, %vm187_vm6 }
  0x99   :  { %797 = vmatpush.bf16.msk.msra.mxu2 %vm796_vm9, %v839_v44 }
  0x9c   :  { %v94_v54 = vpop.permute.xlu1 %93 }
  0x9d   :  { %v151_v55 = vpop.permute.xlu0 %150  ;;  %vm182_vm11 = vcmp.eq.s32.totalorder %v94_v54, %v951_v39  ;;  %vm183_vm12 = vcmp.eq.s32.totalorder %v94_v54, %v954_v40  ;;  %v130_v61 = vpop.permute.xlu2 %129 }
  0x9e   :  { %vm220_vm14 = vcmp.eq.s32.totalorder %v151_v55, %v951_v39  ;;  %vm221_vm15 = vcmp.eq.s32.totalorder %v151_v55, %v954_v40  ;;  %vm766_vm0 = vmpackc.low %vm184_vm10, %vm182_vm11 }
  0x9f   :  { %767 = vmatpush.bf16.msk.msra.mxu0 %vm766_vm0, %v839_v44  ;;  %vm780_vm2 = vmpackc.low %vm220_vm14, %vm218_vm13  ;;  %vm178_vm14 = vcmp.eq.s32.totalorder %v88_v53, %v951_v39 }
  0xa0   :  { %781 = vmatpush.bf16.msk.msra.mxu1 %vm780_vm2, %v839_v44  ;;  %vm798_vm4 = vmpackc.low %vm185_vm1, %vm183_vm12  ;;  %vm212_vm12 = vcmp.eq.s32.totalorder %v139_v58, %v951_v39 }
  0xa1   :  { %799 = vmatpush.bf16.msk.msra.mxu2 %vm798_vm4, %v839_v44  ;;  %vm812_vm5 = vmpackc.low %vm221_vm15, %vm219_vm3  ;;  %vm179_vm3 = vcmp.eq.s32.totalorder %v88_v53, %v954_v40 }
  0xa2   :  { %813 = vmatpush.bf16.msk.msra.mxu3 %vm812_vm5, %v839_v44  ;;  %vm213_vm5 = vcmp.eq.s32.totalorder %v139_v58, %v954_v40 }
  0xa4   :  { %v145_v56 = vpop.permute.xlu1 %144 }
  0xa5   :  { %v142_v57 = vpop.permute.xlu0 %141  ;;  %vm216_vm7 = vcmp.eq.s32.totalorder %v145_v56, %v951_v39  ;;  %vm217_vm6 = vcmp.eq.s32.totalorder %v145_v56, %v954_v40  ;;  %v79_v0 = vpop.permute.xlu2 %78 }
  0xa6   :  { %vm214_vm8 = vcmp.eq.s32.totalorder %v142_v57, %v951_v39  ;;  %vm215_vm9 = vcmp.eq.s32.totalorder %v142_v57, %v954_v40 }
  0xa7   :  { %vm782_vm10 = vmpackc.low %vm216_vm7, %vm214_vm8 }
  0xa8   :  { %783 = vmatpush.bf16.msk.msra.mxu1 %vm782_vm10, %v839_v44  ;;  %vm814_vm11 = vmpackc.low %vm217_vm6, %vm215_vm9 }
  0xa9   :  { %815 = vmatpush.bf16.msk.msra.mxu3 %vm814_vm11, %v839_v44 }
  0xac   :  { %v136_v59 = vpop.permute.xlu1 %135 }
  0xad   :  { %vm210_vm13 = vcmp.eq.s32.totalorder %v136_v59, %v951_v39  ;;  %v91_v60 = vpop.permute.xlu0 %90  ;;  %vm211_vm15 = vcmp.eq.s32.totalorder %v136_v59, %v954_v40 }
  0xae   :  { %vm180_vm0 = vcmp.eq.s32.totalorder %v91_v60, %v951_v39  ;;  %vm181_vm1 = vcmp.eq.s32.totalorder %v91_v60, %v954_v40  ;;  %vm784_vm2 = vmpackc.low %vm212_vm12, %vm210_vm13 }
  0xaf   :  { %vm768_vm4 = vmpackc.low %vm180_vm0, %vm178_vm14  ;;  %785 = vmatpush.bf16.msk.msra.mxu1 %vm784_vm2, %v839_v44  ;;  %vm172_vm14 = vcmp.eq.s32.totalorder %v79_v0, %v951_v39 }
  0xb0   :  { %769 = vmatpush.bf16.msk.msra.mxu0 %vm768_vm4, %v839_v44  ;;  %vm800_vm7 = vmpackc.low %vm181_vm1, %vm179_vm3  ;;  %vm206_vm1 = vcmp.eq.s32.totalorder %v130_v61, %v951_v39 }
  0xb1   :  { %801 = vmatpush.bf16.msk.msra.mxu2 %vm800_vm7, %v839_v44  ;;  %vm816_vm6 = vmpackc.low %vm213_vm5, %vm211_vm15  ;;  %vm173_vm5 = vcmp.eq.s32.totalorder %v79_v0, %v954_v40 }
  0xb2   :  { %817 = vmatpush.bf16.msk.msra.mxu3 %vm816_vm6, %v839_v44  ;;  %vm207_vm6 = vcmp.eq.s32.totalorder %v130_v61, %v954_v40 }
  0xb4   :  { %v85_v62 = vpop.permute.xlu1 %84 }
  0xb5   :  { %vm176_vm8 = vcmp.eq.s32.totalorder %v85_v62, %v951_v39  ;;  %vm177_vm9 = vcmp.eq.s32.totalorder %v85_v62, %v954_v40  ;;  %v82_v63 = vpop.permute.xlu0 %81 }
  0xb6   :  { %vm174_vm10 = vcmp.eq.s32.totalorder %v82_v63, %v951_v39  ;;  %vm175_vm11 = vcmp.eq.s32.totalorder %v82_v63, %v954_v40 }
  0xb7   :  { %vm770_vm12 = vmpackc.low %vm176_vm8, %vm174_vm10 }
  0xb8   :  { %771 = vmatpush.bf16.msk.msra.mxu0 %vm770_vm12, %v839_v44  ;;  %vm802_vm13 = vmpackc.low %vm177_vm9, %vm175_vm11 }
  0xb9   :  { %803 = vmatpush.bf16.msk.msra.mxu2 %vm802_vm13, %v839_v44 }
  0xbc   :  { %v76_v1 = vpop.permute.xlu1 %75 }
  0xbd   :  { %v133_v2 = vpop.permute.xlu0 %132  ;;  %vm170_vm15 = vcmp.eq.s32.totalorder %v76_v1, %v951_v39  ;;  %vm171_vm0 = vcmp.eq.s32.totalorder %v76_v1, %v954_v40 }
  0xbe   :  { %vm208_vm2 = vcmp.eq.s32.totalorder %v133_v2, %v951_v39  ;;  %vm209_vm3 = vcmp.eq.s32.totalorder %v133_v2, %v954_v40  ;;  %vm772_vm4 = vmpackc.low %vm172_vm14, %vm170_vm15 }
  0xbf   :  { %773 = vmatpush.bf16.msk.msra.mxu0 %vm772_vm4, %v839_v44  ;;  %vm786_vm7 = vmpackc.low %vm208_vm2, %vm206_vm1 }
  0xc0   :  { %787 = vmatpush.bf16.msk.msra.mxu1 %vm786_vm7, %v839_v44  ;;  %vm804_vm8 = vmpackc.low %vm173_vm5, %vm171_vm0 }
  0xc1   :  { %805 = vmatpush.bf16.msk.msra.mxu2 %vm804_vm8, %v839_v44  ;;  %vm818_vm9 = vmpackc.low %vm209_vm3, %vm207_vm6 }
  0xc2   :  { %819 = vmatpush.bf16.msk.msra.mxu3 %vm818_vm9, %v839_v44  ;;  %482 = vmatmul.bf16.vlgmr.msra.gmra.mxu0 %v721_v5 }
  0xc4   :  { %550 = vmatmul.bf16.vlgmr.msra.gmra.mxu2 %v721_v5  ;;  %v127_v6 = vpop.permute.xlu1 %126 }
  0xc5   :  { %v124_v9 = vpop.permute.xlu0 %123  ;;  %vm204_vm10 = vcmp.eq.s32.totalorder %v127_v6, %v951_v39  ;;  %vm205_vm11 = vcmp.eq.s32.totalorder %v127_v6, %v954_v40 }
  0xc6   :  { %vm202_vm12 = vcmp.eq.s32.totalorder %v124_v9, %v951_v39  ;;  %vm203_vm13 = vcmp.eq.s32.totalorder %v124_v9, %v954_v40 }
  0xc7   :  { %vm788_vm14 = vmpackc.low %vm204_vm10, %vm202_vm12 }
  0xc8   :  { %vm820_vm15 = vmpackc.low %vm205_vm11, %vm203_vm13  ;;  %789 = vmatpush.bf16.msk.msra.mxu1 %vm788_vm14, %v839_v44 }
  0xc9   :  { %821 = vmatpush.bf16.msk.msra.mxu3 %vm820_vm15, %v839_v44 }
  0xcb   :  { %516 = vmatmul.bf16.vlgmr.msra.gmra.mxu1 %v725_v10 }
  0xcc   :  { %584 = vmatmul.bf16.vlgmr.msra.gmra.mxu3 %v725_v10 }
  0xd2   :  { %487 = vmatmul.bf16.gmra.mxu0 %v729_v13 }
  0xd4   :  { %555 = vmatmul.bf16.gmra.mxu2 %v729_v13 }
  0xdb   :  { %521 = vmatmul.bf16.gmra.mxu1 %v733_v16 }
  0xdc   :  { %589 = vmatmul.bf16.gmra.mxu3 %v733_v16 }
  0xe2   :  { %492 = vmatmul.bf16.gmra.mxu0 %v737_v19 }
  0xe4   :  { %560 = vmatmul.bf16.gmra.mxu2 %v737_v19 }
  0xeb   :  { %526 = vmatmul.bf16.gmra.mxu1 %v741_v22 }
  0xec   :  { %594 = vmatmul.bf16.gmra.mxu3 %v741_v22 }
  0xf2   :  { %497 = vmatmul.bf16.gmra.mxu0 %v745_v25 }
  0xf4   :  { %565 = vmatmul.bf16.gmra.mxu2 %v745_v25 }
  0xfb   :  { %531 = vmatmul.bf16.gmra.mxu1 %v749_v28 }
  0xfc   :  { %599 = vmatmul.bf16.gmra.mxu3 %v749_v28 }
 0x102   :  { %502 = vmatmul.bf16.gmra.mxu0 %v753_v31 }
 0x104   :  { %570 = vmatmul.bf16.gmra.mxu2 %v753_v31 }
 0x10b   :  { %536 = vmatmul.bf16.gmra.mxu1 %v757_v34 }
 0x10c   :  { %604 = vmatmul.bf16.gmra.mxu3 %v757_v34 }
 0x13f   :  { %v483_v35 = vpop.f32.mrf.mxu0 }
 0x147   :  { %v551_v36 = vpop.f32.mrf.mxu2  ;;  %v485_v37 = vpop.f32.mrf.mxu0 }
 0x148   :  { %v517_v38 = vpop.f32.mrf.mxu1 }
 0x149   :  { %v518_v39 = vadd.f32 %v517_v38, %v483_v35 }
 0x14b   :  { %630 = vst [vmem:[%s1174_s2] sm:$0xff] %v518_v39 }
 0x14f   :  { %v553_v40 = vpop.f32.mrf.mxu2  ;;  %v585_v41 = vpop.f32.mrf.mxu3 }
 0x150   :  { %v586_v42 = vadd.f32 %v585_v41, %v551_v36  ;;  %v519_v43 = vpop.f32.mrf.mxu1  ;;  %v488_v44 = vpop.f32.mrf.mxu0 }
 0x151   :  { %v520_v45 = vadd.f32 %v519_v43, %v485_v37 }
 0x152   :  { %631 = vst [vmem:[%s1174_s2 + $0x8] sm:$0xff] %v586_v42 }
 0x153   :  { %632 = vst [vmem:[%s1174_s2 + $0x10] sm:$0xff] %v520_v45 }
 0x157   :  { %v556_v46 = vpop.f32.mrf.mxu2  ;;  %v587_v47 = vpop.f32.mrf.mxu3 }
 0x158   :  { %v588_v48 = vadd.f32 %v587_v47, %v553_v40  ;;  %v522_v49 = vpop.f32.mrf.mxu1  ;;  %v490_v50 = vpop.f32.mrf.mxu0 }
 0x159   :  { %v523_v51 = vadd.f32 %v522_v49, %v488_v44 }
 0x15a   :  { %633 = vst [vmem:[%s1174_s2 + $0x18] sm:$0xff] %v588_v48 }
 0x15b   :  { %634 = vst [vmem:[%s1174_s2 + $0x20] sm:$0xff] %v523_v51 }
 0x15f   :  { %v558_v52 = vpop.f32.mrf.mxu2  ;;  %v590_v53 = vpop.f32.mrf.mxu3 }
 0x160   :  { %v591_v54 = vadd.f32 %v590_v53, %v556_v46  ;;  %v524_v55 = vpop.f32.mrf.mxu1  ;;  %v493_v56 = vpop.f32.mrf.mxu0 }
 0x161   :  { %v525_v57 = vadd.f32 %v524_v55, %v490_v50 }
 0x162   :  { %635 = vst [vmem:[%s1174_s2 + $0x28] sm:$0xff] %v591_v54 }
 0x163   :  { %636 = vst [vmem:[%s1174_s2 + $0x30] sm:$0xff] %v525_v57 }
 0x167   :  { %v561_v58 = vpop.f32.mrf.mxu2  ;;  %v592_v59 = vpop.f32.mrf.mxu3 }
 0x168   :  { %v593_v60 = vadd.f32 %v592_v59, %v558_v52  ;;  %v527_v61 = vpop.f32.mrf.mxu1  ;;  %v495_v62 = vpop.f32.mrf.mxu0 }
 0x169   :  { %v528_v63 = vadd.f32 %v527_v61, %v493_v56 }
 0x16a   :  { %637 = vst [vmem:[%s1174_s2 + $0x38] sm:$0xff] %v593_v60 }
 0x16b   :  { %638 = vst [vmem:[%s1174_s2 + $0x40] sm:$0xff] %v528_v63 }
 0x16f   :  { %v563_v0 = vpop.f32.mrf.mxu2  ;;  %v595_v1 = vpop.f32.mrf.mxu3 }
 0x170   :  { %v596_v2 = vadd.f32 %v595_v1, %v561_v58  ;;  %v529_v3 = vpop.f32.mrf.mxu1  ;;  %v498_v5 = vpop.f32.mrf.mxu0 }
 0x171   :  { %v530_v4 = vadd.f32 %v529_v3, %v495_v62 }
 0x172   :  { %639 = vst [vmem:[%s1174_s2 + $0x48] sm:$0xff] %v596_v2 }
 0x173   :  { %640 = vst [vmem:[%s1174_s2 + $0x50] sm:$0xff] %v530_v4 }
 0x177   :  { %v597_v6 = vpop.f32.mrf.mxu3  ;;  %v566_v9 = vpop.f32.mrf.mxu2 }
 0x178   :  { %v598_v7 = vadd.f32 %v597_v6, %v563_v0  ;;  %v532_v8 = vpop.f32.mrf.mxu1  ;;  %v500_v11 = vpop.f32.mrf.mxu0 }
 0x179   :  { %v533_v10 = vadd.f32 %v532_v8, %v498_v5 }
 0x17a   :  { %641 = vst [vmem:[%s1174_s2 + $0x58] sm:$0xff] %v598_v7 }
 0x17b   :  { %642 = vst [vmem:[%s1174_s2 + $0x60] sm:$0xff] %v533_v10 }
 0x17f   :  { %v600_v12 = vpop.f32.mrf.mxu3  ;;  %v568_v16 = vpop.f32.mrf.mxu2 }
 0x180   :  { %v601_v13 = vadd.f32 %v600_v12, %v566_v9  ;;  %v534_v14 = vpop.f32.mrf.mxu1  ;;  %v503_v17 = vpop.f32.mrf.mxu0 }
 0x181   :  { %v535_v15 = vadd.f32 %v534_v14, %v500_v11 }
 0x182   :  { %643 = vst [vmem:[%s1174_s2 + $0x68] sm:$0xff] %v601_v13 }
 0x183   :  { %644 = vst [vmem:[%s1174_s2 + $0x70] sm:$0xff] %v535_v15 }
 0x187   :  { %v602_v18 = vpop.f32.mrf.mxu3  ;;  %v571_v22 = vpop.f32.mrf.mxu2 }
 0x188   :  { %v603_v19 = vadd.f32 %v602_v18, %v568_v16  ;;  %v537_v20 = vpop.f32.mrf.mxu1  ;;  %v505_v24 = vpop.f32.mrf.mxu0 }
 0x189   :  { %v538_v21 = vadd.f32 %v537_v20, %v503_v17 }
 0x18a   :  { %645 = vst [vmem:[%s1174_s2 + $0x78] sm:$0xff] %v603_v19 }
 0x18b   :  { %646 = vst [vmem:[%s1174_s2 + $0x80] sm:$0xff] %v538_v21 }
 0x18f   :  { %v605_v23 = vpop.f32.mrf.mxu3  ;;  %v573_v28 = vpop.f32.mrf.mxu2 }
 0x190   :  { %v606_v25 = vadd.f32 %v605_v23, %v571_v22  ;;  %v539_v26 = vpop.f32.mrf.mxu1 }
 0x191   :  { %v540_v27 = vadd.f32 %v539_v26, %v505_v24 }
 0x192   :  { %647 = vst [vmem:[%s1174_s2 + $0x88] sm:$0xff] %v606_v25 }
 0x193   :  { %648 = vst [vmem:[%s1174_s2 + $0x90] sm:$0xff] %v540_v27 }
 0x197   :  { %v607_v29 = vpop.f32.mrf.mxu3 }
 0x198   :  { %v608_v30 = vadd.f32 %v607_v29, %v573_v28 }
 0x19a   :  { %649 = vst [vmem:[%s1174_s2 + $0x98] sm:$0xff] %v608_v30 }

// kernel: attention_interaction_block_vn.7
= control target key start
LH: loop header
LB: loop body
LE: loop exit
PB: predicated region body
PF: predicated region fallthrough
CT: control target
= control target key end

     0   :  { %vm95_vm0 = vcmask 130048   ;;  %vm308_vm8 = vcmask 392192   ;;  %vm389_vm10 = vcmask 261120   ;;  %s3354_s1 = inlined_call_operand.vmem [shape: f32[3,16,256], index: 1, kind: input, shape index: {}]   ;;  %s3355_s3 = inlined_call_operand.vmem [shape: f32[16,16], index: 3, kind: input, shape index: {}]   ;;  %s3356_s0 = inlined_call_operand.vmem [shape: f32[32,256], index: 0, kind: input, shape index: {}]   ;;  %s3357_s7 = inlined_call_operand.vmem [shape: f32[16,1], index: 7, kind: input, shape index: {}]   ;;  %s3358_s10 = inlined_call_operand.vmem [shape: f32[48,1], index: 10, kind: input, shape index: {}]   ;;  %s3359_s5 = inlined_call_operand.vmem [shape: f32[32,48], index: 5, kind: input, shape index: {}]   ;;  %s3360_s11 = inlined_call_operand.vmem [shape: f32[48,1], index: 11, kind: input, shape index: {}]   ;;  %s3361_s8 = inlined_call_operand.vmem [shape: f32[32,1], index: 8, kind: input, shape index: {}]   ;;  %s3362_s9 = inlined_call_operand.vmem [shape: f32[32,1], index: 9, kind: input, shape index: {}]   ;;  %s3363_s2 = inlined_call_operand.vmem [shape: f32[80,256], index: 2, kind: input, shape index: {}]   ;;  %s3364_s4 = inlined_call_operand.vmem [shape: f32[16,16], index: 4, kind: input, shape index: {}]   ;;  %s3365_s6 = inlined_call_operand.vmem [shape: f32[16,32], index: 6, kind: input, shape index: {}]   ;;  %s3366_s17 = inlined_call_operand.vmem [shape: f32[16,1], index: 17, kind: input, shape index: {}]   ;;  %s3367_s12 = inlined_call_operand.vmem [shape: f32[16,16], index: 12, kind: input, shape index: {}]   ;;  %s3368_s13 = inlined_call_operand.vmem [shape: f32[16,16], index: 13, kind: input, shape index: {}]   ;;  %s3369_s15 = inlined_call_operand.vmem [shape: f32[32,48], index: 15, kind: input, shape index: {}]   ;;  %s3370_s18 = inlined_call_operand.vmem [shape: f32[32,256], index: 18, kind: output, shape index: {0}]   ;;  %s3371_s14 = inlined_call_operand.vmem [shape: f32[16,16], index: 14, kind: input, shape index: {}]   ;;  %s3372_s16 = inlined_call_operand.vmem [shape: f32[16,32], index: 16, kind: input, shape index: {}]   ;;  %s3373_s19 = inlined_call_operand.vmem [shape: f32[3,16,256], index: 19, kind: output, shape index: {1}]  }
   0x1   :  { %3382 = sst [smem:[#allocation7_spill]] %s3354_s1 }
   0x2   :  { %3383 = sst [smem:[#allocation8_spill]] %s3355_s3 }
   0x3   :  { %3384 = sst [smem:[#allocation9_spill]] %s3356_s0 }
   0x4   :  { %3385 = sst [smem:[#allocation10_spill]] %s3357_s7 }
   0x5   :  { %s3386_s20 = sld [smem:[#allocation7_spill]] }
   0x6   :  { %s3387_s26 = sld [smem:[#allocation8_spill]] }
   0x7   :  { %s3388_s21 = sld [smem:[#allocation9_spill]] }
   0x8   :  { %s3389_s22 = sld [smem:[#allocation10_spill]] }
   0xb   :  { %v63_v0 = vld [vmem:[%s3386_s20 + $0x10] sm:$0xff]  ;;  %v64_v1 = vld [vmem:[%s3386_s20 + $0x18] sm:$0xff]  ;;  %v61_v2 = vld [vmem:[%s3386_s20] sm:$0xff] }
   0xc   :  { %2130 = vmatpush.msra.mxu2 %v63_v0  ;;  %2132 = vmatpush.msra.mxu3 %v64_v1  ;;  %v62_v3 = vld [vmem:[%s3386_s20 + $0x8] sm:$0xff]  ;;  %v2020_v5 = vld [vmem:[%s3386_s20 + $0x30] sm:$0xff]  ;;  %v2021_v6 = vld [vmem:[%s3386_s20 + $0x38] sm:$0xff] }
   0xd   :  { %v84_v4 = vld [vmem:[%s3387_s26 + $0x8] sm:$0xff]  ;;  %116 = vmatpush.msra.mxu0 %v63_v0  ;;  %139 = vmatpush.msra.mxu1 %v64_v1  ;;  %v2018_v7 = vld [vmem:[%s3386_s20 + $0x20] sm:$0xff]  ;;  %v2024_v10 = vld [vmem:[%s3386_s20 + $0x50] sm:$0xff] }
   0xe   :  { %2131 = vmatpush.msra.mxu2 %v61_v2  ;;  %2133 = vmatpush.msra.mxu3 %v62_v3  ;;  %v2019_v8 = vld [vmem:[%s3386_s20 + $0x28] sm:$0xff]  ;;  %v83_v9 = vld [vmem:[%s3387_s26] sm:$0xff]  ;;  %v2025_v11 = vld [vmem:[%s3386_s20 + $0x58] sm:$0xff] }
   0xf   :  { %2027 = vmatmul.msk.f32.vlgmr.msra.gmra.mxu2 %vm95_vm0, %v84_v4  ;;  %2029 = vmatmul.msk.f32.vlgmr.msra.gmra.mxu3 %vm95_vm0, %v84_v4  ;;  %v2022_v12 = vld [vmem:[%s3386_s20 + $0x40] sm:$0xff]  ;;  %v2023_v13 = vld [vmem:[%s3386_s20 + $0x48] sm:$0xff]  ;;  %v81_v14 = vld [vmem:[%s3388_s21 + $0x30] sm:$0xff] }
  0x10   :  { %162 = vmatpush.msrb.mxu2 %v2020_v5  ;;  %185 = vmatpush.msrb.mxu3 %v2021_v6  ;;  %v82_v15 = vld [vmem:[%s3388_s21 + $0x38] sm:$0xff]  ;;  %v79_v16 = vld [vmem:[%s3388_s21 + $0x20] sm:$0xff]  ;;  %v80_v17 = vld [vmem:[%s3388_s21 + $0x28] sm:$0xff] }
  0x11   :  { %117 = vmatpush.msra.mxu0 %v61_v2  ;;  %140 = vmatpush.msra.mxu1 %v62_v3  ;;  %v77_v18 = vld [vmem:[%s3388_s21 + $0x10] sm:$0xff]  ;;  %v78_v19 = vld [vmem:[%s3388_s21 + $0x18] sm:$0xff]  ;;  %v75_v20 = vld [vmem:[%s3388_s21] sm:$0xff] }
  0x12   :  { %163 = vmatpush.msrb.mxu2 %v2018_v7  ;;  %186 = vmatpush.msrb.mxu3 %v2019_v8  ;;  %v76_v21 = vld [vmem:[%s3388_s21 + $0x8] sm:$0xff] }
  0x13   :  { %2026 = vmatmul.msk.f32.vlgmr.msra.gmra.mxu0 %vm95_vm0, %v83_v9  ;;  %2028 = vmatmul.msk.f32.vlgmr.msra.gmra.mxu1 %vm95_vm0, %v83_v9 }
  0x14   :  { %208 = vmatpush.msrb.mxu0 %v2024_v10  ;;  %231 = vmatpush.msrb.mxu1 %v2025_v11 }
  0x15   :  { %331 = vmatpush.msra.mxu2 %v81_v14  ;;  %360 = vmatpush.msra.mxu3 %v82_v15 }
  0x16   :  { %209 = vmatpush.msrb.mxu0 %v2022_v12  ;;  %232 = vmatpush.msrb.mxu1 %v2023_v13 }
  0x17   :  { %2030 = vmatmul.msk.f32.vlgmr.msrb.gmra.mxu2 %vm95_vm0, %v83_v9  ;;  %2032 = vmatmul.msk.f32.vlgmr.msrb.gmra.mxu3 %vm95_vm0, %v83_v9 }
  0x18   :  { %332 = vmatpush.msra.mxu2 %v79_v16  ;;  %361 = vmatpush.msra.mxu3 %v80_v17 }
  0x1a   :  { %333 = vmatpush.msra.mxu2 %v77_v18  ;;  %362 = vmatpush.msra.mxu3 %v78_v19  ;;  %v93_v18 = vld [vmem:[%s3389_s22] sm:$0xff]  ;;  %v959_v19 = vld [vmem:[%s3358_s10 + $0x8] sm:$0xff] }
  0x1b   :  { %2034 = vmatmul.msk.f32.vlgmr.msrb.gmra.mxu0 %vm95_vm0, %v83_v9  ;;  %2036 = vmatmul.msk.f32.vlgmr.msrb.gmra.mxu1 %vm95_vm0, %v83_v9 }
  0x1c   :  { %334 = vmatpush.msra.mxu2 %v75_v20  ;;  %363 = vmatpush.msra.mxu3 %v76_v21 }
  0x1f   :  { %2031 = vmatmul.msk.f32.gmra.mxu2 %vm95_vm0, %v84_v4  ;;  %2033 = vmatmul.msk.f32.gmra.mxu3 %vm95_vm0, %v84_v4 }
  0x23   :  { %2035 = vmatmul.msk.f32.gmra.mxu0 %vm95_vm0, %v84_v4  ;;  %2037 = vmatmul.msk.f32.gmra.mxu1 %vm95_vm0, %v84_v4 }
  0x90   :  { %v2383_v22 = vpop.f32.mrf.mxu0  ;;  %v2385_v23 = vpop.f32.mrf.mxu1 }
  0x91   :  { %v240_v28 = vmul.f32 %v2383_v22, %v2383_v22  ;;  %v241_v29 = vmul.f32 %v2385_v23, %v2385_v23 }
  0x92   :  { %v2387_v24 = vpop.f32.mrf.mxu2  ;;  %v2389_v25 = vpop.f32.mrf.mxu3 }
  0x93   :  { %v242_v42 = vmul.f32 %v2387_v24, %v2387_v24  ;;  %v243_v43 = vmul.f32 %v2389_v25, %v2389_v25 }
  0x98   :  { %v2391_v26 = vpop.f32.mrf.mxu0  ;;  %v2393_v27 = vpop.f32.mrf.mxu1 }
  0x99   :  { %v252_v34 = vmul.f32 %v2391_v26, %v2391_v26  ;;  %v253_v35 = vmul.f32 %v2393_v27, %v2393_v27 }
  0x9a   :  { %v2399_v30 = vpop.f32.mrf.mxu2  ;;  %v2401_v31 = vpop.f32.mrf.mxu3 }
  0x9b   :  { %v244_v32 = vmul.f32 %v2399_v30, %v2399_v30  ;;  %v245_v33 = vmul.f32 %v2401_v31, %v2401_v31 }
  0x9d   :  { %v248_v36 = vadd.f32 %v244_v32, %v240_v28  ;;  %v249_v37 = vadd.f32 %v245_v33, %v241_v29  ;;  %v2203_v28 = vmov 0  }
  0x9e   :  { %2136 = vset.pattern.permute.xlu0 %v2203_v28  ;;  %2137 = vset.pattern.permute.xlu1 %v2203_v28 }
  0x9f   :  { %v2411_v38 = vadd.f32 %v252_v34, %v248_v36  ;;  %v2413_v39 = vadd.f32 %v253_v35, %v249_v37  ;;  %381 = vperm.xlu0 %2136, %v93_v18   ;;  %981 = vperm.xlu1 %2137, %v959_v19   ;;  %v965_v34 = vld [vmem:[%s3360_s11 + $0x8] sm:$0xff] }
  0xa0   :  { %v2415_v40 = vpop.f32.mrf.mxu0  ;;  %v2417_v41 = vpop.f32.mrf.mxu1  ;;  %2138 = vset.pattern.permute.xlu2 %v2203_v28 }
  0xa1   :  { %2139 = vrsqrt.f32 %v2411_v38  ;;  %v254_v48 = vmul.f32 %v2415_v40, %v2415_v40  ;;  %v255_v49 = vmul.f32 %v2417_v41, %v2417_v41  ;;  %vm267_vm1 = vcmp.eq.f32.partialorder %v2411_v38, inf  ;;  %995 = vperm.xlu2 %2138, %v965_v34  }
  0xa2   :  { %v2424_v44 = vpop.f32.mrf.mxu2  ;;  %v2426_v45 = vpop.f32.mrf.mxu3  ;;  %2141 = vrsqrt.f32 %v2413_v39  ;;  %v270_v17 = vand.u32 2147483648, %v2411_v38  ;;  %vm279_vm2 = vcmp.eq.f32.partialorder %v2413_v39, inf  ;;  %vm269_vm7 = vcmp.eq.f32.partialorder %v2411_v38, 0.0 }
  0xa3   :  { %v246_v46 = vmul.f32 %v2424_v44, %v2424_v44  ;;  %v247_v47 = vmul.f32 %v2426_v45, %v2426_v45  ;;  %vm281_vm9 = vcmp.eq.f32.partialorder %v2413_v39, 0.0 }
  0xa5   :  { %v250_v50 = vadd.f32 %v246_v46, %v242_v42  ;;  %v251_v51 = vadd.f32 %v247_v47, %v243_v43  ;;  %v282_v43 = vand.u32 2147483648, %v2413_v39  ;;  %v87_v46 = vld [vmem:[%s3359_s5] sm:$0xff] }
  0xa7   :  { %v2140_v52 = vpop.eup %2139  ;;  %v258_v53 = vadd.f32 %v254_v48, %v250_v50  ;;  %v259_v54 = vadd.f32 %v255_v49, %v251_v51  ;;  %v958_v49 = vld [vmem:[%s3358_s10] sm:$0xff]  ;;  %v89_v50 = vld [vmem:[%s3359_s5 + $0x10] sm:$0xff]  ;;  %v961_v51 = vld [vmem:[%s3358_s10 + $0x18] sm:$0xff] }
  0xa8   :  { %v2142_v55 = vpop.eup %2141  ;;  %v261_v56 = vmul.f32 %v2140_v52, %v2411_v38  ;;  %976 = vperm.xlu1 %2137, %v958_v49  }
  0xa9   :  { %2143 = vrsqrt.f32 %v258_v53  ;;  %v273_v58 = vmul.f32 %v2142_v55, %v2413_v39  ;;  %vm291_vm3 = vcmp.eq.f32.partialorder %v258_v53, inf  ;;  %vm293_vm4 = vcmp.eq.f32.partialorder %v258_v53, 0.0 }
  0xaa   :  { %2145 = vrsqrt.f32 %v259_v54  ;;  %v262_v57 = vmul.f32 %v2140_v52, %v261_v56  ;;  %v294_v20 = vand.u32 2147483648, %v258_v53  ;;  %vm303_vm5 = vcmp.eq.f32.partialorder %v259_v54, inf  ;;  %v966_v56 = vld [vmem:[%s3360_s11 + $0x10] sm:$0xff] }
  0xab   :  { %v274_v60 = vmul.f32 %v2142_v55, %v273_v58  ;;  %v306_v32 = vand.u32 2147483648, %v259_v54  ;;  %vm305_vm6 = vcmp.eq.f32.partialorder %v259_v54, 0.0  ;;  %v802_v58 = vld [vmem:[%s3361_s8 + $0x10] sm:$0xff] }
  0xac   :  { %v263_v59 = vmul.f32 0.5, %v262_v57  ;;  %v803_v57 = vld [vmem:[%s3361_s8 + $0x18] sm:$0xff] }
  0xad   :  { %v275_v62 = vmul.f32 0.5, %v274_v60  ;;  %v801_v60 = vld [vmem:[%s3361_s8 + $0x8] sm:$0xff] }
  0xae   :  { %v264_v1 = vsub.f32 1.5, %v263_v59  ;;  %v835_v59 = vld [vmem:[%s3362_s9 + $0x18] sm:$0xff] }
  0xaf   :  { %v2144_v61 = vpop.eup %2143  ;;  %v276_v3 = vsub.f32 1.5, %v275_v62  ;;  %v800_v62 = vld [vmem:[%s3361_s8] sm:$0xff] }
  0xb0   :  { %v2146_v63 = vpop.eup %2145  ;;  %v285_v0 = vmul.f32 %v2144_v61, %v258_v53  ;;  %v265_v7 = vmul.f32 %v2140_v52, %v264_v1  ;;  %v968_v52 = vld [vmem:[%s3360_s11 + $0x20] sm:$0xff] }
  0xb1   :  { %v297_v2 = vmul.f32 %v2146_v63, %v259_v54  ;;  %v277_v9 = vmul.f32 %v2142_v55, %v276_v3  ;;  %v967_v55 = vld [vmem:[%s3360_s11 + $0x18] sm:$0xff]  ;;  %v674_v3 = vld [vmem:[%s3363_s2] sm:$0xff] }
  0xb2   :  { %v286_v4 = vmul.f32 %v2144_v61, %v285_v0  ;;  %v266_v13 = vmul.f32 %v265_v7, %v2411_v38  ;;  %v832_v0 = vld [vmem:[%s3362_s9] sm:$0xff] }
  0xb3   :  { %v298_v5 = vmul.f32 %v2146_v63, %v297_v2  ;;  %v278_v15 = vmul.f32 %v277_v9, %v2413_v39 }
  0xb4   :  { %v287_v6 = vmul.f32 0.5, %v286_v4  ;;  %v268_v33 = vsel %vm267_vm1, %v2411_v38, %v266_v13  ;;  %v94_v38 = vld [vmem:[%s3389_s22 + $0x8] sm:$0xff]  ;;  %v676_v4 = vld [vmem:[%s3363_s2 + $0x10] sm:$0xff] }
  0xb5   :  { %v299_v8 = vmul.f32 0.5, %v298_v5  ;;  %v280_v37 = vsel %vm279_vm2, %v2413_v39, %v278_v15  ;;  %v271_v47 = vsel %vm269_vm7, %v270_v17, %v268_v33  ;;  %v964_v39 = vld [vmem:[%s3360_s11] sm:$0xff]  ;;  %386 = vperm.xlu0 %2136, %v94_v38   ;;  %v675_v5 = vld [vmem:[%s3363_s2 + $0x8] sm:$0xff]  ;;  %v681_v33 = vld [vmem:[%s3363_s2 + $0x38] sm:$0xff] }
  0xb6   :  { %v288_v10 = vsub.f32 1.5, %v287_v6  ;;  %v283_v48 = vsel %vm281_vm9, %v282_v43, %v280_v37  ;;  %990 = vperm.xlu2 %2138, %v964_v39   ;;  %v677_v6 = vld [vmem:[%s3363_s2 + $0x18] sm:$0xff]  ;;  %v678_v15 = vld [vmem:[%s3363_s2 + $0x20] sm:$0xff] }
  0xb7   :  { %v300_v11 = vsub.f32 1.5, %v299_v8 }
  0xb8   :  { %v289_v12 = vmul.f32 %v2144_v61, %v288_v10  ;;  %v834_v61 = vld [vmem:[%s3362_s9 + $0x10] sm:$0xff] }
  0xb9   :  { %v301_v14 = vmul.f32 %v2146_v63, %v300_v11  ;;  %v833_v63 = vld [vmem:[%s3362_s9 + $0x8] sm:$0xff] }
  0xba   :  { %v290_v16 = vmul.f32 %v289_v12, %v258_v53 }
  0xbb   :  { %v302_v21 = vmul.f32 %v301_v14, %v259_v54 }
  0xbc   :  { %v292_v29 = vsel %vm291_vm3, %v258_v53, %v290_v16  ;;  %v960_v53 = vld [vmem:[%s3358_s10 + $0x10] sm:$0xff]  ;;  %v679_v16 = vld [vmem:[%s3363_s2 + $0x28] sm:$0xff] }
  0xbd   :  { %v295_v35 = vsel %vm293_vm4, %v294_v20, %v292_v29  ;;  %v304_v36 = vsel %vm303_vm5, %v259_v54, %v302_v21  ;;  %v90_v54 = vld [vmem:[%s3359_s5 + $0x18] sm:$0xff]  ;;  %v2576_v21 = vld [vmem:[%s3364_s4] sm:$0xff] }
  0xbe   :  { %335 = vmatpush.msra.mxu2 %v295_v35  ;;  %v307_v42 = vsel %vm305_vm6, %v306_v32, %v304_v36  ;;  %v680_v32 = vld [vmem:[%s3363_s2 + $0x30] sm:$0xff] }
  0xbf   :  { %364 = vmatpush.msra.mxu3 %v307_v42  ;;  %v2591_v42 = vld [vmem:[%s3364_s4 + $0x8] sm:$0xff] }
  0xc0   :  { %336 = vmatpush.msra.mxu2 %v271_v47 }
  0xc1   :  { %365 = vmatpush.msra.mxu3 %v283_v48  ;;  %2038 = vmatmul.msk.f32.vlgmr.msra.gmra.mxu2 %vm308_vm8, %v87_v46  ;;  %v91_v48 = vld [vmem:[%s3365_s6] sm:$0xff] }
  0xc2   :  { %2042 = vmatmul.msk.f32.vlgmr.msra.gmra.mxu3 %vm308_vm8, %v87_v46  ;;  %584 = vmatpush.msrb.mxu2 %v2424_v44  ;;  %v88_v44 = vld [vmem:[%s3359_s5 + $0x8] sm:$0xff] }
  0xc3   :  { %607 = vmatpush.msrb.mxu3 %v2426_v45  ;;  %v963_v45 = vld [vmem:[%s3358_s10 + $0x28] sm:$0xff] }
  0xc4   :  { %585 = vmatpush.msrb.mxu2 %v2399_v30  ;;  %v962_v30 = vld [vmem:[%s3358_s10 + $0x20] sm:$0xff]  ;;  %1045 = vperm.xlu0 %2136, %v963_v45  }
  0xc5   :  { %608 = vmatpush.msrb.mxu3 %v2401_v31  ;;  %v969_v31 = vld [vmem:[%s3360_s11 + $0x28] sm:$0xff]  ;;  %1040 = vperm.xlu1 %2137, %v962_v30  }
  0xc6   :  { %1059 = vperm.xlu2 %2138, %v969_v31  }
  0xc9   :  { %2039 = vmatmul.msk.f32.gmra.mxu2 %vm308_vm8, %v88_v44 }
  0xca   :  { %2043 = vmatmul.msk.f32.gmra.mxu3 %vm308_vm8, %v88_v44 }
  0xcc   :  { %1013 = vperm.xlu0 %2136, %v961_v51   ;;  %v92_v51 = vld [vmem:[%s3365_s6 + $0x8] sm:$0xff] }
  0xcd   :  { %1054 = vperm.xlu1 %2137, %v968_v52  }
  0xce   :  { %1008 = vperm.xlu2 %2138, %v960_v53  }
  0xd1   :  { %2040 = vmatmul.msk.f32.gmra.mxu2 %vm308_vm8, %v89_v50 }
  0xd2   :  { %2044 = vmatmul.msk.f32.gmra.mxu3 %vm308_vm8, %v89_v50 }
  0xd4   :  { %1027 = vperm.xlu0 %2136, %v967_v55  }
  0xd5   :  { %1022 = vperm.xlu1 %2137, %v966_v56  }
  0xd6   :  { %821 = vperm.xlu2 %2138, %v803_v57  }
  0xd9   :  { %2041 = vmatmul.msk.f32.gmra.mxu2 %vm308_vm8, %v90_v54 }
  0xda   :  { %2045 = vmatmul.msk.f32.gmra.mxu3 %vm308_vm8, %v90_v54 }
  0xdc   :  { %816 = vperm.xlu0 %2136, %v802_v58  }
  0xdd   :  { %853 = vperm.xlu1 %2137, %v835_v59  }
  0xde   :  { %811 = vperm.xlu2 %2138, %v801_v60  }
  0xe1   :  { %2058 = vmatmul.msk.f32.vlgmr.msrb.gmra.mxu2 %vm95_vm0, %v2576_v21 }
  0xe2   :  { %2060 = vmatmul.msk.f32.vlgmr.msrb.gmra.mxu3 %vm95_vm0, %v2576_v21 }
  0xe4   :  { %848 = vperm.xlu0 %2136, %v834_v61  }
  0xe5   :  { %806 = vperm.xlu1 %2137, %v800_v62  }
  0xe6   :  { %843 = vperm.xlu2 %2138, %v833_v63  }
  0xe9   :  { %2059 = vmatmul.msk.f32.gmra.mxu2 %vm95_vm0, %v2591_v42 }
  0xea   :  { %2061 = vmatmul.msk.f32.gmra.mxu3 %vm95_vm0, %v2591_v42 }
  0xec   :  { %838 = vperm.xlu0 %2136, %v832_v0  }
 0x144   :  { %v338_v1 = vpop.f32.mrf.mxu2 }
 0x145   :  { %v367_v2 = vpop.f32.mrf.mxu3  ;;  %v2555_v8 = vadd.f32 %v674_v3, %v338_v1 }
 0x146   :  { %v2559_v11 = vadd.f32 %v675_v5, %v367_v2 }
 0x14c   :  { %v341_v7 = vpop.f32.mrf.mxu2 }
 0x14d   :  { %v2557_v9 = vadd.f32 %v676_v4, %v341_v7  ;;  %v370_v10 = vpop.f32.mrf.mxu3 }
 0x14e   :  { %v2561_v12 = vadd.f32 %v677_v6, %v370_v10 }
 0x14f   :  { %v714_v13 = vadd.f32 %v2557_v9, %v2555_v8 }
 0x150   :  { %v723_v14 = vadd.f32 %v2561_v12, %v2559_v11 }
 0x154   :  { %v344_v17 = vpop.f32.mrf.mxu2 }
 0x155   :  { %v698_v18 = vadd.f32 %v678_v15, %v344_v17  ;;  %v373_v19 = vpop.f32.mrf.mxu3 }
 0x156   :  { %v699_v20 = vadd.f32 %v679_v16, %v373_v19 }
 0x157   :  { %v715_v28 = vadd.f32 %v714_v13, %v698_v18 }
 0x158   :  { %v724_v29 = vadd.f32 %v723_v14, %v699_v20 }
 0x15c   :  { %v347_v34 = vpop.f32.mrf.mxu2 }
 0x15d   :  { %v700_v35 = vadd.f32 %v680_v32, %v347_v34  ;;  %v376_v36 = vpop.f32.mrf.mxu3  ;;  %408 = vmatpush.msra.mxu0 %v347_v34 }
 0x15e   :  { %v701_v37 = vadd.f32 %v681_v33, %v376_v36  ;;  %431 = vmatpush.msra.mxu1 %v376_v36 }
 0x15f   :  { %v716_v43 = vadd.f32 %v715_v28, %v700_v35  ;;  %409 = vmatpush.msra.mxu0 %v344_v17 }
 0x160   :  { %v725_v46 = vadd.f32 %v724_v29, %v701_v37  ;;  %432 = vmatpush.msra.mxu1 %v373_v19 }
 0x161   :  { %v717_v47 = vrot.slane %v716_v43, 4  ;;  %410 = vmatpush.msra.mxu0 %v341_v7 }
 0x162   :  { %v726_v38 = vrot.slane %v725_v46, 4  ;;  %433 = vmatpush.msra.mxu1 %v370_v10 }
 0x163   :  { %v718_v49 = vadd.f32 %v717_v47, %v716_v43  ;;  %411 = vmatpush.msra.mxu0 %v338_v1 }
 0x164   :  { %v727_v39 = vadd.f32 %v726_v38, %v725_v46  ;;  %434 = vmatpush.msra.mxu1 %v367_v2  ;;  %2046 = vmatmul.msk.f32.vlgmr.msra.gmra.mxu0 %vm389_vm10, %v91_v48 }
 0x165   :  { %v719_v44 = vrot.slane %v718_v49, 2  ;;  %2048 = vmatmul.msk.f32.vlgmr.msra.gmra.mxu1 %vm389_vm10, %v91_v48  ;;  %538 = vmatpush.msrb.mxu0 %v2387_v24 }
 0x166   :  { %v728_v45 = vrot.slane %v727_v39, 2  ;;  %561 = vmatpush.msrb.mxu1 %v2389_v25 }
 0x167   :  { %v720_v30 = vadd.f32 %v719_v44, %v718_v49  ;;  %539 = vmatpush.msrb.mxu0 %v2383_v22 }
 0x168   :  { %v729_v31 = vadd.f32 %v728_v45, %v727_v39  ;;  %562 = vmatpush.msrb.mxu1 %v2385_v23 }
 0x169   :  { %630 = vmatpush.msra.mxu0 %v2415_v40  ;;  %v721_v50 = vrot.slane %v720_v30, 1 }
 0x16a   :  { %653 = vmatpush.msra.mxu1 %v2417_v41  ;;  %v730_v52 = vrot.slane %v729_v31, 1 }
 0x16b   :  { %631 = vmatpush.msra.mxu0 %v2391_v26  ;;  %v722_v24 = vadd.f32 %v721_v50, %v720_v30 }
 0x16c   :  { %654 = vmatpush.msra.mxu1 %v2393_v27  ;;  %v731_v25 = vadd.f32 %v730_v52, %v729_v31  ;;  %2047 = vmatmul.msk.f32.gmra.mxu0 %vm389_vm10, %v92_v51 }
 0x16d   :  { %v732_v22 = vmul.f32 0.03125, %v722_v24  ;;  %2049 = vmatmul.msk.f32.gmra.mxu1 %vm389_vm10, %v92_v51 }
 0x16e   :  { %v733_v23 = vmul.f32 0.03125, %v731_v25  ;;  %v1411_v25 = vld [vmem:[%s3366_s17 + $0x8] sm:$0xff] }
 0x16f   :  { %v2616_v40 = vsub.f32 %v2555_v8, %v732_v22  ;;  %v2619_v41 = vsub.f32 %v2557_v9, %v732_v22  ;;  %v2621_v53 = vsub.f32 %v698_v18, %v732_v22  ;;  %v2631_v55 = vsub.f32 %v700_v35, %v732_v22  ;;  %v1410_v18 = vld [vmem:[%s3366_s17] sm:$0xff]  ;;  %1701 = vperm.xlu2 %2138, %v1411_v25   ;;  %v382_v22 = vpop.permute.xlu0 %381 }
 0x170   :  { %v2624_v26 = vsub.f32 %v2559_v11, %v733_v23  ;;  %v2627_v27 = vsub.f32 %v2561_v12, %v733_v23  ;;  %v2629_v54 = vsub.f32 %v699_v20, %v733_v23  ;;  %v2637_v58 = vsub.f32 %v701_v37, %v733_v23  ;;  %1696 = vperm.xlu1 %2137, %v1410_v18  }
 0x171   :  { %v742_v56 = vmul.f32 %v2616_v40, %v2616_v40  ;;  %v744_v57 = vmul.f32 %v2619_v41, %v2619_v41  ;;  %v746_v61 = vmul.f32 %v2621_v53, %v2621_v53  ;;  %v748_v1 = vmul.f32 %v2631_v55, %v2631_v55 }
 0x172   :  { %v743_v59 = vmul.f32 %v2624_v26, %v2624_v26  ;;  %v745_v60 = vmul.f32 %v2627_v27, %v2627_v27  ;;  %v747_v63 = vmul.f32 %v2629_v54, %v2629_v54  ;;  %v749_v3 = vmul.f32 %v2637_v58, %v2637_v58 }
 0x173   :  { %v750_v62 = vadd.f32 %v744_v57, %v742_v56 }
 0x174   :  { %v759_v0 = vadd.f32 %v745_v60, %v743_v59  ;;  %2054 = vmatmul.msk.f32.vlgmr.msrb.gmra.mxu0 %vm95_vm0, %v2576_v21 }
 0x175   :  { %v751_v2 = vadd.f32 %v750_v62, %v746_v61  ;;  %2056 = vmatmul.msk.f32.vlgmr.msrb.gmra.mxu1 %vm95_vm0, %v2576_v21 }
 0x176   :  { %v760_v4 = vadd.f32 %v759_v0, %v747_v63 }
 0x177   :  { %v752_v5 = vadd.f32 %v751_v2, %v748_v1 }
 0x178   :  { %v761_v6 = vadd.f32 %v760_v4, %v749_v3 }
 0x179   :  { %v753_v7 = vrot.slane %v752_v5, 4 }
 0x17a   :  { %v762_v8 = vrot.slane %v761_v6, 4 }
 0x17b   :  { %v754_v9 = vadd.f32 %v753_v7, %v752_v5 }
 0x17c   :  { %v763_v10 = vadd.f32 %v762_v8, %v761_v6  ;;  %2055 = vmatmul.msk.f32.gmra.mxu0 %vm95_vm0, %v2591_v42 }
 0x17d   :  { %v755_v11 = vrot.slane %v754_v9, 2  ;;  %2057 = vmatmul.msk.f32.gmra.mxu1 %vm95_vm0, %v2591_v42 }
 0x17e   :  { %v764_v12 = vrot.slane %v763_v10, 2 }
 0x17f   :  { %v756_v13 = vadd.f32 %v755_v11, %v754_v9 }
 0x180   :  { %v765_v14 = vadd.f32 %v764_v12, %v763_v10 }
 0x181   :  { %v757_v15 = vrot.slane %v756_v13, 1 }
 0x182   :  { %v766_v16 = vrot.slane %v765_v14, 1 }
 0x183   :  { %v758_v17 = vadd.f32 %v757_v15, %v756_v13 }
 0x184   :  { %v767_v19 = vadd.f32 %v766_v16, %v765_v14  ;;  %2062 = vmatmul.msk.f32.vlgmr.msra.gmra.mxu0 %vm95_vm0, %v2576_v21 }
 0x185   :  { %v768_v20 = vmul.f32 0.03125, %v758_v17  ;;  %2064 = vmatmul.msk.f32.vlgmr.msra.gmra.mxu1 %vm95_vm0, %v2576_v21 }
 0x186   :  { %v769_v28 = vmul.f32 0.03125, %v767_v19 }
 0x187   :  { %v770_v29 = vadd.f32 1e-05, %v768_v20  ;;  %v587_v20 = vpop.f32.mrf.mxu2 }
 0x188   :  { %v771_v32 = vadd.f32 1e-05, %v769_v28 }
 0x189   :  { %2147 = vrsqrt.f32 %v770_v29  ;;  %vm778_vm13 = vweird.f32 %v770_v29 }
 0x18a   :  { %2149 = vrsqrt.f32 %v771_v32  ;;  %vm788_vm15 = vweird.f32 %v771_v32 }
 0x18c   :  { %2063 = vmatmul.msk.f32.gmra.mxu0 %vm95_vm0, %v2591_v42 }
 0x18d   :  { %2065 = vmatmul.msk.f32.gmra.mxu1 %vm95_vm0, %v2591_v42 }
 0x18f   :  { %v2148_v33 = vpop.eup %2147 }
 0x190   :  { %v2150_v34 = vpop.eup %2149  ;;  %v773_v35 = vmul.f32 %v2148_v33, %v770_v29  ;;  %vm779_vm11 = vweird.f32 %v2148_v33 }
 0x191   :  { %v783_v36 = vmul.f32 %v2150_v34, %v771_v32  ;;  %vm789_vm12 = vweird.f32 %v2150_v34  ;;  %vm780_vm14 = vmor %vm778_vm13, %vm779_vm11 }
 0x192   :  { %v774_v37 = vmul.f32 %v2148_v33, %v773_v35  ;;  %vm790_vm1 = vmor %vm788_vm15, %vm789_vm12 }
 0x193   :  { %v784_v43 = vmul.f32 %v2150_v34, %v783_v36 }
 0x194   :  { %v775_v46 = vmul.f32 0.5, %v774_v37  ;;  %v610_v37 = vpop.f32.mrf.mxu3 }
 0x195   :  { %v785_v47 = vmul.f32 0.5, %v784_v43 }
 0x196   :  { %v776_v21 = vsub.f32 1.5, %v775_v46 }
 0x197   :  { %v786_v48 = vsub.f32 1.5, %v785_v47 }
 0x198   :  { %v777_v38 = vmul.f32 %v2148_v33, %v776_v21 }
 0x199   :  { %v787_v49 = vmul.f32 %v2150_v34, %v786_v48 }
 0x19a   :  { %v781_v39 = vsel %vm780_vm14, %v2148_v33, %v777_v38 }
 0x19b   :  { %v791_v42 = vsel %vm790_vm1, %v2150_v34, %v787_v49  ;;  %v2671_v44 = vmul.f32 %v781_v39, %v2631_v55  ;;  %v2674_v45 = vmul.f32 %v781_v39, %v2621_v53  ;;  %v2677_v30 = vmul.f32 %v781_v39, %v2619_v41 }
 0x19c   :  { %v2680_v31 = vmul.f32 %v791_v42, %v2637_v58  ;;  %v2683_v50 = vmul.f32 %v791_v42, %v2629_v54  ;;  %v2686_v51 = vmul.f32 %v791_v42, %v2627_v27  ;;  %v2689_v52 = vmul.f32 %v781_v39, %v2616_v40  ;;  %v387_v27 = vpop.permute.xlu0 %386 }
 0x19d   :  { %v2692_v24 = vmul.f32 %v791_v42, %v2624_v26 }
 0x1e1   :  { %v413_v23 = vpop.f32.mrf.mxu0 }
 0x1e2   :  { %v414_v41 = vadd.f32 %v413_v23, %v382_v22  ;;  %v436_v53 = vpop.f32.mrf.mxu1  ;;  %v682_v23 = vld [vmem:[%s3363_s2 + $0x40] sm:$0xff] }
 0x1e3   :  { %v437_v54 = vadd.f32 %v436_v53, %v382_v22 }
 0x1e4   :  { %v2050_v55 = vmul.f32 -1.442695, %v414_v41 }
 0x1e5   :  { %v2051_v56 = vmul.f32 -1.442695, %v437_v54  ;;  %v686_v54 = vld [vmem:[%s3363_s2 + $0x60] sm:$0xff] }
 0x1e6   :  { %2151 = vpow2.f32 %v2050_v55 }
 0x1e7   :  { %2153 = vpow2.f32 %v2051_v56 }
 0x1e9   :  { %v416_v40 = vpop.f32.mrf.mxu0 }
 0x1ea   :  { %v417_v57 = vadd.f32 %v416_v40, %v387_v27  ;;  %v439_v58 = vpop.f32.mrf.mxu1 }
 0x1eb   :  { %v440_v26 = vadd.f32 %v439_v58, %v387_v27 }
 0x1ec   :  { %v2152_v59 = vpop.eup %2151  ;;  %v2052_v60 = vmul.f32 -1.442695, %v417_v57 }
 0x1ed   :  { %v2154_v61 = vpop.eup %2153  ;;  %v454_v62 = vadd.f32 1.0, %v2152_v59  ;;  %v2053_v63 = vmul.f32 -1.442695, %v440_v26 }
 0x1ee   :  { %v455_v0 = vadd.f32 1.0, %v2154_v61  ;;  %2155 = vpow2.f32 %v2052_v60  ;;  %v683_v61 = vld [vmem:[%s3363_s2 + $0x48] sm:$0xff] }
 0x1ef   :  { %2157 = vrcp.f32 %v454_v62  ;;  %v469_v12 = vand.u32 2147483648, %v454_v62  ;;  %v467_v16 = vand.u32 2147483647, %v454_v62  ;;  %vm463_vm4 = vweird.f32 %v454_v62 }
 0x1f0   :  { %2159 = vrcp.f32 %v455_v0  ;;  %v484_v19 = vand.u32 2147483648, %v455_v0  ;;  %v482_v29 = vand.u32 2147483647, %v455_v0  ;;  %vm478_vm6 = vweird.f32 %v455_v0 }
 0x1f1   :  { %2161 = vpow2.f32 %v2053_v63  ;;  %v541_v1 = vpop.f32.mrf.mxu0  ;;  %v470_v33 = vor.u32 1.1754944e-38, %v469_v12  ;;  %vm468_vm7 = vcmp.eq.f32.partialorder %v467_v16, 8.507059e+37  ;;  %v613_v16 = vpop.f32.mrf.mxu3 }
 0x1f2   :  { %v564_v2 = vpop.f32.mrf.mxu1  ;;  %v485_v47 = vor.u32 1.1754944e-38, %v484_v19  ;;  %vm483_vm11 = vcmp.eq.f32.partialorder %v482_v29, 8.507059e+37  ;;  %v691_v29 = vld [vmem:[%s3363_s2 + $0x88] sm:$0xff] }
 0x1f4   :  { %v2156_v3 = vpop.eup %2155 }
 0x1f5   :  { %v2158_v4 = vpop.eup %2157  ;;  %v2697_v5 = vadd.f32 1.0, %v2156_v3 }
 0x1f6   :  { %v2160_v6 = vpop.eup %2159  ;;  %v459_v7 = vmul.f32 %v2158_v4, %v454_v62  ;;  %vm464_vm2 = vweird.f32 %v2158_v4 }
 0x1f7   :  { %v2162_v8 = vpop.eup %2161  ;;  %2163 = vrcp.f32 %v2697_v5  ;;  %v474_v9 = vmul.f32 %v2160_v6, %v455_v0  ;;  %vm479_vm3 = vweird.f32 %v2160_v6  ;;  %vm465_vm5 = vmor %vm463_vm4, %vm464_vm2  ;;  %v499_v21 = vand.u32 2147483648, %v2697_v5  ;;  %v687_v0 = vld [vmem:[%s3363_s2 + $0x68] sm:$0xff] }
 0x1f8   :  { %v2700_v10 = vadd.f32 1.0, %v2162_v8  ;;  %v460_v11 = vsub.f32 1.0, %v459_v7  ;;  %vm480_vm9 = vmor %vm478_vm6, %vm479_vm3  ;;  %vm493_vm12 = vweird.f32 %v2697_v5  ;;  %v497_v53 = vand.u32 2147483647, %v2697_v5 }
 0x1f9   :  { %v475_v13 = vsub.f32 1.0, %v474_v9  ;;  %v2702_v14 = vpop.f32.mrf.mxu0  ;;  %v500_v56 = vor.u32 1.1754944e-38, %v499_v21 }
 0x1fa   :  { %2165 = vrcp.f32 %v2700_v10  ;;  %v461_v15 = vmul.f32 %v2158_v4, %v460_v11  ;;  %v2705_v17 = vpop.f32.mrf.mxu1  ;;  %v512_v40 = vand.u32 2147483647, %v2700_v10  ;;  %v514_v57 = vand.u32 2147483648, %v2700_v10  ;;  %v688_v11 = vld [vmem:[%s3363_s2 + $0x70] sm:$0xff] }
 0x1fb   :  { %v476_v18 = vmul.f32 %v2160_v6, %v475_v13  ;;  %vm498_vm1 = vcmp.eq.f32.partialorder %v497_v53, 8.507059e+37  ;;  %vm508_vm2 = vweird.f32 %v2700_v10 }
 0x1fc   :  { %v462_v28 = vadd.f32 %v2158_v4, %v461_v15  ;;  %vm2739_vm3 = vcmp.eq.f32.partialorder %v512_v40, 8.507059e+37  ;;  %v515_v9 = vor.u32 1.1754944e-38, %v514_v57 }
 0x1fd   :  { %v2164_v32 = vpop.eup %2163  ;;  %v477_v34 = vadd.f32 %v2160_v6, %v476_v18 }
 0x1fe   :  { %v466_v35 = vsel %vm465_vm5, %v2158_v4, %v462_v28  ;;  %v489_v36 = vmul.f32 %v2164_v32, %v2697_v5  ;;  %vm494_vm13 = vweird.f32 %v2164_v32  ;;  %v690_v4 = vld [vmem:[%s3363_s2 + $0x80] sm:$0xff]  ;;  %v684_v5 = vld [vmem:[%s3363_s2 + $0x50] sm:$0xff] }
 0x1ff   :  { %v471_v43 = vsel %vm468_vm7, %v470_v33, %v466_v35  ;;  %v481_v46 = vsel %vm480_vm9, %v2160_v6, %v477_v34  ;;  %vm495_vm15 = vmor %vm493_vm12, %vm494_vm13  ;;  %v685_v35 = vld [vmem:[%s3363_s2 + $0x58] sm:$0xff] }
 0x200   :  { %v2166_v48 = vpop.eup %2165  ;;  %v490_v38 = vsub.f32 1.0, %v489_v36  ;;  %v662_v49 = vmul.f32 %v541_v1, %v471_v43  ;;  %v486_v39 = vsel %vm483_vm11, %v485_v47, %v481_v46  ;;  %v666_v25 = vmul.f32 %v587_v20, %v471_v43  ;;  %v693_v47 = vld [vmem:[%s3363_s2 + $0x98] sm:$0xff] }
 0x201   :  { %v504_v42 = vmul.f32 %v2166_v48, %v2700_v10  ;;  %v633_v22 = vpop.f32.mrf.mxu0  ;;  %v663_v58 = vmul.f32 %v564_v2, %v486_v39  ;;  %vm509_vm14 = vweird.f32 %v2166_v48  ;;  %v667_v59 = vmul.f32 %v610_v37, %v486_v39  ;;  %v590_v2 = vpop.f32.mrf.mxu2  ;;  %v689_v37 = vld [vmem:[%s3363_s2 + $0x78] sm:$0xff] }
 0x202   :  { %v491_v41 = vmul.f32 %v2164_v32, %v490_v38  ;;  %v656_v55 = vpop.f32.mrf.mxu1  ;;  %v2720_v60 = vadd.f32 %v682_v23, %v662_v49  ;;  %v2727_v63 = vadd.f32 %v686_v54, %v666_v25  ;;  %v670_v1 = vmul.f32 %v633_v22, %v471_v43  ;;  %vm510_vm4 = vmor %vm508_vm2, %vm509_vm14 }
 0x203   :  { %v505_v27 = vsub.f32 1.0, %v504_v42  ;;  %v2746_v10 = vadd.f32 %v683_v61, %v663_v58  ;;  %v2750_v13 = vadd.f32 %v687_v0, %v667_v59  ;;  %v671_v28 = vmul.f32 %v656_v55, %v486_v39 }
 0x204   :  { %v492_v26 = vadd.f32 %v2164_v32, %v491_v41  ;;  %v864_v19 = vadd.f32 %v2727_v63, %v2720_v60  ;;  %v710_v20 = vadd.f32 %v690_v4, %v670_v1 }
 0x205   :  { %v506_v62 = vmul.f32 %v2166_v48, %v505_v27  ;;  %v865_v49 = vadd.f32 %v2750_v13, %v2746_v10  ;;  %v711_v22 = vadd.f32 %v691_v29, %v671_v28 }
 0x206   :  { %v496_v3 = vsel %vm495_vm15, %v2164_v32, %v492_v26  ;;  %v868_v53 = vadd.f32 %v864_v19, %v710_v20 }
 0x207   :  { %v501_v6 = vsel %vm498_vm1, %v500_v56, %v496_v3  ;;  %v507_v7 = vadd.f32 %v2166_v48, %v506_v62  ;;  %v869_v27 = vadd.f32 %v865_v49, %v711_v22 }
 0x208   :  { %v664_v12 = vmul.f32 %v2702_v14, %v501_v6  ;;  %v668_v15 = vmul.f32 %v590_v2, %v501_v6  ;;  %v692_v14 = vld [vmem:[%s3363_s2 + $0x90] sm:$0xff] }
 0x209   :  { %v511_v18 = vsel %vm510_vm4, %v2166_v48, %v507_v7  ;;  %v636_v32 = vpop.f32.mrf.mxu0 }
 0x20a   :  { %v704_v33 = vadd.f32 %v684_v5, %v664_v12  ;;  %v516_v34 = vsel %vm2739_vm3, %v515_v9, %v511_v18  ;;  %v708_v36 = vadd.f32 %v688_v11, %v668_v15  ;;  %v672_v43 = vmul.f32 %v636_v32, %v501_v6  ;;  %v659_v46 = vpop.f32.mrf.mxu1 }
 0x20b   :  { %v665_v21 = vmul.f32 %v2705_v17, %v516_v34  ;;  %v669_v48 = vmul.f32 %v613_v16, %v516_v34  ;;  %v673_v38 = vmul.f32 %v659_v46, %v516_v34 }
 0x20c   :  { %v866_v39 = vadd.f32 %v708_v36, %v704_v33  ;;  %v712_v42 = vadd.f32 %v692_v14, %v672_v43 }
 0x20d   :  { %v705_v25 = vadd.f32 %v685_v35, %v665_v21  ;;  %v709_v23 = vadd.f32 %v689_v37, %v669_v48  ;;  %v713_v41 = vadd.f32 %v693_v47, %v673_v38 }
 0x20e   :  { %v870_v54 = vadd.f32 %v866_v39, %v712_v42 }
 0x20f   :  { %v867_v55 = vadd.f32 %v709_v23, %v705_v25 }
 0x210   :  { %v872_v56 = vadd.f32 %v870_v54, %v868_v53 }
 0x211   :  { %v871_v40 = vadd.f32 %v867_v55, %v713_v41 }
 0x212   :  { %v873_v57 = vrot.slane %v872_v56, 4 }
 0x213   :  { %v879_v58 = vadd.f32 %v871_v40, %v869_v27  ;;  %v2828_v27 = vpop.permute.xlu2 %995 }
 0x214   :  { %v874_v17 = vadd.f32 %v873_v57, %v872_v56 }
 0x215   :  { %v880_v26 = vrot.slane %v879_v58, 4 }
 0x216   :  { %v875_v59 = vrot.slane %v874_v17, 2 }
 0x217   :  { %v881_v61 = vadd.f32 %v880_v26, %v879_v58 }
 0x218   :  { %v876_v62 = vadd.f32 %v875_v59, %v874_v17 }
 0x219   :  { %v882_v0 = vrot.slane %v881_v61, 2 }
 0x21a   :  { %v877_v1 = vrot.slane %v876_v62, 1 }
 0x21b   :  { %v883_v2 = vadd.f32 %v882_v0, %v881_v61 }
 0x21c   :  { %v878_v3 = vadd.f32 %v877_v1, %v876_v62 }
 0x21d   :  { %v884_v4 = vrot.slane %v883_v2, 1 }
 0x21e   :  { %v886_v6 = vmul.f32 0.020833334, %v878_v3  ;;  %v2832_v3 = vpop.permute.xlu2 %990 }
 0x21f   :  { %v885_v5 = vadd.f32 %v884_v4, %v883_v2 }
 0x220   :  { %v2775_v7 = vsub.f32 %v2720_v60, %v886_v6  ;;  %v2777_v8 = vsub.f32 %v704_v33, %v886_v6  ;;  %v2780_v9 = vsub.f32 %v2727_v63, %v886_v6  ;;  %v2782_v11 = vsub.f32 %v708_v36, %v886_v6 }
 0x221   :  { %v2784_v12 = vsub.f32 %v710_v20, %v886_v6  ;;  %v2786_v15 = vsub.f32 %v712_v42, %v886_v6  ;;  %v887_v16 = vmul.f32 0.020833334, %v885_v5  ;;  %v1046_v6 = vpop.permute.xlu0 %1045 }
 0x222   :  { %v892_v18 = vmul.f32 %v2775_v7, %v2775_v7  ;;  %v894_v19 = vmul.f32 %v2777_v8, %v2777_v8  ;;  %v900_v60 = vmul.f32 %v2780_v9, %v2780_v9  ;;  %v902_v63 = vmul.f32 %v2782_v11, %v2782_v11 }
 0x223   :  { %v912_v28 = vmul.f32 %v2784_v12, %v2784_v12  ;;  %v914_v20 = vmul.f32 %v2786_v15, %v2786_v15  ;;  %v2801_v29 = vsub.f32 %v2746_v10, %v887_v16  ;;  %v2803_v32 = vsub.f32 %v705_v25, %v887_v16  ;;  %v2826_v25 = vpop.permute.xlu1 %981 }
 0x224   :  { %v904_v14 = vadd.f32 %v900_v60, %v892_v18  ;;  %v906_v33 = vadd.f32 %v902_v63, %v894_v19  ;;  %v2806_v34 = vsub.f32 %v2750_v13, %v887_v16  ;;  %v2808_v35 = vsub.f32 %v709_v23, %v887_v16 }
 0x225   :  { %v893_v36 = vmul.f32 %v2801_v29, %v2801_v29  ;;  %v895_v37 = vmul.f32 %v2803_v32, %v2803_v32  ;;  %v2814_v43 = vsub.f32 %v711_v22, %v887_v16  ;;  %v2816_v46 = vsub.f32 %v713_v41, %v887_v16 }
 0x226   :  { %v916_v10 = vadd.f32 %v912_v28, %v904_v14  ;;  %v918_v47 = vadd.f32 %v914_v20, %v906_v33  ;;  %v901_v21 = vmul.f32 %v2806_v34, %v2806_v34  ;;  %v903_v13 = vmul.f32 %v2808_v35, %v2808_v35  ;;  %v2836_v28 = vpop.permute.xlu2 %1059 }
 0x227   :  { %v913_v48 = vmul.f32 %v2814_v43, %v2814_v43  ;;  %v915_v42 = vmul.f32 %v2816_v46, %v2816_v46 }
 0x228   :  { %v920_v38 = vadd.f32 %v918_v47, %v916_v10  ;;  %v905_v49 = vadd.f32 %v901_v21, %v893_v36  ;;  %v907_v39 = vadd.f32 %v903_v13, %v895_v37 }
 0x229   :  { %v1014_v33 = vpop.permute.xlu0 %1013 }
 0x22a   :  { %v921_v22 = vrot.slane %v920_v38, 4  ;;  %v917_v23 = vadd.f32 %v913_v48, %v905_v49  ;;  %v919_v41 = vadd.f32 %v915_v42, %v907_v39 }
 0x22b   :  { %v2830_v26 = vpop.permute.xlu1 %976 }
 0x22c   :  { %v922_v53 = vadd.f32 %v921_v22, %v920_v38  ;;  %v927_v54 = vadd.f32 %v919_v41, %v917_v23 }
 0x22e   :  { %v923_v55 = vrot.slane %v922_v53, 2  ;;  %v928_v56 = vrot.slane %v927_v54, 4  ;;  %v1009_v41 = vpop.permute.xlu2 %1008 }
 0x230   :  { %v924_v40 = vadd.f32 %v923_v55, %v922_v53  ;;  %v929_v57 = vadd.f32 %v928_v56, %v927_v54 }
 0x232   :  { %v925_v58 = vrot.slane %v924_v40, 1  ;;  %v930_v17 = vrot.slane %v929_v57, 2 }
 0x233   :  { %v2834_v16 = vpop.permute.xlu1 %1040 }
 0x234   :  { %v926_v59 = vadd.f32 %v925_v58, %v924_v40  ;;  %v931_v61 = vadd.f32 %v930_v17, %v929_v57 }
 0x236   :  { %v934_v62 = vmul.f32 0.020833334, %v926_v59  ;;  %v932_v0 = vrot.slane %v931_v61, 1 }
 0x238   :  { %v936_v1 = vadd.f32 1e-05, %v934_v62  ;;  %v933_v2 = vadd.f32 %v932_v0, %v931_v61 }
 0x23a   :  { %2167 = vrsqrt.f32 %v936_v1  ;;  %v935_v4 = vmul.f32 0.020833334, %v933_v2  ;;  %vm944_vm6 = vweird.f32 %v936_v1 }
 0x23b   :  { %v2838_v10 = vpop.permute.xlu1 %1054 }
 0x23c   :  { %v937_v5 = vadd.f32 1e-05, %v935_v4 }
 0x23e   :  { %2169 = vrsqrt.f32 %v937_v5  ;;  %vm954_vm11 = vweird.f32 %v937_v5 }
 0x240   :  { %v2168_v18 = vpop.eup %2167 }
 0x241   :  { %v939_v19 = vmul.f32 %v2168_v18, %v936_v1  ;;  %vm945_vm5 = vweird.f32 %v2168_v18 }
 0x242   :  { %vm946_vm7 = vmor %vm944_vm6, %vm945_vm5 }
 0x243   :  { %v940_v60 = vmul.f32 %v2168_v18, %v939_v19  ;;  %v1023_v61 = vpop.permute.xlu1 %1022  ;;  %v1091_v19 = vld [vmem:[%s3367_s12 + $0x8] sm:$0xff] }
 0x244   :  { %v2170_v63 = vpop.eup %2169 }
 0x245   :  { %v941_v20 = vmul.f32 0.5, %v940_v60  ;;  %v949_v14 = vmul.f32 %v2170_v63, %v937_v5  ;;  %vm955_vm9 = vweird.f32 %v2170_v63  ;;  %v822_v60 = vpop.permute.xlu2 %821 }
 0x246   :  { %vm956_vm12 = vmor %vm954_vm11, %vm955_vm9 }
 0x247   :  { %v942_v36 = vsub.f32 1.5, %v941_v20  ;;  %v950_v37 = vmul.f32 %v2170_v63, %v949_v14 }
 0x249   :  { %v943_v47 = vmul.f32 %v2168_v18, %v942_v36  ;;  %v951_v21 = vmul.f32 0.5, %v950_v37 }
 0x24b   :  { %v947_v13 = vsel %vm946_vm7, %v2168_v18, %v943_v47  ;;  %v952_v48 = vsub.f32 1.5, %v951_v21  ;;  %v854_v20 = vpop.permute.xlu1 %853  ;;  %v830_v47 = vmul.f32 %v822_v60, %v2671_v44 }
 0x24c   :  { %v972_v38 = vmul.f32 %v947_v13, %v2777_v8  ;;  %v1004_v49 = vmul.f32 %v947_v13, %v2782_v11  ;;  %v970_v39 = vmul.f32 %v947_v13, %v2775_v7  ;;  %v1036_v42 = vmul.f32 %v947_v13, %v2786_v15  ;;  %v1028_v8 = vpop.permute.xlu0 %1027 }
 0x24d   :  { %v953_v22 = vmul.f32 %v2170_v63, %v952_v48  ;;  %v1002_v23 = vmul.f32 %v947_v13, %v2780_v9  ;;  %v1034_v57 = vmul.f32 %v947_v13, %v2784_v12  ;;  %v1090_v12 = vld [vmem:[%s3367_s12] sm:$0xff] }
 0x24e   :  { %v986_v53 = vmul.f32 %v2826_v25, %v972_v38  ;;  %v1018_v54 = vmul.f32 %v1014_v33, %v1004_v49  ;;  %v984_v55 = vmul.f32 %v2830_v26, %v970_v39  ;;  %v1050_v9 = vmul.f32 %v1046_v6, %v1036_v42 }
 0x24f   :  { %v957_v56 = vsel %vm956_vm12, %v2170_v63, %v953_v22  ;;  %v1016_v40 = vmul.f32 %v1009_v41, %v1002_v23  ;;  %v831_v39 = vmul.f32 %v822_v60, %v2680_v31 }
 0x250   :  { %v1037_v11 = vmul.f32 %v957_v56, %v2816_v46  ;;  %v2849_v7 = vadd.f32 %v2828_v27, %v986_v53  ;;  %v973_v15 = vmul.f32 %v957_v56, %v2803_v32  ;;  %v2853_v58 = vadd.f32 %v1028_v8, %v1018_v54 }
 0x251   :  { %v1005_v17 = vmul.f32 %v957_v56, %v2808_v35  ;;  %v971_v59 = vmul.f32 %v957_v56, %v2801_v29  ;;  %v2860_v46 = vadd.f32 %v2832_v3, %v984_v55  ;;  %v1003_v0 = vmul.f32 %v957_v56, %v2806_v34 }
 0x252   :  { %1112 = vmatpush.msra.mxu2 %v2849_v7  ;;  %v987_v62 = vmul.f32 %v2826_v25, %v973_v15  ;;  %1158 = vmatpush.msrb.mxu0 %v2853_v58  ;;  %v2868_v29 = vadd.f32 %v1023_v61, %v1016_v40  ;;  %v1035_v1 = vmul.f32 %v957_v56, %v2814_v43 }
 0x253   :  { %v1019_v32 = vmul.f32 %v1014_v33, %v1005_v17  ;;  %v985_v35 = vmul.f32 %v2830_v26, %v971_v59  ;;  %v1051_v2 = vmul.f32 %v1046_v6, %v1037_v11  ;;  %v1017_v34 = vmul.f32 %v1009_v41, %v1003_v0  ;;  %v812_v33 = vpop.permute.xlu2 %811  ;;  %v807_v13 = vpop.permute.xlu1 %806 }
 0x254   :  { %v2872_v25 = vadd.f32 %v2828_v27, %v987_v62  ;;  %1113 = vmatpush.msra.mxu2 %v2860_v46  ;;  %v2876_v4 = vadd.f32 %v2836_v28, %v1050_v9  ;;  %1159 = vmatpush.msrb.mxu0 %v2868_v29  ;;  %v1048_v26 = vmul.f32 %v2834_v16, %v1034_v57  ;;  %v817_v63 = vpop.permute.xlu0 %816 }
 0x255   :  { %v2878_v5 = vadd.f32 %v1028_v8, %v1019_v32  ;;  %2066 = vmatmul.msk.f32.vlgmr.msra.gmra.mxu2 %vm95_vm0, %v1090_v12  ;;  %v2885_v43 = vadd.f32 %v2832_v3, %v985_v35  ;;  %2070 = vmatmul.msk.f32.vlgmr.msrb.gmra.mxu0 %vm95_vm0, %v1090_v12  ;;  %v1049_v27 = vmul.f32 %v2834_v16, %v1035_v1 }
 0x256   :  { %1135 = vmatpush.msra.mxu3 %v2872_v25  ;;  %v2890_v6 = vadd.f32 %v1023_v61, %v1017_v34  ;;  %1204 = vmatpush.msrb.mxu2 %v2876_v4  ;;  %v2894_v18 = vadd.f32 %v2836_v28, %v1051_v2  ;;  %v2900_v3 = vadd.f32 %v2838_v10, %v1048_v26 }
 0x257   :  { %1181 = vmatpush.msrb.mxu1 %v2878_v5  ;;  %v2905_v16 = vadd.f32 %v2838_v10, %v1049_v27  ;;  %v828_v21 = vmul.f32 %v817_v63, %v2674_v45  ;;  %v829_v42 = vmul.f32 %v817_v63, %v2683_v50  ;;  %v826_v22 = vmul.f32 %v812_v33, %v2677_v30 }
 0x258   :  { %1136 = vmatpush.msra.mxu3 %v2885_v43  ;;  %1205 = vmatpush.msrb.mxu2 %v2900_v3  ;;  %v827_v44 = vmul.f32 %v812_v33, %v2686_v51  ;;  %v824_v45 = vmul.f32 %v807_v13, %v2689_v52  ;;  %v2943_v53 = vadd.f32 %v854_v20, %v830_v47 }
 0x259   :  { %1182 = vmatpush.msrb.mxu1 %v2890_v6  ;;  %2068 = vmatmul.msk.f32.vlgmr.msra.gmra.mxu3 %vm95_vm0, %v1090_v12  ;;  %v2948_v55 = vmul.f32 %v807_v13, %v2692_v24  ;;  %v2960_v40 = vadd.f32 %v854_v20, %v831_v39 }
 0x25a   :  { %2072 = vmatmul.msk.f32.vlgmr.msrb.gmra.mxu1 %vm95_vm0, %v1090_v12  ;;  %1227 = vmatpush.msrb.mxu3 %v2894_v18  ;;  %v2988_v35 = vmul.f32 0.01, %v2943_v53  ;;  %vm1072_vm2 = vcmp.ge.f32.partialorder %v2943_v53, 0.0 }
 0x25b   :  { %v844_v41 = vpop.permute.xlu2 %843  ;;  %v2999_v63 = vmul.f32 0.01, %v2960_v40  ;;  %vm1073_vm4 = vcmp.ge.f32.partialorder %v2960_v40, 0.0 }
 0x25c   :  { %1228 = vmatpush.msrb.mxu3 %v2905_v16  ;;  %v849_v36 = vpop.permute.xlu0 %848  ;;  %v2964_v24 = vadd.f32 %v844_v41, %v826_v22  ;;  %v2968_v15 = vadd.f32 %v844_v41, %v827_v44 }
 0x25d   :  { %2067 = vmatmul.msk.f32.gmra.mxu2 %vm95_vm0, %v1091_v19  ;;  %2071 = vmatmul.msk.f32.gmra.mxu0 %vm95_vm0, %v1091_v19  ;;  %v2945_v54 = vadd.f32 %v849_v36, %v828_v21  ;;  %v2962_v8 = vadd.f32 %v849_v36, %v829_v42  ;;  %3396 = vst [vmem:[#allocation6_spill] sm:$0xff] %v2999_v63 }
 0x25e   :  { %3394 = vst [vmem:[#allocation4_spill] sm:$0xff] %v2968_v15  ;;  %vm1068_vm5 = vcmp.ge.f32.partialorder %v2964_v24, 0.0 }
 0x25f   :  { %3393 = vst [vmem:[#allocation3_spill] sm:$0xff] %v2962_v8  ;;  %v3002_v33 = vmul.f32 0.01, %v2945_v54  ;;  %vm1070_vm3 = vcmp.ge.f32.partialorder %v2945_v54, 0.0 }
 0x261   :  { %2069 = vmatmul.msk.f32.gmra.mxu3 %vm95_vm0, %v1091_v19 }
 0x262   :  { %2073 = vmatmul.msk.f32.gmra.mxu1 %vm95_vm0, %v1091_v19 }
 0x264   :  { %v2950_v56 = vpop.permute.xlu0 %838 }
 0x265   :  { %2074 = vmatmul.msk.f32.vlgmr.msrb.gmra.mxu2 %vm95_vm0, %v1090_v12  ;;  %3392 = vst [vmem:[#allocation2_spill] sm:$0xff] %v2950_v56  ;;  %v2971_v57 = vadd.f32 %v2950_v56, %v824_v45 }
 0x267   :  { %3395 = vst [vmem:[#allocation5_spill] sm:$0xff] %v2971_v57 }
 0x269   :  { %2076 = vmatmul.msk.f32.vlgmr.msrb.gmra.mxu3 %vm95_vm0, %v1090_v12 }
 0x26d   :  { %2075 = vmatmul.msk.f32.gmra.mxu2 %vm95_vm0, %v1091_v19 }
 0x271   :  { %2077 = vmatmul.msk.f32.gmra.mxu3 %vm95_vm0, %v1091_v19 }
 0x2d2   :  { %v2926_v10 = vpop.f32.mrf.mxu0 }
 0x2d3   :  { %v1260_v38 = vmul.f32 %v2926_v10, %v2926_v10  ;;  %v1240_v9 = vmul.f32 %v2926_v10, %v2868_v29 }
 0x2d7   :  { %v2939_v23 = vpop.f32.mrf.mxu1 }
 0x2d8   :  { %v2920_v28 = vpop.f32.mrf.mxu2  ;;  %v1261_v30 = vmul.f32 %v2939_v23, %v2939_v23  ;;  %v1241_v26 = vmul.f32 %v2939_v23, %v2890_v6 }
 0x2d9   :  { %v1256_v49 = vmul.f32 %v2920_v28, %v2920_v28  ;;  %v1236_v11 = vmul.f32 %v2920_v28, %v2860_v46 }
 0x2da   :  { %v2975_v17 = vpop.f32.mrf.mxu0 }
 0x2db   :  { %v1264_v50 = vadd.f32 %v1260_v38, %v1256_v49  ;;  %v1262_v62 = vmul.f32 %v2975_v17, %v2975_v17  ;;  %v1244_v27 = vadd.f32 %v1240_v9, %v1236_v11  ;;  %v1242_v47 = vmul.f32 %v2975_v17, %v2853_v58 }
 0x2dc   :  { %v2922_v14 = vpop.f32.mrf.mxu3  ;;  %v3023_v11 = vmul.f32 0.2, %v2849_v7 }
 0x2dd   :  { %v1257_v51 = vmul.f32 %v2922_v14, %v2922_v14  ;;  %v1237_v61 = vmul.f32 %v2922_v14, %v2885_v43 }
 0x2df   :  { %v1265_v1 = vadd.f32 %v1261_v30, %v1257_v51  ;;  %v1245_v36 = vadd.f32 %v1241_v26, %v1237_v61  ;;  %v3006_v21 = vpop.f32.mrf.mxu1  ;;  %v3028_v61 = vmul.f32 0.2, %v2853_v58 }
 0x2e0   :  { %v2924_v37 = vpop.f32.mrf.mxu2  ;;  %v1263_v45 = vmul.f32 %v3006_v21, %v3006_v21  ;;  %v1243_v51 = vmul.f32 %v3006_v21, %v2878_v5 }
 0x2e1   :  { %v1258_v0 = vmul.f32 %v2924_v37, %v2924_v37  ;;  %v1238_v19 = vmul.f32 %v2924_v37, %v2849_v7 }
 0x2e3   :  { %v1266_v13 = vadd.f32 %v1262_v62, %v1258_v0  ;;  %v1246_v41 = vadd.f32 %v1242_v47, %v1238_v19  ;;  %v2204_v19 = vmov 0.0  }
 0x2e4   :  { %v2930_v48 = vpop.f32.mrf.mxu3 }
 0x2e5   :  { %v1239_v39 = vmul.f32 %v2930_v48, %v2872_v25  ;;  %v1259_v30 = vmul.f32 %v2930_v48, %v2930_v48 }
 0x2e7   :  { %v1247_v0 = vadd.f32 %v1243_v51, %v1239_v39  ;;  %v3042_v39 = vmul.f32 0.2, %v2868_v29 }
 0x2e8   :  { %v2952_v31 = vpop.f32.mrf.mxu2 }
 0x2e9   :  { %v1268_v52 = vmul.f32 %v2952_v31, %v2952_v31  ;;  %v1248_v12 = vmul.f32 %v2952_v31, %v2900_v3 }
 0x2eb   :  { %v1272_v59 = vadd.f32 %v1268_v52, %v1264_v50  ;;  %v1252_v38 = vadd.f32 %v1248_v12, %v1244_v27  ;;  %v3035_v27 = vmul.f32 0.2, %v2872_v25 }
 0x2ec   :  { %v2985_v32 = vpop.f32.mrf.mxu3 }
 0x2ed   :  { %v1288_v2 = vadd.f32 1e-06, %v1272_v59  ;;  %v1269_v34 = vmul.f32 %v2985_v32, %v2985_v32  ;;  %v1249_v60 = vmul.f32 %v2985_v32, %v2905_v16  ;;  %vm1276_vm13 = vcmp.ge.f32.partialorder %v1252_v38, 0.0 }
 0x2ef   :  { %2171 = vrcp.f32 %v1288_v2  ;;  %v1273_v20 = vadd.f32 %v1269_v34, %v1265_v1  ;;  %v1253_v50 = vadd.f32 %v1249_v60, %v1245_v36  ;;  %v1267_v34 = vadd.f32 %v1263_v45, %v1259_v30 }
 0x2f0   :  { %v3008_v49 = vpop.f32.mrf.mxu2  ;;  %v2078_v60 = vsel %vm1276_vm13, 1.0, %v2204_v19  ;;  %v3038_v36 = vmul.f32 0.2, %v2860_v46  ;;  %v3049_v45 = vmul.f32 0.2, %v2878_v5 }
 0x2f1   :  { %v1289_v42 = vadd.f32 1e-06, %v1273_v20  ;;  %v1250_v22 = vmul.f32 %v3008_v49, %v2876_v4  ;;  %v1270_v44 = vmul.f32 %v3008_v49, %v3008_v49  ;;  %vm1277_vm14 = vcmp.ge.f32.partialorder %v1253_v50, 0.0 }
 0x2f3   :  { %2173 = vrcp.f32 %v1289_v42  ;;  %v1274_v52 = vadd.f32 %v1270_v44, %v1266_v13  ;;  %v1254_v9 = vadd.f32 %v1250_v22, %v1246_v41  ;;  %v3046_v44 = vsel %vm1277_vm14, 1.0, %v2204_v19 }
 0x2f4   :  { %v3025_v59 = vpop.f32.mrf.mxu3  ;;  %v1308_v41 = vsub.f32 1.0, %v2078_v60 }
 0x2f5   :  { %v2172_v62 = vpop.eup %2171  ;;  %v1290_v12 = vadd.f32 1e-06, %v1274_v52  ;;  %v1251_v1 = vmul.f32 %v3025_v59, %v2894_v18  ;;  %v1271_v2 = vmul.f32 %v3025_v59, %v3025_v59  ;;  %vm1278_vm15 = vcmp.ge.f32.partialorder %v1254_v9, 0.0 }
 0x2f6   :  { %v1296_v26 = vmul.f32 %v2172_v62, %v1252_v38  ;;  %v2080_v52 = vsel %vm1278_vm15, 1.0, %v2204_v19  ;;  %v1340_v62 = vmul.f32 %v2078_v60, %v2868_v29 }
 0x2f7   :  { %2175 = vrcp.f32 %v1290_v12  ;;  %v1255_v20 = vadd.f32 %v1251_v1, %v1247_v0  ;;  %v1275_v13 = vadd.f32 %v1271_v2, %v1267_v34  ;;  %v1372_v0 = vmul.f32 %v2078_v60, %v2900_v3 }
 0x2f8   :  { %v1376_v47 = vmul.f32 %v1296_v26, %v2952_v31  ;;  %v1312_v38 = vmul.f32 %v1296_v26, %v2920_v28  ;;  %v1344_v22 = vmul.f32 %v1296_v26, %v2926_v10  ;;  %v1304_v31 = vmul.f32 %v2078_v60, %v2860_v46 }
 0x2f9   :  { %v2174_v42 = vpop.eup %2173  ;;  %v1291_v51 = vadd.f32 1e-06, %v1275_v13  ;;  %vm1279_vm1 = vcmp.ge.f32.partialorder %v1255_v20, 0.0  ;;  %v1309_v10 = vsub.f32 1.0, %v3046_v44  ;;  %v1305_v12 = vmul.f32 %v3046_v44, %v2885_v43 }
 0x2fa   :  { %v1297_v30 = vmul.f32 %v2174_v42, %v1253_v50  ;;  %v1380_v28 = vsub.f32 %v2900_v3, %v1376_v47  ;;  %v1341_v1 = vmul.f32 %v3046_v44, %v2890_v6  ;;  %v1316_v34 = vsub.f32 %v2860_v46, %v1312_v38 }
 0x2fb   :  { %2177 = vrcp.f32 %v1291_v51  ;;  %v1348_v26 = vsub.f32 %v2868_v29, %v1344_v22  ;;  %v1310_v47 = vsub.f32 1.0, %v2080_v52  ;;  %v2081_v42 = vsel %vm1279_vm1, 1.0, %v2204_v19 }
 0x2fc   :  { %v1313_v2 = vmul.f32 %v1297_v30, %v2922_v14  ;;  %v1345_v60 = vmul.f32 %v1297_v30, %v2939_v23  ;;  %v1377_v15 = vmul.f32 %v1297_v30, %v2985_v32  ;;  %v1374_v63 = vmul.f32 %v2080_v52, %v2876_v4 }
 0x2fd   :  { %v2176_v50 = vpop.eup %2175  ;;  %v1306_v57 = vmul.f32 %v2080_v52, %v2849_v7  ;;  %v1320_v8 = vmul.f32 %v1316_v34, %v1308_v41  ;;  %v1342_v29 = vmul.f32 %v2080_v52, %v2853_v58  ;;  %v1384_v38 = vmul.f32 %v1380_v28, %v1308_v41 }
 0x2fe   :  { %v1298_v13 = vmul.f32 %v2176_v50, %v1254_v9  ;;  %v1311_v23 = vsub.f32 1.0, %v2081_v42  ;;  %v1317_v9 = vsub.f32 %v2885_v43, %v1313_v2  ;;  %v1352_v19 = vmul.f32 %v1348_v26, %v1308_v41 }
 0x2ff   :  { %v1349_v51 = vsub.f32 %v2890_v6, %v1345_v60  ;;  %v1307_v52 = vmul.f32 %v2081_v42, %v2872_v25  ;;  %v1324_v28 = vadd.f32 %v1320_v8, %v1304_v31  ;;  %v1388_v26 = vadd.f32 %v1384_v38, %v1372_v0 }
 0x300   :  { %v1314_v56 = vmul.f32 %v1298_v13, %v2924_v37  ;;  %v1346_v14 = vmul.f32 %v1298_v13, %v2975_v17  ;;  %v1378_v46 = vmul.f32 %v1298_v13, %v3008_v49  ;;  %v1381_v17 = vsub.f32 %v2905_v16, %v1377_v15 }
 0x301   :  { %v2178_v37 = vpop.eup %2177  ;;  %v1375_v49 = vmul.f32 %v2081_v42, %v2894_v18  ;;  %v1328_v0 = vmul.f32 0.8, %v1324_v28 }
 0x302   :  { %v1382_v32 = vsub.f32 %v2876_v4, %v1378_v46  ;;  %v1318_v22 = vsub.f32 %v2849_v7, %v1314_v56  ;;  %v1350_v30 = vsub.f32 %v2853_v58, %v1346_v14  ;;  %v1299_v34 = vmul.f32 %v2178_v37, %v1255_v20 }
 0x303   :  { %v1343_v7 = vmul.f32 %v2081_v42, %v2878_v5  ;;  %v1321_v56 = vmul.f32 %v1317_v9, %v1309_v10  ;;  %v1356_v58 = vadd.f32 %v1352_v19, %v1340_v62  ;;  %v1353_v14 = vmul.f32 %v1349_v51, %v1309_v10 }
 0x304   :  { %v1386_v50 = vmul.f32 %v1382_v32, %v1310_v47  ;;  %v1322_v2 = vmul.f32 %v1318_v22, %v1310_v47  ;;  %v1354_v41 = vmul.f32 %v1350_v30, %v1310_v47  ;;  %v1315_v60 = vmul.f32 %v1299_v34, %v2930_v48 }
 0x305   :  { %v1347_v15 = vmul.f32 %v1299_v34, %v3006_v21  ;;  %v1379_v13 = vmul.f32 %v1299_v34, %v3025_v59  ;;  %v1385_v8 = vmul.f32 %v1381_v17, %v1309_v10  ;;  %v1325_v9 = vadd.f32 %v1321_v56, %v1305_v12  ;;  %v3398_v56 = vld [vmem:[#allocation3_spill] sm:$0xff] }
 0x306   :  { %v1390_v20 = vadd.f32 %v1386_v50, %v1374_v63  ;;  %v1326_v31 = vadd.f32 %v1322_v2, %v1306_v57  ;;  %v1358_v47 = vadd.f32 %v1354_v41, %v1342_v29  ;;  %v1319_v42 = vsub.f32 %v2872_v25, %v1315_v60  ;;  %v3397_v41 = vld [vmem:[#allocation2_spill] sm:$0xff] }
 0x307   :  { %v1383_v46 = vsub.f32 %v2894_v18, %v1379_v13  ;;  %v1351_v62 = vsub.f32 %v2878_v5, %v1347_v15  ;;  %v1360_v21 = vmul.f32 0.8, %v1356_v58  ;;  %v1357_v22 = vadd.f32 %v1353_v14, %v1341_v1  ;;  %v3401_v15 = vld [vmem:[#allocation4_spill] sm:$0xff] }
 0x308   :  { %v1330_v38 = vmul.f32 0.8, %v1326_v31  ;;  %v1362_v48 = vmul.f32 0.8, %v1358_v47  ;;  %v1323_v59 = vmul.f32 %v1319_v42, %v1311_v23  ;;  %v1370_v63 = vmul.f32 0.2, %v2876_v4 }
 0x309   :  { %v1387_v19 = vmul.f32 %v1383_v46, %v1311_v23  ;;  %v1355_v32 = vmul.f32 %v1351_v62, %v1311_v23  ;;  %v1394_v29 = vmul.f32 0.8, %v1390_v20  ;;  %v1373_v5 = vmul.f32 %v3046_v44, %v2905_v16 }
 0x30a   :  { %v1334_v10 = vadd.f32 %v1330_v38, %v3023_v11  ;;  %v1366_v57 = vadd.f32 %v1362_v48, %v3028_v61  ;;  %v1327_v25 = vadd.f32 %v1323_v59, %v1307_v52  ;;  %v1332_v12 = vadd.f32 %v1328_v0, %v3038_v36  ;;  %v3098_v11 = vld [vmem:[%s3368_s13] sm:$0xff] }
 0x30b   :  { %v1391_v30 = vadd.f32 %v1387_v19, %v1375_v49  ;;  %v1359_v51 = vadd.f32 %v1355_v32, %v1343_v7  ;;  %v1329_v37 = vmul.f32 0.8, %v1325_v9  ;;  %v1364_v1 = vadd.f32 %v1360_v21, %v3042_v39 }
 0x30c   :  { %1432 = vmatpush.msra.mxu0 %v1334_v10  ;;  %1478 = vmatpush.msra.mxu2 %v1366_v57  ;;  %v1392_v4 = vmul.f32 0.8, %v1388_v26  ;;  %v1331_v61 = vmul.f32 0.8, %v1327_v25  ;;  %v1361_v17 = vmul.f32 0.8, %v1357_v22  ;;  %v1389_v49 = vadd.f32 %v1385_v8, %v1373_v5 }
 0x30d   :  { %v1363_v23 = vmul.f32 0.8, %v1359_v51  ;;  %v1301_v44 = vmul.f32 0.2, %v2885_v43  ;;  %v1398_v52 = vadd.f32 %v1394_v29, %v1370_v63  ;;  %v1088_v36 = vsel %vm1072_vm2, %v2943_v53, %v2988_v35  ;;  %v3399_v26 = vld [vmem:[#allocation5_spill] sm:$0xff]  ;;  %v1401_v8 = vld [vmem:[%s3368_s13 + $0x8] sm:$0xff] }
 0x30e   :  { %1433 = vmatpush.msra.mxu0 %v1332_v12  ;;  %1479 = vmatpush.msra.mxu2 %v1364_v1  ;;  %v1368_v39 = vmul.f32 0.2, %v2900_v3  ;;  %v1335_v28 = vadd.f32 %v1331_v61, %v3035_v27  ;;  %v1337_v34 = vmul.f32 0.2, %v2890_v6  ;;  %v1395_v43 = vmul.f32 0.8, %v1391_v30 }
 0x30f   :  { %v1367_v50 = vadd.f32 %v1363_v23, %v3049_v45  ;;  %2082 = vmatmul.msk.f32.vlgmr.msra.gmra.mxu0 %vm95_vm0, %v3098_v11  ;;  %2086 = vmatmul.msk.f32.vlgmr.msra.gmra.mxu2 %vm95_vm0, %v3098_v11  ;;  %v1086_v3 = vsel %vm1070_vm3, %v2945_v54, %v3002_v33  ;;  %v1076_v35 = vmul.f32 0.01, %v2964_v24  ;;  %v1333_v6 = vadd.f32 %v1329_v37, %v1301_v44 }
 0x310   :  { %1524 = vmatpush.msrb.mxu0 %v1398_v52  ;;  %1646 = vmatpush.msrb.mxu2 %v1088_v36  ;;  %v1396_v53 = vadd.f32 %v1392_v4, %v1368_v39  ;;  %v1365_v27 = vadd.f32 %v1361_v17, %v1337_v34  ;;  %v1371_v45 = vmul.f32 0.2, %v2894_v18  ;;  %v1393_v2 = vmul.f32 0.8, %v1389_v49  ;;  %v3400_v18 = vld [vmem:[#allocation6_spill] sm:$0xff] }
 0x311   :  { %1455 = vmatpush.msra.mxu1 %v1335_v28  ;;  %1501 = vmatpush.msra.mxu3 %v1367_v50  ;;  %v857_v7 = vadd.f32 %v3397_v41, %v2948_v55  ;;  %v1079_v58 = vmul.f32 0.01, %v3398_v56  ;;  %v1074_v54 = vmul.f32 0.01, %v3399_v26  ;;  %v1369_v60 = vmul.f32 0.2, %v2905_v16 }
 0x312   :  { %1525 = vmatpush.msrb.mxu0 %v1396_v53  ;;  %1647 = vmatpush.msrb.mxu2 %v1086_v3  ;;  %v1399_v33 = vadd.f32 %v1395_v43, %v1371_v45  ;;  %vm1071_vm6 = vcmp.ge.f32.partialorder %v3398_v56, 0.0  ;;  %v1089_v55 = vsel %vm1073_vm4, %v2960_v40, %v3400_v18  ;;  %v1077_v13 = vmul.f32 0.01, %v3401_v15 }
 0x313   :  { %1456 = vmatpush.msra.mxu1 %v1333_v6  ;;  %1502 = vmatpush.msra.mxu3 %v1365_v27  ;;  %vm1066_vm7 = vcmp.ge.f32.partialorder %v3399_v26, 0.0  ;;  %v1397_v16 = vadd.f32 %v1393_v2, %v1369_v60  ;;  %v1084_v14 = vsel %vm1068_vm5, %v2964_v24, %v1076_v35  ;;  %vm1069_vm9 = vcmp.ge.f32.partialorder %v3401_v15, 0.0 }
 0x314   :  { %2084 = vmatmul.msk.f32.vlgmr.msra.gmra.mxu1 %vm95_vm0, %v3098_v11  ;;  %2088 = vmatmul.msk.f32.vlgmr.msra.gmra.mxu3 %vm95_vm0, %v3098_v11  ;;  %v1075_v20 = vmul.f32 0.01, %v857_v7  ;;  %v1087_v31 = vsel %vm1071_vm6, %v3398_v56, %v1079_v58  ;;  %v1082_v40 = vsel %vm1066_vm7, %v3399_v26, %v1074_v54  ;;  %vm1067_vm11 = vcmp.ge.f32.partialorder %v857_v7, 0.0 }
 0x315   :  { %1547 = vmatpush.msrb.mxu1 %v1399_v33  ;;  %1675 = vmatpush.msrb.mxu3 %v1089_v55  ;;  %v1085_v47 = vsel %vm1069_vm9, %v3401_v15, %v1077_v13 }
 0x316   :  { %1648 = vmatpush.msrb.mxu2 %v1084_v14  ;;  %v1083_v24 = vsel %vm1067_vm11, %v857_v7, %v1075_v20 }
 0x317   :  { %1548 = vmatpush.msrb.mxu1 %v1397_v16  ;;  %1676 = vmatpush.msrb.mxu3 %v1087_v31 }
 0x318   :  { %1649 = vmatpush.msrb.mxu2 %v1082_v40  ;;  %2083 = vmatmul.msk.f32.gmra.mxu0 %vm95_vm0, %v1401_v8 }
 0x319   :  { %1677 = vmatpush.msrb.mxu3 %v1085_v47  ;;  %2087 = vmatmul.msk.f32.gmra.mxu2 %vm95_vm0, %v1401_v8 }
 0x31b   :  { %1678 = vmatpush.msrb.mxu3 %v1083_v24 }
 0x31c   :  { %2085 = vmatmul.msk.f32.gmra.mxu1 %vm95_vm0, %v1401_v8  ;;  %2089 = vmatmul.msk.f32.gmra.mxu3 %vm95_vm0, %v1401_v8 }
 0x320   :  { %2090 = vmatmul.msk.f32.vlgmr.msrb.gmra.mxu0 %vm95_vm0, %v3098_v11 }
 0x324   :  { %2092 = vmatmul.msk.f32.vlgmr.msrb.gmra.mxu1 %vm95_vm0, %v3098_v11 }
 0x328   :  { %2091 = vmatmul.msk.f32.gmra.mxu0 %vm95_vm0, %v1401_v8 }
 0x32c   :  { %2093 = vmatmul.msk.f32.gmra.mxu1 %vm95_vm0, %v1401_v8 }
 0x38c   :  { %v3155_v46 = vpop.f32.mrf.mxu0 }
 0x38d   :  { %v1556_v21 = vmul.f32 %v3155_v46, %v3155_v46 }
 0x391   :  { %v3157_v42 = vpop.f32.mrf.mxu1 }
 0x392   :  { %v3159_v62 = vpop.f32.mrf.mxu2  ;;  %v1557_v57 = vmul.f32 %v3157_v42, %v3157_v42 }
 0x393   :  { %v1560_v9 = vmul.f32 %v3159_v62, %v3159_v62 }
 0x395   :  { %v3161_v0 = vpop.f32.mrf.mxu0  ;;  %v1564_v59 = vadd.f32 %v1560_v9, %v1556_v21  ;;  %v1404_v21 = vld [vmem:[%s3369_s15] sm:$0xff] }
 0x396   :  { %v1558_v12 = vmul.f32 %v3161_v0, %v3161_v0 }
 0x397   :  { %v3163_v38 = vpop.f32.mrf.mxu3 }
 0x398   :  { %v1561_v32 = vmul.f32 %v3163_v38, %v3163_v38 }
 0x399   :  { %v3165_v48 = vpop.f32.mrf.mxu1 }
 0x39a   :  { %v1565_v30 = vadd.f32 %v1561_v32, %v1557_v57  ;;  %v1559_v17 = vmul.f32 %v3165_v48, %v3165_v48 }
 0x39c   :  { %v3177_v10 = vpop.f32.mrf.mxu2 }
 0x39d   :  { %v3171_v19 = vpop.f32.mrf.mxu0  ;;  %v1562_v25 = vmul.f32 %v3177_v10, %v3177_v10 }
 0x39e   :  { %v1568_v22 = vmul.f32 %v3171_v19, %v3171_v19 }
 0x39f   :  { %v3190_v5 = vpop.f32.mrf.mxu3  ;;  %v1566_v11 = vadd.f32 %v1562_v25, %v1558_v12 }
 0x3a0   :  { %v3181_v63 = vadd.f32 %v1568_v22, %v1564_v59  ;;  %v1563_v4 = vmul.f32 %v3190_v5, %v3190_v5 }
 0x3a1   :  { %v3183_v29 = vpop.f32.mrf.mxu1 }
 0x3a2   :  { %v1569_v51 = vmul.f32 %v3183_v29, %v3183_v29  ;;  %2179 = vrsqrt.f32 %v3181_v63  ;;  %v1567_v36 = vadd.f32 %v1563_v4, %v1559_v17  ;;  %vm1583_vm14 = vcmp.eq.f32.partialorder %v3181_v63, inf }
 0x3a3   :  { %v1586_v24 = vand.u32 2147483648, %v3181_v63  ;;  %vm1585_vm15 = vcmp.eq.f32.partialorder %v3181_v63, 0.0 }
 0x3a4   :  { %v3194_v37 = vadd.f32 %v1569_v51, %v1565_v30  ;;  %v1405_v51 = vld [vmem:[%s3369_s15 + $0x8] sm:$0xff] }
 0x3a5   :  { %v3196_v1 = vpop.f32.mrf.mxu0 }
 0x3a6   :  { %v1570_v61 = vmul.f32 %v3196_v1, %v3196_v1  ;;  %2181 = vrsqrt.f32 %v3194_v37  ;;  %vm1595_vm2 = vcmp.eq.f32.partialorder %v3194_v37, inf  ;;  %v1598_v25 = vand.u32 2147483648, %v3194_v37 }
 0x3a7   :  { %vm1597_vm4 = vcmp.eq.f32.partialorder %v3194_v37, 0.0 }
 0x3a8   :  { %v2180_v23 = vpop.eup %2179  ;;  %v1574_v49 = vadd.f32 %v1570_v61, %v1566_v11  ;;  %v1402_v11 = vld [vmem:[%s3371_s14] sm:$0xff] }
 0x3a9   :  { %v3205_v44 = vpop.f32.mrf.mxu1  ;;  %v1577_v52 = vmul.f32 %v2180_v23, %v3181_v63 }
 0x3aa   :  { %v1571_v39 = vmul.f32 %v3205_v44, %v3205_v44  ;;  %2183 = vrsqrt.f32 %v1574_v49  ;;  %vm1607_vm12 = vcmp.eq.f32.partialorder %v1574_v49, inf  ;;  %vm1609_vm13 = vcmp.eq.f32.partialorder %v1574_v49, 0.0 }
 0x3ab   :  { %v1578_v28 = vmul.f32 %v2180_v23, %v1577_v52  ;;  %v1610_v14 = vand.u32 2147483648, %v1574_v49  ;;  %v1408_v52 = vld [vmem:[%s3372_s16] sm:$0xff] }
 0x3ac   :  { %v2182_v50 = vpop.eup %2181  ;;  %v1575_v34 = vadd.f32 %v1571_v39, %v1567_v36  ;;  %v1409_v36 = vld [vmem:[%s3372_s16 + $0x8] sm:$0xff] }
 0x3ad   :  { %v1579_v43 = vmul.f32 0.5, %v1578_v28  ;;  %v1589_v53 = vmul.f32 %v2182_v50, %v3194_v37 }
 0x3ae   :  { %2185 = vrsqrt.f32 %v1575_v34  ;;  %vm1619_vm1 = vcmp.eq.f32.partialorder %v1575_v34, inf  ;;  %v1622_v59 = vand.u32 2147483648, %v1575_v34  ;;  %vm1621_vm3 = vcmp.eq.f32.partialorder %v1575_v34, 0.0 }
 0x3af   :  { %v1590_v3 = vmul.f32 %v2182_v50, %v1589_v53  ;;  %v1580_v27 = vsub.f32 1.5, %v1579_v43 }
 0x3b0   :  { %v2184_v35 = vpop.eup %2183 }
 0x3b1   :  { %v1601_v6 = vmul.f32 %v2184_v35, %v1574_v49  ;;  %v1591_v45 = vmul.f32 0.5, %v1590_v3  ;;  %v1581_v58 = vmul.f32 %v2180_v23, %v1580_v27  ;;  %v1403_v23 = vld [vmem:[%s3371_s14 + $0x8] sm:$0xff] }
 0x3b3   :  { %v1602_v2 = vmul.f32 %v2184_v35, %v1601_v6  ;;  %v1592_v26 = vsub.f32 1.5, %v1591_v45  ;;  %v1582_v55 = vmul.f32 %v1581_v58, %v3181_v63 }
 0x3b4   :  { %v2186_v41 = vpop.eup %2185 }
 0x3b5   :  { %v1603_v7 = vmul.f32 0.5, %v1602_v2  ;;  %v1613_v56 = vmul.f32 %v2186_v41, %v1575_v34  ;;  %v1593_v15 = vmul.f32 %v2182_v50, %v1592_v26  ;;  %v1584_v31 = vsel %vm1583_vm14, %v3181_v63, %v1582_v55 }
 0x3b6   :  { %v1587_v32 = vsel %vm1585_vm15, %v1586_v24, %v1584_v31 }
 0x3b7   :  { %v1604_v54 = vsub.f32 1.5, %v1603_v7  ;;  %v1614_v33 = vmul.f32 %v2186_v41, %v1613_v56  ;;  %v1594_v40 = vmul.f32 %v1593_v15, %v3194_v37 }
 0x3b9   :  { %v1605_v60 = vmul.f32 %v2184_v35, %v1604_v54  ;;  %v1615_v18 = vmul.f32 0.5, %v1614_v33  ;;  %v1596_v57 = vsel %vm1595_vm2, %v3194_v37, %v1594_v40 }
 0x3ba   :  { %v1599_v63 = vsel %vm1597_vm4, %v1598_v25, %v1596_v57 }
 0x3bb   :  { %v1606_v13 = vmul.f32 %v1605_v60, %v1574_v49  ;;  %v1616_v16 = vsub.f32 1.5, %v1615_v18 }
 0x3bd   :  { %v1608_v8 = vsel %vm1607_vm12, %v1574_v49, %v1606_v13  ;;  %v1617_v20 = vmul.f32 %v2186_v41, %v1616_v16 }
 0x3be   :  { %v1611_v47 = vsel %vm1609_vm13, %v1610_v14, %v1608_v8 }
 0x3bf   :  { %1650 = vmatpush.msrb.mxu2 %v1611_v47  ;;  %v1618_v9 = vmul.f32 %v1617_v20, %v1575_v34 }
 0x3c1   :  { %v1620_v22 = vsel %vm1619_vm1, %v1575_v34, %v1618_v9  ;;  %1651 = vmatpush.msrb.mxu2 %v1587_v32 }
 0x3c2   :  { %v1623_v30 = vsel %vm1621_vm3, %v1622_v59, %v1620_v22  ;;  %2094 = vmatmul.msk.f32.vlgmr.msrb.gmra.mxu2 %vm308_vm8, %v1404_v21 }
 0x3c3   :  { %1679 = vmatpush.msrb.mxu3 %v1623_v30  ;;  %1898 = vmatpush.msra.mxu2 %v3177_v10  ;;  %v1406_v10 = vld [vmem:[%s3369_s15 + $0x10] sm:$0xff] }
 0x3c5   :  { %1680 = vmatpush.msrb.mxu3 %v1599_v63  ;;  %1899 = vmatpush.msra.mxu2 %v3159_v62  ;;  %v1407_v62 = vld [vmem:[%s3369_s15 + $0x18] sm:$0xff] }
 0x3c6   :  { %2098 = vmatmul.msk.f32.vlgmr.msrb.gmra.mxu3 %vm308_vm8, %v1404_v21 }
 0x3c7   :  { %1921 = vmatpush.msra.mxu3 %v3190_v5 }
 0x3c9   :  { %1922 = vmatpush.msra.mxu3 %v3163_v38 }
 0x3ca   :  { %2095 = vmatmul.msk.f32.gmra.mxu2 %vm308_vm8, %v1405_v51 }
 0x3ce   :  { %2099 = vmatmul.msk.f32.gmra.mxu3 %vm308_vm8, %v1405_v51 }
 0x3d2   :  { %2096 = vmatmul.msk.f32.gmra.mxu2 %vm308_vm8, %v1406_v10 }
 0x3d6   :  { %2100 = vmatmul.msk.f32.gmra.mxu3 %vm308_vm8, %v1406_v10 }
 0x3da   :  { %2097 = vmatmul.msk.f32.gmra.mxu2 %vm308_vm8, %v1407_v62 }
 0x3de   :  { %2101 = vmatmul.msk.f32.gmra.mxu3 %vm308_vm8, %v1407_v62 }
 0x3e2   :  { %2114 = vmatmul.msk.f32.vlgmr.msra.gmra.mxu2 %vm95_vm0, %v1402_v11 }
 0x3e6   :  { %2116 = vmatmul.msk.f32.vlgmr.msra.gmra.mxu3 %vm95_vm0, %v1402_v11 }
 0x3ea   :  { %2115 = vmatmul.msk.f32.gmra.mxu2 %vm95_vm0, %v1403_v23 }
 0x3ee   :  { %2117 = vmatmul.msk.f32.gmra.mxu3 %vm95_vm0, %v1403_v23 }
 0x445   :  { %v1653_v38 = vpop.f32.mrf.mxu2 }
 0x446   :  { %1988 = vst [vmem:[%s3370_s18] sm:$0xff] %v1653_v38 }
 0x449   :  { %v1682_v5 = vpop.f32.mrf.mxu3 }
 0x44a   :  { %1989 = vst [vmem:[%s3370_s18 + $0x8] sm:$0xff] %v1682_v5 }
 0x44d   :  { %v1656_v12 = vpop.f32.mrf.mxu2 }
 0x44e   :  { %1990 = vst [vmem:[%s3370_s18 + $0x10] sm:$0xff] %v1656_v12 }
 0x451   :  { %v1685_v37 = vpop.f32.mrf.mxu3 }
 0x452   :  { %1991 = vst [vmem:[%s3370_s18 + $0x18] sm:$0xff] %v1685_v37 }
 0x455   :  { %v1659_v4 = vpop.f32.mrf.mxu2 }
 0x456   :  { %1992 = vst [vmem:[%s3370_s18 + $0x20] sm:$0xff] %v1659_v4 }
 0x459   :  { %v1688_v61 = vpop.f32.mrf.mxu3 }
 0x45a   :  { %1993 = vst [vmem:[%s3370_s18 + $0x28] sm:$0xff] %v1688_v61 }
 0x45d   :  { %v1662_v17 = vpop.f32.mrf.mxu2 }
 0x45e   :  { %1994 = vst [vmem:[%s3370_s18 + $0x30] sm:$0xff] %v1662_v17  ;;  %1722 = vmatpush.msra.mxu0 %v1662_v17 }
 0x460   :  { %1723 = vmatpush.msra.mxu0 %v1659_v4 }
 0x461   :  { %v1691_v49 = vpop.f32.mrf.mxu3 }
 0x462   :  { %1995 = vst [vmem:[%s3370_s18 + $0x38] sm:$0xff] %v1691_v49  ;;  %1745 = vmatpush.msra.mxu1 %v1691_v49  ;;  %1724 = vmatpush.msra.mxu0 %v1656_v12 }
 0x464   :  { %1746 = vmatpush.msra.mxu1 %v1688_v61  ;;  %1725 = vmatpush.msra.mxu0 %v1653_v38 }
 0x465   :  { %2102 = vmatmul.msk.f32.vlgmr.msra.gmra.mxu0 %vm389_vm10, %v1408_v52  ;;  %v1901_v14 = vpop.f32.mrf.mxu2 }
 0x466   :  { %1747 = vmatpush.msra.mxu1 %v1685_v37  ;;  %1852 = vmatpush.msrb.mxu0 %v3161_v0 }
 0x468   :  { %1748 = vmatpush.msra.mxu1 %v1682_v5  ;;  %1853 = vmatpush.msrb.mxu0 %v3155_v46  ;;  %v1697_v46 = vpop.permute.xlu1 %1696 }
 0x469   :  { %2104 = vmatmul.msk.f32.vlgmr.msra.gmra.mxu1 %vm389_vm10, %v1408_v52  ;;  %v1924_v57 = vpop.f32.mrf.mxu3 }
 0x46a   :  { %1944 = vmatpush.msra.mxu0 %v3196_v1  ;;  %1875 = vmatpush.msrb.mxu1 %v3165_v48 }
 0x46c   :  { %1945 = vmatpush.msra.mxu0 %v3171_v19  ;;  %1876 = vmatpush.msrb.mxu1 %v3157_v42 }
 0x46d   :  { %2103 = vmatmul.msk.f32.gmra.mxu0 %vm389_vm10, %v1409_v36 }
 0x46e   :  { %1967 = vmatpush.msra.mxu1 %v3205_v44  ;;  %v1702_v44 = vpop.permute.xlu2 %1701 }
 0x470   :  { %1968 = vmatpush.msra.mxu1 %v3183_v29 }
 0x471   :  { %2105 = vmatmul.msk.f32.gmra.mxu1 %vm389_vm10, %v1409_v36 }
 0x475   :  { %2110 = vmatmul.msk.f32.vlgmr.msrb.gmra.mxu0 %vm95_vm0, %v1402_v11 }
 0x479   :  { %2112 = vmatmul.msk.f32.vlgmr.msrb.gmra.mxu1 %vm95_vm0, %v1402_v11 }
 0x47d   :  { %2111 = vmatmul.msk.f32.gmra.mxu0 %vm95_vm0, %v1403_v23 }
 0x481   :  { %2113 = vmatmul.msk.f32.gmra.mxu1 %vm95_vm0, %v1403_v23 }
 0x485   :  { %2118 = vmatmul.msk.f32.vlgmr.msra.gmra.mxu0 %vm95_vm0, %v1402_v11 }
 0x489   :  { %2120 = vmatmul.msk.f32.vlgmr.msra.gmra.mxu1 %vm95_vm0, %v1402_v11 }
 0x48d   :  { %2119 = vmatmul.msk.f32.gmra.mxu0 %vm95_vm0, %v1403_v23 }
 0x491   :  { %2121 = vmatmul.msk.f32.gmra.mxu1 %vm95_vm0, %v1403_v23 }
 0x4e2   :  { %v1727_v42 = vpop.f32.mrf.mxu0 }
 0x4e3   :  { %v1728_v0 = vadd.f32 %v1727_v42, %v1697_v46 }
 0x4e5   :  { %v2106_v48 = vmul.f32 -1.442695, %v1728_v0 }
 0x4e6   :  { %v1750_v19 = vpop.f32.mrf.mxu1 }
 0x4e7   :  { %2187 = vpow2.f32 %v2106_v48  ;;  %v1751_v29 = vadd.f32 %v1750_v19, %v1697_v46  ;;  %v1904_v19 = vpop.f32.mrf.mxu2 }
 0x4e9   :  { %v2107_v1 = vmul.f32 -1.442695, %v1751_v29 }
 0x4ea   :  { %v1730_v39 = vpop.f32.mrf.mxu0 }
 0x4eb   :  { %2189 = vpow2.f32 %v2107_v1  ;;  %v1731_v28 = vadd.f32 %v1730_v39, %v1702_v44 }
 0x4ed   :  { %v2188_v50 = vpop.eup %2187  ;;  %v2108_v34 = vmul.f32 -1.442695, %v1731_v28 }
 0x4ee   :  { %v1768_v43 = vadd.f32 1.0, %v2188_v50  ;;  %v1753_v53 = vpop.f32.mrf.mxu1 }
 0x4ef   :  { %2191 = vpow2.f32 %v2108_v34  ;;  %v1754_v3 = vadd.f32 %v1753_v53, %v1702_v44  ;;  %v1927_v53 = vpop.f32.mrf.mxu3 }
 0x4f0   :  { %2193 = vrcp.f32 %v1768_v43  ;;  %v1781_v18 = vand.u32 2147483647, %v1768_v43  ;;  %v1783_v55 = vand.u32 2147483648, %v1768_v43  ;;  %vm1777_vm8 = vweird.f32 %v1768_v43 }
 0x4f1   :  { %v2190_v35 = vpop.eup %2189  ;;  %v2109_v6 = vmul.f32 -1.442695, %v1754_v3 }
 0x4f2   :  { %v1769_v27 = vadd.f32 1.0, %v2190_v35  ;;  %v1855_v45 = vpop.f32.mrf.mxu0  ;;  %vm1782_vm5 = vcmp.eq.f32.partialorder %v1781_v18, 8.507059e+37  ;;  %v1784_v40 = vor.u32 1.1754944e-38, %v1783_v55 }
 0x4f3   :  { %2195 = vpow2.f32 %v2109_v6 }
 0x4f4   :  { %2197 = vrcp.f32 %v1769_v27  ;;  %v1796_v47 = vand.u32 2147483647, %v1769_v27  ;;  %v1798_v24 = vand.u32 2147483648, %v1769_v27  ;;  %vm1792_vm7 = vweird.f32 %v1769_v27 }
 0x4f5   :  { %v2192_v2 = vpop.eup %2191 }
 0x4f6   :  { %v2194_v41 = vpop.eup %2193  ;;  %v1770_v7 = vadd.f32 1.0, %v2192_v2  ;;  %v1878_v56 = vpop.f32.mrf.mxu1  ;;  %vm1797_vm11 = vcmp.eq.f32.partialorder %v1796_v47, 8.507059e+37  ;;  %v1799_v62 = vor.u32 1.1754944e-38, %v1798_v24 }
 0x4f7   :  { %v1773_v58 = vmul.f32 %v2194_v41, %v1768_v43  ;;  %vm1778_vm0 = vweird.f32 %v2194_v41 }
 0x4f8   :  { %2199 = vrcp.f32 %v1770_v7  ;;  %vm1779_vm10 = vmor %vm1777_vm8, %vm1778_vm0  ;;  %v1811_v38 = vand.u32 2147483647, %v1770_v7  ;;  %v1813_v5 = vand.u32 2147483648, %v1770_v7  ;;  %vm1807_vm13 = vweird.f32 %v1770_v7 }
 0x4f9   :  { %v2196_v26 = vpop.eup %2195  ;;  %v1774_v54 = vsub.f32 1.0, %v1773_v58 }
 0x4fa   :  { %v2198_v33 = vpop.eup %2197  ;;  %v3305_v60 = vadd.f32 1.0, %v2196_v26  ;;  %v3307_v15 = vpop.f32.mrf.mxu0  ;;  %vm1812_vm15 = vcmp.eq.f32.partialorder %v1811_v38, 8.507059e+37  ;;  %v1814_v46 = vor.u32 1.1754944e-38, %v1813_v5 }
 0x4fb   :  { %v1775_v13 = vmul.f32 %v2194_v41, %v1774_v54  ;;  %v1788_v16 = vmul.f32 %v2198_v33, %v1769_v27  ;;  %vm1793_vm6 = vweird.f32 %v2198_v33 }
 0x4fc   :  { %2201 = vrcp.f32 %v3305_v60  ;;  %vm1794_vm9 = vmor %vm1792_vm7, %vm1793_vm6  ;;  %v1826_v42 = vand.u32 2147483647, %v3305_v60  ;;  %v1828_v0 = vand.u32 2147483648, %v3305_v60  ;;  %vm1822_vm2 = vweird.f32 %v3305_v60 }
 0x4fd   :  { %v1776_v8 = vadd.f32 %v2194_v41, %v1775_v13  ;;  %v1789_v20 = vsub.f32 1.0, %v1788_v16 }
 0x4fe   :  { %v2200_v31 = vpop.eup %2199  ;;  %v3310_v9 = vpop.f32.mrf.mxu1  ;;  %v1829_v43 = vor.u32 1.1754944e-38, %v1828_v0  ;;  %vm1827_vm4 = vcmp.eq.f32.partialorder %v1826_v42, 8.507059e+37 }
 0x4ff   :  { %v1780_v21 = vsel %vm1779_vm10, %v2194_v41, %v1776_v8  ;;  %v1790_v59 = vmul.f32 %v2198_v33, %v1789_v20  ;;  %v1803_v32 = vmul.f32 %v2200_v31, %v1770_v7  ;;  %vm1808_vm12 = vweird.f32 %v2200_v31 }
 0x500   :  { %v1785_v22 = vsel %vm1782_vm5, %v1784_v40, %v1780_v21  ;;  %vm1809_vm14 = vmor %vm1807_vm13, %vm1808_vm12 }
 0x501   :  { %v1976_v30 = vmul.f32 %v1855_v45, %v1785_v22  ;;  %v1791_v25 = vadd.f32 %v2198_v33, %v1790_v59  ;;  %v1804_v63 = vsub.f32 1.0, %v1803_v32  ;;  %v1980_v51 = vmul.f32 %v1901_v14, %v1785_v22 }
 0x502   :  { %v2202_v10 = vpop.eup %2201  ;;  %v1947_v12 = vpop.f32.mrf.mxu0 }
 0x503   :  { %1996 = vst [vmem:[%s3373_s19] sm:$0xff] %v1976_v30  ;;  %v1795_v37 = vsel %vm1794_vm9, %v2198_v33, %v1791_v25  ;;  %v1805_v11 = vmul.f32 %v2200_v31, %v1804_v63  ;;  %v1818_v4 = vmul.f32 %v2202_v10, %v3305_v60  ;;  %v1984_v23 = vmul.f32 %v1947_v12, %v1785_v22 }
 0x504   :  { %v1800_v61 = vsel %vm1797_vm11, %v1799_v62, %v1795_v37  ;;  %2122 = vst [vmem:[%s3373_s19 + $0x20] sm:$0xff] %v1980_v51  ;;  %vm1823_vm1 = vweird.f32 %v2202_v10 }
 0x505   :  { %v1977_v17 = vmul.f32 %v1878_v56, %v1800_v61  ;;  %v1806_v49 = vadd.f32 %v2200_v31, %v1805_v11  ;;  %v1819_v52 = vsub.f32 1.0, %v1818_v4  ;;  %v1981_v36 = vmul.f32 %v1924_v57, %v1800_v61  ;;  %2126 = vst [vmem:[%s3373_s19 + $0x40] sm:$0xff] %v1984_v23  ;;  %vm1824_vm3 = vmor %vm1822_vm2, %vm1823_vm1 }
 0x506   :  { %v1970_v48 = vpop.f32.mrf.mxu1 }
 0x507   :  { %1997 = vst [vmem:[%s3373_s19 + $0x8] sm:$0xff] %v1977_v17  ;;  %v1810_v29 = vsel %vm1809_vm14, %v2200_v31, %v1806_v49  ;;  %v1820_v1 = vmul.f32 %v2202_v10, %v1819_v52  ;;  %v1985_v44 = vmul.f32 %v1970_v48, %v1800_v61 }
 0x508   :  { %v1815_v39 = vsel %vm1812_vm15, %v1814_v46, %v1810_v29  ;;  %2123 = vst [vmem:[%s3373_s19 + $0x28] sm:$0xff] %v1981_v36 }
 0x509   :  { %v1978_v28 = vmul.f32 %v3307_v15, %v1815_v39  ;;  %v1821_v50 = vadd.f32 %v2202_v10, %v1820_v1  ;;  %2127 = vst [vmem:[%s3373_s19 + $0x48] sm:$0xff] %v1985_v44  ;;  %v1982_v34 = vmul.f32 %v1904_v19, %v1815_v39 }
 0x50a   :  { %v1950_v3 = vpop.f32.mrf.mxu0 }
 0x50b   :  { %1998 = vst [vmem:[%s3373_s19 + $0x10] sm:$0xff] %v1978_v28  ;;  %v1825_v35 = vsel %vm1824_vm3, %v2202_v10, %v1821_v50  ;;  %v1986_v6 = vmul.f32 %v1950_v3, %v1815_v39 }
 0x50c   :  { %v1830_v27 = vsel %vm1827_vm4, %v1829_v43, %v1825_v35  ;;  %2124 = vst [vmem:[%s3373_s19 + $0x30] sm:$0xff] %v1982_v34 }
 0x50d   :  { %v1979_v45 = vmul.f32 %v3310_v9, %v1830_v27  ;;  %v1983_v2 = vmul.f32 %v1927_v53, %v1830_v27  ;;  %2128 = vst [vmem:[%s3373_s19 + $0x50] sm:$0xff] %v1986_v6 }
 0x50e   :  { %v1973_v41 = vpop.f32.mrf.mxu1 }
 0x50f   :  { %1999 = vst [vmem:[%s3373_s19 + $0x18] sm:$0xff] %v1979_v45  ;;  %v1987_v7 = vmul.f32 %v1973_v41, %v1830_v27 }
 0x510   :  { %2125 = vst [vmem:[%s3373_s19 + $0x38] sm:$0xff] %v1983_v2 }
 0x511   :  { %2129 = vst [vmem:[%s3373_s19 + $0x58] sm:$0xff] %v1987_v7 }

// kernel: attention_interaction_block_vn.5
= control target key start
LH: loop header
LB: loop body
LE: loop exit
PB: predicated region body
PF: predicated region fallthrough
CT: control target
= control target key end

     0   :  { %v3765_v0 = vmov 0   ;;  %vm179_vm2 = vcmask 130048   ;;  %vm406_vm3 = vcmask 1043456   ;;  %vm399_vm11 = vcmask 293888   ;;  %s3733_s6 = inlined_call_operand.vmem [shape: f32[16,1], index: 6, kind: input, shape index: {}]   ;;  %s3734_s14 = inlined_call_operand.vmem [shape: f32[48,1], index: 14, kind: input, shape index: {}]   ;;  %s3735_s16 = inlined_call_operand.vmem [shape: f32[16,1], index: 16, kind: input, shape index: {}]   ;;  %s3736_s22 = inlined_call_operand.vmem [shape: f32[16,1], index: 22, kind: input, shape index: {}]   ;;  %s3737_s0 = inlined_call_operand.vmem [shape: f32[3,1,256], index: 0, kind: input, shape index: {}]   ;;  %s3738_s5 = inlined_call_operand.vmem [shape: f32[16,1], index: 5, kind: input, shape index: {}]   ;;  %s3739_s7 = inlined_call_operand.vmem [shape: f32[16,16], index: 7, kind: input, shape index: {}]   ;;  %s3740_s1 = inlined_call_operand.vmem [shape: f32[4,256], index: 1, kind: input, shape index: {}]   ;;  %s3741_s9 = inlined_call_operand.vmem [shape: f32[16,36], index: 9, kind: input, shape index: {}]   ;;  %s3742_s11 = inlined_call_operand.vmem [shape: f32[16,1], index: 11, kind: input, shape index: {}]   ;;  %s3743_s8 = inlined_call_operand.vmem [shape: f32[16,16], index: 8, kind: input, shape index: {}]   ;;  %s3744_s10 = inlined_call_operand.vmem [shape: f32[16,16], index: 10, kind: input, shape index: {}]   ;;  %s3745_s12 = inlined_call_operand.vmem [shape: f32[16,16], index: 12, kind: input, shape index: {}]   ;;  %s3746_s2 = inlined_call_operand.vmem [shape: bf16[32,256], index: 2, kind: input, shape index: {}]   ;;  %s3747_s13 = inlined_call_operand.vmem [shape: f32[48,16], index: 13, kind: input, shape index: {}]   ;;  %s3748_s15 = inlined_call_operand.vmem [shape: f32[16,32], index: 15, kind: input, shape index: {}]   ;;  %s3749_s17 = inlined_call_operand.vmem [shape: f32[16,16], index: 17, kind: input, shape index: {}]   ;;  %s3750_s3 = inlined_call_operand.vmem [shape: bf16[3,16,256], index: 3, kind: input, shape index: {}]   ;;  %s3751_s18 = inlined_call_operand.vmem [shape: f32[16,16], index: 18, kind: input, shape index: {}]   ;;  %s3752_s20 = inlined_call_operand.vmem [shape: f32[32,48], index: 20, kind: input, shape index: {}]   ;;  %s3753_s4 = inlined_call_operand.vmem [shape: f32[1,256], index: 4, kind: input, shape index: {}]   ;;  %s3754_s23 = inlined_call_operand.vmem [shape: bf16[80,256], index: 23, kind: output, shape index: {}]   ;;  %s3755_s19 = inlined_call_operand.vmem [shape: f32[16,16], index: 19, kind: input, shape index: {}]   ;;  %s3756_s21 = inlined_call_operand.vmem [shape: f32[16,32], index: 21, kind: input, shape index: {}]  }
   0x1   :  { %3767 = sst [smem:[#allocation2_spill]] %s3733_s6  ;;  %2443 = vset.pattern.permute.xlu0 %v3765_v0  ;;  %2444 = vset.pattern.permute.xlu1 %v3765_v0 }
   0x2   :  { %3768 = sst [smem:[#allocation3_spill]] %s3734_s14  ;;  %2445 = vset.pattern.permute.xlu2 %v3765_v0 }
   0x3   :  { %3769 = sst [smem:[#allocation4_spill]] %s3735_s16 }
   0x4   :  { %3770 = sst [smem:[#allocation5_spill]] %s3736_s22 }
   0x5   :  { %3771 = sst [smem:[#allocation6_spill]] %s3737_s0 }
   0x6   :  { %3772 = sst [smem:[#allocation7_spill]] %s3738_s5 }
   0x7   :  { %3773 = sst [smem:[#allocation8_spill]] %s3739_s7 }
   0x8   :  { %3774 = sst [smem:[#allocation9_spill]] %s3740_s1 }
   0x9   :  { %s3775_s24 = sld [smem:[#allocation2_spill]] }
   0xa   :  { %s3776_s26 = sld [smem:[#allocation3_spill]] }
   0xb   :  { %s3777_s1 = sld [smem:[#allocation4_spill]] }
   0xc   :  { %s3778_s0 = sld [smem:[#allocation5_spill]] }
   0xd   :  { %s3779_s25 = sld [smem:[#allocation6_spill]] }
   0xe   :  { %s3780_s29 = sld [smem:[#allocation7_spill]] }
   0xf   :  { %v139_v1 = vld [vmem:[%s3775_s24 + $0x8] sm:$0xff]  ;;  %v138_v2 = vld [vmem:[%s3775_s24] sm:$0xff]  ;;  %s3781_s7 = sld [smem:[#allocation8_spill]] }
  0x10   :  { %147 = vperm.xlu0 %2443, %v139_v1   ;;  %v1122_v3 = vld [vmem:[%s3776_s26 + $0x28] sm:$0xff]  ;;  %v1120_v38 = vld [vmem:[%s3776_s26 + $0x18] sm:$0xff]  ;;  %v1117_v56 = vld [vmem:[%s3776_s26] sm:$0xff]  ;;  %s3782_s30 = sld [smem:[#allocation9_spill]] }
  0x11   :  { %v1251_v4 = vld [vmem:[%s3777_s1] sm:$0xff]  ;;  %v1118_v5 = vld [vmem:[%s3776_s26 + $0x8] sm:$0xff] }
  0x12   :  { %v1509_v6 = vld [vmem:[%s3778_s0 + $0x8] sm:$0xff] }
  0x13   :  { %v74_v7 = vld [vmem:[%s3779_s25] sm:$0x3]  ;;  %v2299_v8 = vld [vmem:[%s3779_s25 + $0x2] sm:$0x3]  ;;  %v2300_v11 = vld [vmem:[%s3779_s25 + $0x4] sm:$0x3] }
  0x14   :  { %v79_v9 = vmul.f32 %v74_v7, %v74_v7  ;;  %v80_v10 = vmul.f32 %v2299_v8, %v2299_v8  ;;  %v82_v13 = vmul.f32 %v2300_v11, %v2300_v11  ;;  %v97_v26 = vld [vmem:[%s3780_s29 + $0x8] sm:$0xff]  ;;  %v96_v28 = vld [vmem:[%s3780_s29] sm:$0xff] }
  0x15   :  { %110 = vperm.xlu1 %2444, %v97_v26   ;;  %v1252_v32 = vld [vmem:[%s3777_s1 + $0x8] sm:$0xff]  ;;  %v177_v55 = vld [vmem:[%s3781_s7] sm:$0xff] }
  0x16   :  { %v81_v12 = vadd.f32 %v80_v10, %v79_v9  ;;  %v178_v46 = vld [vmem:[%s3781_s7 + $0x8] sm:$0xff] }
  0x18   :  { %142 = vperm.xlu0 %2443, %v138_v2   ;;  %v83_v14 = vadd.f32 %v82_v13, %v81_v12 }
  0x1a   :  { %2446 = vrsqrt.f32 %v83_v14  ;;  %vm91_vm0 = vcmp.eq.f32.partialorder %v83_v14, inf  ;;  %v94_v22 = vand.u32 2147483648, %v83_v14  ;;  %vm93_vm1 = vcmp.eq.f32.partialorder %v83_v14, 0.0 }
  0x1d   :  { %105 = vperm.xlu1 %2444, %v96_v28  }
  0x20   :  { %1150 = vperm.xlu0 %2443, %v1122_v3   ;;  %v2447_v15 = vpop.eup %2446 }
  0x21   :  { %v85_v16 = vmul.f32 %v2447_v15, %v83_v14 }
  0x23   :  { %v86_v17 = vmul.f32 %v2447_v15, %v85_v16 }
  0x25   :  { %v87_v18 = vmul.f32 0.5, %v86_v17  ;;  %1260 = vperm.xlu1 %2444, %v1252_v32  }
  0x27   :  { %v88_v19 = vsub.f32 1.5, %v87_v18 }
  0x28   :  { %1255 = vperm.xlu0 %2443, %v1251_v4  }
  0x29   :  { %v89_v20 = vmul.f32 %v2447_v15, %v88_v19 }
  0x2b   :  { %v90_v21 = vmul.f32 %v89_v20, %v83_v14 }
  0x2d   :  { %v92_v23 = vsel %vm91_vm0, %v83_v14, %v90_v21  ;;  %1140 = vperm.xlu1 %2444, %v1120_v38   ;;  %v392_v14 = vld [vmem:[%s3782_s30] sm:$0xff] }
  0x2e   :  { %v2672_v24 = vsel %vm93_vm1, %v94_v22, %v92_v23  ;;  %394 = vst [vmem:[#allocation1] ss:$2 sm:$0xff] %v392_v14 }
  0x2f   :  { %v133_v25 = vadd.f32 1e-07, %v2672_v24  ;;  %v99_v58 = vperm.slane %v2672_v24, 0  ;;  %v100_v59 = vperm.slane %v2672_v24, 1 }
  0x30   :  { %1130 = vperm.xlu0 %2443, %v1118_v5  }
  0x31   :  { %2448 = vrcp.f32 %v133_v25 }
  0x35   :  { %1125 = vperm.xlu1 %2444, %v1117_v56   ;;  %v395_v17 = vld.sshfl [vmem:[#allocation1] sm:$0xff pattern:$0x75316420]  ;;  %v396_v18 = vld.sshfl [vmem:[#allocation1 + $0x8] sm:$0xff pattern:$0x75316420] }
  0x37   :  { %v2449_v27 = vpop.eup %2448 }
  0x38   :  { %1800 = vperm.xlu0 %2443, %v1509_v6   ;;  %v135_v29 = vmul.f32 %v2449_v27, %v74_v7  ;;  %v136_v36 = vmul.f32 %v2449_v27, %v2299_v8  ;;  %v137_v37 = vmul.f32 %v2449_v27, %v2300_v11 }
  0x3a   :  { %v151_v30 = vperm.slane %v135_v29, 0  ;;  %v152_v31 = vperm.slane %v135_v29, 1  ;;  %v160_v40 = vperm.slane %v136_v36, 0  ;;  %v161_v41 = vperm.slane %v136_v36, 1 }
  0x3b   :  { %v169_v44 = vperm.slane %v137_v37, 0  ;;  %v170_v45 = vperm.slane %v137_v37, 1 }
  0x82   :  { %v148_v33 = vpop.permute.xlu0 %147 }
  0x83   :  { %v157_v34 = vmul.f32 %v151_v30, %v148_v33  ;;  %v158_v35 = vmul.f32 %v152_v31, %v148_v33  ;;  %v166_v47 = vmul.f32 %v160_v40, %v148_v33  ;;  %v167_v48 = vmul.f32 %v161_v41, %v148_v33 }
  0x84   :  { %v175_v49 = vmul.f32 %v169_v44, %v148_v33  ;;  %v176_v50 = vmul.f32 %v170_v45, %v148_v33 }
  0x85   :  { %200 = vmatpush.msra.mxu0 %v157_v34  ;;  %2431 = vmatpush.msra.mxu2 %v157_v34 }
  0x86   :  { %223 = vmatpush.msra.mxu1 %v158_v35  ;;  %2433 = vmatpush.msra.mxu3 %v158_v35 }
  0x87   :  { %v111_v57 = vpop.permute.xlu1 %110 }
  0x88   :  { %v115_v60 = vsub.f32 %v99_v58, %v111_v57  ;;  %v116_v61 = vsub.f32 %v100_v59, %v111_v57 }
  0x8a   :  { %v143_v39 = vpop.permute.xlu0 %142  ;;  %v119_v2 = vmul.f32 -0.60499996, %v115_v60  ;;  %v120_v3 = vmul.f32 -0.60499996, %v116_v61 }
  0x8b   :  { %v155_v42 = vmul.f32 %v151_v30, %v143_v39  ;;  %v156_v43 = vmul.f32 %v152_v31, %v143_v39  ;;  %v164_v51 = vmul.f32 %v160_v40, %v143_v39  ;;  %v165_v52 = vmul.f32 %v161_v41, %v143_v39 }
  0x8c   :  { %v173_v53 = vmul.f32 %v169_v44, %v143_v39  ;;  %v174_v54 = vmul.f32 %v170_v45, %v143_v39  ;;  %v123_v6 = vmul.f32 %v119_v2, %v115_v60  ;;  %v124_v7 = vmul.f32 %v120_v3, %v116_v61 }
  0x8d   :  { %201 = vmatpush.msra.mxu0 %v155_v42  ;;  %2432 = vmatpush.msra.mxu2 %v155_v42 }
  0x8e   :  { %224 = vmatpush.msra.mxu1 %v156_v43  ;;  %2434 = vmatpush.msra.mxu3 %v156_v43  ;;  %v129_v10 = vmul.f32 1.442695, %v123_v6  ;;  %v131_v11 = vmul.f32 1.442695, %v124_v7 }
  0x8f   :  { %2302 = vmatmul.msk.f32.vlgmr.msra.gmra.mxu2 %vm179_vm2, %v178_v46  ;;  %2304 = vmatmul.msk.f32.vlgmr.msra.gmra.mxu3 %vm179_vm2, %v178_v46  ;;  %v106_v62 = vpop.permute.xlu1 %105 }
  0x90   :  { %246 = vmatpush.msrb.mxu2 %v166_v47  ;;  %269 = vmatpush.msrb.mxu3 %v167_v48  ;;  %v113_v63 = vsub.f32 %v99_v58, %v106_v62  ;;  %v114_v1 = vsub.f32 %v100_v59, %v106_v62  ;;  %2450 = vpow2.f32 %v129_v10 }
  0x91   :  { %292 = vmatpush.msrb.mxu0 %v175_v49  ;;  %315 = vmatpush.msrb.mxu1 %v176_v50  ;;  %2452 = vpow2.f32 %v131_v11 }
  0x92   :  { %247 = vmatpush.msrb.mxu2 %v164_v51  ;;  %270 = vmatpush.msrb.mxu3 %v165_v52  ;;  %v117_v4 = vmul.f32 -0.60499996, %v113_v63  ;;  %v118_v5 = vmul.f32 -0.60499996, %v114_v1 }
  0x93   :  { %293 = vmatpush.msrb.mxu0 %v173_v53  ;;  %316 = vmatpush.msrb.mxu1 %v174_v54 }
  0x94   :  { %2301 = vmatmul.msk.f32.vlgmr.msra.gmra.mxu0 %vm179_vm2, %v177_v55  ;;  %2303 = vmatmul.msk.f32.vlgmr.msra.gmra.mxu1 %vm179_vm2, %v177_v55  ;;  %v121_v8 = vmul.f32 %v117_v4, %v113_v63  ;;  %v122_v9 = vmul.f32 %v118_v5, %v114_v1 }
  0x95   :  { %2313 = vmatpush.msk.msra.mxu2 %vm406_vm3, %v395_v17  ;;  %2316 = vmatpush.msk.msra.mxu3 %vm406_vm3, %v396_v18 }
  0x96   :  { %v125_v12 = vmul.f32 1.442695, %v121_v8  ;;  %v127_v13 = vmul.f32 1.442695, %v122_v9  ;;  %v2451_v15 = vpop.eup %2450 }
  0x97   :  { %2305 = vmatmul.msk.f32.vlgmr.msrb.gmra.mxu2 %vm179_vm2, %v177_v55  ;;  %2307 = vmatmul.msk.f32.vlgmr.msrb.gmra.mxu3 %vm179_vm2, %v177_v55  ;;  %v2453_v16 = vpop.eup %2452 }
  0x98   :  { %2454 = vpow2.f32 %v125_v12  ;;  %423 = vmatpush.msra.mxu2 %v2451_v15  ;;  %446 = vmatpush.msra.mxu3 %v2453_v16 }
  0x99   :  { %2456 = vpow2.f32 %v127_v13 }
  0x9c   :  { %2309 = vmatmul.msk.f32.vlgmr.msrb.gmra.mxu0 %vm179_vm2, %v177_v55  ;;  %2311 = vmatmul.msk.f32.vlgmr.msrb.gmra.mxu1 %vm179_vm2, %v177_v55 }
  0x9e   :  { %v2455_v19 = vpop.eup %2454 }
  0x9f   :  { %2306 = vmatmul.msk.f32.gmra.mxu2 %vm179_vm2, %v178_v46  ;;  %2308 = vmatmul.msk.f32.gmra.mxu3 %vm179_vm2, %v178_v46  ;;  %v2457_v20 = vpop.eup %2456 }
  0xa0   :  { %424 = vmatpush.msra.mxu2 %v2455_v19  ;;  %447 = vmatpush.msra.mxu3 %v2457_v20 }
  0xa4   :  { %2310 = vmatmul.msk.f32.gmra.mxu0 %vm179_vm2, %v178_v46  ;;  %2312 = vmatmul.msk.f32.gmra.mxu1 %vm179_vm2, %v178_v46 }
 0x111   :  { %v2713_v21 = vpop.f32.mrf.mxu0  ;;  %v2715_v22 = vpop.f32.mrf.mxu1 }
 0x112   :  { %v2717_v23 = vpop.f32.mrf.mxu2  ;;  %v2719_v25 = vpop.f32.mrf.mxu3  ;;  %v324_v28 = vmul.f32 %v2713_v21, %v2713_v21  ;;  %v325_v29 = vmul.f32 %v2715_v22, %v2715_v22 }
 0x113   :  { %v326_v42 = vmul.f32 %v2717_v23, %v2717_v23  ;;  %v327_v43 = vmul.f32 %v2719_v25, %v2719_v25 }
 0x119   :  { %v2721_v26 = vpop.f32.mrf.mxu0  ;;  %v2723_v27 = vpop.f32.mrf.mxu1 }
 0x11a   :  { %v2729_v30 = vpop.f32.mrf.mxu2  ;;  %v2731_v31 = vpop.f32.mrf.mxu3  ;;  %v336_v34 = vmul.f32 %v2721_v26, %v2721_v26  ;;  %v337_v35 = vmul.f32 %v2723_v27, %v2723_v27 }
 0x11b   :  { %v328_v32 = vmul.f32 %v2729_v30, %v2729_v30  ;;  %v329_v33 = vmul.f32 %v2731_v31, %v2731_v31 }
 0x11d   :  { %v332_v36 = vadd.f32 %v328_v32, %v324_v28  ;;  %v333_v37 = vadd.f32 %v329_v33, %v325_v29 }
 0x11f   :  { %v2741_v38 = vadd.f32 %v336_v34, %v332_v36  ;;  %v2743_v39 = vadd.f32 %v337_v35, %v333_v37 }
 0x121   :  { %v2745_v40 = vpop.f32.mrf.mxu0  ;;  %v2747_v41 = vpop.f32.mrf.mxu1  ;;  %2458 = vrsqrt.f32 %v2741_v38  ;;  %vm351_vm4 = vcmp.eq.f32.partialorder %v2741_v38, inf  ;;  %v354_v18 = vand.u32 2147483648, %v2741_v38  ;;  %vm363_vm5 = vcmp.eq.f32.partialorder %v2743_v39, inf }
 0x122   :  { %v2754_v44 = vpop.f32.mrf.mxu2  ;;  %v2756_v45 = vpop.f32.mrf.mxu3  ;;  %2460 = vrsqrt.f32 %v2743_v39  ;;  %v338_v48 = vmul.f32 %v2745_v40, %v2745_v40  ;;  %v339_v49 = vmul.f32 %v2747_v41, %v2747_v41  ;;  %vm353_vm10 = vcmp.eq.f32.partialorder %v2741_v38, 0.0 }
 0x123   :  { %v330_v46 = vmul.f32 %v2754_v44, %v2754_v44  ;;  %v331_v47 = vmul.f32 %v2756_v45, %v2756_v45  ;;  %v366_v37 = vand.u32 2147483648, %v2743_v39  ;;  %vm365_vm12 = vcmp.eq.f32.partialorder %v2743_v39, 0.0 }
 0x125   :  { %v334_v50 = vadd.f32 %v330_v46, %v326_v42  ;;  %v335_v51 = vadd.f32 %v331_v47, %v327_v43  ;;  %v397_v42 = vld [vmem:[%s3741_s9] sm:$0xff] }
 0x127   :  { %v2459_v52 = vpop.eup %2458  ;;  %v342_v53 = vadd.f32 %v338_v48, %v334_v50  ;;  %v343_v54 = vadd.f32 %v339_v49, %v335_v51  ;;  %v457_v48 = vld [vmem:[%s3744_s10] sm:$0xff]  ;;  %v458_v50 = vld [vmem:[%s3744_s10 + $0x8] sm:$0xff] }
 0x128   :  { %v2461_v55 = vpop.eup %2460  ;;  %v345_v56 = vmul.f32 %v2459_v52, %v2741_v38  ;;  %v1508_v49 = vld [vmem:[%s3778_s0] sm:$0xff] }
 0x129   :  { %2462 = vrsqrt.f32 %v342_v53  ;;  %v357_v58 = vmul.f32 %v2461_v55, %v2743_v39  ;;  %vm375_vm6 = vcmp.eq.f32.partialorder %v342_v53, inf  ;;  %vm377_vm7 = vcmp.eq.f32.partialorder %v342_v53, 0.0 }
 0x12a   :  { %2464 = vrsqrt.f32 %v343_v54  ;;  %v346_v57 = vmul.f32 %v2459_v52, %v345_v56  ;;  %v378_v19 = vand.u32 2147483648, %v342_v53  ;;  %vm387_vm8 = vcmp.eq.f32.partialorder %v343_v54, inf }
 0x12b   :  { %v358_v60 = vmul.f32 %v2461_v55, %v357_v58  ;;  %v390_v29 = vand.u32 2147483648, %v343_v54  ;;  %vm389_vm9 = vcmp.eq.f32.partialorder %v343_v54, 0.0 }
 0x12c   :  { %v347_v59 = vmul.f32 0.5, %v346_v57 }
 0x12d   :  { %v359_v62 = vmul.f32 0.5, %v358_v60 }
 0x12e   :  { %v348_v2 = vsub.f32 1.5, %v347_v59 }
 0x12f   :  { %v2463_v61 = vpop.eup %2462  ;;  %v360_v4 = vsub.f32 1.5, %v359_v62 }
 0x130   :  { %v2465_v63 = vpop.eup %2464  ;;  %v369_v1 = vmul.f32 %v2463_v61, %v342_v53  ;;  %v349_v8 = vmul.f32 %v2459_v52, %v348_v2 }
 0x131   :  { %v381_v3 = vmul.f32 %v2465_v63, %v343_v54  ;;  %v361_v10 = vmul.f32 %v2461_v55, %v360_v4 }
 0x132   :  { %v370_v5 = vmul.f32 %v2463_v61, %v369_v1  ;;  %v350_v14 = vmul.f32 %v349_v8, %v2741_v38 }
 0x133   :  { %v382_v6 = vmul.f32 %v2465_v63, %v381_v3  ;;  %v362_v16 = vmul.f32 %v361_v10, %v2743_v39 }
 0x134   :  { %v371_v7 = vmul.f32 0.5, %v370_v5  ;;  %v352_v32 = vsel %vm351_vm4, %v2741_v38, %v350_v14  ;;  %v398_v38 = vld [vmem:[%s3741_s9 + $0x8] sm:$0xff] }
 0x135   :  { %v383_v9 = vmul.f32 0.5, %v382_v6  ;;  %v364_v35 = vsel %vm363_vm5, %v2743_v39, %v362_v16  ;;  %v355_v43 = vsel %vm353_vm10, %v354_v18, %v352_v32 }
 0x136   :  { %v372_v11 = vsub.f32 1.5, %v371_v7  ;;  %v367_v46 = vsel %vm365_vm12, %v366_v37, %v364_v35 }
 0x137   :  { %v384_v12 = vsub.f32 1.5, %v383_v9 }
 0x138   :  { %v373_v13 = vmul.f32 %v2463_v61, %v372_v11 }
 0x139   :  { %v385_v15 = vmul.f32 %v2465_v63, %v384_v12 }
 0x13a   :  { %v374_v17 = vmul.f32 %v373_v13, %v342_v53 }
 0x13b   :  { %v386_v20 = vmul.f32 %v385_v15, %v343_v54 }
 0x13c   :  { %v376_v28 = vsel %vm375_vm6, %v342_v53, %v374_v17 }
 0x13d   :  { %v379_v33 = vsel %vm377_vm7, %v378_v19, %v376_v28  ;;  %v388_v34 = vsel %vm387_vm8, %v343_v54, %v386_v20 }
 0x13e   :  { %425 = vmatpush.msra.mxu2 %v379_v33  ;;  %v391_v36 = vsel %vm389_vm9, %v390_v29, %v388_v34 }
 0x13f   :  { %448 = vmatpush.msra.mxu3 %v391_v36 }
 0x140   :  { %426 = vmatpush.msra.mxu2 %v355_v43 }
 0x141   :  { %449 = vmatpush.msra.mxu3 %v367_v46  ;;  %2314 = vmatmul.msk.f32.vlgmr.msra.gmra.mxu2 %vm399_vm11, %v397_v42 }
 0x142   :  { %2317 = vmatmul.msk.f32.vlgmr.msra.gmra.mxu3 %vm399_vm11, %v397_v42  ;;  %621 = vmatpush.msrb.mxu2 %v2717_v23  ;;  %v459_v23 = vld [vmem:[%s3742_s11] sm:$0xff] }
 0x143   :  { %644 = vmatpush.msrb.mxu3 %v2719_v25  ;;  %v600_v25 = vld [vmem:[%s3743_s8 + $0x8] sm:$0xff] }
 0x144   :  { %622 = vmatpush.msrb.mxu2 %v2713_v21  ;;  %v460_v21 = vld [vmem:[%s3742_s11 + $0x8] sm:$0xff] }
 0x145   :  { %645 = vmatpush.msrb.mxu3 %v2715_v22  ;;  %468 = vperm.xlu2 %2445, %v460_v21   ;;  %v599_v22 = vld [vmem:[%s3743_s8] sm:$0xff] }
 0x146   :  { %713 = vmatpush.msra.mxu2 %v2745_v40  ;;  %v1119_v40 = vld [vmem:[%s3776_s26 + $0x10] sm:$0xff] }
 0x147   :  { %736 = vmatpush.msra.mxu3 %v2747_v41 }
 0x148   :  { %714 = vmatpush.msra.mxu2 %v2721_v26  ;;  %v1121_v26 = vld [vmem:[%s3776_s26 + $0x20] sm:$0xff] }
 0x149   :  { %737 = vmatpush.msra.mxu3 %v2723_v27  ;;  %2315 = vmatmul.msk.f32.gmra.mxu2 %vm399_vm11, %v398_v38 }
 0x14a   :  { %2318 = vmatmul.msk.f32.gmra.mxu3 %vm399_vm11, %v398_v38 }
 0x14d   :  { %463 = vperm.xlu2 %2445, %v459_v23  }
 0x151   :  { %2327 = vmatmul.msk.f32.vlgmr.msrb.gmra.mxu2 %vm179_vm2, %v599_v22 }
 0x152   :  { %2329 = vmatmul.msk.f32.vlgmr.msrb.gmra.mxu3 %vm179_vm2, %v599_v22 }
 0x155   :  { %1145 = vperm.xlu2 %2445, %v1121_v26  }
 0x159   :  { %2328 = vmatmul.msk.f32.gmra.mxu2 %vm179_vm2, %v600_v25 }
 0x15a   :  { %2330 = vmatmul.msk.f32.gmra.mxu3 %vm179_vm2, %v600_v25 }
 0x15d   :  { %1135 = vperm.xlu2 %2445, %v1119_v40  }
 0x161   :  { %2335 = vmatmul.msk.f32.vlgmr.msra.gmra.mxu2 %vm179_vm2, %v599_v22 }
 0x162   :  { %2337 = vmatmul.msk.f32.vlgmr.msra.gmra.mxu3 %vm179_vm2, %v599_v22 }
 0x165   :  { %1795 = vperm.xlu2 %2445, %v1508_v49  }
 0x169   :  { %2336 = vmatmul.msk.f32.gmra.mxu2 %vm179_vm2, %v600_v25 }
 0x16a   :  { %2338 = vmatmul.msk.f32.gmra.mxu3 %vm179_vm2, %v600_v25 }
 0x1c4   :  { %v2816_v27 = vpop.f32.mrf.mxu2 }
 0x1c5   :  { %v2818_v39 = vpop.f32.mrf.mxu3 }
 0x1cc   :  { %v2825_v41 = vpop.f32.mrf.mxu2 }
 0x1cd   :  { %v2827_v47 = vpop.f32.mrf.mxu3  ;;  %491 = vmatpush.msra.mxu0 %v2825_v41 }
 0x1ce   :  { %514 = vmatpush.msra.mxu1 %v2827_v47 }
 0x1cf   :  { %492 = vmatpush.msra.mxu0 %v2816_v27 }
 0x1d0   :  { %515 = vmatpush.msra.mxu1 %v2818_v39  ;;  %2319 = vmatmul.msk.f32.vlgmr.msra.gmra.mxu0 %vm179_vm2, %v457_v48 }
 0x1d1   :  { %2321 = vmatmul.msk.f32.vlgmr.msra.gmra.mxu1 %vm179_vm2, %v457_v48  ;;  %667 = vmatpush.msrb.mxu0 %v2754_v44 }
 0x1d2   :  { %690 = vmatpush.msrb.mxu1 %v2756_v45 }
 0x1d3   :  { %668 = vmatpush.msrb.mxu0 %v2729_v30  ;;  %v469_v30 = vpop.permute.xlu2 %468 }
 0x1d4   :  { %691 = vmatpush.msrb.mxu1 %v2731_v31  ;;  %v2858_v2 = vpop.f32.mrf.mxu2 }
 0x1d5   :  { %v2860_v3 = vpop.f32.mrf.mxu3 }
 0x1d8   :  { %2320 = vmatmul.msk.f32.gmra.mxu0 %vm179_vm2, %v458_v50 }
 0x1d9   :  { %2322 = vmatmul.msk.f32.gmra.mxu1 %vm179_vm2, %v458_v50 }
 0x1db   :  { %v464_v44 = vpop.permute.xlu2 %463 }
 0x1dc   :  { %v627_v13 = vpop.f32.mrf.mxu2 }
 0x1dd   :  { %v2869_v14 = vpop.f32.mrf.mxu3 }
 0x1e0   :  { %2331 = vmatmul.msk.f32.vlgmr.msrb.gmra.mxu0 %vm179_vm2, %v599_v22 }
 0x1e1   :  { %2333 = vmatmul.msk.f32.vlgmr.msrb.gmra.mxu1 %vm179_vm2, %v599_v22 }
 0x1e4   :  { %v2887_v23 = vpop.f32.mrf.mxu2 }
 0x1e8   :  { %2332 = vmatmul.msk.f32.gmra.mxu0 %vm179_vm2, %v600_v25 }
 0x1e9   :  { %2334 = vmatmul.msk.f32.gmra.mxu1 %vm179_vm2, %v600_v25  ;;  %v2889_v25 = vpop.f32.mrf.mxu3 }
 0x24d   :  { %v494_v31 = vpop.f32.mrf.mxu0 }
 0x24e   :  { %v495_v45 = vadd.f32 %v494_v31, %v464_v44  ;;  %v517_v51 = vpop.f32.mrf.mxu1 }
 0x24f   :  { %v518_v52 = vadd.f32 %v517_v51, %v464_v44 }
 0x250   :  { %v2323_v53 = vmul.f32 -1.442695, %v495_v45 }
 0x251   :  { %v2324_v54 = vmul.f32 -1.442695, %v518_v52 }
 0x252   :  { %2466 = vpow2.f32 %v2323_v53 }
 0x253   :  { %2468 = vpow2.f32 %v2324_v54 }
 0x255   :  { %v497_v55 = vpop.f32.mrf.mxu0 }
 0x256   :  { %v498_v56 = vadd.f32 %v497_v55, %v469_v30  ;;  %v520_v57 = vpop.f32.mrf.mxu1 }
 0x257   :  { %v521_v58 = vadd.f32 %v520_v57, %v469_v30 }
 0x258   :  { %v2467_v59 = vpop.eup %2466  ;;  %v2325_v60 = vmul.f32 -1.442695, %v498_v56 }
 0x259   :  { %v2469_v61 = vpop.eup %2468  ;;  %v535_v62 = vadd.f32 1.0, %v2467_v59  ;;  %v2326_v63 = vmul.f32 -1.442695, %v521_v58 }
 0x25a   :  { %v2856_v1 = vadd.f32 1.0, %v2469_v61  ;;  %2470 = vpow2.f32 %v2325_v60 }
 0x25b   :  { %2472 = vrcp.f32 %v535_v62  ;;  %v548_v19 = vand.u32 2147483647, %v535_v62  ;;  %vm544_vm14 = vweird.f32 %v535_v62  ;;  %v550_v34 = vand.u32 2147483648, %v535_v62 }
 0x25c   :  { %2474 = vrcp.f32 %v2856_v1  ;;  %vm559_vm15 = vweird.f32 %v2856_v1  ;;  %v563_v36 = vand.u32 2147483647, %v2856_v1  ;;  %v565_v37 = vand.u32 2147483648, %v2856_v1 }
 0x25d   :  { %2476 = vpow2.f32 %v2326_v63  ;;  %v670_v17 = vpop.f32.mrf.mxu0  ;;  %vm2883_vm1 = vcmp.eq.f32.partialorder %v548_v19, 8.507059e+37  ;;  %v551_v49 = vor.u32 1.1754944e-38, %v550_v34 }
 0x25e   :  { %v2872_v28 = vpop.f32.mrf.mxu1  ;;  %v566_v58 = vor.u32 1.1754944e-38, %v565_v37  ;;  %vm564_vm12 = vcmp.eq.f32.partialorder %v563_v36, 8.507059e+37  ;;  %v758_v36 = vld [vmem:[%s3745_s12 + $0x8] sm:$0xff] }
 0x260   :  { %v2471_v4 = vpop.eup %2470 }
 0x261   :  { %v2473_v5 = vpop.eup %2472  ;;  %v537_v6 = vadd.f32 1.0, %v2471_v4 }
 0x262   :  { %v2863_v7 = vpop.eup %2474  ;;  %v540_v8 = vmul.f32 %v2473_v5, %v535_v62  ;;  %vm545_vm13 = vweird.f32 %v2473_v5 }
 0x263   :  { %v2477_v9 = vpop.eup %2476  ;;  %2478 = vrcp.f32 %v537_v6  ;;  %v555_v10 = vmul.f32 %v2863_v7, %v2856_v1  ;;  %v580_v42 = vand.u32 2147483648, %v537_v6  ;;  %vm2879_vm0 = vmor %vm544_vm14, %vm545_vm13  ;;  %v578_v22 = vand.u32 2147483647, %v537_v6 }
 0x264   :  { %v2867_v11 = vadd.f32 1.0, %v2477_v9  ;;  %v541_v12 = vsub.f32 1.0, %v540_v8  ;;  %vm560_vm4 = vweird.f32 %v2863_v7  ;;  %vm574_vm5 = vweird.f32 %v537_v6 }
 0x265   :  { %v556_v16 = vsub.f32 1.0, %v555_v10  ;;  %v581_v44 = vor.u32 1.1754944e-38, %v580_v42  ;;  %v673_v51 = vpop.f32.mrf.mxu0  ;;  %vm2901_vm8 = vmor %vm559_vm15, %vm560_vm4  ;;  %vm579_vm9 = vcmp.eq.f32.partialorder %v578_v22, 8.507059e+37  ;;  %v1073_v9 = vmul.f32 0.01, %v2825_v41  ;;  %v1112_v22 = vld [vmem:[%s3747_s13 + $0x8] sm:$0xff] }
 0x266   :  { %2480 = vrcp.f32 %v2867_v11  ;;  %v542_v15 = vmul.f32 %v2473_v5, %v541_v12  ;;  %v595_v30 = vand.u32 2147483648, %v2867_v11  ;;  %v593_v45 = vand.u32 2147483647, %v2867_v11  ;;  %v696_v62 = vpop.f32.mrf.mxu1  ;;  %v742_v12 = vpop.f32.mrf.mxu3 }
 0x267   :  { %v557_v32 = vmul.f32 %v2863_v7, %v556_v16  ;;  %vm589_vm10 = vweird.f32 %v2867_v11  ;;  %v1074_v10 = vmul.f32 0.01, %v2827_v47  ;;  %vm1069_vm14 = vcmp.ge.f32.partialorder %v2825_v41, 0.0 }
 0x268   :  { %v543_v29 = vadd.f32 %v2473_v5, %v542_v15  ;;  %v596_v60 = vor.u32 1.1754944e-38, %v595_v30  ;;  %vm594_vm13 = vcmp.eq.f32.partialorder %v593_v45, 8.507059e+37  ;;  %vm1070_vm15 = vcmp.ge.f32.partialorder %v2827_v47, 0.0 }
 0x269   :  { %v2479_v18 = vpop.eup %2478  ;;  %v558_v40 = vadd.f32 %v2863_v7, %v557_v32  ;;  %v1071_v15 = vmul.f32 0.01, %v2816_v27  ;;  %v1072_v16 = vmul.f32 0.01, %v2818_v39  ;;  %v1077_v19 = vsel %vm1069_vm14, %v2825_v41, %v1073_v9 }
 0x26a   :  { %v570_v20 = vmul.f32 %v2479_v18, %v537_v6  ;;  %vm575_vm3 = vweird.f32 %v2479_v18  ;;  %v547_v26 = vsel %vm2879_vm0, %v2473_v5, %v543_v29  ;;  %vm1067_vm0 = vcmp.ge.f32.partialorder %v2816_v27, 0.0 }
 0x26b   :  { %vm576_vm6 = vmor %vm574_vm5, %vm575_vm3  ;;  %v552_v52 = vsel %vm2883_vm1, %v551_v49, %v547_v26  ;;  %v562_v55 = vsel %vm2901_vm8, %v2863_v7, %v558_v40  ;;  %vm1068_vm1 = vcmp.ge.f32.partialorder %v2818_v39, 0.0  ;;  %v1075_v34 = vsel %vm1067_vm0, %v2816_v27, %v1071_v15  ;;  %v1114_v26 = vld [vmem:[%s3747_s13 + $0x18] sm:$0xff]  ;;  %v1250_v40 = vld [vmem:[%s3748_s15 + $0x8] sm:$0xff] }
 0x26c   :  { %v2481_v33 = vpop.eup %2480  ;;  %v571_v35 = vsub.f32 1.0, %v570_v20  ;;  %v2914_v63 = vmul.f32 %v2858_v2, %v552_v52  ;;  %v567_v4 = vsel %vm564_vm12, %v566_v58, %v562_v55  ;;  %v2916_v6 = vmul.f32 %v670_v17, %v552_v52  ;;  %v2928_v2 = vld [vmem:[%s3745_s12] sm:$0xff]  ;;  %v1116_v49 = vld [vmem:[%s3747_s13 + $0x28] sm:$0xff] }
 0x26d   :  { %v585_v43 = vmul.f32 %v2481_v33, %v2867_v11  ;;  %vm590_vm7 = vweird.f32 %v2481_v33  ;;  %v719_v11 = vpop.f32.mrf.mxu2  ;;  %v1078_v20 = vsel %vm1070_vm15, %v2827_v47, %v1074_v10  ;;  %v2975_v29 = vmul.f32 %v2887_v23, %v552_v52  ;;  %v1113_v23 = vld [vmem:[%s3747_s13 + $0x10] sm:$0xff] }
 0x26e   :  { %v572_v21 = vmul.f32 %v2479_v18, %v571_v35  ;;  %vm591_vm11 = vmor %vm589_vm10, %vm590_vm7  ;;  %v2978_v32 = vmul.f32 %v2889_v25, %v567_v4  ;;  %v1076_v35 = vsel %vm1068_vm1, %v2818_v39, %v1072_v16  ;;  %v1249_v25 = vld [vmem:[%s3748_s15] sm:$0xff]  ;;  %vm1263_vm3 = vcmask 261120  }
 0x26f   :  { %v586_v48 = vsub.f32 1.0, %v585_v43  ;;  %v3001_v43 = vld [vmem:[%s3746_s2] sm:$0xff] }
 0x270   :  { %v573_v50 = vadd.f32 %v2479_v18, %v572_v21  ;;  %v1083_v46 = vunpack.c.l.bf16 %v3001_v43  ;;  %v1084_v38 = vunpack.c.h.bf16 %v3001_v43  ;;  %v1111_v21 = vld [vmem:[%s3747_s13] sm:$0xff] }
 0x271   :  { %v587_v31 = vmul.f32 %v2481_v33, %v586_v48  ;;  %v1115_v48 = vld [vmem:[%s3747_s13 + $0x20] sm:$0xff] }
 0x272   :  { %v577_v54 = vsel %vm576_vm6, %v2479_v18, %v573_v50 }
 0x273   :  { %v582_v56 = vsel %vm579_vm9, %v581_v44, %v577_v54  ;;  %v588_v57 = vadd.f32 %v2481_v33, %v587_v31 }
 0x274   :  { %v2909_v59 = vmul.f32 %v627_v13, %v582_v56  ;;  %v2911_v61 = vmul.f32 %v673_v51, %v582_v56  ;;  %v2935_v13 = vmul.f32 %v2860_v3, %v567_v4  ;;  %v2951_v3 = vld [vmem:[%s3746_s2 + $0x18] sm:$0xff]  ;;  %v2955_v17 = vmul.f32 %v719_v11, %v582_v56 }
 0x275   :  { %v592_v1 = vsel %vm591_vm11, %v2481_v33, %v588_v57  ;;  %v1089_v41 = vunpack.c.l.bf16 %v2951_v3  ;;  %v1090_v47 = vunpack.c.h.bf16 %v2951_v3  ;;  %v2987_v33 = vld [vmem:[%s3746_s2 + $0x8] sm:$0xff] }
 0x276   :  { %v597_v5 = vsel %vm594_vm13, %v596_v60, %v592_v1  ;;  %779 = vmatpush.msra.mxu0 %v2909_v59  ;;  %825 = vmatpush.msrb.mxu2 %v2911_v61  ;;  %v1085_v27 = vunpack.c.l.bf16 %v2987_v33  ;;  %v1086_v39 = vunpack.c.h.bf16 %v2987_v33 }
 0x277   :  { %v2921_v7 = vmul.f32 %v2869_v14, %v597_v5  ;;  %v2923_v8 = vmul.f32 %v696_v62, %v597_v5  ;;  %v2938_v14 = vmul.f32 %v2872_v28, %v567_v4  ;;  %v2957_v18 = vmul.f32 %v742_v12, %v597_v5  ;;  %v2972_v28 = vld [vmem:[%s3746_s2 + $0x10] sm:$0xff] }
 0x278   :  { %780 = vmatpush.msra.mxu0 %v2914_v63  ;;  %826 = vmatpush.msrb.mxu2 %v2916_v6  ;;  %v1087_v37 = vunpack.c.l.bf16 %v2972_v28  ;;  %v1088_v42 = vunpack.c.h.bf16 %v2972_v28  ;;  %v3398_v28 = vmul.f32 0.31415927, %v2672_v24 }
 0x279   :  { %802 = vmatpush.msra.mxu1 %v2921_v7  ;;  %848 = vmatpush.msrb.mxu3 %v2923_v8 }
 0x27a   :  { %2339 = vmatmul.msk.f32.vlgmr.msra.gmra.mxu0 %vm179_vm2, %v2928_v2  ;;  %2343 = vmatmul.msk.f32.vlgmr.msrb.gmra.mxu2 %vm179_vm2, %v2928_v2  ;;  %v2091_v33 = vand.u32 2139095040, %v3398_v28 }
 0x27b   :  { %803 = vmatpush.msra.mxu1 %v2935_v13  ;;  %849 = vmatpush.msrb.mxu3 %v2938_v14 }
 0x27c   :  { %2341 = vmatmul.msk.f32.vlgmr.msra.gmra.mxu1 %vm179_vm2, %v2928_v2  ;;  %2345 = vmatmul.msk.f32.vlgmr.msrb.gmra.mxu3 %vm179_vm2, %v2928_v2 }
 0x27d   :  { %871 = vmatpush.msrb.mxu0 %v2955_v17  ;;  %894 = vmatpush.msrb.mxu1 %v2957_v18 }
 0x27e   :  { %1185 = vmatpush.msra.mxu2 %v1077_v19  ;;  %1220 = vmatpush.msra.mxu3 %v1078_v20 }
 0x27f   :  { %872 = vmatpush.msrb.mxu0 %v2975_v29  ;;  %895 = vmatpush.msrb.mxu1 %v2978_v32 }
 0x280   :  { %1186 = vmatpush.msra.mxu2 %v1075_v34  ;;  %1221 = vmatpush.msra.mxu3 %v1076_v35 }
 0x281   :  { %1282 = vmatpush.msra.mxu0 %v1089_v41  ;;  %1305 = vmatpush.msra.mxu1 %v1090_v47 }
 0x282   :  { %2340 = vmatmul.msk.f32.gmra.mxu0 %vm179_vm2, %v758_v36  ;;  %2344 = vmatmul.msk.f32.gmra.mxu2 %vm179_vm2, %v758_v36 }
 0x283   :  { %1283 = vmatpush.msra.mxu0 %v1087_v37  ;;  %1306 = vmatpush.msra.mxu1 %v1088_v42 }
 0x284   :  { %2342 = vmatmul.msk.f32.gmra.mxu1 %vm179_vm2, %v758_v36  ;;  %2346 = vmatmul.msk.f32.gmra.mxu3 %vm179_vm2, %v758_v36 }
 0x285   :  { %1284 = vmatpush.msra.mxu0 %v1085_v27  ;;  %1307 = vmatpush.msra.mxu1 %v1086_v39 }
 0x287   :  { %1285 = vmatpush.msra.mxu0 %v1083_v46  ;;  %1308 = vmatpush.msra.mxu1 %v1084_v38 }
 0x28a   :  { %2347 = vmatmul.msk.f32.vlgmr.msrb.gmra.mxu0 %vm179_vm2, %v2928_v2  ;;  %2359 = vmatmul.msk.f32.vlgmr.msra.gmra.mxu2 %vm179_vm2, %v1111_v21 }
 0x28c   :  { %2349 = vmatmul.msk.f32.vlgmr.msrb.gmra.mxu1 %vm179_vm2, %v2928_v2  ;;  %2365 = vmatmul.msk.f32.vlgmr.msra.gmra.mxu3 %vm179_vm2, %v1111_v21 }
 0x292   :  { %2348 = vmatmul.msk.f32.gmra.mxu0 %vm179_vm2, %v758_v36  ;;  %2360 = vmatmul.msk.f32.gmra.mxu2 %vm179_vm2, %v1112_v22 }
 0x294   :  { %2350 = vmatmul.msk.f32.gmra.mxu1 %vm179_vm2, %v758_v36  ;;  %2366 = vmatmul.msk.f32.gmra.mxu3 %vm179_vm2, %v1112_v22 }
 0x29a   :  { %2361 = vmatmul.msk.f32.gmra.mxu2 %vm179_vm2, %v1113_v23  ;;  %2371 = vmatmul.msk.f32.vlgmr.msra.gmra.mxu0 %vm1263_vm3, %v1249_v25 }
 0x29c   :  { %2367 = vmatmul.msk.f32.gmra.mxu3 %vm179_vm2, %v1113_v23  ;;  %2373 = vmatmul.msk.f32.vlgmr.msra.gmra.mxu1 %vm1263_vm3, %v1249_v25 }
 0x2a2   :  { %2362 = vmatmul.msk.f32.gmra.mxu2 %vm179_vm2, %v1114_v26  ;;  %2372 = vmatmul.msk.f32.gmra.mxu0 %vm1263_vm3, %v1250_v40 }
 0x2a4   :  { %2368 = vmatmul.msk.f32.gmra.mxu3 %vm179_vm2, %v1114_v26  ;;  %2374 = vmatmul.msk.f32.gmra.mxu1 %vm1263_vm3, %v1250_v40 }
 0x2aa   :  { %2363 = vmatmul.msk.f32.gmra.mxu2 %vm179_vm2, %v1115_v48 }
 0x2ac   :  { %2369 = vmatmul.msk.f32.gmra.mxu3 %vm179_vm2, %v1115_v48 }
 0x2b2   :  { %2364 = vmatmul.msk.f32.gmra.mxu2 %vm179_vm2, %v1116_v49 }
 0x2b4   :  { %2370 = vmatmul.msk.f32.gmra.mxu3 %vm179_vm2, %v1116_v49 }
 0x2f7   :  { %v3073_v50 = vpop.f32.mrf.mxu0 }
 0x2f8   :  { %v923_v53 = vmul.f32 %v3073_v50, %v3073_v50  ;;  %v903_v12 = vmul.f32 %v3073_v50, %v2914_v63 }
 0x2f9   :  { %v3075_v30 = vpop.f32.mrf.mxu1 }
 0x2fa   :  { %v924_v1 = vmul.f32 %v3075_v30, %v3075_v30  ;;  %v904_v40 = vmul.f32 %v3075_v30, %v2935_v13 }
 0x2fd   :  { %v3079_v31 = vpop.f32.mrf.mxu2 }
 0x2fe   :  { %v927_v52 = vmul.f32 %v3079_v31, %v3079_v31  ;;  %v907_v2 = vmul.f32 %v3079_v31, %v2916_v6 }
 0x2ff   :  { %v3077_v44 = vpop.f32.mrf.mxu0  ;;  %v3087_v56 = vpop.f32.mrf.mxu3 }
 0x300   :  { %v931_v55 = vadd.f32 %v927_v52, %v923_v53  ;;  %v928_v60 = vmul.f32 %v3087_v56, %v3087_v56  ;;  %v925_v19 = vmul.f32 %v3077_v44, %v3077_v44  ;;  %v911_v36 = vadd.f32 %v907_v2, %v903_v12 }
 0x301   :  { %v3081_v45 = vpop.f32.mrf.mxu1  ;;  %v908_v21 = vmul.f32 %v3087_v56, %v2938_v14 }
 0x302   :  { %v932_v9 = vadd.f32 %v928_v60, %v924_v1  ;;  %v926_v22 = vmul.f32 %v3081_v45, %v3081_v45  ;;  %v905_v60 = vmul.f32 %v3077_v44, %v2909_v59 }
 0x303   :  { %v912_v1 = vadd.f32 %v908_v21, %v904_v40 }
 0x305   :  { %v3095_v4 = vpop.f32.mrf.mxu2 }
 0x306   :  { %v929_v11 = vmul.f32 %v3095_v4, %v3095_v4  ;;  %v909_v48 = vmul.f32 %v3095_v4, %v2911_v61 }
 0x307   :  { %v874_v51 = vpop.f32.mrf.mxu0  ;;  %v3101_v10 = vpop.f32.mrf.mxu3 }
 0x308   :  { %v935_v54 = vmul.f32 %v874_v51, %v874_v51  ;;  %v930_v20 = vmul.f32 %v3101_v10, %v3101_v10  ;;  %v915_v34 = vmul.f32 %v874_v51, %v2975_v29  ;;  %v933_v23 = vadd.f32 %v929_v11, %v925_v19 }
 0x309   :  { %v3089_v58 = vpop.f32.mrf.mxu1  ;;  %v913_v11 = vadd.f32 %v909_v48, %v905_v60  ;;  %v910_v12 = vmul.f32 %v3101_v10, %v2923_v8  ;;  %v906_v19 = vmul.f32 %v3081_v45, %v2921_v7 }
 0x30a   :  { %v939_v57 = vadd.f32 %v935_v54, %v931_v55  ;;  %v936_v5 = vmul.f32 %v3089_v58, %v3089_v58  ;;  %v934_v53 = vadd.f32 %v930_v20, %v926_v22  ;;  %v919_v54 = vadd.f32 %v915_v34, %v911_v36 }
 0x30b   :  { %v916_v55 = vmul.f32 %v3089_v58, %v2978_v32  ;;  %v914_v22 = vadd.f32 %v910_v12, %v906_v19  ;;  %v1037_v12 = vmul.f32 0.2, %v2955_v17 }
 0x30c   :  { %v955_v62 = vadd.f32 1e-06, %v939_v57  ;;  %v940_v15 = vadd.f32 %v936_v5, %v932_v9  ;;  %vm943_vm4 = vcmp.ge.f32.partialorder %v919_v54, 0.0 }
 0x30e   :  { %2482 = vrcp.f32 %v955_v62  ;;  %v956_v49 = vadd.f32 1e-06, %v940_v15  ;;  %v920_v15 = vadd.f32 %v916_v55, %v912_v1 }
 0x30f   :  { %v877_v16 = vpop.f32.mrf.mxu0 }
 0x310   :  { %v937_v25 = vmul.f32 %v877_v16, %v877_v16  ;;  %v917_v62 = vmul.f32 %v877_v16, %v2955_v17  ;;  %2484 = vrcp.f32 %v956_v49  ;;  %vm944_vm5 = vcmp.ge.f32.partialorder %v920_v15, 0.0 }
 0x311   :  { %v3112_v35 = vpop.f32.mrf.mxu1 }
 0x312   :  { %v938_v52 = vmul.f32 %v3112_v35, %v3112_v35  ;;  %v941_v57 = vadd.f32 %v937_v25, %v933_v23  ;;  %v921_v20 = vadd.f32 %v917_v62, %v913_v11  ;;  %v918_v34 = vmul.f32 %v3112_v35, %v2957_v18 }
 0x313   :  { %v3764_v25 = vmov 0.0   ;;  %v969_v11 = vmul.f32 0.2, %v2909_v59 }
 0x314   :  { %v2483_v26 = vpop.eup %2482  ;;  %v957_v2 = vadd.f32 1e-06, %v941_v57  ;;  %v942_v9 = vadd.f32 %v938_v52, %v934_v53  ;;  %vm945_vm6 = vcmp.ge.f32.partialorder %v921_v20, 0.0  ;;  %v922_v40 = vadd.f32 %v918_v34, %v914_v22 }
 0x315   :  { %v3129_v5 = vmul.f32 %v2483_v26, %v919_v54  ;;  %v3139_v26 = vsel %vm943_vm4, 1.0, %v3764_v25  ;;  %v3143_v52 = vsel %vm944_vm5, 1.0, %v3764_v25  ;;  %v3153_v57 = vsel %vm945_vm6, 1.0, %v3764_v25 }
 0x316   :  { %2486 = vrcp.f32 %v957_v2  ;;  %v958_v21 = vadd.f32 1e-06, %v942_v9  ;;  %v2485_v23 = vpop.eup %2484  ;;  %vm946_vm7 = vcmp.ge.f32.partialorder %v922_v40, 0.0  ;;  %v3158_v9 = vsub.f32 1.0, %v3143_v52 }
 0x317   :  { %v1043_v36 = vmul.f32 %v3129_v5, %v874_v51  ;;  %v3146_v51 = vsub.f32 1.0, %v3139_v26  ;;  %v979_v54 = vmul.f32 %v3129_v5, %v3073_v50  ;;  %v3150_v55 = vmul.f32 %v2485_v23, %v920_v15 }
 0x318   :  { %2488 = vrcp.f32 %v958_v21  ;;  %v3163_v50 = vsub.f32 1.0, %v3153_v57  ;;  %v3172_v34 = vsel %vm946_vm7, 1.0, %v3764_v25  ;;  %v1041_v21 = vmul.f32 %v3153_v57, %v2955_v17 }
 0x319   :  { %v1047_v49 = vsub.f32 %v2975_v29, %v1043_v36  ;;  %v983_v36 = vsub.f32 %v2914_v63, %v979_v54 }
 0x31b   :  { %v1051_v2 = vmul.f32 %v1047_v49, %v3146_v51  ;;  %v987_v49 = vmul.f32 %v983_v36, %v3146_v51 }
 0x31c   :  { %v2487_v48 = vpop.eup %2486 }
 0x31d   :  { %v965_v53 = vmul.f32 %v2487_v48, %v921_v20  ;;  %v1044_v20 = vmul.f32 %v3150_v55, %v3089_v58  ;;  %v971_v58 = vmul.f32 %v3139_v26, %v2914_v63 }
 0x31e   :  { %v2489_v1 = vpop.eup %2488 }
 0x31f   :  { %v981_v60 = vmul.f32 %v965_v53, %v3077_v44  ;;  %v1045_v62 = vmul.f32 %v965_v53, %v877_v16  ;;  %v966_v19 = vmul.f32 %v2489_v1, %v922_v40  ;;  %v980_v16 = vmul.f32 %v3150_v55, %v3075_v30 }
 0x320   :  { %v973_v30 = vmul.f32 %v3153_v57, %v2909_v59  ;;  %v991_v1 = vadd.f32 %v987_v49, %v971_v58  ;;  %v1013_v0 = vmul.f32 %v965_v53, %v3095_v4  ;;  %v1040_v4 = vmul.f32 %v3143_v52, %v2978_v32 }
 0x321   :  { %v1049_v15 = vsub.f32 %v2955_v17, %v1045_v62  ;;  %v985_v44 = vsub.f32 %v2909_v59, %v981_v60  ;;  %v982_v23 = vmul.f32 %v966_v19, %v3081_v45  ;;  %v1046_v40 = vmul.f32 %v966_v19, %v3112_v35 }
 0x322   :  { %v3187_v60 = vsub.f32 1.0, %v3172_v34  ;;  %v1048_v35 = vsub.f32 %v2978_v32, %v1044_v20  ;;  %v984_v59 = vsub.f32 %v2935_v13, %v980_v16  ;;  %v995_v25 = vmul.f32 0.8, %v991_v1 }
 0x323   :  { %v1053_v22 = vmul.f32 %v1049_v15, %v3163_v50  ;;  %v989_v48 = vmul.f32 %v985_v44, %v3163_v50  ;;  %v1050_v17 = vsub.f32 %v2957_v18, %v1046_v40  ;;  %v986_v45 = vsub.f32 %v2921_v7, %v982_v23 }
 0x324   :  { %v1042_v15 = vmul.f32 %v3172_v34, %v2957_v18  ;;  %v974_v40 = vmul.f32 %v3172_v34, %v2921_v7  ;;  %v1039_v20 = vmul.f32 %v3139_v26, %v2975_v29  ;;  %v988_v16 = vmul.f32 %v984_v59, %v3158_v9 }
 0x325   :  { %v1057_v54 = vadd.f32 %v1053_v22, %v1041_v21  ;;  %v993_v62 = vadd.f32 %v989_v48, %v973_v30  ;;  %v1054_v44 = vmul.f32 %v1050_v17, %v3187_v60  ;;  %v990_v36 = vmul.f32 %v986_v45, %v3187_v60 }
 0x326   :  { %v967_v30 = vmul.f32 0.2, %v2914_v63  ;;  %v1055_v17 = vadd.f32 %v1051_v2, %v1039_v20  ;;  %v1052_v45 = vmul.f32 %v1048_v35, %v3158_v9  ;;  %v972_v1 = vmul.f32 %v3143_v52, %v2935_v13 }
 0x327   :  { %v1061_v21 = vmul.f32 0.8, %v1057_v54  ;;  %v997_v22 = vmul.f32 0.8, %v993_v62  ;;  %v1058_v23 = vadd.f32 %v1054_v44, %v1042_v15  ;;  %v994_v58 = vadd.f32 %v990_v36, %v974_v40 }
 0x328   :  { %v970_v54 = vmul.f32 0.2, %v2921_v7  ;;  %v1038_v62 = vmul.f32 0.2, %v2957_v18  ;;  %v999_v59 = vadd.f32 %v995_v25, %v967_v30  ;;  %v1035_v2 = vmul.f32 0.2, %v2975_v29 }
 0x329   :  { %v1001_v48 = vadd.f32 %v997_v22, %v969_v11  ;;  %v1065_v49 = vadd.f32 %v1061_v21, %v1037_v12  ;;  %v998_v15 = vmul.f32 0.8, %v994_v58  ;;  %v1062_v63 = vmul.f32 0.8, %v1058_v23  ;;  %v3214_v7 = vld [vmem:[%s3749_s17] sm:$0xff] }
 0x32a   :  { %v1014_v11 = vmul.f32 %v966_v19, %v3101_v10  ;;  %v992_v12 = vadd.f32 %v988_v16, %v972_v1  ;;  %v1059_v44 = vmul.f32 0.8, %v1055_v17  ;;  %v1011_v25 = vmul.f32 %v3129_v5, %v3079_v31 }
 0x32b   :  { %1338 = vmatpush.msrb.mxu0 %v1001_v48  ;;  %1430 = vmatpush.msrb.mxu2 %v1065_v49  ;;  %v1002_v18 = vadd.f32 %v998_v15, %v970_v54  ;;  %v1066_v35 = vadd.f32 %v1062_v63, %v1038_v62  ;;  %v968_v10 = vmul.f32 0.2, %v2935_v13  ;;  %v1056_v19 = vadd.f32 %v1052_v45, %v1040_v4  ;;  %v1317_v45 = vld [vmem:[%s3749_s17 + $0x8] sm:$0xff] }
 0x32c   :  { %v996_v53 = vmul.f32 0.8, %v992_v12  ;;  %v1063_v29 = vadd.f32 %v1059_v44, %v1035_v2  ;;  %v1017_v36 = vsub.f32 %v2911_v61, %v1013_v0  ;;  %v1012_v21 = vmul.f32 %v3150_v55, %v3087_v56  ;;  %v1287_v2 = vpop.f32.mrf.mxu0 }
 0x32d   :  { %1339 = vmatpush.msrb.mxu0 %v999_v59  ;;  %1361 = vmatpush.msrb.mxu1 %v1002_v18  ;;  %v1036_v40 = vmul.f32 0.2, %v2978_v32  ;;  %v1060_v31 = vmul.f32 0.8, %v1056_v19  ;;  %v1009_v13 = vmul.f32 %v3153_v57, %v2911_v61  ;;  %v1018_v20 = vsub.f32 %v2923_v8, %v1014_v11 }
 0x32e   :  { %2375 = vmatmul.msk.f32.vlgmr.msrb.gmra.mxu0 %vm179_vm2, %v3214_v7  ;;  %1453 = vmatpush.msrb.mxu3 %v1066_v35  ;;  %v1000_v22 = vadd.f32 %v996_v53, %v968_v10  ;;  %v1021_v5 = vmul.f32 %v1017_v36, %v3163_v50  ;;  %v1015_v0 = vsub.f32 %v2916_v6, %v1011_v25  ;;  %v1005_v16 = vmul.f32 0.2, %v2911_v61  ;;  %v1310_v35 = vpop.f32.mrf.mxu1  ;;  %v1151_v10 = vpop.permute.xlu0 %1150  ;;  %v1092_v36 = vld [vmem:[%s3750_s3 + $0x8] sm:$0xff] }
 0x32f   :  { %1431 = vmatpush.msrb.mxu2 %v1063_v29  ;;  %v1064_v23 = vadd.f32 %v1060_v31, %v1036_v40  ;;  %v1010_v56 = vmul.f32 %v3172_v34, %v2923_v8  ;;  %v1022_v55 = vmul.f32 %v1018_v20, %v3187_v60  ;;  %v1007_v57 = vmul.f32 %v3139_v26, %v2916_v6  ;;  %v1091_v40 = vld [vmem:[%s3750_s3] sm:$0xff]  ;;  %v1261_v20 = vpop.permute.xlu1 %1260 }
 0x330   :  { %1362 = vmatpush.msrb.mxu1 %v1000_v22  ;;  %2383 = vmatmul.msk.f32.vlgmr.msrb.gmra.mxu2 %vm179_vm2, %v3214_v7  ;;  %v1025_v32 = vadd.f32 %v1021_v5, %v1009_v13  ;;  %v1019_v50 = vmul.f32 %v1015_v0, %v3146_v51  ;;  %v1016_v30 = vsub.f32 %v2938_v14, %v1012_v21  ;;  %v1006_v26 = vmul.f32 0.2, %v2923_v8  ;;  %v1146_v0 = vpop.permute.xlu2 %1145 }
 0x331   :  { %2377 = vmatmul.msk.f32.vlgmr.msrb.gmra.mxu1 %vm179_vm2, %v3214_v7  ;;  %1454 = vmatpush.msrb.mxu3 %v1064_v23  ;;  %v1026_v58 = vadd.f32 %v1022_v55, %v1010_v56  ;;  %v1008_v34 = vmul.f32 %v3143_v52, %v2938_v14  ;;  %v1003_v61 = vmul.f32 0.2, %v2916_v6  ;;  %v1004_v52 = vmul.f32 0.2, %v2938_v14  ;;  %v3265_v6 = vpop.f32.mrf.mxu2  ;;  %v3267_v14 = vpop.f32.mrf.mxu3 }
 0x332   :  { %v1029_v48 = vmul.f32 0.8, %v1025_v32  ;;  %2385 = vmatmul.msk.f32.vlgmr.msrb.gmra.mxu3 %vm179_vm2, %v3214_v7  ;;  %v1023_v49 = vadd.f32 %v1019_v50, %v1007_v57  ;;  %v1020_v60 = vmul.f32 %v1016_v30, %v3158_v9  ;;  %v1095_v5 = vunpack.c.l.bf16 %v1092_v36 }
 0x333   :  { %v1030_v51 = vmul.f32 0.8, %v1026_v58  ;;  %v1093_v55 = vunpack.c.l.bf16 %v1091_v40 }
 0x334   :  { %v1033_v17 = vadd.f32 %v1029_v48, %v1005_v16  ;;  %v1027_v54 = vmul.f32 0.8, %v1023_v49  ;;  %v1024_v62 = vadd.f32 %v1020_v60, %v1008_v34  ;;  %v1290_v44 = vpop.f32.mrf.mxu0  ;;  %v1096_v49 = vunpack.c.h.bf16 %v1092_v36  ;;  %v2358_v34 = vld [vmem:[%s3750_s3 + $0x28] sm:$0xff] }
 0x335   :  { %v1034_v1 = vadd.f32 %v1030_v51, %v1006_v26  ;;  %v3291_v32 = vadd.f32 %v1290_v44, %v1261_v20 }
 0x336   :  { %2376 = vmatmul.msk.f32.gmra.mxu0 %vm179_vm2, %v1317_v45  ;;  %v1031_v15 = vadd.f32 %v1027_v54, %v1003_v61  ;;  %v1028_v9 = vmul.f32 0.8, %v1024_v62  ;;  %v1313_v53 = vpop.f32.mrf.mxu1  ;;  %v1256_v31 = vpop.permute.xlu0 %1255  ;;  %v2357_v54 = vld [vmem:[%s3750_s3 + $0x20] sm:$0xff] }
 0x337   :  { %1384 = vmatpush.msra.mxu0 %v1033_v17  ;;  %1407 = vmatpush.msra.mxu1 %v1034_v1  ;;  %v3289_v23 = vadd.f32 %v1287_v2, %v1256_v31  ;;  %v3303_v60 = vadd.f32 %v1310_v35, %v1256_v31  ;;  %v3305_v17 = vadd.f32 %v1313_v53, %v1261_v20  ;;  %v3319_v35 = vld [vmem:[%s3751_s18] sm:$0xff]  ;;  %v1110_v53 = vunpack.c.h.bf16 %v2358_v34 }
 0x338   :  { %2384 = vmatmul.msk.f32.gmra.mxu2 %vm179_vm2, %v1317_v45  ;;  %v1032_v8 = vadd.f32 %v1028_v9, %v1004_v52 }
 0x339   :  { %1385 = vmatpush.msra.mxu0 %v1031_v15  ;;  %2378 = vmatmul.msk.f32.gmra.mxu1 %vm179_vm2, %v1317_v45  ;;  %v3269_v63 = vpop.f32.mrf.mxu2  ;;  %v3271_v59 = vpop.f32.mrf.mxu3  ;;  %v1109_v15 = vunpack.c.l.bf16 %v2358_v34 }
 0x33a   :  { %1408 = vmatpush.msra.mxu1 %v1032_v8  ;;  %2386 = vmatmul.msk.f32.gmra.mxu3 %vm179_vm2, %v1317_v45 }
 0x33e   :  { %2379 = vmatmul.msk.f32.vlgmr.msra.gmra.mxu0 %vm179_vm2, %v3214_v7 }
 0x341   :  { %2381 = vmatmul.msk.f32.vlgmr.msra.gmra.mxu1 %vm179_vm2, %v3214_v7  ;;  %v3273_v11 = vpop.f32.mrf.mxu2  ;;  %v3275_v12 = vpop.f32.mrf.mxu3 }
 0x346   :  { %2380 = vmatmul.msk.f32.gmra.mxu0 %vm179_vm2, %v1317_v45 }
 0x349   :  { %2382 = vmatmul.msk.f32.gmra.mxu1 %vm179_vm2, %v1317_v45  ;;  %v3277_v18 = vpop.f32.mrf.mxu2  ;;  %v3279_v7 = vpop.f32.mrf.mxu3  ;;  %v1094_v45 = vunpack.c.h.bf16 %v1091_v40  ;;  %v2356_v40 = vld [vmem:[%s3750_s3 + $0x18] sm:$0xff] }
 0x34a   :  { %v1102_v34 = vunpack.c.l.bf16 %v2356_v40 }
 0x351   :  { %v1200_v4 = vpop.f32.mrf.mxu2  ;;  %v1235_v25 = vpop.f32.mrf.mxu3 }
 0x352   :  { %v3293_v56 = vadd.f32 %v1200_v4, %v1146_v0  ;;  %v3307_v26 = vadd.f32 %v1235_v25, %v1146_v0  ;;  %v1107_v4 = vunpack.c.l.bf16 %v2357_v54 }
 0x354   :  { %v1462_v51 = vmul.f32 %v3293_v56, %v1093_v55  ;;  %v1463_v44 = vmul.f32 %v3307_v26, %v1094_v45  ;;  %v1486_v31 = vmul.f32 %v3293_v56, %v1107_v4 }
 0x359   :  { %v1203_v19 = vpop.f32.mrf.mxu2  ;;  %v1238_v22 = vpop.f32.mrf.mxu3 }
 0x35a   :  { %v3287_v13 = vadd.f32 %v1203_v19, %v1151_v10  ;;  %v3295_v57 = vadd.f32 %v1238_v22, %v1151_v10 }
 0x35c   :  { %v1464_v48 = vmul.f32 %v3287_v13, %v1095_v5  ;;  %v1465_v8 = vmul.f32 %v3295_v57, %v1096_v49  ;;  %v1108_v5 = vunpack.c.h.bf16 %v2357_v54  ;;  %v1489_v55 = vmul.f32 %v3295_v57, %v1110_v53 }
 0x35e   :  { %v1487_v45 = vmul.f32 %v3307_v26, %v1108_v5 }
 0x3ab   :  { %v1341_v29 = vpop.f32.mrf.mxu0 }
 0x3ac   :  { %v1466_v16 = vmul.f32 %v1341_v29, %v3289_v23 }
 0x3ae   :  { %v1364_v21 = vpop.f32.mrf.mxu1  ;;  %v1470_v52 = vadd.f32 %v1466_v16, %v1462_v51  ;;  %v1141_v16 = vpop.permute.xlu1 %1140  ;;  %v3342_v51 = vld [vmem:[%s3751_s18 + $0x8] sm:$0xff] }
 0x3af   :  { %v1467_v9 = vmul.f32 %v1364_v21, %v3303_v60  ;;  %v1488_v21 = vmul.f32 %v3287_v13, %v1109_v15  ;;  %v1103_v15 = vunpack.c.h.bf16 %v2356_v40 }
 0x3b1   :  { %v1471_v19 = vadd.f32 %v1467_v9, %v1463_v44  ;;  %v1476_v9 = vmul.f32 %v3287_v13, %v1102_v34  ;;  %v1198_v44 = vadd.f32 %v3277_v18, %v1141_v16  ;;  %v2521_v34 = vmov 2131351028  }
 0x3b3   :  { %v1433_v50 = vpop.f32.mrf.mxu2  ;;  %v1344_v30 = vpop.f32.mrf.mxu0 }
 0x3b4   :  { %v1468_v58 = vmul.f32 %v1344_v30, %v3291_v32  ;;  %v1490_v36 = vmul.f32 %v1433_v50, %v3289_v23  ;;  %v2355_v50 = vld [vmem:[%s3750_s3 + $0x10] sm:$0xff] }
 0x3b5   :  { %v1456_v62 = vpop.f32.mrf.mxu3  ;;  %v1100_v54 = vunpack.c.l.bf16 %v2355_v50 }
 0x3b6   :  { %v1472_v61 = vadd.f32 %v1468_v58, %v1464_v48  ;;  %v1367_v1 = vpop.f32.mrf.mxu1  ;;  %v1494_v48 = vadd.f32 %v1490_v36, %v1486_v31  ;;  %v1491_v58 = vmul.f32 %v1456_v62, %v3303_v60 }
 0x3b7   :  { %v1469_v2 = vmul.f32 %v1367_v1, %v3305_v17  ;;  %v1474_v4 = vmul.f32 %v3293_v56, %v1100_v54  ;;  %v1126_v56 = vpop.permute.xlu1 %1125 }
 0x3b8   :  { %1530 = vmatpush.msrb.mxu0 %v1472_v61  ;;  %v1495_v62 = vadd.f32 %v1491_v58, %v1487_v45  ;;  %v1189_v31 = vadd.f32 %v3265_v6, %v1126_v56 }
 0x3b9   :  { %v1473_v25 = vadd.f32 %v1469_v2, %v1465_v8  ;;  %v1136_v2 = vpop.permute.xlu2 %1135 }
 0x3ba   :  { %1531 = vmatpush.msrb.mxu0 %v1470_v52  ;;  %v1195_v53 = vadd.f32 %v3273_v11, %v1136_v2  ;;  %v1233_v11 = vadd.f32 %v3279_v7, %v1141_v16 }
 0x3bb   :  { %v1436_v10 = vpop.f32.mrf.mxu2  ;;  %v1387_v29 = vpop.f32.mrf.mxu0  ;;  %2387 = vmatmul.msk.f32.vlgmr.msrb.gmra.mxu0 %vm179_vm2, %v3319_v35  ;;  %1553 = vmatpush.msrb.mxu1 %v1473_v25  ;;  %v1101_v25 = vunpack.c.h.bf16 %v2355_v50 }
 0x3bc   :  { %v1492_v22 = vmul.f32 %v1436_v10, %v3291_v32  ;;  %v1478_v52 = vmul.f32 %v1387_v29, %v3289_v23  ;;  %v1131_v23 = vpop.permute.xlu0 %1130  ;;  %v1248_v6 = vmul.f32 %v1233_v11, %v1090_v47 }
 0x3bd   :  { %1554 = vmatpush.msrb.mxu1 %v1471_v19  ;;  %v1459_v0 = vpop.f32.mrf.mxu3  ;;  %v1192_v18 = vadd.f32 %v3269_v63, %v1131_v23  ;;  %v1245_v63 = vmul.f32 %v1195_v53, %v1087_v37  ;;  %v1241_v37 = vmul.f32 %v1189_v31, %v1083_v46 }
 0x3be   :  { %v1496_v20 = vadd.f32 %v1492_v22, %v1488_v21  ;;  %v1410_v30 = vpop.f32.mrf.mxu1  ;;  %2389 = vmatmul.msk.f32.vlgmr.msrb.gmra.mxu1 %vm179_vm2, %v3319_v35  ;;  %v1493_v49 = vmul.f32 %v1459_v0, %v3305_v17  ;;  %v1482_v29 = vadd.f32 %v1478_v52, %v1474_v4  ;;  %v1247_v21 = vmul.f32 %v1198_v44, %v1089_v41 }
 0x3bf   :  { %v1479_v13 = vmul.f32 %v1410_v30, %v3303_v60  ;;  %v1475_v22 = vmul.f32 %v3307_v26, %v1101_v25  ;;  %v1243_v7 = vmul.f32 %v1192_v18, %v1085_v27  ;;  %v1227_v60 = vadd.f32 %v3271_v59, %v1131_v23 }
 0x3c0   :  { %1622 = vmatpush.msra.mxu0 %v1496_v20  ;;  %v1497_v61 = vadd.f32 %v1493_v49, %v1489_v55  ;;  %v2516_v59 = vmov 2102212464   ;;  %v2517_v26 = vmov 920167782   ;;  %v2518_v20 = vmov 1326507024  }
 0x3c1   :  { %v1483_v41 = vadd.f32 %v1479_v13, %v1475_v22  ;;  %v1244_v3 = vmul.f32 %v1227_v60, %v1086_v39  ;;  %v2088_v55 = vand.u32 2147483647, %v3398_v28  ;;  %v2519_v30 = vmov 683565275  }
 0x3c2   :  { %1623 = vmatpush.msra.mxu0 %v1494_v48  ;;  %1645 = vmatpush.msra.mxu1 %v1497_v61  ;;  %v2520_v48 = vmov 2475754826  }
 0x3c3   :  { %v1390_v1 = vpop.f32.mrf.mxu0  ;;  %2388 = vmatmul.msk.f32.gmra.mxu0 %vm179_vm2, %v3342_v51 }
 0x3c4   :  { %v1480_v8 = vmul.f32 %v1390_v1, %v3291_v32  ;;  %1646 = vmatpush.msra.mxu1 %v1495_v62  ;;  %v1477_v32 = vmul.f32 %v3295_v57, %v1103_v15  ;;  %v1230_v57 = vadd.f32 %v3275_v12, %v1136_v2  ;;  %v1224_v12 = vadd.f32 %v3267_v14, %v1126_v56 }
 0x3c5   :  { %v2095_v15 = vand.u32 8388607, %v2088_v55 }
 0x3c6   :  { %v1484_v10 = vadd.f32 %v1480_v8, %v1476_v9  ;;  %v1413_v19 = vpop.f32.mrf.mxu1  ;;  %2390 = vmatmul.msk.f32.gmra.mxu1 %vm179_vm2, %v3342_v51  ;;  %v1246_v27 = vmul.f32 %v1230_v57, %v1088_v42  ;;  %v1242_v47 = vmul.f32 %v1224_v12, %v1084_v38  ;;  %v2092_v42 = vshrl.u32 %v2091_v33, 23 }
 0x3c7   :  { %v1481_v36 = vmul.f32 %v1413_v19, %v3305_v17  ;;  %v2096_v4 = vor.u32 8388608, %v2095_v15 }
 0x3c8   :  { %1576 = vmatpush.msra.mxu2 %v1484_v10  ;;  %v2427_v39 = vadd.s32 4294967169, %v2092_v42 }
 0x3c9   :  { %v1485_v40 = vadd.f32 %v1481_v36, %v1477_v32 }
 0x3ca   :  { %1577 = vmatpush.msra.mxu2 %v1482_v29  ;;  %v2098_v46 = vadd.s32 1, %v2427_v39  ;;  %v3445_v29 = vshll.u32 %v2096_v4, 8 }
 0x3cb   :  { %2391 = vmatmul.msk.f32.vlgmr.msra.gmra.mxu2 %vm179_vm2, %v3319_v35  ;;  %2395 = vmatmul.msk.f32.vlgmr.msra.gmra.mxu0 %vm179_vm2, %v3319_v35 }
 0x3cc   :  { %1599 = vmatpush.msra.mxu3 %v1485_v40  ;;  %1745 = vmatpush.msrb.mxu2 %v1247_v21  ;;  %vm2099_vm8 = vcmp.gt.s32.totalorder %v2098_v46, 0  ;;  %v2137_v18 = vand.u32 65535, %v3445_v29  ;;  %v2138_v22 = vshrl.u32 %v3445_v29, 16 }
 0x3cd   :  { %v2100_v14 = vsel %vm2099_vm8, %v2098_v46, 0  ;;  %vm1722_vm8 = vcmask 392192  }
 0x3ce   :  { %1600 = vmatpush.msra.mxu3 %v1483_v41  ;;  %1746 = vmatpush.msrb.mxu2 %v1245_v63  ;;  %v2102_v43 = vand.u32 31, %v2100_v14  ;;  %v3406_v50 = vshrl.u32 %v2100_v14, 5 }
 0x3cf   :  { %2393 = vmatmul.msk.f32.vlgmr.msra.gmra.mxu3 %vm179_vm2, %v3319_v35  ;;  %2397 = vmatmul.msk.f32.vlgmr.msra.gmra.mxu1 %vm179_vm2, %v3319_v35 }
 0x3d0   :  { %1774 = vmatpush.msrb.mxu3 %v1248_v6  ;;  %1747 = vmatpush.msrb.mxu2 %v1243_v7  ;;  %v3401_v38 = vsub.s32 32, %v2102_v43  ;;  %v2114_v17 = vshll.u32 %v2516_v59, %v2102_v43  ;;  %v2117_v5 = vshll.u32 %v2517_v26, %v2102_v43  ;;  %v2105_v16 = vshll.u32 %v2519_v30, %v2102_v43 }
 0x3d1   :  { %v2108_v58 = vshll.u32 %v2520_v48, %v2102_v43  ;;  %v2111_v45 = vshll.u32 %v2521_v34, %v2102_v43  ;;  %vm2123_vm9 = vcmp.lt.s32.totalorder %v3406_v50, 4  ;;  %vm2120_vm10 = vcmp.lt.s32.totalorder %v3406_v50, 1 }
 0x3d2   :  { %1775 = vmatpush.msrb.mxu3 %v1246_v27  ;;  %1748 = vmatpush.msrb.mxu2 %v1241_v37  ;;  %v2115_v35 = vshrl.u32 %v2517_v26, %v3401_v38  ;;  %v2118_v0 = vshrl.u32 %v2518_v20, %v3401_v38  ;;  %v2106_v49 = vshrl.u32 %v2520_v48, %v3401_v38  ;;  %vm2122_vm11 = vcmp.lt.s32.totalorder %v3406_v50, 3 }
 0x3d3   :  { %2392 = vmatmul.msk.f32.gmra.mxu2 %vm179_vm2, %v3342_v51  ;;  %2396 = vmatmul.msk.f32.gmra.mxu0 %vm179_vm2, %v3342_v51  ;;  %v2112_v61 = vshrl.u32 %v2516_v59, %v3401_v38  ;;  %vm2121_vm12 = vcmp.lt.s32.totalorder %v3406_v50, 2 }
 0x3d4   :  { %1776 = vmatpush.msrb.mxu3 %v1244_v3  ;;  %v2116_v54 = vor.u32 %v2115_v35, %v2114_v17  ;;  %v2119_v1 = vor.u32 %v2118_v0, %v2117_v5  ;;  %v3415_v62 = vor.u32 %v2106_v49, %v2105_v16  ;;  %v3789_v5 = vmov 0  }
 0x3d5   :  { %v3419_v9 = vor.u32 %v2112_v61, %v2111_v45 }
 0x3d6   :  { %1777 = vmatpush.msrb.mxu3 %v1242_v47  ;;  %v2129_v2 = vsel %vm2123_vm9, %v2116_v54, 920167782  ;;  %v2133_v44 = vsel %vm2123_vm9, %v2119_v1, 1326507024 }
 0x3d7   :  { %2394 = vmatmul.msk.f32.gmra.mxu3 %vm179_vm2, %v3342_v51  ;;  %2398 = vmatmul.msk.f32.gmra.mxu1 %vm179_vm2, %v3342_v51  ;;  %v2109_v51 = vshrl.u32 %v2521_v34, %v3401_v38  ;;  %v2130_v10 = vsel %vm2122_vm11, %v3419_v9, %v2129_v2  ;;  %v2134_v19 = vsel %vm2122_vm11, %v2116_v54, %v2133_v44 }
 0x3d9   :  { %v3417_v52 = vor.u32 %v2109_v51, %v2108_v58 }
 0x3db   :  { %v2128_v25 = vsel %vm2120_vm10, %v3415_v62, %v3417_v52  ;;  %v2132_v53 = vsel %vm2120_vm10, %v3417_v52, %v3419_v9 }
 0x3dc   :  { %v2131_v13 = vsel %vm2121_vm12, %v2128_v25, %v2130_v10  ;;  %v2135_v32 = vsel %vm2121_vm12, %v2132_v53, %v2134_v19 }
 0x3dd   :  { %v2140_v56 = vshrl.u32 %v2135_v32, 16  ;;  %v2162_v21 = vshrl.u32 %v2131_v13, 16  ;;  %v2161_v40 = vand.u32 65535, %v2131_v13  ;;  %v2139_v31 = vand.u32 65535, %v2135_v32 }
 0x3df   :  { %v3457_v63 = vmul.u32 %v2140_v56, %v2137_v18  ;;  %v3459_v57 = vmul.u32 %v2162_v21, %v2137_v18  ;;  %v2163_v41 = vmul.u32 %v2161_v40, %v2137_v18  ;;  %v3461_v7 = vmul.u32 %v2161_v40, %v2138_v22 }
 0x3e0   :  { %v2141_v60 = vmul.u32 %v2139_v31, %v2137_v18  ;;  %v3463_v6 = vmul.u32 %v2139_v31, %v2138_v22  ;;  %v2144_v17 = vmul.u32 %v2140_v56, %v2138_v22  ;;  %v2166_v26 = vmul.u32 %v2162_v21, %v2138_v22 }
 0x3e1   :  { %v2145_v37 = vshll.u32 %v3457_v63, 16  ;;  %v2167_v12 = vshll.u32 %v3459_v57, 16  ;;  %v2169_v3 = vshll.u32 %v3461_v7, 16  ;;  %v2146_v13 = vshrl.u32 %v3457_v63, 16 }
 0x3e2   :  { %v2147_v47 = vshll.u32 %v3463_v6, 16  ;;  %v2168_v18 = vshrl.u32 %v3459_v57, 16  ;;  %v2104_v63 = vshrl.u32 %v2519_v30, %v3401_v38  ;;  %v2170_v57 = vshrl.u32 %v3461_v7, 16 }
 0x3e3   :  { %v2151_v33 = vadd.s32 %v2145_v37, %v2141_v60  ;;  %vm2171_vm13 = vc.u32 %v2163_v41, %v2167_v12  ;;  %v3471_v42 = vadd.s32 %v2167_v12, %v2163_v41  ;;  %vm2149_vm14 = vc.u32 %v2141_v60, %v2145_v37 }
 0x3e4   :  { %v2150_v20 = vsel %vm2149_vm14, 1, %v3789_v5  ;;  %v2172_v0 = vsel %vm2171_vm13, 1, %v3789_v5 }
 0x3e5   :  { %vm2153_vm15 = vc.u32 %v2151_v33, %v2147_v47  ;;  %vm2175_vm0 = vc.u32 %v3471_v42, %v2169_v3  ;;  %v2174_v45 = vadd.s32 %v2172_v0, %v2166_v26  ;;  %v2152_v54 = vadd.s32 %v2150_v20, %v2144_v17 }
 0x3e6   :  { %v2154_v1 = vsel %vm2153_vm15, 1, %v3789_v5  ;;  %v2176_v15 = vsel %vm2175_vm0, 1, %v3789_v5  ;;  %v2148_v33 = vshrl.u32 %v3463_v6, 16  ;;  %v2124_v6 = vsel %vm2120_vm10, %v2104_v63, %v3415_v62 }
 0x3e7   :  { %v2156_v32 = vadd.s32 %v2154_v1, %v2152_v54  ;;  %v2178_v56 = vadd.s32 %v2176_v15, %v2174_v45  ;;  %v3546_v0 = vadd.s32 %v3471_v42, %v2169_v3  ;;  %vm2090_vm15 = vcmp.lt.s32.totalorder %v3398_v28, 0 }
 0x3e8   :  { %vm3601_vm0 = vcmp.le.f32.partialorder %v2088_v55, 0.7853982 }
 0x438   :  { %v3421_v8 = vpop.f32.mrf.mxu0 }
 0x439   :  { %v1654_v14 = vmul.f32 %v3421_v8, %v3421_v8 }
 0x43b   :  { %v3443_v23 = vpop.f32.mrf.mxu1 }
 0x43c   :  { %v1655_v48 = vmul.f32 %v3443_v23, %v3443_v23 }
 0x440   :  { %v3451_v36 = vpop.f32.mrf.mxu0 }
 0x441   :  { %v1656_v44 = vmul.f32 %v3451_v36, %v3451_v36 }
 0x443   :  { %v3454_v11 = vpop.f32.mrf.mxu1 }
 0x444   :  { %v1657_v22 = vmul.f32 %v3454_v11, %v3454_v11 }
 0x448   :  { %v3467_v27 = vpop.f32.mrf.mxu0 }
 0x449   :  { %v1666_v59 = vmul.f32 %v3467_v27, %v3467_v27 }
 0x44c   :  { %v3475_v46 = vpop.f32.mrf.mxu1 }
 0x44d   :  { %v1667_v34 = vmul.f32 %v3475_v46, %v3475_v46 }
 0x44e   :  { %v3473_v39 = vpop.f32.mrf.mxu2 }
 0x44f   :  { %v1658_v43 = vmul.f32 %v3473_v39, %v3473_v39 }
 0x450   :  { %v3498_v51 = vpop.f32.mrf.mxu0 }
 0x451   :  { %v1662_v35 = vadd.f32 %v1658_v43, %v1654_v14  ;;  %v1668_v10 = vmul.f32 %v3498_v51, %v3498_v51  ;;  %v2157_v14 = vadd.s32 %v2156_v32, %v2146_v13  ;;  %v2179_v43 = vadd.s32 %v2178_v56, %v2168_v18 }
 0x452   :  { %v3488_v16 = vpop.f32.mrf.mxu3 }
 0x453   :  { %v1659_v58 = vmul.f32 %v3488_v16, %v3488_v16  ;;  %v3494_v49 = vadd.f32 %v1666_v59, %v1662_v35  ;;  %v2125_v35 = vsel %vm2123_vm9, %v3419_v9, 2102212464  ;;  %v3541_v20 = vadd.s32 %v2157_v14, %v2148_v33  ;;  %v1502_v33 = vld [vmem:[%s3752_s20] sm:$0xff] }
 0x454   :  { %v3513_v53 = vpop.f32.mrf.mxu1  ;;  %v2126_v9 = vsel %vm2122_vm11, %v3417_v52, %v2125_v35 }
 0x455   :  { %v1663_v61 = vadd.f32 %v1659_v58, %v1655_v48  ;;  %2490 = vrsqrt.f32 %v3494_v49  ;;  %v1669_v41 = vmul.f32 %v3513_v53, %v3513_v53  ;;  %v2180_v48 = vadd.s32 %v2179_v43, %v2170_v57 }
 0x456   :  { %v3502_v2 = vpop.f32.mrf.mxu2  ;;  %v2127_v62 = vsel %vm2121_vm12, %v2124_v6, %v2126_v9  ;;  %vm2183_vm1 = vc.u32 %v3541_v20, %v3546_v0  ;;  %vm1681_vm6 = vcmp.eq.f32.partialorder %v3494_v49, inf  ;;  %v1684_v57 = vand.u32 2147483648, %v3494_v49 }
 0x457   :  { %v3507_v4 = vadd.f32 %v1667_v34, %v1663_v61  ;;  %v1660_v25 = vmul.f32 %v3502_v2, %v3502_v2  ;;  %v2184_v7 = vadd.s32 1, %v2180_v48  ;;  %vm1683_vm7 = vcmp.eq.f32.partialorder %v3494_v49, 0.0 }
 0x459   :  { %v1664_v19 = vadd.f32 %v1660_v25, %v1656_v44  ;;  %2492 = vrsqrt.f32 %v3507_v4  ;;  %v2181_v44 = vmul.u32 %v3445_v29, %v2127_v62  ;;  %vm1693_vm10 = vcmp.eq.f32.partialorder %v3507_v4, inf }
 0x45a   :  { %v3518_v21 = vpop.f32.mrf.mxu3  ;;  %vm1695_vm12 = vcmp.eq.f32.partialorder %v3507_v4, 0.0 }
 0x45b   :  { %v1661_v40 = vmul.f32 %v3518_v21, %v3518_v21  ;;  %v1672_v31 = vadd.f32 %v1668_v10, %v1664_v19  ;;  %v2491_v60 = vpop.eup %2490  ;;  %v2185_v10 = vsel %vm2183_vm1, %v2184_v7, %v2180_v48 }
 0x45c   :  { %v1675_v12 = vmul.f32 %v2491_v60, %v3494_v49  ;;  %v2186_v18 = vadd.s32 %v2185_v10, %v2181_v44 }
 0x45d   :  { %v1665_v37 = vadd.f32 %v1661_v40, %v1657_v22  ;;  %2494 = vrsqrt.f32 %v1672_v31  ;;  %vm1705_vm4 = vcmp.eq.f32.partialorder %v1672_v31, inf  ;;  %vm1707_vm5 = vcmp.eq.f32.partialorder %v1672_v31, 0.0 }
 0x45e   :  { %v1676_v17 = vmul.f32 %v2491_v60, %v1675_v12  ;;  %v1708_v40 = vand.u32 2147483648, %v1672_v31  ;;  %v2187_v12 = vadd.s32 536870912, %v2186_v18 }
 0x45f   :  { %v2493_v47 = vpop.eup %2492  ;;  %v3531_v59 = vadd.f32 %v1669_v41, %v1665_v37 }
 0x460   :  { %v1687_v26 = vmul.f32 %v2493_v47, %v3507_v4  ;;  %v1677_v38 = vmul.f32 0.5, %v1676_v17  ;;  %v2188_v35 = vshrl.u32 %v2187_v12, 30 }
 0x461   :  { %2496 = vrsqrt.f32 %v3531_v59  ;;  %vm1717_vm9 = vcmp.eq.f32.partialorder %v3531_v59, inf  ;;  %vm1719_vm11 = vcmp.eq.f32.partialorder %v3531_v59, 0.0 }
 0x462   :  { %v1688_v30 = vmul.f32 %v2493_v47, %v1687_v26  ;;  %v1678_v34 = vsub.f32 1.5, %v1677_v38  ;;  %v1696_v26 = vand.u32 2147483648, %v3507_v4 }
 0x463   :  { %v2495_v5 = vpop.eup %2494 }
 0x464   :  { %v1699_v58 = vmul.f32 %v2495_v5, %v1672_v31  ;;  %v1689_v45 = vmul.f32 0.5, %v1688_v30  ;;  %v1679_v42 = vmul.f32 %v2491_v60, %v1678_v34  ;;  %v2189_v30 = vshll.u32 %v2188_v35, 30 }
 0x466   :  { %v1700_v61 = vmul.f32 %v2495_v5, %v1699_v58  ;;  %v1690_v15 = vsub.f32 1.5, %v1689_v45  ;;  %v1680_v32 = vmul.f32 %v1679_v42, %v3494_v49  ;;  %v2182_v58 = vadd.s32 %v3546_v0, %v3541_v20 }
 0x467   :  { %v2497_v54 = vpop.eup %2496 }
 0x468   :  { %v1701_v1 = vmul.f32 0.5, %v1700_v61  ;;  %v1711_v3 = vmul.f32 %v2497_v54, %v3531_v59  ;;  %v1691_v50 = vmul.f32 %v2493_v47, %v1690_v15  ;;  %v1682_v29 = vsel %vm1681_vm6, %v3494_v49, %v1680_v32 }
 0x469   :  { %v1685_v14 = vsel %vm1683_vm7, %v1684_v57, %v1682_v29  ;;  %vm2231_vm6 = vweird.f32 %v3398_v28  ;;  %vm2244_vm7 = vcmp.le.f32.partialorder %v2672_v24, 10.0 }
 0x46a   :  { %v1702_v52 = vsub.f32 1.5, %v1701_v1  ;;  %v1712_v25 = vmul.f32 %v2497_v54, %v1711_v3  ;;  %v1692_v37 = vmul.f32 %v1691_v50, %v3507_v4 }
 0x46c   :  { %v1703_v19 = vmul.f32 %v2495_v5, %v1702_v52  ;;  %v1713_v13 = vmul.f32 0.5, %v1712_v25  ;;  %v1694_v17 = vsel %vm1693_vm10, %v3507_v4, %v1692_v37  ;;  %v2190_v4 = vsub.s32 %v2186_v18, %v2189_v30  ;;  %v2248_v30 = vld [vmem:[%s3753_s4] sm:$0x3] }
 0x46d   :  { %v1697_v38 = vsel %vm1695_vm12, %v1696_v26, %v1694_v17 }
 0x46e   :  { %v1704_v56 = vmul.f32 %v1703_v19, %v1672_v31  ;;  %v1714_v22 = vsub.f32 1.5, %v1713_v13  ;;  %vm2191_vm13 = vcmp.lt.s32.totalorder %v2190_v4, 0 }
 0x470   :  { %v1706_v41 = vsel %vm1705_vm4, %v1672_v31, %v1704_v56  ;;  %v1715_v60 = vmul.f32 %v2497_v54, %v1714_v22  ;;  %v1720_v31 = vand.u32 2147483648, %v3531_v59  ;;  %v2212_v22 = vsub.s32 4, %v2188_v35 }
 0x471   :  { %v1709_v63 = vsel %vm1707_vm5, %v1708_v40, %v1706_v41 }
 0x472   :  { %1749 = vmatpush.msrb.mxu2 %v1709_v63  ;;  %v1716_v47 = vmul.f32 %v1715_v60, %v3531_v59  ;;  %v2213_v55 = vsel %vm2090_vm15, %v2212_v22, %v2188_v35  ;;  %v3792_v35 = vmov 0.0  }
 0x473   :  { %v2215_v37 = vsel %vm3601_vm0, 0, %v2213_v55 }
 0x474   :  { %v1718_v43 = vsel %vm1717_vm9, %v3531_v59, %v1716_v47  ;;  %1750 = vmatpush.msrb.mxu2 %v1685_v14  ;;  %v1503_v59 = vld [vmem:[%s3752_s20 + $0x8] sm:$0xff]  ;;  %v2232_v12 = vand.u32 3, %v2215_v37 }
 0x475   :  { %v1721_v49 = vsel %vm1719_vm11, %v1720_v31, %v1718_v43  ;;  %2399 = vmatmul.msk.f32.vlgmr.msrb.gmra.mxu2 %vm1722_vm8, %v1502_v33 }
 0x476   :  { %1778 = vmatpush.msrb.mxu3 %v1721_v49  ;;  %1997 = vmatpush.msra.mxu2 %v3502_v2  ;;  %v2192_v2 = vsub.s32 0, %v2190_v4  ;;  %vm2234_vm1 = vcmp.eq.s32.totalorder %v2232_v12, 0  ;;  %vm2237_vm4 = vcmp.eq.s32.totalorder %v2232_v12, 2  ;;  %vm2233_vm5 = vcmp.lt.s32.totalorder %v2232_v12, 2 }
 0x478   :  { %1779 = vmatpush.msrb.mxu3 %v1697_v38  ;;  %1998 = vmatpush.msra.mxu2 %v3473_v39  ;;  %v1504_v39 = vld [vmem:[%s3752_s20 + $0x10] sm:$0xff]  ;;  %v2430_v38 = vsel %vm2244_vm7, 1.0, %v3792_v35 }
 0x479   :  { %2403 = vmatmul.msk.f32.vlgmr.msrb.gmra.mxu3 %vm1722_vm8, %v1502_v33 }
 0x47a   :  { %2020 = vmatpush.msra.mxu3 %v3518_v21  ;;  %v2193_v21 = vsel %vm2191_vm13, %v2192_v2, %v2190_v4 }
 0x47b   :  { %v2194_v5 = vclz %v2193_v21 }
 0x47c   :  { %2021 = vmatpush.msra.mxu3 %v3488_v16  ;;  %v1505_v16 = vld [vmem:[%s3752_s20 + $0x18] sm:$0xff] }
 0x47d   :  { %2400 = vmatmul.msk.f32.gmra.mxu2 %vm1722_vm8, %v1503_v59  ;;  %v2428_v6 = vadd.s32 4294967294, %v2194_v5 }
 0x47f   :  { %vm2429_vm14 = vcmp.lt.s32.totalorder %v2428_v6, 0 }
 0x480   :  { %v2197_v48 = vsel %vm2429_vm14, 0, %v2428_v6 }
 0x481   :  { %2404 = vmatmul.msk.f32.gmra.mxu3 %vm1722_vm8, %v1503_v59  ;;  %v2202_v9 = vsub.s32 4294967266, %v2197_v48  ;;  %v2198_v34 = vsub.s32 32, %v2197_v48  ;;  %v2199_v61 = vshll.u32 %v2190_v4, %v2197_v48 }
 0x483   :  { %v2203_v45 = vadd.s32 127, %v2202_v9  ;;  %v2200_v54 = vshrl.u32 %v2182_v58, %v2198_v34  ;;  %v1500_v58 = vld [vmem:[%s3755_s19] sm:$0xff] }
 0x485   :  { %2401 = vmatmul.msk.f32.gmra.mxu2 %vm1722_vm8, %v1504_v39  ;;  %v2204_v62 = vshll.u32 %v2203_v45, 23  ;;  %v2201_v7 = vor.u32 %v2200_v54, %v2199_v61 }
 0x487   :  { %v2205_v1 = vor.u32 4788187, %v2204_v62  ;;  %v2208_v42 = vcvt.s32.f32 %v2201_v7  ;;  %v1501_v7 = vld [vmem:[%s3755_s19 + $0x8] sm:$0xff] }
 0x489   :  { %2405 = vmatmul.msk.f32.gmra.mxu3 %vm1722_vm8, %v1504_v39  ;;  %v2206_v3 = vand.u32 2147483647, %v2205_v1 }
 0x48b   :  { %v2209_v15 = vmul.f32 %v2208_v42, %v2206_v3 }
 0x48d   :  { %2402 = vmatmul.msk.f32.gmra.mxu2 %vm1722_vm8, %v1505_v16  ;;  %v2210_v44 = vxor.u32 2147483648, %v2209_v15 }
 0x48f   :  { %v2211_v20 = vsel %vm2090_vm15, %v2210_v44, %v2209_v15 }
 0x490   :  { %v2214_v0 = vsel %vm3601_vm0, %v3398_v28, %v2211_v20  ;;  %v1506_v20 = vld [vmem:[%s3756_s21] sm:$0xff] }
 0x491   :  { %2406 = vmatmul.msk.f32.gmra.mxu3 %vm1722_vm8, %v1505_v16  ;;  %v2216_v25 = vmul.f32 %v2214_v0, %v2214_v0 }
 0x493   :  { %v2224_v10 = vmul.f32 -0.00019511016, %v2216_v25  ;;  %v2217_v19 = vmul.f32 -0.001358992, %v2216_v25 }
 0x495   :  { %v2225_v13 = vadd.f32 0.008332121, %v2224_v10  ;;  %v2218_v32 = vadd.f32 0.041655596, %v2217_v19  ;;  %2419 = vmatmul.msk.f32.vlgmr.msra.gmra.mxu2 %vm179_vm2, %v1500_v58 }
 0x497   :  { %v2226_v50 = vmul.f32 %v2225_v13, %v2216_v25  ;;  %v2219_v18 = vmul.f32 %v2218_v32, %v2216_v25 }
 0x499   :  { %v2227_v56 = vadd.f32 -0.16666654, %v2226_v50  ;;  %v2220_v40 = vadd.f32 -0.4999988, %v2219_v18  ;;  %2421 = vmatmul.msk.f32.vlgmr.msra.gmra.mxu3 %vm179_vm2, %v1500_v58 }
 0x49b   :  { %v2228_v41 = vmul.f32 %v2227_v56, %v2216_v25  ;;  %v2221_v60 = vmul.f32 %v2220_v40, %v2216_v25  ;;  %v1507_v25 = vld [vmem:[%s3756_s21 + $0x8] sm:$0xff] }
 0x49d   :  { %v2229_v29 = vadd.f32 1.0, %v2228_v41  ;;  %v2222_v63 = vadd.f32 1.0, %v2221_v60  ;;  %2420 = vmatmul.msk.f32.gmra.mxu2 %vm179_vm2, %v1501_v7 }
 0x49f   :  { %v2230_v57 = vmul.f32 %v2229_v29, %v2214_v0  ;;  %v2238_v33 = vxor.u32 2147483648, %v2222_v63 }
 0x4a1   :  { %v2235_v47 = vxor.u32 2147483648, %v2230_v57  ;;  %v2239_v14 = vsel %vm2237_vm4, %v2238_v33, %v2230_v57  ;;  %2422 = vmatmul.msk.f32.gmra.mxu3 %vm179_vm2, %v1501_v7 }
 0x4a3   :  { %v2236_v31 = vsel %vm2234_vm1, %v2222_v63, %v2235_v47 }
 0x4a4   :  { %v2240_v43 = vsel %vm2233_vm5, %v2236_v31, %v2239_v14 }
 0x4a5   :  { %v2241_v17 = vsel %vm2231_vm6, nan, %v2240_v43 }
 0x4a6   :  { %v2242_v49 = vadd.f32 1.0, %v2241_v17 }
 0x4a8   :  { %v2243_v26 = vmul.f32 0.5, %v2242_v49 }
 0x4aa   :  { %v2247_v59 = vmul.f32 %v2430_v38, %v2243_v26 }
 0x4ac   :  { %v2249_v4 = vmul.f32 %v2248_v30, %v2247_v59 }
 0x4ae   :  { %v3616_v39 = vperm.slane %v2249_v4, 0  ;;  %v3618_v21 = vperm.slane %v2249_v4, 1 }
 0x4f8   :  { %v1752_v2 = vpop.f32.mrf.mxu2 }
 0x4f9   :  { %v2255_v28 = vmul.f32 %v3616_v39, %v1752_v2 }
 0x4fc   :  { %v1781_v5 = vpop.f32.mrf.mxu3 }
 0x4fd   :  { %v2256_v16 = vmul.f32 %v3618_v21, %v1781_v5 }
 0x4ff   :  { %v2275_v24 = vpack.c.bf16 %v2256_v16, %v2255_v28 }
 0x500   :  { %v1755_v6 = vpop.f32.mrf.mxu2 }
 0x501   :  { %2285 = vst [vmem:[%s3754_s23] sm:$0xff] %v2275_v24  ;;  %v2257_v48 = vmul.f32 %v3616_v39, %v1755_v6 }
 0x504   :  { %v1784_v9 = vpop.f32.mrf.mxu3 }
 0x505   :  { %v2258_v34 = vmul.f32 %v3618_v21, %v1784_v9 }
 0x507   :  { %v2276_v45 = vpack.c.bf16 %v2258_v34, %v2257_v48 }
 0x508   :  { %v1758_v61 = vpop.f32.mrf.mxu2 }
 0x509   :  { %2286 = vst [vmem:[%s3754_s23 + $0x8] sm:$0xff] %v2276_v45  ;;  %v2259_v54 = vmul.f32 %v3616_v39, %v1758_v61 }
 0x50c   :  { %v1787_v62 = vpop.f32.mrf.mxu3 }
 0x50d   :  { %v2260_v1 = vmul.f32 %v3618_v21, %v1787_v62 }
 0x50f   :  { %v2277_v3 = vpack.c.bf16 %v2260_v1, %v2259_v54 }
 0x510   :  { %v1761_v42 = vpop.f32.mrf.mxu2 }
 0x511   :  { %2287 = vst [vmem:[%s3754_s23 + $0x10] sm:$0xff] %v2277_v3  ;;  %1821 = vmatpush.msrb.mxu0 %v1761_v42  ;;  %v2261_v15 = vmul.f32 %v3616_v39, %v1761_v42 }
 0x513   :  { %1822 = vmatpush.msrb.mxu0 %v1758_v61 }
 0x514   :  { %v1790_v44 = vpop.f32.mrf.mxu3 }
 0x515   :  { %v2262_v52 = vmul.f32 %v3618_v21, %v1790_v44  ;;  %1844 = vmatpush.msrb.mxu1 %v1790_v44  ;;  %1823 = vmatpush.msrb.mxu0 %v1755_v6 }
 0x517   :  { %v2278_v0 = vpack.c.bf16 %v2262_v52, %v2261_v15  ;;  %1845 = vmatpush.msrb.mxu1 %v1787_v62  ;;  %1824 = vmatpush.msrb.mxu0 %v1752_v2 }
 0x518   :  { %2407 = vmatmul.msk.f32.vlgmr.msrb.gmra.mxu0 %vm1263_vm3, %v1506_v20  ;;  %v2000_v30 = vpop.f32.mrf.mxu2 }
 0x519   :  { %2288 = vst [vmem:[%s3754_s23 + $0x18] sm:$0xff] %v2278_v0  ;;  %1846 = vmatpush.msrb.mxu1 %v1784_v9  ;;  %1951 = vmatpush.msra.mxu0 %v3451_v36 }
 0x51b   :  { %1847 = vmatpush.msrb.mxu1 %v1781_v5  ;;  %1952 = vmatpush.msra.mxu0 %v3421_v8  ;;  %v1796_v8 = vpop.permute.xlu2 %1795 }
 0x51c   :  { %2409 = vmatmul.msk.f32.vlgmr.msrb.gmra.mxu1 %vm1263_vm3, %v1506_v20  ;;  %v2023_v34 = vpop.f32.mrf.mxu3 }
 0x51d   :  { %2043 = vmatpush.msrb.mxu0 %v3498_v51  ;;  %1974 = vmatpush.msra.mxu1 %v3454_v11 }
 0x51f   :  { %2044 = vmatpush.msrb.mxu0 %v3467_v27  ;;  %1975 = vmatpush.msra.mxu1 %v3443_v23 }
 0x520   :  { %2408 = vmatmul.msk.f32.gmra.mxu0 %vm1263_vm3, %v1507_v25 }
 0x521   :  { %2066 = vmatpush.msrb.mxu1 %v3513_v53  ;;  %v1801_v53 = vpop.permute.xlu0 %1800 }
 0x523   :  { %2067 = vmatpush.msrb.mxu1 %v3475_v46 }
 0x524   :  { %2410 = vmatmul.msk.f32.gmra.mxu1 %vm1263_vm3, %v1507_v25 }
 0x528   :  { %2415 = vmatmul.msk.f32.vlgmr.msra.gmra.mxu0 %vm179_vm2, %v1500_v58 }
 0x52c   :  { %2417 = vmatmul.msk.f32.vlgmr.msra.gmra.mxu1 %vm179_vm2, %v1500_v58 }
 0x530   :  { %2416 = vmatmul.msk.f32.gmra.mxu0 %vm179_vm2, %v1501_v7 }
 0x534   :  { %2418 = vmatmul.msk.f32.gmra.mxu1 %vm179_vm2, %v1501_v7 }
 0x538   :  { %2423 = vmatmul.msk.f32.vlgmr.msrb.gmra.mxu0 %vm179_vm2, %v1500_v58 }
 0x53c   :  { %2425 = vmatmul.msk.f32.vlgmr.msrb.gmra.mxu1 %vm179_vm2, %v1500_v58 }
 0x540   :  { %2424 = vmatmul.msk.f32.gmra.mxu0 %vm179_vm2, %v1501_v7 }
 0x544   :  { %2426 = vmatmul.msk.f32.gmra.mxu1 %vm179_vm2, %v1501_v7 }
 0x595   :  { %v1826_v23 = vpop.f32.mrf.mxu0 }
 0x596   :  { %v1827_v36 = vadd.f32 %v1826_v23, %v1796_v8 }
 0x598   :  { %v2411_v11 = vmul.f32 -1.442695, %v1827_v36 }
 0x599   :  { %v1849_v27 = vpop.f32.mrf.mxu1 }
 0x59a   :  { %2498 = vpow2.f32 %v2411_v11  ;;  %v1850_v46 = vadd.f32 %v1849_v27, %v1796_v8 }
 0x59c   :  { %v2412_v51 = vmul.f32 -1.442695, %v1850_v46 }
 0x59d   :  { %v1829_v10 = vpop.f32.mrf.mxu0 }
 0x59e   :  { %2500 = vpow2.f32 %v2412_v51  ;;  %v1830_v19 = vadd.f32 %v1829_v10, %v1801_v53 }
 0x5a0   :  { %v2499_v13 = vpop.eup %2498  ;;  %v2413_v32 = vmul.f32 -1.442695, %v1830_v19 }
 0x5a1   :  { %v1867_v50 = vadd.f32 1.0, %v2499_v13  ;;  %v1852_v18 = vpop.f32.mrf.mxu1 }
 0x5a2   :  { %2502 = vpow2.f32 %v2413_v32  ;;  %v1853_v56 = vadd.f32 %v1852_v18, %v1801_v53 }
 0x5a3   :  { %2504 = vrcp.f32 %v1867_v50  ;;  %v1880_v14 = vand.u32 2147483647, %v1867_v50  ;;  %v1882_v43 = vand.u32 2147483648, %v1867_v50  ;;  %vm1876_vm3 = vweird.f32 %v1867_v50 }
 0x5a4   :  { %v2501_v22 = vpop.eup %2500  ;;  %v2414_v40 = vmul.f32 -1.442695, %v1853_v56  ;;  %v2003_v56 = vpop.f32.mrf.mxu2 }
 0x5a5   :  { %v1868_v41 = vadd.f32 1.0, %v2501_v22  ;;  %v1954_v55 = vpop.f32.mrf.mxu0  ;;  %vm1881_vm9 = vcmp.eq.f32.partialorder %v1880_v14, 8.507059e+37  ;;  %v1883_v2 = vor.u32 1.1754944e-38, %v1882_v43 }
 0x5a6   :  { %2506 = vpow2.f32 %v2414_v40 }
 0x5a7   :  { %2508 = vrcp.f32 %v1868_v41  ;;  %v1895_v35 = vand.u32 2147483647, %v1868_v41  ;;  %v1897_v28 = vand.u32 2147483648, %v1868_v41  ;;  %vm1891_vm11 = vweird.f32 %v1868_v41 }
 0x5a8   :  { %v2503_v60 = vpop.eup %2502 }
 0x5a9   :  { %v2505_v29 = vpop.eup %2504  ;;  %v1869_v37 = vadd.f32 1.0, %v2503_v60  ;;  %v1977_v63 = vpop.f32.mrf.mxu1  ;;  %vm3683_vm12 = vcmp.eq.f32.partialorder %v1895_v35, 8.507059e+37  ;;  %v1898_v1 = vor.u32 1.1754944e-38, %v1897_v28 }
 0x5aa   :  { %v1872_v57 = vmul.f32 %v2505_v29, %v1867_v50  ;;  %vm1877_vm2 = vweird.f32 %v2505_v29 }
 0x5ab   :  { %2510 = vrcp.f32 %v1869_v37  ;;  %vm1878_vm8 = vmor %vm1876_vm3, %vm1877_vm2  ;;  %v1910_v5 = vand.u32 2147483647, %v1869_v37  ;;  %vm1906_vm14 = vweird.f32 %v1869_v37  ;;  %v1912_v42 = vand.u32 2147483648, %v1869_v37 }
 0x5ac   :  { %v2507_v12 = vpop.eup %2506  ;;  %v1873_v47 = vsub.f32 1.0, %v1872_v57 }
 0x5ad   :  { %v2509_v33 = vpop.eup %2508  ;;  %v3676_v31 = vadd.f32 1.0, %v2507_v12  ;;  %v3678_v17 = vpop.f32.mrf.mxu0  ;;  %vm3687_vm15 = vcmp.eq.f32.partialorder %v1910_v5, 8.507059e+37  ;;  %v1913_v51 = vor.u32 1.1754944e-38, %v1912_v42 }
 0x5ae   :  { %v1874_v49 = vmul.f32 %v2505_v29, %v1873_v47  ;;  %v1887_v26 = vmul.f32 %v2509_v33, %v1868_v41  ;;  %vm1892_vm10 = vweird.f32 %v2509_v33  ;;  %v2026_v47 = vpop.f32.mrf.mxu3 }
 0x5af   :  { %2512 = vrcp.f32 %v3676_v31  ;;  %vm1893_vm13 = vmor %vm1891_vm11, %vm1892_vm10  ;;  %v1925_v53 = vand.u32 2147483647, %v3676_v31  ;;  %v1927_v10 = vand.u32 2147483648, %v3676_v31  ;;  %vm1921_vm5 = vweird.f32 %v3676_v31 }
 0x5b0   :  { %v1875_v38 = vadd.f32 %v2505_v29, %v1874_v49  ;;  %v1888_v59 = vsub.f32 1.0, %v1887_v26 }
 0x5b1   :  { %v2511_v4 = vpop.eup %2510  ;;  %v3681_v16 = vpop.f32.mrf.mxu1  ;;  %vm1926_vm7 = vcmp.eq.f32.partialorder %v1925_v53, 8.507059e+37 }
 0x5b2   :  { %v1879_v24 = vsel %vm1878_vm8, %v2505_v29, %v1875_v38  ;;  %v1889_v6 = vmul.f32 %v2509_v33, %v1888_v59  ;;  %v1902_v48 = vmul.f32 %v2511_v4, %v1869_v37  ;;  %vm1907_vm0 = vweird.f32 %v2511_v4 }
 0x5b3   :  { %v1884_v9 = vsel %vm1881_vm9, %v1883_v2, %v1879_v24  ;;  %vm1908_vm1 = vmor %vm1906_vm14, %vm1907_vm0 }
 0x5b4   :  { %v2075_v45 = vmul.f32 %v1954_v55, %v1884_v9  ;;  %v1890_v61 = vadd.f32 %v2509_v33, %v1889_v6  ;;  %v1903_v54 = vsub.f32 1.0, %v1902_v48  ;;  %v2079_v62 = vmul.f32 %v2000_v30, %v1884_v9 }
 0x5b5   :  { %v2513_v7 = vpop.eup %2512  ;;  %v2046_v15 = vpop.f32.mrf.mxu0 }
 0x5b6   :  { %v1894_v44 = vsel %vm1893_vm13, %v2509_v33, %v1890_v61  ;;  %v1904_v52 = vmul.f32 %v2511_v4, %v1903_v54  ;;  %v1917_v20 = vmul.f32 %v2513_v7, %v3676_v31  ;;  %v2263_v0 = vmul.f32 %v3616_v39, %v2075_v45 }
 0x5b7   :  { %v1899_v25 = vsel %vm3683_vm12, %v1898_v1, %v1894_v44  ;;  %v2267_v8 = vmul.f32 %v3616_v39, %v2079_v62  ;;  %v2083_v23 = vmul.f32 %v2046_v15, %v1884_v9  ;;  %vm1922_vm4 = vweird.f32 %v2513_v7 }
 0x5b8   :  { %v2076_v36 = vmul.f32 %v1977_v63, %v1899_v25  ;;  %v1905_v11 = vadd.f32 %v2511_v4, %v1904_v52  ;;  %v1918_v27 = vsub.f32 1.0, %v1917_v20  ;;  %v2080_v46 = vmul.f32 %v2023_v34, %v1899_v25  ;;  %vm1923_vm6 = vmor %vm1921_vm5, %vm1922_vm4 }
 0x5b9   :  { %v2069_v19 = vpop.f32.mrf.mxu1  ;;  %v2271_v40 = vmul.f32 %v3616_v39, %v2083_v23  ;;  %v1928_v63 = vor.u32 1.1754944e-38, %v1927_v10 }
 0x5ba   :  { %v2264_v13 = vmul.f32 %v3618_v21, %v2076_v36  ;;  %v1909_v32 = vsel %vm1908_vm1, %v2511_v4, %v1905_v11  ;;  %v1919_v50 = vmul.f32 %v2513_v7, %v1918_v27  ;;  %v2268_v18 = vmul.f32 %v3618_v21, %v2080_v46 }
 0x5bb   :  { %v1914_v22 = vsel %vm3687_vm15, %v1913_v51, %v1909_v32  ;;  %v2084_v41 = vmul.f32 %v2069_v19, %v1899_v25 }
 0x5bc   :  { %v2279_v55 = vpack.c.bf16 %v2264_v13, %v2263_v0  ;;  %v2077_v60 = vmul.f32 %v3678_v17, %v1914_v22  ;;  %v1920_v29 = vadd.f32 %v2513_v7, %v1919_v50  ;;  %v2281_v37 = vpack.c.bf16 %v2268_v18, %v2267_v8 }
 0x5bd   :  { %v2272_v57 = vmul.f32 %v3618_v21, %v2084_v41  ;;  %v2081_v12 = vmul.f32 %v2003_v56, %v1914_v22  ;;  %v2049_v33 = vpop.f32.mrf.mxu0 }
 0x5be   :  { %2289 = vst [vmem:[%s3754_s23 + $0x20] sm:$0xff] %v2279_v55  ;;  %v1924_v31 = vsel %vm1923_vm6, %v2513_v7, %v1920_v29  ;;  %v2085_v14 = vmul.f32 %v2049_v33, %v1914_v22  ;;  %v2265_v49 = vmul.f32 %v3616_v39, %v2077_v60 }
 0x5bf   :  { %v1929_v43 = vsel %vm1926_vm7, %v1928_v63, %v1924_v31  ;;  %2291 = vst [vmem:[%s3754_s23 + $0x30] sm:$0xff] %v2281_v37  ;;  %v2283_v17 = vpack.c.bf16 %v2272_v57, %v2271_v40  ;;  %v2269_v35 = vmul.f32 %v3616_v39, %v2081_v12 }
 0x5c0   :  { %v2078_v26 = vmul.f32 %v3681_v16, %v1929_v43  ;;  %v2082_v38 = vmul.f32 %v2026_v47, %v1929_v43  ;;  %v2273_v2 = vmul.f32 %v3616_v39, %v2085_v14 }
 0x5c1   :  { %2293 = vst [vmem:[%s3754_s23 + $0x40] sm:$0xff] %v2283_v17  ;;  %v2072_v59 = vpop.f32.mrf.mxu1 }
 0x5c2   :  { %v2266_v30 = vmul.f32 %v3618_v21, %v2078_v26  ;;  %v2270_v4 = vmul.f32 %v3618_v21, %v2082_v38  ;;  %v2086_v28 = vmul.f32 %v2072_v59, %v1929_v43 }
 0x5c4   :  { %v2280_v5 = vpack.c.bf16 %v2266_v30, %v2265_v49  ;;  %v2282_v24 = vpack.c.bf16 %v2270_v4, %v2269_v35  ;;  %v2274_v6 = vmul.f32 %v3618_v21, %v2086_v28 }
 0x5c6   :  { %2290 = vst [vmem:[%s3754_s23 + $0x28] sm:$0xff] %v2280_v5  ;;  %v2284_v16 = vpack.c.bf16 %v2274_v6, %v2273_v2 }
 0x5c7   :  { %2292 = vst [vmem:[%s3754_s23 + $0x38] sm:$0xff] %v2282_v24 }
 0x5c8   :  { %2294 = vst [vmem:[%s3754_s23 + $0x48] sm:$0xff] %v2284_v16 }

</bundles_post_ra>
